<compile_context>
chip_gen: v5e
topology: v5e:2x2
jax: 0.10.0
libtpu: 0.0.40
codegen_flags: <defaults>
</compile_context>

<pallas_src>
import functools

import jax
import jax.numpy as jnp
from jax import lax
from jax.experimental import pallas as pl
from jax.experimental.pallas import tpu as pltpu


# ------------------------------------------------------------------ helpers --
def _leaky_relu(x, slope=0.2):
    return jnp.where(x > 0, x, slope * x)


def _dot(a, b):
    return jnp.dot(a, b, preferred_element_type=jnp.float32)


def _dot_nt(a, b):
    # a: (M, K), b: (N, K) -> (M, N)  (contract last dims; no explicit transpose)
    return lax.dot_general(a, b, (((1,), (1,)), ((), ())),
                           preferred_element_type=jnp.float32)


# ---------------- fused EdgeConv: kNN + gather + 2x(conv+BN+LeakyReLU) + max --
def _edgeconv_kernel(xr_ref, xf_ref, w1n_ref, w1c_ref, s1_ref, t1_ref,
                     w2_ref, s2_ref, t2_ref, o_ref, *, K):
    xr = xr_ref[0]                                   # (tm, C) f32  row tile (centrals)
    xf = xf_ref[0]                                   # (N,  C) f32  all candidate points
    tm, C = xr.shape
    N = xf.shape[0]

    # Pairwise neighbor scores, f32 so the kNN selection matches the f32 reference.
    #   score[i, j] = 2<x_i, x_j> - ||x_j||^2
    # (the reference's row-constant -||x_i||^2 does not affect per-row top-K ranking).
    inner = _dot_nt(xr, xf)                                          # (tm, N)  MXU
    sqj = _dot_nt(jnp.ones((1, C), jnp.float32), xf * xf)            # (1, N) ||x_j||^2
    score = 2.0 * inner - sqj                                        # VPU broadcast

    col = lax.broadcasted_iota(jnp.int32, (tm, N), 1).astype(jnp.float32)

    # Hoisted central-point contribution of layer 1:  x @ W1_central  (same for all k).
    xr_b = xr.astype(jnp.bfloat16)
    cterm = _dot(xr_b, w1c_ref[...])                                 # (tm, W1) f32

    w1n = w1n_ref[...]
    w2 = w2_ref[...]
    s1 = s1_ref[...]; t1 = t1_ref[...]
    s2 = s2_ref[...]; t2 = t2_ref[...]

    acc = None
    for _ in range(K):                               # K small & static -> unrolled
        maxv = jnp.max(score, axis=-1, keepdims=True)
        is_max = score == maxv
        # lowest column index among ties (matches lax.top_k / torch.topk selection)
        idx = -jnp.max(jnp.where(is_max, -col, -float(N)), axis=-1, keepdims=True)
        sel = col == idx                             # exactly one True per row
        onehot = sel.astype(jnp.float32)
        # TODO(synk): at very large N an in-kernel dynamic gather would beat this
        # one-hot MXU gather; kept as matmul for robust lowering.
        nbr = _dot(onehot, xf)                       # (tm, C) exact row gather
        edge = (nbr - xr).astype(jnp.bfloat16)
        h = _dot(edge, w1n) + cterm                  # == concat(nbr - x, x) @ W1
        h = _leaky_relu(h * s1 + t1)
        h = _leaky_relu(_dot(h.astype(jnp.bfloat16), w2) * s2 + t2)
        acc = h if acc is None else jnp.maximum(acc, h)   # running max over neighbors
        score = jnp.where(sel, -jnp.inf, score)      # mask selected neighbor

    o_ref[0] = acc


def edgeconv_block(x, w1n, w1c, s1, t1, w2, s2, t2, *, K):
    B, N, C = x.shape
    W2 = w2.shape[1]
    # Row-tile so the (tm, N) intermediates stay well under v7x's 64 MiB VMEM and the
    # second grid axis feeds both v7x TensorCores even at B=1.
    tm = N if N <= 512 else 512
    assert N % tm == 0 and tm % 8 == 0
    kernel = functools.partial(_edgeconv_kernel, K=K)
    return pl.pallas_call(
        kernel,
        out_shape=jax.ShapeDtypeStruct((B, N, W2), jnp.float32),
        grid=(B, N // tm),
        in_specs=[
            pl.BlockSpec((1, tm, C), lambda b, r: (b, r, 0)),   # row tile of points
            pl.BlockSpec((1, N, C), lambda b, r: (b, 0, 0)),    # all points (resident)
            pl.BlockSpec(w1n.shape, lambda b, r: (0, 0)),
            pl.BlockSpec(w1c.shape, lambda b, r: (0, 0)),
            pl.BlockSpec(s1.shape, lambda b, r: (0, 0)),
            pl.BlockSpec(t1.shape, lambda b, r: (0, 0)),
            pl.BlockSpec(w2.shape, lambda b, r: (0, 0)),
            pl.BlockSpec(s2.shape, lambda b, r: (0, 0)),
            pl.BlockSpec(t2.shape, lambda b, r: (0, 0)),
        ],
        out_specs=pl.BlockSpec((1, tm, W2), lambda b, r: (b, r, 0)),
        compiler_params=pltpu.CompilerParams(
            dimension_semantics=("parallel", "parallel")),
    )(x, x, w1n, w1c, s1, t1, w2, s2, t2)


# ------------- fused tail: shared MLP + self-attention + max-pool + segmenter --
def _tail_kernel(f_ref, mw1_ref, ms1_ref, mt1_ref, mw2_ref, ms2_ref, mt2_ref,
                 wq_ref, wk_ref, wv_ref,
                 sw1f_ref, sw1g_ref, ss1_ref, st1_ref, sw2_ref, ss2_ref, st2_ref,
                 sw3_ref, b3_ref, o_ref, *, temperature):
    f = f_ref[0]                                     # (N, Cedge) f32  concat edge feats
    fb = f.astype(jnp.bfloat16)

    # shared point-wise MLP (two 1x1 conv + BN + LeakyReLU layers)
    h = _leaky_relu(_dot(fb, mw1_ref[...]) * ms1_ref[...] + mt1_ref[...])
    h = _leaky_relu(_dot(h.astype(jnp.bfloat16), mw2_ref[...]) * ms2_ref[...]
                    + mt2_ref[...])
    hb = h.astype(jnp.bfloat16)

    # self-attention over points (whole per-batch tile fits VMEM at these sizes).
    # TODO(synk): switch to flash-style online softmax over KV tiles for very large N.
    q = _dot(hb, wq_ref[...])
    k = _dot(hb, wk_ref[...])
    v = _dot(hb, wv_ref[...])
    logits = _dot_nt((q * (1.0 / temperature)).astype(jnp.bfloat16),
                     k.astype(jnp.bfloat16))                         # (N, N) f32
    m = jnp.max(logits, axis=-1, keepdims=True)
    p = jnp.exp(logits - m)
    p = p * pl.reciprocal(jnp.sum(p, axis=-1, keepdims=True), approx=True)
    att = _dot(p.astype(jnp.bfloat16), v.astype(jnp.bfloat16))       # (N, Co)
    g = jnp.max(att, axis=0, keepdims=True)                          # global max (1,Co)

    # segmenter on concat(edge_feats, broadcast(g)) == f @ W1f + g @ W1g (hoisted)
    gterm = _dot(g.astype(jnp.bfloat16), sw1g_ref[...])              # (1, 256)
    s = _leaky_relu((_dot(fb, sw1f_ref[...]) + gterm) * ss1_ref[...] + st1_ref[...])
    s = _leaky_relu(_dot(s.astype(jnp.bfloat16), sw2_ref[...]) * ss2_ref[...]
                    + st2_ref[...])
    # TODO(synk): nn.Dropout(0.3) is identity in eval mode (no RNG applied here).
    o_ref[0] = _dot(s.astype(jnp.bfloat16), sw3_ref[...]) + b3_ref[...]


def tail_block(feat, mlp_params, attn_params, seg_params):
    B, N, Cin = feat.shape
    mw1, ms1, mt1, mw2, ms2, mt2 = mlp_params
    wq, wk, wv = attn_params
    sw1f, sw1g, ss1, st1, sw2, ss2, st2, sw3, b3 = seg_params
    ncls = sw3.shape[1]
    temperature = float(wq.shape[1]) ** 0.5
    kernel = functools.partial(_tail_kernel, temperature=temperature)

    args = (feat, mw1, ms1, mt1, mw2, ms2, mt2, wq, wk, wv,
            sw1f, sw1g, ss1, st1, sw2, ss2, st2, sw3, b3)
    in_specs = ([pl.BlockSpec((1, N, Cin), lambda b: (b, 0, 0))]
                + [pl.BlockSpec(a.shape, lambda b: (0, 0)) for a in args[1:]])
    return pl.pallas_call(
        kernel,
        out_shape=jax.ShapeDtypeStruct((B, N, ncls), jnp.float32),
        grid=(B,),
        in_specs=in_specs,
        out_specs=pl.BlockSpec((1, N, ncls), lambda b: (b, 0, 0)),
        compiler_params=pltpu.CompilerParams(dimension_semantics=("parallel",)),
    )(*args)


# -------------------------------------------------------------- params / glue --
def init_params(key, nfeat, edgeconv_widths, mlp_widths, atten_out, num_classes,
                eps=1e-5):
    def bn_fold(c, conv_bias=None):
        gamma = jnp.ones((c,), jnp.float32)
        beta = jnp.zeros((c,), jnp.float32)
        mean = jnp.zeros((c,), jnp.float32)
        var = jnp.ones((c,), jnp.float32)
        scale = gamma / jnp.sqrt(var + eps)
        shift = beta - mean * scale
        if conv_bias is not None:
            shift = shift + conv_bias * scale
        return scale.reshape(1, c), shift.reshape(1, c)

    keys = iter(jax.random.split(key, 64))

    def w(cin, cout, gain=0.1):
        # bf16 storage: MXU operands are bf16; accumulation stays f32 in-kernel.
        return (gain * jax.random.normal(next(keys), (cin, cout), jnp.float32)
                ).astype(jnp.bfloat16)

    params = {}
    edge = []
    prev = nfeat
    for widths in edgeconv_widths:
        w1 = w(prev * 2, widths[0])
        w1n, w1c = w1[:prev], w1[prev:]        # split: (nbr - x) part / central part
        s1, t1 = bn_fold(widths[0])
        w2 = w(widths[0], widths[1]); s2, t2 = bn_fold(widths[1])
        edge.append((w1n, w1c, s1, t1, w2, s2, t2))
        prev = widths[-1]
    params["edgeconvs"] = edge

    cin = sum(wd[-1] for wd in edgeconv_widths)
    w1 = w(cin, mlp_widths[0]); s1, t1 = bn_fold(mlp_widths[0])
    w2 = w(mlp_widths[0], mlp_widths[1]); s2, t2 = bn_fold(mlp_widths[1])
    params["mlp"] = (w1, s1, t1, w2, s2, t2)

    c = mlp_widths[-1]
    params["attn"] = (w(c, atten_out), w(c, atten_out), w(c, atten_out))

    edge_total = sum(wd[-1] for wd in edgeconv_widths)
    sw1 = w(edge_total + atten_out, 256)
    sw1f, sw1g = sw1[:edge_total], sw1[edge_total:]
    ss1, st1 = bn_fold(256)
    sw2 = w(256, 128)
    cb2 = 0.1 * jax.random.normal(next(keys), (128,), jnp.float32)
    ss2, st2 = bn_fold(128, conv_bias=cb2)
    sw3 = w(128, num_classes)
    b3 = 0.1 * jax.random.normal(next(keys), (num_classes,), jnp.float32)
    params["seg"] = (sw1f, sw1g, ss1, st1, sw2, ss2, st2, sw3,
                     b3.reshape(1, num_classes))
    return params


def dgcnn_seg_attention_forward(pc, params, K):
    """pc: (B, C, N) channels-first like PyTorch; returns logits (B, num_classes, N)."""
    x = jnp.transpose(pc, (0, 2, 1)).astype(jnp.float32)   # -> (B, N, C)

    edgeconv_outputs = []
    for blk in params["edgeconvs"]:
        x = edgeconv_block(x, *blk, K=K)                   # fused kNN + MLP + max
        edgeconv_outputs.append(x)

    feat = jnp.concatenate(edgeconv_outputs, axis=-1)      # (B, N, sum_w)
    logits = tail_block(feat, params["mlp"], params["attn"], params["seg"])
    return jnp.transpose(logits, (0, 2, 1))                # (B, num_classes, N)


if __name__ == "__main__":
    B, C_IN, N, K = 2, 3, 64, 8
    edgeconv_widths = [[16, 16], [16, 16], [16, 16]]
    mlp_widths = [32, 32]
    dg_atten_dim = 32
    num_classes = 5

    key = jax.random.PRNGKey(0)
    k_pc, k_par = jax.random.split(key)
    pc = jax.random.normal(k_pc, (B, C_IN, N), jnp.float32)
    params = init_params(k_par, C_IN, edgeconv_widths, mlp_widths,
                         dg_atten_dim, num_classes)

    fwd = jax.jit(functools.partial(dgcnn_seg_attention_forward, K=K))
    logits = fwd(pc, params)
    jax.block_until_ready(logits)
    assert logits.shape == (B, num_classes, N)
    assert bool(jnp.all(jnp.isfinite(logits)))
    print("KERNEL_OK")
</pallas_src>

<mosaic_0001>
module attributes {stable_mosaic.version = 11 : i64} {
  func.func @_edgeconv_kernel(%arg0: i32, %arg1: i32, %arg2: memref<1x64x16xf32, #tpu.memory_space<vmem>>, %arg3: memref<1x64x16xf32, #tpu.memory_space<vmem>>, %arg4: memref<16x16xbf16, #tpu.memory_space<vmem>>, %arg5: memref<16x16xbf16, #tpu.memory_space<vmem>>, %arg6: memref<1x16xf32, #tpu.memory_space<vmem>>, %arg7: memref<1x16xf32, #tpu.memory_space<vmem>>, %arg8: memref<16x16xbf16, #tpu.memory_space<vmem>>, %arg9: memref<1x16xf32, #tpu.memory_space<vmem>>, %arg10: memref<1x16xf32, #tpu.memory_space<vmem>>, %arg11: memref<1x64x16xf32, #tpu.memory_space<vmem>>) attributes {dimension_semantics = [#tpu.dimension_semantics<parallel>, #tpu.dimension_semantics<parallel>], iteration_bounds = array<i64: 2, 1>, scalar_prefetch = 0 : i64, scratch_operands = 0 : i64, tpu.core_type = #tpu.core_type<tc>, window_params = [{transform_indices = @transform_0, window_bounds = array<i64: 1, 64, 16>}, {transform_indices = @transform_1, window_bounds = array<i64: 1, 64, 16>}, {pipeline_mode = #tpu.pipeline_mode<synchronous>, transform_indices = @transform_2, window_bounds = array<i64: 16, 16>}, {pipeline_mode = #tpu.pipeline_mode<synchronous>, transform_indices = @transform_3, window_bounds = array<i64: 16, 16>}, {pipeline_mode = #tpu.pipeline_mode<synchronous>, transform_indices = @transform_4, window_bounds = array<i64: 1, 16>}, {pipeline_mode = #tpu.pipeline_mode<synchronous>, transform_indices = @transform_5, window_bounds = array<i64: 1, 16>}, {pipeline_mode = #tpu.pipeline_mode<synchronous>, transform_indices = @transform_6, window_bounds = array<i64: 16, 16>}, {pipeline_mode = #tpu.pipeline_mode<synchronous>, transform_indices = @transform_7, window_bounds = array<i64: 1, 16>}, {pipeline_mode = #tpu.pipeline_mode<synchronous>, transform_indices = @transform_8, window_bounds = array<i64: 1, 16>}, {transform_indices = @transform_9, window_bounds = array<i64: 1, 64, 16>}]} {
    %c0 = arith.constant 0 : index
    %c0_0 = arith.constant 0 : index
    %c0_1 = arith.constant 0 : index
    %0 = vector.load %arg2[%c0, %c0_0, %c0_1] : memref<1x64x16xf32, #tpu.memory_space<vmem>>, vector<1x64x16xf32>
    %1 = vector.shape_cast %0 : vector<1x64x16xf32> to vector<64x16xf32>
    %c0_2 = arith.constant 0 : index
    %c0_3 = arith.constant 0 : index
    %c0_4 = arith.constant 0 : index
    %2 = vector.load %arg3[%c0_2, %c0_3, %c0_4] : memref<1x64x16xf32, #tpu.memory_space<vmem>>, vector<1x64x16xf32>
    %3 = vector.shape_cast %2 : vector<1x64x16xf32> to vector<64x16xf32>
    %cst = arith.constant dense<0.000000e+00> : vector<64x64xf32>
    %4 = tpu.matmul %1, %3, %cst {dimension_numbers = #tpu.dot_dimension_numbers<[1], [1], [0], [0], [0, 0, 1, 0], [], []>} : vector<64x16xf32>, vector<64x16xf32>, vector<64x64xf32> -> vector<64x64xf32>
    %cst_5 = arith.constant 1.000000e+00 : f32
    %5 = vector.broadcast %cst_5 : f32 to vector<1x16xf32>
    %6 = arith.mulf %3, %3 : vector<64x16xf32>
    %cst_6 = arith.constant dense<0.000000e+00> : vector<1x64xf32>
    %7 = tpu.matmul %5, %6, %cst_6 {dimension_numbers = #tpu.dot_dimension_numbers<[1], [1], [0], [0], [0, 0, 1, 0], [], []>} : vector<1x16xf32>, vector<64x16xf32>, vector<1x64xf32> -> vector<1x64xf32>
    %cst_7 = arith.constant 2.000000e+00 : f32
    %8 = vector.broadcast %cst_7 : f32 to vector<64x64xf32>
    %9 = arith.mulf %8, %4 : vector<64x64xf32>
    %10 = vector.broadcast %7 : vector<1x64xf32> to vector<64x64xf32>
    %11 = arith.subf %9, %10 : vector<64x64xf32>
    %12 = tpu.iota {dimensions = array<i32: 1>} : vector<64x64xi32>
    %13 = arith.sitofp %12 : vector<64x64xi32> to vector<64x64xf32>
    %14 = arith.truncf %1 : vector<64x16xf32> to vector<64x16xbf16>
    %c0_8 = arith.constant 0 : index
    %c0_9 = arith.constant 0 : index
    %15 = vector.load %arg5[%c0_8, %c0_9] : memref<16x16xbf16, #tpu.memory_space<vmem>>, vector<16x16xbf16>
    %cst_10 = arith.constant dense<0.000000e+00> : vector<64x16xf32>
    %16 = tpu.matmul %14, %15, %cst_10 {dimension_numbers = #tpu.dot_dimension_numbers<[1], [0], [0], [1], [0, 0, 1, 1], [], []>} : vector<64x16xbf16>, vector<16x16xbf16>, vector<64x16xf32> -> vector<64x16xf32>
    %c0_11 = arith.constant 0 : index
    %c0_12 = arith.constant 0 : index
    %17 = vector.load %arg4[%c0_11, %c0_12] : memref<16x16xbf16, #tpu.memory_space<vmem>>, vector<16x16xbf16>
    %c0_13 = arith.constant 0 : index
    %c0_14 = arith.constant 0 : index
    %18 = vector.load %arg8[%c0_13, %c0_14] : memref<16x16xbf16, #tpu.memory_space<vmem>>, vector<16x16xbf16>
    %c0_15 = arith.constant 0 : index
    %c0_16 = arith.constant 0 : index
    %19 = vector.load %arg6[%c0_15, %c0_16] : memref<1x16xf32, #tpu.memory_space<vmem>>, vector<1x16xf32>
    %c0_17 = arith.constant 0 : index
    %c0_18 = arith.constant 0 : index
    %20 = vector.load %arg7[%c0_17, %c0_18] : memref<1x16xf32, #tpu.memory_space<vmem>>, vector<1x16xf32>
    %c0_19 = arith.constant 0 : index
    %c0_20 = arith.constant 0 : index
    %21 = vector.load %arg9[%c0_19, %c0_20] : memref<1x16xf32, #tpu.memory_space<vmem>>, vector<1x16xf32>
    %c0_21 = arith.constant 0 : index
    %c0_22 = arith.constant 0 : index
    %22 = vector.load %arg10[%c0_21, %c0_22] : memref<1x16xf32, #tpu.memory_space<vmem>>, vector<1x16xf32>
    %cst_23 = arith.constant dense<0xFF800000> : vector<64xf32>
    %23 = vector.multi_reduction <maximumf>, %11, %cst_23 [1] : vector<64x64xf32> to vector<64xf32>
    %24 = vector.shape_cast %23 : vector<64xf32> to vector<64x1xf32>
    %25 = vector.broadcast %24 : vector<64x1xf32> to vector<64x64xf32>
    %26 = arith.cmpf oeq, %11, %25 : vector<64x64xf32>
    %cst_24 = arith.constant 0.000000e+00 : f32
    %27 = vector.broadcast %cst_24 : f32 to vector<64x64xf32>
    %28 = arith.subf %27, %13 : vector<64x64xf32>
    %cst_25 = arith.constant -6.400000e+01 : f32
    %29 = vector.broadcast %cst_25 : f32 to vector<64x64xf32>
    %30 = arith.select %26, %28, %29 : vector<64x64xi1>, vector<64x64xf32>
    %cst_26 = arith.constant dense<0xFF800000> : vector<64xf32>
    %31 = vector.multi_reduction <maximumf>, %30, %cst_26 [1] : vector<64x64xf32> to vector<64xf32>
    %32 = vector.shape_cast %31 : vector<64xf32> to vector<64x1xf32>
    %cst_27 = arith.constant 0.000000e+00 : f32
    %33 = vector.broadcast %cst_27 : f32 to vector<64x1xf32>
    %34 = arith.subf %33, %32 : vector<64x1xf32>
    %35 = vector.broadcast %34 : vector<64x1xf32> to vector<64x64xf32>
    %36 = arith.cmpf oeq, %13, %35 : vector<64x64xf32>
    %37 = arith.extui %36 : vector<64x64xi1> to vector<64x64xi32>
    %38 = arith.sitofp %37 : vector<64x64xi32> to vector<64x64xf32>
    %cst_28 = arith.constant dense<0.000000e+00> : vector<64x16xf32>
    %39 = tpu.matmul %38, %3, %cst_28 {dimension_numbers = #tpu.dot_dimension_numbers<[1], [0], [0], [1], [0, 0, 1, 1], [], []>} : vector<64x64xf32>, vector<64x16xf32>, vector<64x16xf32> -> vector<64x16xf32>
    %40 = arith.subf %39, %1 : vector<64x16xf32>
    %41 = arith.truncf %40 : vector<64x16xf32> to vector<64x16xbf16>
    %cst_29 = arith.constant dense<0.000000e+00> : vector<64x16xf32>
    %42 = tpu.matmul %41, %17, %cst_29 {dimension_numbers = #tpu.dot_dimension_numbers<[1], [0], [0], [1], [0, 0, 1, 1], [], []>} : vector<64x16xbf16>, vector<16x16xbf16>, vector<64x16xf32> -> vector<64x16xf32>
    %43 = arith.addf %42, %16 : vector<64x16xf32>
    %44 = vector.broadcast %19 : vector<1x16xf32> to vector<64x16xf32>
    %45 = arith.mulf %43, %44 : vector<64x16xf32>
    %46 = vector.broadcast %20 : vector<1x16xf32> to vector<64x16xf32>
    %47 = arith.addf %45, %46 : vector<64x16xf32>
    %cst_30 = arith.constant 0.000000e+00 : f32
    %48 = vector.broadcast %cst_30 : f32 to vector<64x16xf32>
    %49 = arith.cmpf ogt, %47, %48 : vector<64x16xf32>
    %cst_31 = arith.constant 2.000000e-01 : f32
    %50 = vector.broadcast %cst_31 : f32 to vector<64x16xf32>
    %51 = arith.mulf %50, %47 : vector<64x16xf32>
    %52 = arith.select %49, %47, %51 : vector<64x16xi1>, vector<64x16xf32>
    %53 = arith.truncf %52 : vector<64x16xf32> to vector<64x16xbf16>
    %cst_32 = arith.constant dense<0.000000e+00> : vector<64x16xf32>
    %54 = tpu.matmul %53, %18, %cst_32 {dimension_numbers = #tpu.dot_dimension_numbers<[1], [0], [0], [1], [0, 0, 1, 1], [], []>} : vector<64x16xbf16>, vector<16x16xbf16>, vector<64x16xf32> -> vector<64x16xf32>
    %55 = vector.broadcast %21 : vector<1x16xf32> to vector<64x16xf32>
    %56 = arith.mulf %54, %55 : vector<64x16xf32>
    %57 = vector.broadcast %22 : vector<1x16xf32> to vector<64x16xf32>
    %58 = arith.addf %56, %57 : vector<64x16xf32>
    %cst_33 = arith.constant 0.000000e+00 : f32
    %59 = vector.broadcast %cst_33 : f32 to vector<64x16xf32>
    %60 = arith.cmpf ogt, %58, %59 : vector<64x16xf32>
    %cst_34 = arith.constant 2.000000e-01 : f32
    %61 = vector.broadcast %cst_34 : f32 to vector<64x16xf32>
    %62 = arith.mulf %61, %58 : vector<64x16xf32>
    %63 = arith.select %60, %58, %62 : vector<64x16xi1>, vector<64x16xf32>
    %cst_35 = arith.constant 0xFF800000 : f32
    %64 = vector.broadcast %cst_35 : f32 to vector<64x64xf32>
    %65 = arith.select %36, %64, %11 : vector<64x64xi1>, vector<64x64xf32>
    %cst_36 = arith.constant dense<0xFF800000> : vector<64xf32>
    %66 = vector.multi_reduction <maximumf>, %65, %cst_36 [1] : vector<64x64xf32> to vector<64xf32>
    %67 = vector.shape_cast %66 : vector<64xf32> to vector<64x1xf32>
    %68 = vector.broadcast %67 : vector<64x1xf32> to vector<64x64xf32>
    %69 = arith.cmpf oeq, %65, %68 : vector<64x64xf32>
    %cst_37 = arith.constant 0.000000e+00 : f32
    %70 = vector.broadcast %cst_37 : f32 to vector<64x64xf32>
    %71 = arith.subf %70, %13 : vector<64x64xf32>
    %cst_38 = arith.constant -6.400000e+01 : f32
    %72 = vector.broadcast %cst_38 : f32 to vector<64x64xf32>
    %73 = arith.select %69, %71, %72 : vector<64x64xi1>, vector<64x64xf32>
    %cst_39 = arith.constant dense<0xFF800000> : vector<64xf32>
    %74 = vector.multi_reduction <maximumf>, %73, %cst_39 [1] : vector<64x64xf32> to vector<64xf32>
    %75 = vector.shape_cast %74 : vector<64xf32> to vector<64x1xf32>
    %cst_40 = arith.constant 0.000000e+00 : f32
    %76 = vector.broadcast %cst_40 : f32 to vector<64x1xf32>
    %77 = arith.subf %76, %75 : vector<64x1xf32>
    %78 = vector.broadcast %77 : vector<64x1xf32> to vector<64x64xf32>
    %79 = arith.cmpf oeq, %13, %78 : vector<64x64xf32>
    %80 = arith.extui %79 : vector<64x64xi1> to vector<64x64xi32>
    %81 = arith.sitofp %80 : vector<64x64xi32> to vector<64x64xf32>
    %cst_41 = arith.constant dense<0.000000e+00> : vector<64x16xf32>
    %82 = tpu.matmul %81, %3, %cst_41 {dimension_numbers = #tpu.dot_dimension_numbers<[1], [0], [0], [1], [0, 0, 1, 1], [], []>} : vector<64x64xf32>, vector<64x16xf32>, vector<64x16xf32> -> vector<64x16xf32>
    %83 = arith.subf %82, %1 : vector<64x16xf32>
    %84 = arith.truncf %83 : vector<64x16xf32> to vector<64x16xbf16>
    %cst_42 = arith.constant dense<0.000000e+00> : vector<64x16xf32>
    %85 = tpu.matmul %84, %17, %cst_42 {dimension_numbers = #tpu.dot_dimension_numbers<[1], [0], [0], [1], [0, 0, 1, 1], [], []>} : vector<64x16xbf16>, vector<16x16xbf16>, vector<64x16xf32> -> vector<64x16xf32>
    %86 = arith.addf %85, %16 : vector<64x16xf32>
    %87 = vector.broadcast %19 : vector<1x16xf32> to vector<64x16xf32>
    %88 = arith.mulf %86, %87 : vector<64x16xf32>
    %89 = vector.broadcast %20 : vector<1x16xf32> to vector<64x16xf32>
    %90 = arith.addf %88, %89 : vector<64x16xf32>
    %cst_43 = arith.constant 0.000000e+00 : f32
    %91 = vector.broadcast %cst_43 : f32 to vector<64x16xf32>
    %92 = arith.cmpf ogt, %90, %91 : vector<64x16xf32>
    %cst_44 = arith.constant 2.000000e-01 : f32
    %93 = vector.broadcast %cst_44 : f32 to vector<64x16xf32>
    %94 = arith.mulf %93, %90 : vector<64x16xf32>
    %95 = arith.select %92, %90, %94 : vector<64x16xi1>, vector<64x16xf32>
    %96 = arith.truncf %95 : vector<64x16xf32> to vector<64x16xbf16>
    %cst_45 = arith.constant dense<0.000000e+00> : vector<64x16xf32>
    %97 = tpu.matmul %96, %18, %cst_45 {dimension_numbers = #tpu.dot_dimension_numbers<[1], [0], [0], [1], [0, 0, 1, 1], [], []>} : vector<64x16xbf16>, vector<16x16xbf16>, vector<64x16xf32> -> vector<64x16xf32>
    %98 = vector.broadcast %21 : vector<1x16xf32> to vector<64x16xf32>
    %99 = arith.mulf %97, %98 : vector<64x16xf32>
    %100 = vector.broadcast %22 : vector<1x16xf32> to vector<64x16xf32>
    %101 = arith.addf %99, %100 : vector<64x16xf32>
    %cst_46 = arith.constant 0.000000e+00 : f32
    %102 = vector.broadcast %cst_46 : f32 to vector<64x16xf32>
    %103 = arith.cmpf ogt, %101, %102 : vector<64x16xf32>
    %cst_47 = arith.constant 2.000000e-01 : f32
    %104 = vector.broadcast %cst_47 : f32 to vector<64x16xf32>
    %105 = arith.mulf %104, %101 : vector<64x16xf32>
    %106 = arith.select %103, %101, %105 : vector<64x16xi1>, vector<64x16xf32>
    %107 = arith.maximumf %63, %106 : vector<64x16xf32>
    %cst_48 = arith.constant 0xFF800000 : f32
    %108 = vector.broadcast %cst_48 : f32 to vector<64x64xf32>
    %109 = arith.select %79, %108, %65 : vector<64x64xi1>, vector<64x64xf32>
    %cst_49 = arith.constant dense<0xFF800000> : vector<64xf32>
    %110 = vector.multi_reduction <maximumf>, %109, %cst_49 [1] : vector<64x64xf32> to vector<64xf32>
    %111 = vector.shape_cast %110 : vector<64xf32> to vector<64x1xf32>
    %112 = vector.broadcast %111 : vector<64x1xf32> to vector<64x64xf32>
    %113 = arith.cmpf oeq, %109, %112 : vector<64x64xf32>
    %cst_50 = arith.constant 0.000000e+00 : f32
    %114 = vector.broadcast %cst_50 : f32 to vector<64x64xf32>
    %115 = arith.subf %114, %13 : vector<64x64xf32>
    %cst_51 = arith.constant -6.400000e+01 : f32
    %116 = vector.broadcast %cst_51 : f32 to vector<64x64xf32>
    %117 = arith.select %113, %115, %116 : vector<64x64xi1>, vector<64x64xf32>
    %cst_52 = arith.constant dense<0xFF800000> : vector<64xf32>
    %118 = vector.multi_reduction <maximumf>, %117, %cst_52 [1] : vector<64x64xf32> to vector<64xf32>
    %119 = vector.shape_cast %118 : vector<64xf32> to vector<64x1xf32>
    %cst_53 = arith.constant 0.000000e+00 : f32
    %120 = vector.broadcast %cst_53 : f32 to vector<64x1xf32>
    %121 = arith.subf %120, %119 : vector<64x1xf32>
    %122 = vector.broadcast %121 : vector<64x1xf32> to vector<64x64xf32>
    %123 = arith.cmpf oeq, %13, %122 : vector<64x64xf32>
    %124 = arith.extui %123 : vector<64x64xi1> to vector<64x64xi32>
    %125 = arith.sitofp %124 : vector<64x64xi32> to vector<64x64xf32>
    %cst_54 = arith.constant dense<0.000000e+00> : vector<64x16xf32>
    %126 = tpu.matmul %125, %3, %cst_54 {dimension_numbers = #tpu.dot_dimension_numbers<[1], [0], [0], [1], [0, 0, 1, 1], [], []>} : vector<64x64xf32>, vector<64x16xf32>, vector<64x16xf32> -> vector<64x16xf32>
    %127 = arith.subf %126, %1 : vector<64x16xf32>
    %128 = arith.truncf %127 : vector<64x16xf32> to vector<64x16xbf16>
    %cst_55 = arith.constant dense<0.000000e+00> : vector<64x16xf32>
    %129 = tpu.matmul %128, %17, %cst_55 {dimension_numbers = #tpu.dot_dimension_numbers<[1], [0], [0], [1], [0, 0, 1, 1], [], []>} : vector<64x16xbf16>, vector<16x16xbf16>, vector<64x16xf32> -> vector<64x16xf32>
    %130 = arith.addf %129, %16 : vector<64x16xf32>
    %131 = vector.broadcast %19 : vector<1x16xf32> to vector<64x16xf32>
    %132 = arith.mulf %130, %131 : vector<64x16xf32>
    %133 = vector.broadcast %20 : vector<1x16xf32> to vector<64x16xf32>
    %134 = arith.addf %132, %133 : vector<64x16xf32>
    %cst_56 = arith.constant 0.000000e+00 : f32
    %135 = vector.broadcast %cst_56 : f32 to vector<64x16xf32>
    %136 = arith.cmpf ogt, %134, %135 : vector<64x16xf32>
    %cst_57 = arith.constant 2.000000e-01 : f32
    %137 = vector.broadcast %cst_57 : f32 to vector<64x16xf32>
    %138 = arith.mulf %137, %134 : vector<64x16xf32>
    %139 = arith.select %136, %134, %138 : vector<64x16xi1>, vector<64x16xf32>
    %140 = arith.truncf %139 : vector<64x16xf32> to vector<64x16xbf16>
    %cst_58 = arith.constant dense<0.000000e+00> : vector<64x16xf32>
    %141 = tpu.matmul %140, %18, %cst_58 {dimension_numbers = #tpu.dot_dimension_numbers<[1], [0], [0], [1], [0, 0, 1, 1], [], []>} : vector<64x16xbf16>, vector<16x16xbf16>, vector<64x16xf32> -> vector<64x16xf32>
    %142 = vector.broadcast %21 : vector<1x16xf32> to vector<64x16xf32>
    %143 = arith.mulf %141, %142 : vector<64x16xf32>
    %144 = vector.broadcast %22 : vector<1x16xf32> to vector<64x16xf32>
    %145 = arith.addf %143, %144 : vector<64x16xf32>
    %cst_59 = arith.constant 0.000000e+00 : f32
    %146 = vector.broadcast %cst_59 : f32 to vector<64x16xf32>
    %147 = arith.cmpf ogt, %145, %146 : vector<64x16xf32>
    %cst_60 = arith.constant 2.000000e-01 : f32
    %148 = vector.broadcast %cst_60 : f32 to vector<64x16xf32>
    %149 = arith.mulf %148, %145 : vector<64x16xf32>
    %150 = arith.select %147, %145, %149 : vector<64x16xi1>, vector<64x16xf32>
    %151 = arith.maximumf %107, %150 : vector<64x16xf32>
    %cst_61 = arith.constant 0xFF800000 : f32
    %152 = vector.broadcast %cst_61 : f32 to vector<64x64xf32>
    %153 = arith.select %123, %152, %109 : vector<64x64xi1>, vector<64x64xf32>
    %cst_62 = arith.constant dense<0xFF800000> : vector<64xf32>
    %154 = vector.multi_reduction <maximumf>, %153, %cst_62 [1] : vector<64x64xf32> to vector<64xf32>
    %155 = vector.shape_cast %154 : vector<64xf32> to vector<64x1xf32>
    %156 = vector.broadcast %155 : vector<64x1xf32> to vector<64x64xf32>
    %157 = arith.cmpf oeq, %153, %156 : vector<64x64xf32>
    %cst_63 = arith.constant 0.000000e+00 : f32
    %158 = vector.broadcast %cst_63 : f32 to vector<64x64xf32>
    %159 = arith.subf %158, %13 : vector<64x64xf32>
    %cst_64 = arith.constant -6.400000e+01 : f32
    %160 = vector.broadcast %cst_64 : f32 to vector<64x64xf32>
    %161 = arith.select %157, %159, %160 : vector<64x64xi1>, vector<64x64xf32>
    %cst_65 = arith.constant dense<0xFF800000> : vector<64xf32>
    %162 = vector.multi_reduction <maximumf>, %161, %cst_65 [1] : vector<64x64xf32> to vector<64xf32>
    %163 = vector.shape_cast %162 : vector<64xf32> to vector<64x1xf32>
    %cst_66 = arith.constant 0.000000e+00 : f32
    %164 = vector.broadcast %cst_66 : f32 to vector<64x1xf32>
    %165 = arith.subf %164, %163 : vector<64x1xf32>
    %166 = vector.broadcast %165 : vector<64x1xf32> to vector<64x64xf32>
    %167 = arith.cmpf oeq, %13, %166 : vector<64x64xf32>
    %168 = arith.extui %167 : vector<64x64xi1> to vector<64x64xi32>
    %169 = arith.sitofp %168 : vector<64x64xi32> to vector<64x64xf32>
    %cst_67 = arith.constant dense<0.000000e+00> : vector<64x16xf32>
    %170 = tpu.matmul %169, %3, %cst_67 {dimension_numbers = #tpu.dot_dimension_numbers<[1], [0], [0], [1], [0, 0, 1, 1], [], []>} : vector<64x64xf32>, vector<64x16xf32>, vector<64x16xf32> -> vector<64x16xf32>
    %171 = arith.subf %170, %1 : vector<64x16xf32>
    %172 = arith.truncf %171 : vector<64x16xf32> to vector<64x16xbf16>
    %cst_68 = arith.constant dense<0.000000e+00> : vector<64x16xf32>
    %173 = tpu.matmul %172, %17, %cst_68 {dimension_numbers = #tpu.dot_dimension_numbers<[1], [0], [0], [1], [0, 0, 1, 1], [], []>} : vector<64x16xbf16>, vector<16x16xbf16>, vector<64x16xf32> -> vector<64x16xf32>
    %174 = arith.addf %173, %16 : vector<64x16xf32>
    %175 = vector.broadcast %19 : vector<1x16xf32> to vector<64x16xf32>
    %176 = arith.mulf %174, %175 : vector<64x16xf32>
    %177 = vector.broadcast %20 : vector<1x16xf32> to vector<64x16xf32>
    %178 = arith.addf %176, %177 : vector<64x16xf32>
    %cst_69 = arith.constant 0.000000e+00 : f32
    %179 = vector.broadcast %cst_69 : f32 to vector<64x16xf32>
    %180 = arith.cmpf ogt, %178, %179 : vector<64x16xf32>
    %cst_70 = arith.constant 2.000000e-01 : f32
    %181 = vector.broadcast %cst_70 : f32 to vector<64x16xf32>
    %182 = arith.mulf %181, %178 : vector<64x16xf32>
    %183 = arith.select %180, %178, %182 : vector<64x16xi1>, vector<64x16xf32>
    %184 = arith.truncf %183 : vector<64x16xf32> to vector<64x16xbf16>
    %cst_71 = arith.constant dense<0.000000e+00> : vector<64x16xf32>
    %185 = tpu.matmul %184, %18, %cst_71 {dimension_numbers = #tpu.dot_dimension_numbers<[1], [0], [0], [1], [0, 0, 1, 1], [], []>} : vector<64x16xbf16>, vector<16x16xbf16>, vector<64x16xf32> -> vector<64x16xf32>
    %186 = vector.broadcast %21 : vector<1x16xf32> to vector<64x16xf32>
    %187 = arith.mulf %185, %186 : vector<64x16xf32>
    %188 = vector.broadcast %22 : vector<1x16xf32> to vector<64x16xf32>
    %189 = arith.addf %187, %188 : vector<64x16xf32>
    %cst_72 = arith.constant 0.000000e+00 : f32
    %190 = vector.broadcast %cst_72 : f32 to vector<64x16xf32>
    %191 = arith.cmpf ogt, %189, %190 : vector<64x16xf32>
    %cst_73 = arith.constant 2.000000e-01 : f32
    %192 = vector.broadcast %cst_73 : f32 to vector<64x16xf32>
    %193 = arith.mulf %192, %189 : vector<64x16xf32>
    %194 = arith.select %191, %189, %193 : vector<64x16xi1>, vector<64x16xf32>
    %195 = arith.maximumf %151, %194 : vector<64x16xf32>
    %cst_74 = arith.constant 0xFF800000 : f32
    %196 = vector.broadcast %cst_74 : f32 to vector<64x64xf32>
    %197 = arith.select %167, %196, %153 : vector<64x64xi1>, vector<64x64xf32>
    %cst_75 = arith.constant dense<0xFF800000> : vector<64xf32>
    %198 = vector.multi_reduction <maximumf>, %197, %cst_75 [1] : vector<64x64xf32> to vector<64xf32>
    %199 = vector.shape_cast %198 : vector<64xf32> to vector<64x1xf32>
    %200 = vector.broadcast %199 : vector<64x1xf32> to vector<64x64xf32>
    %201 = arith.cmpf oeq, %197, %200 : vector<64x64xf32>
    %cst_76 = arith.constant 0.000000e+00 : f32
    %202 = vector.broadcast %cst_76 : f32 to vector<64x64xf32>
    %203 = arith.subf %202, %13 : vector<64x64xf32>
    %cst_77 = arith.constant -6.400000e+01 : f32
    %204 = vector.broadcast %cst_77 : f32 to vector<64x64xf32>
    %205 = arith.select %201, %203, %204 : vector<64x64xi1>, vector<64x64xf32>
    %cst_78 = arith.constant dense<0xFF800000> : vector<64xf32>
    %206 = vector.multi_reduction <maximumf>, %205, %cst_78 [1] : vector<64x64xf32> to vector<64xf32>
    %207 = vector.shape_cast %206 : vector<64xf32> to vector<64x1xf32>
    %cst_79 = arith.constant 0.000000e+00 : f32
    %208 = vector.broadcast %cst_79 : f32 to vector<64x1xf32>
    %209 = arith.subf %208, %207 : vector<64x1xf32>
    %210 = vector.broadcast %209 : vector<64x1xf32> to vector<64x64xf32>
    %211 = arith.cmpf oeq, %13, %210 : vector<64x64xf32>
    %212 = arith.extui %211 : vector<64x64xi1> to vector<64x64xi32>
    %213 = arith.sitofp %212 : vector<64x64xi32> to vector<64x64xf32>
    %cst_80 = arith.constant dense<0.000000e+00> : vector<64x16xf32>
    %214 = tpu.matmul %213, %3, %cst_80 {dimension_numbers = #tpu.dot_dimension_numbers<[1], [0], [0], [1], [0, 0, 1, 1], [], []>} : vector<64x64xf32>, vector<64x16xf32>, vector<64x16xf32> -> vector<64x16xf32>
    %215 = arith.subf %214, %1 : vector<64x16xf32>
    %216 = arith.truncf %215 : vector<64x16xf32> to vector<64x16xbf16>
    %cst_81 = arith.constant dense<0.000000e+00> : vector<64x16xf32>
    %217 = tpu.matmul %216, %17, %cst_81 {dimension_numbers = #tpu.dot_dimension_numbers<[1], [0], [0], [1], [0, 0, 1, 1], [], []>} : vector<64x16xbf16>, vector<16x16xbf16>, vector<64x16xf32> -> vector<64x16xf32>
    %218 = arith.addf %217, %16 : vector<64x16xf32>
    %219 = vector.broadcast %19 : vector<1x16xf32> to vector<64x16xf32>
    %220 = arith.mulf %218, %219 : vector<64x16xf32>
    %221 = vector.broadcast %20 : vector<1x16xf32> to vector<64x16xf32>
    %222 = arith.addf %220, %221 : vector<64x16xf32>
    %cst_82 = arith.constant 0.000000e+00 : f32
    %223 = vector.broadcast %cst_82 : f32 to vector<64x16xf32>
    %224 = arith.cmpf ogt, %222, %223 : vector<64x16xf32>
    %cst_83 = arith.constant 2.000000e-01 : f32
    %225 = vector.broadcast %cst_83 : f32 to vector<64x16xf32>
    %226 = arith.mulf %225, %222 : vector<64x16xf32>
    %227 = arith.select %224, %222, %226 : vector<64x16xi1>, vector<64x16xf32>
    %228 = arith.truncf %227 : vector<64x16xf32> to vector<64x16xbf16>
    %cst_84 = arith.constant dense<0.000000e+00> : vector<64x16xf32>
    %229 = tpu.matmul %228, %18, %cst_84 {dimension_numbers = #tpu.dot_dimension_numbers<[1], [0], [0], [1], [0, 0, 1, 1], [], []>} : vector<64x16xbf16>, vector<16x16xbf16>, vector<64x16xf32> -> vector<64x16xf32>
    %230 = vector.broadcast %21 : vector<1x16xf32> to vector<64x16xf32>
    %231 = arith.mulf %229, %230 : vector<64x16xf32>
    %232 = vector.broadcast %22 : vector<1x16xf32> to vector<64x16xf32>
    %233 = arith.addf %231, %232 : vector<64x16xf32>
    %cst_85 = arith.constant 0.000000e+00 : f32
    %234 = vector.broadcast %cst_85 : f32 to vector<64x16xf32>
    %235 = arith.cmpf ogt, %233, %234 : vector<64x16xf32>
    %cst_86 = arith.constant 2.000000e-01 : f32
    %236 = vector.broadcast %cst_86 : f32 to vector<64x16xf32>
    %237 = arith.mulf %236, %233 : vector<64x16xf32>
    %238 = arith.select %235, %233, %237 : vector<64x16xi1>, vector<64x16xf32>
    %239 = arith.maximumf %195, %238 : vector<64x16xf32>
    %cst_87 = arith.constant 0xFF800000 : f32
    %240 = vector.broadcast %cst_87 : f32 to vector<64x64xf32>
    %241 = arith.select %211, %240, %197 : vector<64x64xi1>, vector<64x64xf32>
    %cst_88 = arith.constant dense<0xFF800000> : vector<64xf32>
    %242 = vector.multi_reduction <maximumf>, %241, %cst_88 [1] : vector<64x64xf32> to vector<64xf32>
    %243 = vector.shape_cast %242 : vector<64xf32> to vector<64x1xf32>
    %244 = vector.broadcast %243 : vector<64x1xf32> to vector<64x64xf32>
    %245 = arith.cmpf oeq, %241, %244 : vector<64x64xf32>
    %cst_89 = arith.constant 0.000000e+00 : f32
    %246 = vector.broadcast %cst_89 : f32 to vector<64x64xf32>
    %247 = arith.subf %246, %13 : vector<64x64xf32>
    %cst_90 = arith.constant -6.400000e+01 : f32
    %248 = vector.broadcast %cst_90 : f32 to vector<64x64xf32>
    %249 = arith.select %245, %247, %248 : vector<64x64xi1>, vector<64x64xf32>
    %cst_91 = arith.constant dense<0xFF800000> : vector<64xf32>
    %250 = vector.multi_reduction <maximumf>, %249, %cst_91 [1] : vector<64x64xf32> to vector<64xf32>
    %251 = vector.shape_cast %250 : vector<64xf32> to vector<64x1xf32>
    %cst_92 = arith.constant 0.000000e+00 : f32
    %252 = vector.broadcast %cst_92 : f32 to vector<64x1xf32>
    %253 = arith.subf %252, %251 : vector<64x1xf32>
    %254 = vector.broadcast %253 : vector<64x1xf32> to vector<64x64xf32>
    %255 = arith.cmpf oeq, %13, %254 : vector<64x64xf32>
    %256 = arith.extui %255 : vector<64x64xi1> to vector<64x64xi32>
    %257 = arith.sitofp %256 : vector<64x64xi32> to vector<64x64xf32>
    %cst_93 = arith.constant dense<0.000000e+00> : vector<64x16xf32>
    %258 = tpu.matmul %257, %3, %cst_93 {dimension_numbers = #tpu.dot_dimension_numbers<[1], [0], [0], [1], [0, 0, 1, 1], [], []>} : vector<64x64xf32>, vector<64x16xf32>, vector<64x16xf32> -> vector<64x16xf32>
    %259 = arith.subf %258, %1 : vector<64x16xf32>
    %260 = arith.truncf %259 : vector<64x16xf32> to vector<64x16xbf16>
    %cst_94 = arith.constant dense<0.000000e+00> : vector<64x16xf32>
    %261 = tpu.matmul %260, %17, %cst_94 {dimension_numbers = #tpu.dot_dimension_numbers<[1], [0], [0], [1], [0, 0, 1, 1], [], []>} : vector<64x16xbf16>, vector<16x16xbf16>, vector<64x16xf32> -> vector<64x16xf32>
    %262 = arith.addf %261, %16 : vector<64x16xf32>
    %263 = vector.broadcast %19 : vector<1x16xf32> to vector<64x16xf32>
    %264 = arith.mulf %262, %263 : vector<64x16xf32>
    %265 = vector.broadcast %20 : vector<1x16xf32> to vector<64x16xf32>
    %266 = arith.addf %264, %265 : vector<64x16xf32>
    %cst_95 = arith.constant 0.000000e+00 : f32
    %267 = vector.broadcast %cst_95 : f32 to vector<64x16xf32>
    %268 = arith.cmpf ogt, %266, %267 : vector<64x16xf32>
    %cst_96 = arith.constant 2.000000e-01 : f32
    %269 = vector.broadcast %cst_96 : f32 to vector<64x16xf32>
    %270 = arith.mulf %269, %266 : vector<64x16xf32>
    %271 = arith.select %268, %266, %270 : vector<64x16xi1>, vector<64x16xf32>
    %272 = arith.truncf %271 : vector<64x16xf32> to vector<64x16xbf16>
    %cst_97 = arith.constant dense<0.000000e+00> : vector<64x16xf32>
    %273 = tpu.matmul %272, %18, %cst_97 {dimension_numbers = #tpu.dot_dimension_numbers<[1], [0], [0], [1], [0, 0, 1, 1], [], []>} : vector<64x16xbf16>, vector<16x16xbf16>, vector<64x16xf32> -> vector<64x16xf32>
    %274 = vector.broadcast %21 : vector<1x16xf32> to vector<64x16xf32>
    %275 = arith.mulf %273, %274 : vector<64x16xf32>
    %276 = vector.broadcast %22 : vector<1x16xf32> to vector<64x16xf32>
    %277 = arith.addf %275, %276 : vector<64x16xf32>
    %cst_98 = arith.constant 0.000000e+00 : f32
    %278 = vector.broadcast %cst_98 : f32 to vector<64x16xf32>
    %279 = arith.cmpf ogt, %277, %278 : vector<64x16xf32>
    %cst_99 = arith.constant 2.000000e-01 : f32
    %280 = vector.broadcast %cst_99 : f32 to vector<64x16xf32>
    %281 = arith.mulf %280, %277 : vector<64x16xf32>
    %282 = arith.select %279, %277, %281 : vector<64x16xi1>, vector<64x16xf32>
    %283 = arith.maximumf %239, %282 : vector<64x16xf32>
    %cst_100 = arith.constant 0xFF800000 : f32
    %284 = vector.broadcast %cst_100 : f32 to vector<64x64xf32>
    %285 = arith.select %255, %284, %241 : vector<64x64xi1>, vector<64x64xf32>
    %cst_101 = arith.constant dense<0xFF800000> : vector<64xf32>
    %286 = vector.multi_reduction <maximumf>, %285, %cst_101 [1] : vector<64x64xf32> to vector<64xf32>
    %287 = vector.shape_cast %286 : vector<64xf32> to vector<64x1xf32>
    %288 = vector.broadcast %287 : vector<64x1xf32> to vector<64x64xf32>
    %289 = arith.cmpf oeq, %285, %288 : vector<64x64xf32>
    %cst_102 = arith.constant 0.000000e+00 : f32
    %290 = vector.broadcast %cst_102 : f32 to vector<64x64xf32>
    %291 = arith.subf %290, %13 : vector<64x64xf32>
    %cst_103 = arith.constant -6.400000e+01 : f32
    %292 = vector.broadcast %cst_103 : f32 to vector<64x64xf32>
    %293 = arith.select %289, %291, %292 : vector<64x64xi1>, vector<64x64xf32>
    %cst_104 = arith.constant dense<0xFF800000> : vector<64xf32>
    %294 = vector.multi_reduction <maximumf>, %293, %cst_104 [1] : vector<64x64xf32> to vector<64xf32>
    %295 = vector.shape_cast %294 : vector<64xf32> to vector<64x1xf32>
    %cst_105 = arith.constant 0.000000e+00 : f32
    %296 = vector.broadcast %cst_105 : f32 to vector<64x1xf32>
    %297 = arith.subf %296, %295 : vector<64x1xf32>
    %298 = vector.broadcast %297 : vector<64x1xf32> to vector<64x64xf32>
    %299 = arith.cmpf oeq, %13, %298 : vector<64x64xf32>
    %300 = arith.extui %299 : vector<64x64xi1> to vector<64x64xi32>
    %301 = arith.sitofp %300 : vector<64x64xi32> to vector<64x64xf32>
    %cst_106 = arith.constant dense<0.000000e+00> : vector<64x16xf32>
    %302 = tpu.matmul %301, %3, %cst_106 {dimension_numbers = #tpu.dot_dimension_numbers<[1], [0], [0], [1], [0, 0, 1, 1], [], []>} : vector<64x64xf32>, vector<64x16xf32>, vector<64x16xf32> -> vector<64x16xf32>
    %303 = arith.subf %302, %1 : vector<64x16xf32>
    %304 = arith.truncf %303 : vector<64x16xf32> to vector<64x16xbf16>
    %cst_107 = arith.constant dense<0.000000e+00> : vector<64x16xf32>
    %305 = tpu.matmul %304, %17, %cst_107 {dimension_numbers = #tpu.dot_dimension_numbers<[1], [0], [0], [1], [0, 0, 1, 1], [], []>} : vector<64x16xbf16>, vector<16x16xbf16>, vector<64x16xf32> -> vector<64x16xf32>
    %306 = arith.addf %305, %16 : vector<64x16xf32>
    %307 = vector.broadcast %19 : vector<1x16xf32> to vector<64x16xf32>
    %308 = arith.mulf %306, %307 : vector<64x16xf32>
    %309 = vector.broadcast %20 : vector<1x16xf32> to vector<64x16xf32>
    %310 = arith.addf %308, %309 : vector<64x16xf32>
    %cst_108 = arith.constant 0.000000e+00 : f32
    %311 = vector.broadcast %cst_108 : f32 to vector<64x16xf32>
    %312 = arith.cmpf ogt, %310, %311 : vector<64x16xf32>
    %cst_109 = arith.constant 2.000000e-01 : f32
    %313 = vector.broadcast %cst_109 : f32 to vector<64x16xf32>
    %314 = arith.mulf %313, %310 : vector<64x16xf32>
    %315 = arith.select %312, %310, %314 : vector<64x16xi1>, vector<64x16xf32>
    %316 = arith.truncf %315 : vector<64x16xf32> to vector<64x16xbf16>
    %cst_110 = arith.constant dense<0.000000e+00> : vector<64x16xf32>
    %317 = tpu.matmul %316, %18, %cst_110 {dimension_numbers = #tpu.dot_dimension_numbers<[1], [0], [0], [1], [0, 0, 1, 1], [], []>} : vector<64x16xbf16>, vector<16x16xbf16>, vector<64x16xf32> -> vector<64x16xf32>
    %318 = vector.broadcast %21 : vector<1x16xf32> to vector<64x16xf32>
    %319 = arith.mulf %317, %318 : vector<64x16xf32>
    %320 = vector.broadcast %22 : vector<1x16xf32> to vector<64x16xf32>
    %321 = arith.addf %319, %320 : vector<64x16xf32>
    %cst_111 = arith.constant 0.000000e+00 : f32
    %322 = vector.broadcast %cst_111 : f32 to vector<64x16xf32>
    %323 = arith.cmpf ogt, %321, %322 : vector<64x16xf32>
    %cst_112 = arith.constant 2.000000e-01 : f32
    %324 = vector.broadcast %cst_112 : f32 to vector<64x16xf32>
    %325 = arith.mulf %324, %321 : vector<64x16xf32>
    %326 = arith.select %323, %321, %325 : vector<64x16xi1>, vector<64x16xf32>
    %327 = arith.maximumf %283, %326 : vector<64x16xf32>
    %cst_113 = arith.constant 0xFF800000 : f32
    %328 = vector.broadcast %cst_113 : f32 to vector<64x64xf32>
    %329 = arith.select %299, %328, %285 : vector<64x64xi1>, vector<64x64xf32>
    %cst_114 = arith.constant dense<0xFF800000> : vector<64xf32>
    %330 = vector.multi_reduction <maximumf>, %329, %cst_114 [1] : vector<64x64xf32> to vector<64xf32>
    %331 = vector.shape_cast %330 : vector<64xf32> to vector<64x1xf32>
    %332 = vector.broadcast %331 : vector<64x1xf32> to vector<64x64xf32>
    %333 = arith.cmpf oeq, %329, %332 : vector<64x64xf32>
    %cst_115 = arith.constant 0.000000e+00 : f32
    %334 = vector.broadcast %cst_115 : f32 to vector<64x64xf32>
    %335 = arith.subf %334, %13 : vector<64x64xf32>
    %cst_116 = arith.constant -6.400000e+01 : f32
    %336 = vector.broadcast %cst_116 : f32 to vector<64x64xf32>
    %337 = arith.select %333, %335, %336 : vector<64x64xi1>, vector<64x64xf32>
    %cst_117 = arith.constant dense<0xFF800000> : vector<64xf32>
    %338 = vector.multi_reduction <maximumf>, %337, %cst_117 [1] : vector<64x64xf32> to vector<64xf32>
    %339 = vector.shape_cast %338 : vector<64xf32> to vector<64x1xf32>
    %cst_118 = arith.constant 0.000000e+00 : f32
    %340 = vector.broadcast %cst_118 : f32 to vector<64x1xf32>
    %341 = arith.subf %340, %339 : vector<64x1xf32>
    %342 = vector.broadcast %341 : vector<64x1xf32> to vector<64x64xf32>
    %343 = arith.cmpf oeq, %13, %342 : vector<64x64xf32>
    %344 = arith.extui %343 : vector<64x64xi1> to vector<64x64xi32>
    %345 = arith.sitofp %344 : vector<64x64xi32> to vector<64x64xf32>
    %cst_119 = arith.constant dense<0.000000e+00> : vector<64x16xf32>
    %346 = tpu.matmul %345, %3, %cst_119 {dimension_numbers = #tpu.dot_dimension_numbers<[1], [0], [0], [1], [0, 0, 1, 1], [], []>} : vector<64x64xf32>, vector<64x16xf32>, vector<64x16xf32> -> vector<64x16xf32>
    %347 = arith.subf %346, %1 : vector<64x16xf32>
    %348 = arith.truncf %347 : vector<64x16xf32> to vector<64x16xbf16>
    %cst_120 = arith.constant dense<0.000000e+00> : vector<64x16xf32>
    %349 = tpu.matmul %348, %17, %cst_120 {dimension_numbers = #tpu.dot_dimension_numbers<[1], [0], [0], [1], [0, 0, 1, 1], [], []>} : vector<64x16xbf16>, vector<16x16xbf16>, vector<64x16xf32> -> vector<64x16xf32>
    %350 = arith.addf %349, %16 : vector<64x16xf32>
    %351 = vector.broadcast %19 : vector<1x16xf32> to vector<64x16xf32>
    %352 = arith.mulf %350, %351 : vector<64x16xf32>
    %353 = vector.broadcast %20 : vector<1x16xf32> to vector<64x16xf32>
    %354 = arith.addf %352, %353 : vector<64x16xf32>
    %cst_121 = arith.constant 0.000000e+00 : f32
    %355 = vector.broadcast %cst_121 : f32 to vector<64x16xf32>
    %356 = arith.cmpf ogt, %354, %355 : vector<64x16xf32>
    %cst_122 = arith.constant 2.000000e-01 : f32
    %357 = vector.broadcast %cst_122 : f32 to vector<64x16xf32>
    %358 = arith.mulf %357, %354 : vector<64x16xf32>
    %359 = arith.select %356, %354, %358 : vector<64x16xi1>, vector<64x16xf32>
    %360 = arith.truncf %359 : vector<64x16xf32> to vector<64x16xbf16>
    %cst_123 = arith.constant dense<0.000000e+00> : vector<64x16xf32>
    %361 = tpu.matmul %360, %18, %cst_123 {dimension_numbers = #tpu.dot_dimension_numbers<[1], [0], [0], [1], [0, 0, 1, 1], [], []>} : vector<64x16xbf16>, vector<16x16xbf16>, vector<64x16xf32> -> vector<64x16xf32>
    %362 = vector.broadcast %21 : vector<1x16xf32> to vector<64x16xf32>
    %363 = arith.mulf %361, %362 : vector<64x16xf32>
    %364 = vector.broadcast %22 : vector<1x16xf32> to vector<64x16xf32>
    %365 = arith.addf %363, %364 : vector<64x16xf32>
    %cst_124 = arith.constant 0.000000e+00 : f32
    %366 = vector.broadcast %cst_124 : f32 to vector<64x16xf32>
    %367 = arith.cmpf ogt, %365, %366 : vector<64x16xf32>
    %cst_125 = arith.constant 2.000000e-01 : f32
    %368 = vector.broadcast %cst_125 : f32 to vector<64x16xf32>
    %369 = arith.mulf %368, %365 : vector<64x16xf32>
    %370 = arith.select %367, %365, %369 : vector<64x16xi1>, vector<64x16xf32>
    %371 = arith.maximumf %327, %370 : vector<64x16xf32>
    %c0_126 = arith.constant 0 : index
    %c0_127 = arith.constant 0 : index
    %c0_128 = arith.constant 0 : index
    %372 = vector.load %arg11[%c0_126, %c0_127, %c0_128] : memref<1x64x16xf32, #tpu.memory_space<vmem>>, vector<1x64x16xf32>
    %373 = vector.shape_cast %372 : vector<1x64x16xf32> to vector<64x16xf32>
    %374 = vector.shape_cast %371 : vector<64x16xf32> to vector<1x64x16xf32>
    tpu.vector_store %arg11[%c0_126, %c0_127, %c0_128], %374 {strides = array<i32>} : memref<1x64x16xf32, #tpu.memory_space<vmem>>, vector<1x64x16xf32>,
    return
  }
  func.func @transform_0(%arg0: i32, %arg1: i32) -> (i32, i32, i32) {
    %c0_i32 = arith.constant 0 : i32
    %c0_i32_0 = arith.constant 0 : i32
    return %arg0, %arg1, %c0_i32 : i32, i32, i32
  }
  func.func @transform_1(%arg0: i32, %arg1: i32) -> (i32, i32, i32) {
    %c0_i32 = arith.constant 0 : i32
    %c0_i32_0 = arith.constant 0 : i32
    %c0_i32_1 = arith.constant 0 : i32
    return %arg0, %c0_i32, %c0_i32_0 : i32, i32, i32
  }
  func.func @transform_2(%arg0: i32, %arg1: i32) -> (i32, i32) {
    %c0_i32 = arith.constant 0 : i32
    %c0_i32_0 = arith.constant 0 : i32
    %c0_i32_1 = arith.constant 0 : i32
    return %c0_i32, %c0_i32_0 : i32, i32
  }
  func.func @transform_3(%arg0: i32, %arg1: i32) -> (i32, i32) {
    %c0_i32 = arith.constant 0 : i32
    %c0_i32_0 = arith.constant 0 : i32
    %c0_i32_1 = arith.constant 0 : i32
    return %c0_i32, %c0_i32_0 : i32, i32
  }
  func.func @transform_4(%arg0: i32, %arg1: i32) -> (i32, i32) {
    %c0_i32 = arith.constant 0 : i32
    %c0_i32_0 = arith.constant 0 : i32
    %c0_i32_1 = arith.constant 0 : i32
    return %c0_i32, %c0_i32_0 : i32, i32
  }
  func.func @transform_5(%arg0: i32, %arg1: i32) -> (i32, i32) {
    %c0_i32 = arith.constant 0 : i32
    %c0_i32_0 = arith.constant 0 : i32
    %c0_i32_1 = arith.constant 0 : i32
    return %c0_i32, %c0_i32_0 : i32, i32
  }
  func.func @transform_6(%arg0: i32, %arg1: i32) -> (i32, i32) {
    %c0_i32 = arith.constant 0 : i32
    %c0_i32_0 = arith.constant 0 : i32
    %c0_i32_1 = arith.constant 0 : i32
    return %c0_i32, %c0_i32_0 : i32, i32
  }
  func.func @transform_7(%arg0: i32, %arg1: i32) -> (i32, i32) {
    %c0_i32 = arith.constant 0 : i32
    %c0_i32_0 = arith.constant 0 : i32
    %c0_i32_1 = arith.constant 0 : i32
    return %c0_i32, %c0_i32_0 : i32, i32
  }
  func.func @transform_8(%arg0: i32, %arg1: i32) -> (i32, i32) {
    %c0_i32 = arith.constant 0 : i32
    %c0_i32_0 = arith.constant 0 : i32
    %c0_i32_1 = arith.constant 0 : i32
    return %c0_i32, %c0_i32_0 : i32, i32
  }
  func.func @transform_9(%arg0: i32, %arg1: i32) -> (i32, i32, i32) {
    %c0_i32 = arith.constant 0 : i32
    %c0_i32_0 = arith.constant 0 : i32
    return %arg0, %arg1, %c0_i32 : i32, i32, i32
  }
}

module attributes {stable_mosaic.version = 11 : i64} {
  func.func @_edgeconv_kernel(%arg0: i32, %arg1: i32, %arg2: memref<1x64x3xf32, #tpu.memory_space<vmem>>, %arg3: memref<1x64x3xf32, #tpu.memory_space<vmem>>, %arg4: memref<3x16xbf16, #tpu.memory_space<vmem>>, %arg5: memref<3x16xbf16, #tpu.memory_space<vmem>>, %arg6: memref<1x16xf32, #tpu.memory_space<vmem>>, %arg7: memref<1x16xf32, #tpu.memory_space<vmem>>, %arg8: memref<16x16xbf16, #tpu.memory_space<vmem>>, %arg9: memref<1x16xf32, #tpu.memory_space<vmem>>, %arg10: memref<1x16xf32, #tpu.memory_space<vmem>>, %arg11: memref<1x64x16xf32, #tpu.memory_space<vmem>>) attributes {dimension_semantics = [#tpu.dimension_semantics<parallel>, #tpu.dimension_semantics<parallel>], iteration_bounds = array<i64: 2, 1>, scalar_prefetch = 0 : i64, scratch_operands = 0 : i64, tpu.core_type = #tpu.core_type<tc>, window_params = [{transform_indices = @transform_0, window_bounds = array<i64: 1, 64, 3>}, {transform_indices = @transform_1, window_bounds = array<i64: 1, 64, 3>}, {pipeline_mode = #tpu.pipeline_mode<synchronous>, transform_indices = @transform_2, window_bounds = array<i64: 3, 16>}, {pipeline_mode = #tpu.pipeline_mode<synchronous>, transform_indices = @transform_3, window_bounds = array<i64: 3, 16>}, {pipeline_mode = #tpu.pipeline_mode<synchronous>, transform_indices = @transform_4, window_bounds = array<i64: 1, 16>}, {pipeline_mode = #tpu.pipeline_mode<synchronous>, transform_indices = @transform_5, window_bounds = array<i64: 1, 16>}, {pipeline_mode = #tpu.pipeline_mode<synchronous>, transform_indices = @transform_6, window_bounds = array<i64: 16, 16>}, {pipeline_mode = #tpu.pipeline_mode<synchronous>, transform_indices = @transform_7, window_bounds = array<i64: 1, 16>}, {pipeline_mode = #tpu.pipeline_mode<synchronous>, transform_indices = @transform_8, window_bounds = array<i64: 1, 16>}, {transform_indices = @transform_9, window_bounds = array<i64: 1, 64, 16>}]} {
    %c0 = arith.constant 0 : index
    %c0_0 = arith.constant 0 : index
    %c0_1 = arith.constant 0 : index
    %0 = vector.load %arg2[%c0, %c0_0, %c0_1] : memref<1x64x3xf32, #tpu.memory_space<vmem>>, vector<1x64x3xf32>
    %1 = vector.shape_cast %0 : vector<1x64x3xf32> to vector<64x3xf32>
    %c0_2 = arith.constant 0 : index
    %c0_3 = arith.constant 0 : index
    %c0_4 = arith.constant 0 : index
    %2 = vector.load %arg3[%c0_2, %c0_3, %c0_4] : memref<1x64x3xf32, #tpu.memory_space<vmem>>, vector<1x64x3xf32>
    %3 = vector.shape_cast %2 : vector<1x64x3xf32> to vector<64x3xf32>
    %cst = arith.constant dense<0.000000e+00> : vector<64x64xf32>
    %4 = tpu.matmul %1, %3, %cst {dimension_numbers = #tpu.dot_dimension_numbers<[1], [1], [0], [0], [0, 0, 1, 0], [], []>} : vector<64x3xf32>, vector<64x3xf32>, vector<64x64xf32> -> vector<64x64xf32>
    %cst_5 = arith.constant 1.000000e+00 : f32
    %5 = vector.broadcast %cst_5 : f32 to vector<1x3xf32>
    %6 = arith.mulf %3, %3 : vector<64x3xf32>
    %cst_6 = arith.constant dense<0.000000e+00> : vector<1x64xf32>
    %7 = tpu.matmul %5, %6, %cst_6 {dimension_numbers = #tpu.dot_dimension_numbers<[1], [1], [0], [0], [0, 0, 1, 0], [], []>} : vector<1x3xf32>, vector<64x3xf32>, vector<1x64xf32> -> vector<1x64xf32>
    %cst_7 = arith.constant 2.000000e+00 : f32
    %8 = vector.broadcast %cst_7 : f32 to vector<64x64xf32>
    %9 = arith.mulf %8, %4 : vector<64x64xf32>
    %10 = vector.broadcast %7 : vector<1x64xf32> to vector<64x64xf32>
    %11 = arith.subf %9, %10 : vector<64x64xf32>
    %12 = tpu.iota {dimensions = array<i32: 1>} : vector<64x64xi32>
    %13 = arith.sitofp %12 : vector<64x64xi32> to vector<64x64xf32>
    %14 = arith.truncf %1 : vector<64x3xf32> to vector<64x3xbf16>
    %c0_8 = arith.constant 0 : index
    %c0_9 = arith.constant 0 : index
    %15 = vector.load %arg5[%c0_8, %c0_9] : memref<3x16xbf16, #tpu.memory_space<vmem>>, vector<3x16xbf16>
    %cst_10 = arith.constant dense<0.000000e+00> : vector<64x16xf32>
    %16 = tpu.matmul %14, %15, %cst_10 {dimension_numbers = #tpu.dot_dimension_numbers<[1], [0], [0], [1], [0, 0, 1, 1], [], []>} : vector<64x3xbf16>, vector<3x16xbf16>, vector<64x16xf32> -> vector<64x16xf32>
    %c0_11 = arith.constant 0 : index
    %c0_12 = arith.constant 0 : index
    %17 = vector.load %arg4[%c0_11, %c0_12] : memref<3x16xbf16, #tpu.memory_space<vmem>>, vector<3x16xbf16>
    %c0_13 = arith.constant 0 : index
    %c0_14 = arith.constant 0 : index
    %18 = vector.load %arg8[%c0_13, %c0_14] : memref<16x16xbf16, #tpu.memory_space<vmem>>, vector<16x16xbf16>
    %c0_15 = arith.constant 0 : index
    %c0_16 = arith.constant 0 : index
    %19 = vector.load %arg6[%c0_15, %c0_16] : memref<1x16xf32, #tpu.memory_space<vmem>>, vector<1x16xf32>
    %c0_17 = arith.constant 0 : index
    %c0_18 = arith.constant 0 : index
    %20 = vector.load %arg7[%c0_17, %c0_18] : memref<1x16xf32, #tpu.memory_space<vmem>>, vector<1x16xf32>
    %c0_19 = arith.constant 0 : index
    %c0_20 = arith.constant 0 : index
    %21 = vector.load %arg9[%c0_19, %c0_20] : memref<1x16xf32, #tpu.memory_space<vmem>>, vector<1x16xf32>
    %c0_21 = arith.constant 0 : index
    %c0_22 = arith.constant 0 : index
    %22 = vector.load %arg10[%c0_21, %c0_22] : memref<1x16xf32, #tpu.memory_space<vmem>>, vector<1x16xf32>
    %cst_23 = arith.constant dense<0xFF800000> : vector<64xf32>
    %23 = vector.multi_reduction <maximumf>, %11, %cst_23 [1] : vector<64x64xf32> to vector<64xf32>
    %24 = vector.shape_cast %23 : vector<64xf32> to vector<64x1xf32>
    %25 = vector.broadcast %24 : vector<64x1xf32> to vector<64x64xf32>
    %26 = arith.cmpf oeq, %11, %25 : vector<64x64xf32>
    %cst_24 = arith.constant 0.000000e+00 : f32
    %27 = vector.broadcast %cst_24 : f32 to vector<64x64xf32>
    %28 = arith.subf %27, %13 : vector<64x64xf32>
    %cst_25 = arith.constant -6.400000e+01 : f32
    %29 = vector.broadcast %cst_25 : f32 to vector<64x64xf32>
    %30 = arith.select %26, %28, %29 : vector<64x64xi1>, vector<64x64xf32>
    %cst_26 = arith.constant dense<0xFF800000> : vector<64xf32>
    %31 = vector.multi_reduction <maximumf>, %30, %cst_26 [1] : vector<64x64xf32> to vector<64xf32>
    %32 = vector.shape_cast %31 : vector<64xf32> to vector<64x1xf32>
    %cst_27 = arith.constant 0.000000e+00 : f32
    %33 = vector.broadcast %cst_27 : f32 to vector<64x1xf32>
    %34 = arith.subf %33, %32 : vector<64x1xf32>
    %35 = vector.broadcast %34 : vector<64x1xf32> to vector<64x64xf32>
    %36 = arith.cmpf oeq, %13, %35 : vector<64x64xf32>
    %37 = arith.extui %36 : vector<64x64xi1> to vector<64x64xi32>
    %38 = arith.sitofp %37 : vector<64x64xi32> to vector<64x64xf32>
    %cst_28 = arith.constant dense<0.000000e+00> : vector<64x3xf32>
    %39 = tpu.matmul %38, %3, %cst_28 {dimension_numbers = #tpu.dot_dimension_numbers<[1], [0], [0], [1], [0, 0, 1, 1], [], []>} : vector<64x64xf32>, vector<64x3xf32>, vector<64x3xf32> -> vector<64x3xf32>
    %40 = arith.subf %39, %1 : vector<64x3xf32>
    %41 = arith.truncf %40 : vector<64x3xf32> to vector<64x3xbf16>
    %cst_29 = arith.constant dense<0.000000e+00> : vector<64x16xf32>
    %42 = tpu.matmul %41, %17, %cst_29 {dimension_numbers = #tpu.dot_dimension_numbers<[1], [0], [0], [1], [0, 0, 1, 1], [], []>} : vector<64x3xbf16>, vector<3x16xbf16>, vector<64x16xf32> -> vector<64x16xf32>
    %43 = arith.addf %42, %16 : vector<64x16xf32>
    %44 = vector.broadcast %19 : vector<1x16xf32> to vector<64x16xf32>
    %45 = arith.mulf %43, %44 : vector<64x16xf32>
    %46 = vector.broadcast %20 : vector<1x16xf32> to vector<64x16xf32>
    %47 = arith.addf %45, %46 : vector<64x16xf32>
    %cst_30 = arith.constant 0.000000e+00 : f32
    %48 = vector.broadcast %cst_30 : f32 to vector<64x16xf32>
    %49 = arith.cmpf ogt, %47, %48 : vector<64x16xf32>
    %cst_31 = arith.constant 2.000000e-01 : f32
    %50 = vector.broadcast %cst_31 : f32 to vector<64x16xf32>
    %51 = arith.mulf %50, %47 : vector<64x16xf32>
    %52 = arith.select %49, %47, %51 : vector<64x16xi1>, vector<64x16xf32>
    %53 = arith.truncf %52 : vector<64x16xf32> to vector<64x16xbf16>
    %cst_32 = arith.constant dense<0.000000e+00> : vector<64x16xf32>
    %54 = tpu.matmul %53, %18, %cst_32 {dimension_numbers = #tpu.dot_dimension_numbers<[1], [0], [0], [1], [0, 0, 1, 1], [], []>} : vector<64x16xbf16>, vector<16x16xbf16>, vector<64x16xf32> -> vector<64x16xf32>
    %55 = vector.broadcast %21 : vector<1x16xf32> to vector<64x16xf32>
    %56 = arith.mulf %54, %55 : vector<64x16xf32>
    %57 = vector.broadcast %22 : vector<1x16xf32> to vector<64x16xf32>
    %58 = arith.addf %56, %57 : vector<64x16xf32>
    %cst_33 = arith.constant 0.000000e+00 : f32
    %59 = vector.broadcast %cst_33 : f32 to vector<64x16xf32>
    %60 = arith.cmpf ogt, %58, %59 : vector<64x16xf32>
    %cst_34 = arith.constant 2.000000e-01 : f32
    %61 = vector.broadcast %cst_34 : f32 to vector<64x16xf32>
    %62 = arith.mulf %61, %58 : vector<64x16xf32>
    %63 = arith.select %60, %58, %62 : vector<64x16xi1>, vector<64x16xf32>
    %cst_35 = arith.constant 0xFF800000 : f32
    %64 = vector.broadcast %cst_35 : f32 to vector<64x64xf32>
    %65 = arith.select %36, %64, %11 : vector<64x64xi1>, vector<64x64xf32>
    %cst_36 = arith.constant dense<0xFF800000> : vector<64xf32>
    %66 = vector.multi_reduction <maximumf>, %65, %cst_36 [1] : vector<64x64xf32> to vector<64xf32>
    %67 = vector.shape_cast %66 : vector<64xf32> to vector<64x1xf32>
    %68 = vector.broadcast %67 : vector<64x1xf32> to vector<64x64xf32>
    %69 = arith.cmpf oeq, %65, %68 : vector<64x64xf32>
    %cst_37 = arith.constant 0.000000e+00 : f32
    %70 = vector.broadcast %cst_37 : f32 to vector<64x64xf32>
    %71 = arith.subf %70, %13 : vector<64x64xf32>
    %cst_38 = arith.constant -6.400000e+01 : f32
    %72 = vector.broadcast %cst_38 : f32 to vector<64x64xf32>
    %73 = arith.select %69, %71, %72 : vector<64x64xi1>, vector<64x64xf32>
    %cst_39 = arith.constant dense<0xFF800000> : vector<64xf32>
    %74 = vector.multi_reduction <maximumf>, %73, %cst_39 [1] : vector<64x64xf32> to vector<64xf32>
    %75 = vector.shape_cast %74 : vector<64xf32> to vector<64x1xf32>
    %cst_40 = arith.constant 0.000000e+00 : f32
    %76 = vector.broadcast %cst_40 : f32 to vector<64x1xf32>
    %77 = arith.subf %76, %75 : vector<64x1xf32>
    %78 = vector.broadcast %77 : vector<64x1xf32> to vector<64x64xf32>
    %79 = arith.cmpf oeq, %13, %78 : vector<64x64xf32>
    %80 = arith.extui %79 : vector<64x64xi1> to vector<64x64xi32>
    %81 = arith.sitofp %80 : vector<64x64xi32> to vector<64x64xf32>
    %cst_41 = arith.constant dense<0.000000e+00> : vector<64x3xf32>
    %82 = tpu.matmul %81, %3, %cst_41 {dimension_numbers = #tpu.dot_dimension_numbers<[1], [0], [0], [1], [0, 0, 1, 1], [], []>} : vector<64x64xf32>, vector<64x3xf32>, vector<64x3xf32> -> vector<64x3xf32>
    %83 = arith.subf %82, %1 : vector<64x3xf32>
    %84 = arith.truncf %83 : vector<64x3xf32> to vector<64x3xbf16>
    %cst_42 = arith.constant dense<0.000000e+00> : vector<64x16xf32>
    %85 = tpu.matmul %84, %17, %cst_42 {dimension_numbers = #tpu.dot_dimension_numbers<[1], [0], [0], [1], [0, 0, 1, 1], [], []>} : vector<64x3xbf16>, vector<3x16xbf16>, vector<64x16xf32> -> vector<64x16xf32>
    %86 = arith.addf %85, %16 : vector<64x16xf32>
    %87 = vector.broadcast %19 : vector<1x16xf32> to vector<64x16xf32>
    %88 = arith.mulf %86, %87 : vector<64x16xf32>
    %89 = vector.broadcast %20 : vector<1x16xf32> to vector<64x16xf32>
    %90 = arith.addf %88, %89 : vector<64x16xf32>
    %cst_43 = arith.constant 0.000000e+00 : f32
    %91 = vector.broadcast %cst_43 : f32 to vector<64x16xf32>
    %92 = arith.cmpf ogt, %90, %91 : vector<64x16xf32>
    %cst_44 = arith.constant 2.000000e-01 : f32
    %93 = vector.broadcast %cst_44 : f32 to vector<64x16xf32>
    %94 = arith.mulf %93, %90 : vector<64x16xf32>
    %95 = arith.select %92, %90, %94 : vector<64x16xi1>, vector<64x16xf32>
    %96 = arith.truncf %95 : vector<64x16xf32> to vector<64x16xbf16>
    %cst_45 = arith.constant dense<0.000000e+00> : vector<64x16xf32>
    %97 = tpu.matmul %96, %18, %cst_45 {dimension_numbers = #tpu.dot_dimension_numbers<[1], [0], [0], [1], [0, 0, 1, 1], [], []>} : vector<64x16xbf16>, vector<16x16xbf16>, vector<64x16xf32> -> vector<64x16xf32>
    %98 = vector.broadcast %21 : vector<1x16xf32> to vector<64x16xf32>
    %99 = arith.mulf %97, %98 : vector<64x16xf32>
    %100 = vector.broadcast %22 : vector<1x16xf32> to vector<64x16xf32>
    %101 = arith.addf %99, %100 : vector<64x16xf32>
    %cst_46 = arith.constant 0.000000e+00 : f32
    %102 = vector.broadcast %cst_46 : f32 to vector<64x16xf32>
    %103 = arith.cmpf ogt, %101, %102 : vector<64x16xf32>
    %cst_47 = arith.constant 2.000000e-01 : f32
    %104 = vector.broadcast %cst_47 : f32 to vector<64x16xf32>
    %105 = arith.mulf %104, %101 : vector<64x16xf32>
    %106 = arith.select %103, %101, %105 : vector<64x16xi1>, vector<64x16xf32>
    %107 = arith.maximumf %63, %106 : vector<64x16xf32>
    %cst_48 = arith.constant 0xFF800000 : f32
    %108 = vector.broadcast %cst_48 : f32 to vector<64x64xf32>
    %109 = arith.select %79, %108, %65 : vector<64x64xi1>, vector<64x64xf32>
    %cst_49 = arith.constant dense<0xFF800000> : vector<64xf32>
    %110 = vector.multi_reduction <maximumf>, %109, %cst_49 [1] : vector<64x64xf32> to vector<64xf32>
    %111 = vector.shape_cast %110 : vector<64xf32> to vector<64x1xf32>
    %112 = vector.broadcast %111 : vector<64x1xf32> to vector<64x64xf32>
    %113 = arith.cmpf oeq, %109, %112 : vector<64x64xf32>
    %cst_50 = arith.constant 0.000000e+00 : f32
    %114 = vector.broadcast %cst_50 : f32 to vector<64x64xf32>
    %115 = arith.subf %114, %13 : vector<64x64xf32>
    %cst_51 = arith.constant -6.400000e+01 : f32
    %116 = vector.broadcast %cst_51 : f32 to vector<64x64xf32>
    %117 = arith.select %113, %115, %116 : vector<64x64xi1>, vector<64x64xf32>
    %cst_52 = arith.constant dense<0xFF800000> : vector<64xf32>
    %118 = vector.multi_reduction <maximumf>, %117, %cst_52 [1] : vector<64x64xf32> to vector<64xf32>
    %119 = vector.shape_cast %118 : vector<64xf32> to vector<64x1xf32>
    %cst_53 = arith.constant 0.000000e+00 : f32
    %120 = vector.broadcast %cst_53 : f32 to vector<64x1xf32>
    %121 = arith.subf %120, %119 : vector<64x1xf32>
    %122 = vector.broadcast %121 : vector<64x1xf32> to vector<64x64xf32>
    %123 = arith.cmpf oeq, %13, %122 : vector<64x64xf32>
    %124 = arith.extui %123 : vector<64x64xi1> to vector<64x64xi32>
    %125 = arith.sitofp %124 : vector<64x64xi32> to vector<64x64xf32>
    %cst_54 = arith.constant dense<0.000000e+00> : vector<64x3xf32>
    %126 = tpu.matmul %125, %3, %cst_54 {dimension_numbers = #tpu.dot_dimension_numbers<[1], [0], [0], [1], [0, 0, 1, 1], [], []>} : vector<64x64xf32>, vector<64x3xf32>, vector<64x3xf32> -> vector<64x3xf32>
    %127 = arith.subf %126, %1 : vector<64x3xf32>
    %128 = arith.truncf %127 : vector<64x3xf32> to vector<64x3xbf16>
    %cst_55 = arith.constant dense<0.000000e+00> : vector<64x16xf32>
    %129 = tpu.matmul %128, %17, %cst_55 {dimension_numbers = #tpu.dot_dimension_numbers<[1], [0], [0], [1], [0, 0, 1, 1], [], []>} : vector<64x3xbf16>, vector<3x16xbf16>, vector<64x16xf32> -> vector<64x16xf32>
    %130 = arith.addf %129, %16 : vector<64x16xf32>
    %131 = vector.broadcast %19 : vector<1x16xf32> to vector<64x16xf32>
    %132 = arith.mulf %130, %131 : vector<64x16xf32>
    %133 = vector.broadcast %20 : vector<1x16xf32> to vector<64x16xf32>
    %134 = arith.addf %132, %133 : vector<64x16xf32>
    %cst_56 = arith.constant 0.000000e+00 : f32
    %135 = vector.broadcast %cst_56 : f32 to vector<64x16xf32>
    %136 = arith.cmpf ogt, %134, %135 : vector<64x16xf32>
    %cst_57 = arith.constant 2.000000e-01 : f32
    %137 = vector.broadcast %cst_57 : f32 to vector<64x16xf32>
    %138 = arith.mulf %137, %134 : vector<64x16xf32>
    %139 = arith.select %136, %134, %138 : vector<64x16xi1>, vector<64x16xf32>
    %140 = arith.truncf %139 : vector<64x16xf32> to vector<64x16xbf16>
    %cst_58 = arith.constant dense<0.000000e+00> : vector<64x16xf32>
    %141 = tpu.matmul %140, %18, %cst_58 {dimension_numbers = #tpu.dot_dimension_numbers<[1], [0], [0], [1], [0, 0, 1, 1], [], []>} : vector<64x16xbf16>, vector<16x16xbf16>, vector<64x16xf32> -> vector<64x16xf32>
    %142 = vector.broadcast %21 : vector<1x16xf32> to vector<64x16xf32>
    %143 = arith.mulf %141, %142 : vector<64x16xf32>
    %144 = vector.broadcast %22 : vector<1x16xf32> to vector<64x16xf32>
    %145 = arith.addf %143, %144 : vector<64x16xf32>
    %cst_59 = arith.constant 0.000000e+00 : f32
    %146 = vector.broadcast %cst_59 : f32 to vector<64x16xf32>
    %147 = arith.cmpf ogt, %145, %146 : vector<64x16xf32>
    %cst_60 = arith.constant 2.000000e-01 : f32
    %148 = vector.broadcast %cst_60 : f32 to vector<64x16xf32>
    %149 = arith.mulf %148, %145 : vector<64x16xf32>
    %150 = arith.select %147, %145, %149 : vector<64x16xi1>, vector<64x16xf32>
    %151 = arith.maximumf %107, %150 : vector<64x16xf32>
    %cst_61 = arith.constant 0xFF800000 : f32
    %152 = vector.broadcast %cst_61 : f32 to vector<64x64xf32>
    %153 = arith.select %123, %152, %109 : vector<64x64xi1>, vector<64x64xf32>
    %cst_62 = arith.constant dense<0xFF800000> : vector<64xf32>
    %154 = vector.multi_reduction <maximumf>, %153, %cst_62 [1] : vector<64x64xf32> to vector<64xf32>
    %155 = vector.shape_cast %154 : vector<64xf32> to vector<64x1xf32>
    %156 = vector.broadcast %155 : vector<64x1xf32> to vector<64x64xf32>
    %157 = arith.cmpf oeq, %153, %156 : vector<64x64xf32>
    %cst_63 = arith.constant 0.000000e+00 : f32
    %158 = vector.broadcast %cst_63 : f32 to vector<64x64xf32>
    %159 = arith.subf %158, %13 : vector<64x64xf32>
    %cst_64 = arith.constant -6.400000e+01 : f32
    %160 = vector.broadcast %cst_64 : f32 to vector<64x64xf32>
    %161 = arith.select %157, %159, %160 : vector<64x64xi1>, vector<64x64xf32>
    %cst_65 = arith.constant dense<0xFF800000> : vector<64xf32>
    %162 = vector.multi_reduction <maximumf>, %161, %cst_65 [1] : vector<64x64xf32> to vector<64xf32>
    %163 = vector.shape_cast %162 : vector<64xf32> to vector<64x1xf32>
    %cst_66 = arith.constant 0.000000e+00 : f32
    %164 = vector.broadcast %cst_66 : f32 to vector<64x1xf32>
    %165 = arith.subf %164, %163 : vector<64x1xf32>
    %166 = vector.broadcast %165 : vector<64x1xf32> to vector<64x64xf32>
    %167 = arith.cmpf oeq, %13, %166 : vector<64x64xf32>
    %168 = arith.extui %167 : vector<64x64xi1> to vector<64x64xi32>
    %169 = arith.sitofp %168 : vector<64x64xi32> to vector<64x64xf32>
    %cst_67 = arith.constant dense<0.000000e+00> : vector<64x3xf32>
    %170 = tpu.matmul %169, %3, %cst_67 {dimension_numbers = #tpu.dot_dimension_numbers<[1], [0], [0], [1], [0, 0, 1, 1], [], []>} : vector<64x64xf32>, vector<64x3xf32>, vector<64x3xf32> -> vector<64x3xf32>
    %171 = arith.subf %170, %1 : vector<64x3xf32>
    %172 = arith.truncf %171 : vector<64x3xf32> to vector<64x3xbf16>
    %cst_68 = arith.constant dense<0.000000e+00> : vector<64x16xf32>
    %173 = tpu.matmul %172, %17, %cst_68 {dimension_numbers = #tpu.dot_dimension_numbers<[1], [0], [0], [1], [0, 0, 1, 1], [], []>} : vector<64x3xbf16>, vector<3x16xbf16>, vector<64x16xf32> -> vector<64x16xf32>
    %174 = arith.addf %173, %16 : vector<64x16xf32>
    %175 = vector.broadcast %19 : vector<1x16xf32> to vector<64x16xf32>
    %176 = arith.mulf %174, %175 : vector<64x16xf32>
    %177 = vector.broadcast %20 : vector<1x16xf32> to vector<64x16xf32>
    %178 = arith.addf %176, %177 : vector<64x16xf32>
    %cst_69 = arith.constant 0.000000e+00 : f32
    %179 = vector.broadcast %cst_69 : f32 to vector<64x16xf32>
    %180 = arith.cmpf ogt, %178, %179 : vector<64x16xf32>
    %cst_70 = arith.constant 2.000000e-01 : f32
    %181 = vector.broadcast %cst_70 : f32 to vector<64x16xf32>
    %182 = arith.mulf %181, %178 : vector<64x16xf32>
    %183 = arith.select %180, %178, %182 : vector<64x16xi1>, vector<64x16xf32>
    %184 = arith.truncf %183 : vector<64x16xf32> to vector<64x16xbf16>
    %cst_71 = arith.constant dense<0.000000e+00> : vector<64x16xf32>
    %185 = tpu.matmul %184, %18, %cst_71 {dimension_numbers = #tpu.dot_dimension_numbers<[1], [0], [0], [1], [0, 0, 1, 1], [], []>} : vector<64x16xbf16>, vector<16x16xbf16>, vector<64x16xf32> -> vector<64x16xf32>
    %186 = vector.broadcast %21 : vector<1x16xf32> to vector<64x16xf32>
    %187 = arith.mulf %185, %186 : vector<64x16xf32>
    %188 = vector.broadcast %22 : vector<1x16xf32> to vector<64x16xf32>
    %189 = arith.addf %187, %188 : vector<64x16xf32>
    %cst_72 = arith.constant 0.000000e+00 : f32
    %190 = vector.broadcast %cst_72 : f32 to vector<64x16xf32>
    %191 = arith.cmpf ogt, %189, %190 : vector<64x16xf32>
    %cst_73 = arith.constant 2.000000e-01 : f32
    %192 = vector.broadcast %cst_73 : f32 to vector<64x16xf32>
    %193 = arith.mulf %192, %189 : vector<64x16xf32>
    %194 = arith.select %191, %189, %193 : vector<64x16xi1>, vector<64x16xf32>
    %195 = arith.maximumf %151, %194 : vector<64x16xf32>
    %cst_74 = arith.constant 0xFF800000 : f32
    %196 = vector.broadcast %cst_74 : f32 to vector<64x64xf32>
    %197 = arith.select %167, %196, %153 : vector<64x64xi1>, vector<64x64xf32>
    %cst_75 = arith.constant dense<0xFF800000> : vector<64xf32>
    %198 = vector.multi_reduction <maximumf>, %197, %cst_75 [1] : vector<64x64xf32> to vector<64xf32>
    %199 = vector.shape_cast %198 : vector<64xf32> to vector<64x1xf32>
    %200 = vector.broadcast %199 : vector<64x1xf32> to vector<64x64xf32>
    %201 = arith.cmpf oeq, %197, %200 : vector<64x64xf32>
    %cst_76 = arith.constant 0.000000e+00 : f32
    %202 = vector.broadcast %cst_76 : f32 to vector<64x64xf32>
    %203 = arith.subf %202, %13 : vector<64x64xf32>
    %cst_77 = arith.constant -6.400000e+01 : f32
    %204 = vector.broadcast %cst_77 : f32 to vector<64x64xf32>
    %205 = arith.select %201, %203, %204 : vector<64x64xi1>, vector<64x64xf32>
    %cst_78 = arith.constant dense<0xFF800000> : vector<64xf32>
    %206 = vector.multi_reduction <maximumf>, %205, %cst_78 [1] : vector<64x64xf32> to vector<64xf32>
    %207 = vector.shape_cast %206 : vector<64xf32> to vector<64x1xf32>
    %cst_79 = arith.constant 0.000000e+00 : f32
    %208 = vector.broadcast %cst_79 : f32 to vector<64x1xf32>
    %209 = arith.subf %208, %207 : vector<64x1xf32>
    %210 = vector.broadcast %209 : vector<64x1xf32> to vector<64x64xf32>
    %211 = arith.cmpf oeq, %13, %210 : vector<64x64xf32>
    %212 = arith.extui %211 : vector<64x64xi1> to vector<64x64xi32>
    %213 = arith.sitofp %212 : vector<64x64xi32> to vector<64x64xf32>
    %cst_80 = arith.constant dense<0.000000e+00> : vector<64x3xf32>
    %214 = tpu.matmul %213, %3, %cst_80 {dimension_numbers = #tpu.dot_dimension_numbers<[1], [0], [0], [1], [0, 0, 1, 1], [], []>} : vector<64x64xf32>, vector<64x3xf32>, vector<64x3xf32> -> vector<64x3xf32>
    %215 = arith.subf %214, %1 : vector<64x3xf32>
    %216 = arith.truncf %215 : vector<64x3xf32> to vector<64x3xbf16>
    %cst_81 = arith.constant dense<0.000000e+00> : vector<64x16xf32>
    %217 = tpu.matmul %216, %17, %cst_81 {dimension_numbers = #tpu.dot_dimension_numbers<[1], [0], [0], [1], [0, 0, 1, 1], [], []>} : vector<64x3xbf16>, vector<3x16xbf16>, vector<64x16xf32> -> vector<64x16xf32>
    %218 = arith.addf %217, %16 : vector<64x16xf32>
    %219 = vector.broadcast %19 : vector<1x16xf32> to vector<64x16xf32>
    %220 = arith.mulf %218, %219 : vector<64x16xf32>
    %221 = vector.broadcast %20 : vector<1x16xf32> to vector<64x16xf32>
    %222 = arith.addf %220, %221 : vector<64x16xf32>
    %cst_82 = arith.constant 0.000000e+00 : f32
    %223 = vector.broadcast %cst_82 : f32 to vector<64x16xf32>
    %224 = arith.cmpf ogt, %222, %223 : vector<64x16xf32>
    %cst_83 = arith.constant 2.000000e-01 : f32
    %225 = vector.broadcast %cst_83 : f32 to vector<64x16xf32>
    %226 = arith.mulf %225, %222 : vector<64x16xf32>
    %227 = arith.select %224, %222, %226 : vector<64x16xi1>, vector<64x16xf32>
    %228 = arith.truncf %227 : vector<64x16xf32> to vector<64x16xbf16>
    %cst_84 = arith.constant dense<0.000000e+00> : vector<64x16xf32>
    %229 = tpu.matmul %228, %18, %cst_84 {dimension_numbers = #tpu.dot_dimension_numbers<[1], [0], [0], [1], [0, 0, 1, 1], [], []>} : vector<64x16xbf16>, vector<16x16xbf16>, vector<64x16xf32> -> vector<64x16xf32>
    %230 = vector.broadcast %21 : vector<1x16xf32> to vector<64x16xf32>
    %231 = arith.mulf %229, %230 : vector<64x16xf32>
    %232 = vector.broadcast %22 : vector<1x16xf32> to vector<64x16xf32>
    %233 = arith.addf %231, %232 : vector<64x16xf32>
    %cst_85 = arith.constant 0.000000e+00 : f32
    %234 = vector.broadcast %cst_85 : f32 to vector<64x16xf32>
    %235 = arith.cmpf ogt, %233, %234 : vector<64x16xf32>
    %cst_86 = arith.constant 2.000000e-01 : f32
    %236 = vector.broadcast %cst_86 : f32 to vector<64x16xf32>
    %237 = arith.mulf %236, %233 : vector<64x16xf32>
    %238 = arith.select %235, %233, %237 : vector<64x16xi1>, vector<64x16xf32>
    %239 = arith.maximumf %195, %238 : vector<64x16xf32>
    %cst_87 = arith.constant 0xFF800000 : f32
    %240 = vector.broadcast %cst_87 : f32 to vector<64x64xf32>
    %241 = arith.select %211, %240, %197 : vector<64x64xi1>, vector<64x64xf32>
    %cst_88 = arith.constant dense<0xFF800000> : vector<64xf32>
    %242 = vector.multi_reduction <maximumf>, %241, %cst_88 [1] : vector<64x64xf32> to vector<64xf32>
    %243 = vector.shape_cast %242 : vector<64xf32> to vector<64x1xf32>
    %244 = vector.broadcast %243 : vector<64x1xf32> to vector<64x64xf32>
    %245 = arith.cmpf oeq, %241, %244 : vector<64x64xf32>
    %cst_89 = arith.constant 0.000000e+00 : f32
    %246 = vector.broadcast %cst_89 : f32 to vector<64x64xf32>
    %247 = arith.subf %246, %13 : vector<64x64xf32>
    %cst_90 = arith.constant -6.400000e+01 : f32
    %248 = vector.broadcast %cst_90 : f32 to vector<64x64xf32>
    %249 = arith.select %245, %247, %248 : vector<64x64xi1>, vector<64x64xf32>
    %cst_91 = arith.constant dense<0xFF800000> : vector<64xf32>
    %250 = vector.multi_reduction <maximumf>, %249, %cst_91 [1] : vector<64x64xf32> to vector<64xf32>
    %251 = vector.shape_cast %250 : vector<64xf32> to vector<64x1xf32>
    %cst_92 = arith.constant 0.000000e+00 : f32
    %252 = vector.broadcast %cst_92 : f32 to vector<64x1xf32>
    %253 = arith.subf %252, %251 : vector<64x1xf32>
    %254 = vector.broadcast %253 : vector<64x1xf32> to vector<64x64xf32>
    %255 = arith.cmpf oeq, %13, %254 : vector<64x64xf32>
    %256 = arith.extui %255 : vector<64x64xi1> to vector<64x64xi32>
    %257 = arith.sitofp %256 : vector<64x64xi32> to vector<64x64xf32>
    %cst_93 = arith.constant dense<0.000000e+00> : vector<64x3xf32>
    %258 = tpu.matmul %257, %3, %cst_93 {dimension_numbers = #tpu.dot_dimension_numbers<[1], [0], [0], [1], [0, 0, 1, 1], [], []>} : vector<64x64xf32>, vector<64x3xf32>, vector<64x3xf32> -> vector<64x3xf32>
    %259 = arith.subf %258, %1 : vector<64x3xf32>
    %260 = arith.truncf %259 : vector<64x3xf32> to vector<64x3xbf16>
    %cst_94 = arith.constant dense<0.000000e+00> : vector<64x16xf32>
    %261 = tpu.matmul %260, %17, %cst_94 {dimension_numbers = #tpu.dot_dimension_numbers<[1], [0], [0], [1], [0, 0, 1, 1], [], []>} : vector<64x3xbf16>, vector<3x16xbf16>, vector<64x16xf32> -> vector<64x16xf32>
    %262 = arith.addf %261, %16 : vector<64x16xf32>
    %263 = vector.broadcast %19 : vector<1x16xf32> to vector<64x16xf32>
    %264 = arith.mulf %262, %263 : vector<64x16xf32>
    %265 = vector.broadcast %20 : vector<1x16xf32> to vector<64x16xf32>
    %266 = arith.addf %264, %265 : vector<64x16xf32>
    %cst_95 = arith.constant 0.000000e+00 : f32
    %267 = vector.broadcast %cst_95 : f32 to vector<64x16xf32>
    %268 = arith.cmpf ogt, %266, %267 : vector<64x16xf32>
    %cst_96 = arith.constant 2.000000e-01 : f32
    %269 = vector.broadcast %cst_96 : f32 to vector<64x16xf32>
    %270 = arith.mulf %269, %266 : vector<64x16xf32>
    %271 = arith.select %268, %266, %270 : vector<64x16xi1>, vector<64x16xf32>
    %272 = arith.truncf %271 : vector<64x16xf32> to vector<64x16xbf16>
    %cst_97 = arith.constant dense<0.000000e+00> : vector<64x16xf32>
    %273 = tpu.matmul %272, %18, %cst_97 {dimension_numbers = #tpu.dot_dimension_numbers<[1], [0], [0], [1], [0, 0, 1, 1], [], []>} : vector<64x16xbf16>, vector<16x16xbf16>, vector<64x16xf32> -> vector<64x16xf32>
    %274 = vector.broadcast %21 : vector<1x16xf32> to vector<64x16xf32>
    %275 = arith.mulf %273, %274 : vector<64x16xf32>
    %276 = vector.broadcast %22 : vector<1x16xf32> to vector<64x16xf32>
    %277 = arith.addf %275, %276 : vector<64x16xf32>
    %cst_98 = arith.constant 0.000000e+00 : f32
    %278 = vector.broadcast %cst_98 : f32 to vector<64x16xf32>
    %279 = arith.cmpf ogt, %277, %278 : vector<64x16xf32>
    %cst_99 = arith.constant 2.000000e-01 : f32
    %280 = vector.broadcast %cst_99 : f32 to vector<64x16xf32>
    %281 = arith.mulf %280, %277 : vector<64x16xf32>
    %282 = arith.select %279, %277, %281 : vector<64x16xi1>, vector<64x16xf32>
    %283 = arith.maximumf %239, %282 : vector<64x16xf32>
    %cst_100 = arith.constant 0xFF800000 : f32
    %284 = vector.broadcast %cst_100 : f32 to vector<64x64xf32>
    %285 = arith.select %255, %284, %241 : vector<64x64xi1>, vector<64x64xf32>
    %cst_101 = arith.constant dense<0xFF800000> : vector<64xf32>
    %286 = vector.multi_reduction <maximumf>, %285, %cst_101 [1] : vector<64x64xf32> to vector<64xf32>
    %287 = vector.shape_cast %286 : vector<64xf32> to vector<64x1xf32>
    %288 = vector.broadcast %287 : vector<64x1xf32> to vector<64x64xf32>
    %289 = arith.cmpf oeq, %285, %288 : vector<64x64xf32>
    %cst_102 = arith.constant 0.000000e+00 : f32
    %290 = vector.broadcast %cst_102 : f32 to vector<64x64xf32>
    %291 = arith.subf %290, %13 : vector<64x64xf32>
    %cst_103 = arith.constant -6.400000e+01 : f32
    %292 = vector.broadcast %cst_103 : f32 to vector<64x64xf32>
    %293 = arith.select %289, %291, %292 : vector<64x64xi1>, vector<64x64xf32>
    %cst_104 = arith.constant dense<0xFF800000> : vector<64xf32>
    %294 = vector.multi_reduction <maximumf>, %293, %cst_104 [1] : vector<64x64xf32> to vector<64xf32>
    %295 = vector.shape_cast %294 : vector<64xf32> to vector<64x1xf32>
    %cst_105 = arith.constant 0.000000e+00 : f32
    %296 = vector.broadcast %cst_105 : f32 to vector<64x1xf32>
    %297 = arith.subf %296, %295 : vector<64x1xf32>
    %298 = vector.broadcast %297 : vector<64x1xf32> to vector<64x64xf32>
    %299 = arith.cmpf oeq, %13, %298 : vector<64x64xf32>
    %300 = arith.extui %299 : vector<64x64xi1> to vector<64x64xi32>
    %301 = arith.sitofp %300 : vector<64x64xi32> to vector<64x64xf32>
    %cst_106 = arith.constant dense<0.000000e+00> : vector<64x3xf32>
    %302 = tpu.matmul %301, %3, %cst_106 {dimension_numbers = #tpu.dot_dimension_numbers<[1], [0], [0], [1], [0, 0, 1, 1], [], []>} : vector<64x64xf32>, vector<64x3xf32>, vector<64x3xf32> -> vector<64x3xf32>
    %303 = arith.subf %302, %1 : vector<64x3xf32>
    %304 = arith.truncf %303 : vector<64x3xf32> to vector<64x3xbf16>
    %cst_107 = arith.constant dense<0.000000e+00> : vector<64x16xf32>
    %305 = tpu.matmul %304, %17, %cst_107 {dimension_numbers = #tpu.dot_dimension_numbers<[1], [0], [0], [1], [0, 0, 1, 1], [], []>} : vector<64x3xbf16>, vector<3x16xbf16>, vector<64x16xf32> -> vector<64x16xf32>
    %306 = arith.addf %305, %16 : vector<64x16xf32>
    %307 = vector.broadcast %19 : vector<1x16xf32> to vector<64x16xf32>
    %308 = arith.mulf %306, %307 : vector<64x16xf32>
    %309 = vector.broadcast %20 : vector<1x16xf32> to vector<64x16xf32>
    %310 = arith.addf %308, %309 : vector<64x16xf32>
    %cst_108 = arith.constant 0.000000e+00 : f32
    %311 = vector.broadcast %cst_108 : f32 to vector<64x16xf32>
    %312 = arith.cmpf ogt, %310, %311 : vector<64x16xf32>
    %cst_109 = arith.constant 2.000000e-01 : f32
    %313 = vector.broadcast %cst_109 : f32 to vector<64x16xf32>
    %314 = arith.mulf %313, %310 : vector<64x16xf32>
    %315 = arith.select %312, %310, %314 : vector<64x16xi1>, vector<64x16xf32>
    %316 = arith.truncf %315 : vector<64x16xf32> to vector<64x16xbf16>
    %cst_110 = arith.constant dense<0.000000e+00> : vector<64x16xf32>
    %317 = tpu.matmul %316, %18, %cst_110 {dimension_numbers = #tpu.dot_dimension_numbers<[1], [0], [0], [1], [0, 0, 1, 1], [], []>} : vector<64x16xbf16>, vector<16x16xbf16>, vector<64x16xf32> -> vector<64x16xf32>
    %318 = vector.broadcast %21 : vector<1x16xf32> to vector<64x16xf32>
    %319 = arith.mulf %317, %318 : vector<64x16xf32>
    %320 = vector.broadcast %22 : vector<1x16xf32> to vector<64x16xf32>
    %321 = arith.addf %319, %320 : vector<64x16xf32>
    %cst_111 = arith.constant 0.000000e+00 : f32
    %322 = vector.broadcast %cst_111 : f32 to vector<64x16xf32>
    %323 = arith.cmpf ogt, %321, %322 : vector<64x16xf32>
    %cst_112 = arith.constant 2.000000e-01 : f32
    %324 = vector.broadcast %cst_112 : f32 to vector<64x16xf32>
    %325 = arith.mulf %324, %321 : vector<64x16xf32>
    %326 = arith.select %323, %321, %325 : vector<64x16xi1>, vector<64x16xf32>
    %327 = arith.maximumf %283, %326 : vector<64x16xf32>
    %cst_113 = arith.constant 0xFF800000 : f32
    %328 = vector.broadcast %cst_113 : f32 to vector<64x64xf32>
    %329 = arith.select %299, %328, %285 : vector<64x64xi1>, vector<64x64xf32>
    %cst_114 = arith.constant dense<0xFF800000> : vector<64xf32>
    %330 = vector.multi_reduction <maximumf>, %329, %cst_114 [1] : vector<64x64xf32> to vector<64xf32>
    %331 = vector.shape_cast %330 : vector<64xf32> to vector<64x1xf32>
    %332 = vector.broadcast %331 : vector<64x1xf32> to vector<64x64xf32>
    %333 = arith.cmpf oeq, %329, %332 : vector<64x64xf32>
    %cst_115 = arith.constant 0.000000e+00 : f32
    %334 = vector.broadcast %cst_115 : f32 to vector<64x64xf32>
    %335 = arith.subf %334, %13 : vector<64x64xf32>
    %cst_116 = arith.constant -6.400000e+01 : f32
    %336 = vector.broadcast %cst_116 : f32 to vector<64x64xf32>
    %337 = arith.select %333, %335, %336 : vector<64x64xi1>, vector<64x64xf32>
    %cst_117 = arith.constant dense<0xFF800000> : vector<64xf32>
    %338 = vector.multi_reduction <maximumf>, %337, %cst_117 [1] : vector<64x64xf32> to vector<64xf32>
    %339 = vector.shape_cast %338 : vector<64xf32> to vector<64x1xf32>
    %cst_118 = arith.constant 0.000000e+00 : f32
    %340 = vector.broadcast %cst_118 : f32 to vector<64x1xf32>
    %341 = arith.subf %340, %339 : vector<64x1xf32>
    %342 = vector.broadcast %341 : vector<64x1xf32> to vector<64x64xf32>
    %343 = arith.cmpf oeq, %13, %342 : vector<64x64xf32>
    %344 = arith.extui %343 : vector<64x64xi1> to vector<64x64xi32>
    %345 = arith.sitofp %344 : vector<64x64xi32> to vector<64x64xf32>
    %cst_119 = arith.constant dense<0.000000e+00> : vector<64x3xf32>
    %346 = tpu.matmul %345, %3, %cst_119 {dimension_numbers = #tpu.dot_dimension_numbers<[1], [0], [0], [1], [0, 0, 1, 1], [], []>} : vector<64x64xf32>, vector<64x3xf32>, vector<64x3xf32> -> vector<64x3xf32>
    %347 = arith.subf %346, %1 : vector<64x3xf32>
    %348 = arith.truncf %347 : vector<64x3xf32> to vector<64x3xbf16>
    %cst_120 = arith.constant dense<0.000000e+00> : vector<64x16xf32>
    %349 = tpu.matmul %348, %17, %cst_120 {dimension_numbers = #tpu.dot_dimension_numbers<[1], [0], [0], [1], [0, 0, 1, 1], [], []>} : vector<64x3xbf16>, vector<3x16xbf16>, vector<64x16xf32> -> vector<64x16xf32>
    %350 = arith.addf %349, %16 : vector<64x16xf32>
    %351 = vector.broadcast %19 : vector<1x16xf32> to vector<64x16xf32>
    %352 = arith.mulf %350, %351 : vector<64x16xf32>
    %353 = vector.broadcast %20 : vector<1x16xf32> to vector<64x16xf32>
    %354 = arith.addf %352, %353 : vector<64x16xf32>
    %cst_121 = arith.constant 0.000000e+00 : f32
    %355 = vector.broadcast %cst_121 : f32 to vector<64x16xf32>
    %356 = arith.cmpf ogt, %354, %355 : vector<64x16xf32>
    %cst_122 = arith.constant 2.000000e-01 : f32
    %357 = vector.broadcast %cst_122 : f32 to vector<64x16xf32>
    %358 = arith.mulf %357, %354 : vector<64x16xf32>
    %359 = arith.select %356, %354, %358 : vector<64x16xi1>, vector<64x16xf32>
    %360 = arith.truncf %359 : vector<64x16xf32> to vector<64x16xbf16>
    %cst_123 = arith.constant dense<0.000000e+00> : vector<64x16xf32>
    %361 = tpu.matmul %360, %18, %cst_123 {dimension_numbers = #tpu.dot_dimension_numbers<[1], [0], [0], [1], [0, 0, 1, 1], [], []>} : vector<64x16xbf16>, vector<16x16xbf16>, vector<64x16xf32> -> vector<64x16xf32>
    %362 = vector.broadcast %21 : vector<1x16xf32> to vector<64x16xf32>
    %363 = arith.mulf %361, %362 : vector<64x16xf32>
    %364 = vector.broadcast %22 : vector<1x16xf32> to vector<64x16xf32>
    %365 = arith.addf %363, %364 : vector<64x16xf32>
    %cst_124 = arith.constant 0.000000e+00 : f32
    %366 = vector.broadcast %cst_124 : f32 to vector<64x16xf32>
    %367 = arith.cmpf ogt, %365, %366 : vector<64x16xf32>
    %cst_125 = arith.constant 2.000000e-01 : f32
    %368 = vector.broadcast %cst_125 : f32 to vector<64x16xf32>
    %369 = arith.mulf %368, %365 : vector<64x16xf32>
    %370 = arith.select %367, %365, %369 : vector<64x16xi1>, vector<64x16xf32>
    %371 = arith.maximumf %327, %370 : vector<64x16xf32>
    %c0_126 = arith.constant 0 : index
    %c0_127 = arith.constant 0 : index
    %c0_128 = arith.constant 0 : index
    %372 = vector.load %arg11[%c0_126, %c0_127, %c0_128] : memref<1x64x16xf32, #tpu.memory_space<vmem>>, vector<1x64x16xf32>
    %373 = vector.shape_cast %372 : vector<1x64x16xf32> to vector<64x16xf32>
    %374 = vector.shape_cast %371 : vector<64x16xf32> to vector<1x64x16xf32>
    tpu.vector_store %arg11[%c0_126, %c0_127, %c0_128], %374 {strides = array<i32>} : memref<1x64x16xf32, #tpu.memory_space<vmem>>, vector<1x64x16xf32>,
    return
  }
  func.func @transform_0(%arg0: i32, %arg1: i32) -> (i32, i32, i32) {
    %c0_i32 = arith.constant 0 : i32
    %c0_i32_0 = arith.constant 0 : i32
    return %arg0, %arg1, %c0_i32 : i32, i32, i32
  }
  func.func @transform_1(%arg0: i32, %arg1: i32) -> (i32, i32, i32) {
    %c0_i32 = arith.constant 0 : i32
    %c0_i32_0 = arith.constant 0 : i32
    %c0_i32_1 = arith.constant 0 : i32
    return %arg0, %c0_i32, %c0_i32_0 : i32, i32, i32
  }
  func.func @transform_2(%arg0: i32, %arg1: i32) -> (i32, i32) {
    %c0_i32 = arith.constant 0 : i32
    %c0_i32_0 = arith.constant 0 : i32
    %c0_i32_1 = arith.constant 0 : i32
    return %c0_i32, %c0_i32_0 : i32, i32
  }
  func.func @transform_3(%arg0: i32, %arg1: i32) -> (i32, i32) {
    %c0_i32 = arith.constant 0 : i32
    %c0_i32_0 = arith.constant 0 : i32
    %c0_i32_1 = arith.constant 0 : i32
    return %c0_i32, %c0_i32_0 : i32, i32
  }
  func.func @transform_4(%arg0: i32, %arg1: i32) -> (i32, i32) {
    %c0_i32 = arith.constant 0 : i32
    %c0_i32_0 = arith.constant 0 : i32
    %c0_i32_1 = arith.constant 0 : i32
    return %c0_i32, %c0_i32_0 : i32, i32
  }
  func.func @transform_5(%arg0: i32, %arg1: i32) -> (i32, i32) {
    %c0_i32 = arith.constant 0 : i32
    %c0_i32_0 = arith.constant 0 : i32
    %c0_i32_1 = arith.constant 0 : i32
    return %c0_i32, %c0_i32_0 : i32, i32
  }
  func.func @transform_6(%arg0: i32, %arg1: i32) -> (i32, i32) {
    %c0_i32 = arith.constant 0 : i32
    %c0_i32_0 = arith.constant 0 : i32
    %c0_i32_1 = arith.constant 0 : i32
    return %c0_i32, %c0_i32_0 : i32, i32
  }
  func.func @transform_7(%arg0: i32, %arg1: i32) -> (i32, i32) {
    %c0_i32 = arith.constant 0 : i32
    %c0_i32_0 = arith.constant 0 : i32
    %c0_i32_1 = arith.constant 0 : i32
    return %c0_i32, %c0_i32_0 : i32, i32
  }
  func.func @transform_8(%arg0: i32, %arg1: i32) -> (i32, i32) {
    %c0_i32 = arith.constant 0 : i32
    %c0_i32_0 = arith.constant 0 : i32
    %c0_i32_1 = arith.constant 0 : i32
    return %c0_i32, %c0_i32_0 : i32, i32
  }
  func.func @transform_9(%arg0: i32, %arg1: i32) -> (i32, i32, i32) {
    %c0_i32 = arith.constant 0 : i32
    %c0_i32_0 = arith.constant 0 : i32
    return %arg0, %arg1, %c0_i32 : i32, i32, i32
  }
}

module attributes {stable_mosaic.version = 11 : i64} {
  func.func @_tail_kernel(%arg0: i32, %arg1: memref<1x64x48xf32, #tpu.memory_space<vmem>>, %arg2: memref<48x32xbf16, #tpu.memory_space<vmem>>, %arg3: memref<1x32xf32, #tpu.memory_space<vmem>>, %arg4: memref<1x32xf32, #tpu.memory_space<vmem>>, %arg5: memref<32x32xbf16, #tpu.memory_space<vmem>>, %arg6: memref<1x32xf32, #tpu.memory_space<vmem>>, %arg7: memref<1x32xf32, #tpu.memory_space<vmem>>, %arg8: memref<32x32xbf16, #tpu.memory_space<vmem>>, %arg9: memref<32x32xbf16, #tpu.memory_space<vmem>>, %arg10: memref<32x32xbf16, #tpu.memory_space<vmem>>, %arg11: memref<48x256xbf16, #tpu.memory_space<vmem>>, %arg12: memref<32x256xbf16, #tpu.memory_space<vmem>>, %arg13: memref<1x256xf32, #tpu.memory_space<vmem>>, %arg14: memref<1x256xf32, #tpu.memory_space<vmem>>, %arg15: memref<256x128xbf16, #tpu.memory_space<vmem>>, %arg16: memref<1x128xf32, #tpu.memory_space<vmem>>, %arg17: memref<1x128xf32, #tpu.memory_space<vmem>>, %arg18: memref<128x5xbf16, #tpu.memory_space<vmem>>, %arg19: memref<1x5xf32, #tpu.memory_space<vmem>>, %arg20: memref<1x64x5xf32, #tpu.memory_space<vmem>>) attributes {dimension_semantics = [#tpu.dimension_semantics<parallel>], iteration_bounds = array<i64: 2>, scalar_prefetch = 0 : i64, scratch_operands = 0 : i64, tpu.core_type = #tpu.core_type<tc>, window_params = [{transform_indices = @transform_0, window_bounds = array<i64: 1, 64, 48>}, {pipeline_mode = #tpu.pipeline_mode<synchronous>, transform_indices = @transform_1, window_bounds = array<i64: 48, 32>}, {pipeline_mode = #tpu.pipeline_mode<synchronous>, transform_indices = @transform_2, window_bounds = array<i64: 1, 32>}, {pipeline_mode = #tpu.pipeline_mode<synchronous>, transform_indices = @transform_3, window_bounds = array<i64: 1, 32>}, {pipeline_mode = #tpu.pipeline_mode<synchronous>, transform_indices = @transform_4, window_bounds = array<i64: 32, 32>}, {pipeline_mode = #tpu.pipeline_mode<synchronous>, transform_indices = @transform_5, window_bounds = array<i64: 1, 32>}, {pipeline_mode = #tpu.pipeline_mode<synchronous>, transform_indices = @transform_6, window_bounds = array<i64: 1, 32>}, {pipeline_mode = #tpu.pipeline_mode<synchronous>, transform_indices = @transform_7, window_bounds = array<i64: 32, 32>}, {pipeline_mode = #tpu.pipeline_mode<synchronous>, transform_indices = @transform_8, window_bounds = array<i64: 32, 32>}, {pipeline_mode = #tpu.pipeline_mode<synchronous>, transform_indices = @transform_9, window_bounds = array<i64: 32, 32>}, {pipeline_mode = #tpu.pipeline_mode<synchronous>, transform_indices = @transform_10, window_bounds = array<i64: 48, 256>}, {pipeline_mode = #tpu.pipeline_mode<synchronous>, transform_indices = @transform_11, window_bounds = array<i64: 32, 256>}, {pipeline_mode = #tpu.pipeline_mode<synchronous>, transform_indices = @transform_12, window_bounds = array<i64: 1, 256>}, {pipeline_mode = #tpu.pipeline_mode<synchronous>, transform_indices = @transform_13, window_bounds = array<i64: 1, 256>}, {pipeline_mode = #tpu.pipeline_mode<synchronous>, transform_indices = @transform_14, window_bounds = array<i64: 256, 128>}, {pipeline_mode = #tpu.pipeline_mode<synchronous>, transform_indices = @transform_15, window_bounds = array<i64: 1, 128>}, {pipeline_mode = #tpu.pipeline_mode<synchronous>, transform_indices = @transform_16, window_bounds = array<i64: 1, 128>}, {pipeline_mode = #tpu.pipeline_mode<synchronous>, transform_indices = @transform_17, window_bounds = array<i64: 128, 5>}, {pipeline_mode = #tpu.pipeline_mode<synchronous>, transform_indices = @transform_18, window_bounds = array<i64: 1, 5>}, {transform_indices = @transform_19, window_bounds = array<i64: 1, 64, 5>}]} {
    %c0 = arith.constant 0 : index
    %c0_0 = arith.constant 0 : index
    %c0_1 = arith.constant 0 : index
    %0 = vector.load %arg1[%c0, %c0_0, %c0_1] : memref<1x64x48xf32, #tpu.memory_space<vmem>>, vector<1x64x48xf32>
    %1 = vector.shape_cast %0 : vector<1x64x48xf32> to vector<64x48xf32>
    %2 = arith.truncf %1 : vector<64x48xf32> to vector<64x48xbf16>
    %c0_2 = arith.constant 0 : index
    %c0_3 = arith.constant 0 : index
    %3 = vector.load %arg2[%c0_2, %c0_3] : memref<48x32xbf16, #tpu.memory_space<vmem>>, vector<48x32xbf16>
    %cst = arith.constant dense<0.000000e+00> : vector<64x32xf32>
    %4 = tpu.matmul %2, %3, %cst {dimension_numbers = #tpu.dot_dimension_numbers<[1], [0], [0], [1], [0, 0, 1, 1], [], []>} : vector<64x48xbf16>, vector<48x32xbf16>, vector<64x32xf32> -> vector<64x32xf32>
    %c0_4 = arith.constant 0 : index
    %c0_5 = arith.constant 0 : index
    %5 = vector.load %arg3[%c0_4, %c0_5] : memref<1x32xf32, #tpu.memory_space<vmem>>, vector<1x32xf32>
    %6 = vector.broadcast %5 : vector<1x32xf32> to vector<64x32xf32>
    %7 = arith.mulf %4, %6 : vector<64x32xf32>
    %c0_6 = arith.constant 0 : index
    %c0_7 = arith.constant 0 : index
    %8 = vector.load %arg4[%c0_6, %c0_7] : memref<1x32xf32, #tpu.memory_space<vmem>>, vector<1x32xf32>
    %9 = vector.broadcast %8 : vector<1x32xf32> to vector<64x32xf32>
    %10 = arith.addf %7, %9 : vector<64x32xf32>
    %cst_8 = arith.constant 0.000000e+00 : f32
    %11 = vector.broadcast %cst_8 : f32 to vector<64x32xf32>
    %12 = arith.cmpf ogt, %10, %11 : vector<64x32xf32>
    %cst_9 = arith.constant 2.000000e-01 : f32
    %13 = vector.broadcast %cst_9 : f32 to vector<64x32xf32>
    %14 = arith.mulf %13, %10 : vector<64x32xf32>
    %15 = arith.select %12, %10, %14 : vector<64x32xi1>, vector<64x32xf32>
    %16 = arith.truncf %15 : vector<64x32xf32> to vector<64x32xbf16>
    %c0_10 = arith.constant 0 : index
    %c0_11 = arith.constant 0 : index
    %17 = vector.load %arg5[%c0_10, %c0_11] : memref<32x32xbf16, #tpu.memory_space<vmem>>, vector<32x32xbf16>
    %cst_12 = arith.constant dense<0.000000e+00> : vector<64x32xf32>
    %18 = tpu.matmul %16, %17, %cst_12 {dimension_numbers = #tpu.dot_dimension_numbers<[1], [0], [0], [1], [0, 0, 1, 1], [], []>} : vector<64x32xbf16>, vector<32x32xbf16>, vector<64x32xf32> -> vector<64x32xf32>
    %c0_13 = arith.constant 0 : index
    %c0_14 = arith.constant 0 : index
    %19 = vector.load %arg6[%c0_13, %c0_14] : memref<1x32xf32, #tpu.memory_space<vmem>>, vector<1x32xf32>
    %20 = vector.broadcast %19 : vector<1x32xf32> to vector<64x32xf32>
    %21 = arith.mulf %18, %20 : vector<64x32xf32>
    %c0_15 = arith.constant 0 : index
    %c0_16 = arith.constant 0 : index
    %22 = vector.load %arg7[%c0_15, %c0_16] : memref<1x32xf32, #tpu.memory_space<vmem>>, vector<1x32xf32>
    %23 = vector.broadcast %22 : vector<1x32xf32> to vector<64x32xf32>
    %24 = arith.addf %21, %23 : vector<64x32xf32>
    %cst_17 = arith.constant 0.000000e+00 : f32
    %25 = vector.broadcast %cst_17 : f32 to vector<64x32xf32>
    %26 = arith.cmpf ogt, %24, %25 : vector<64x32xf32>
    %cst_18 = arith.constant 2.000000e-01 : f32
    %27 = vector.broadcast %cst_18 : f32 to vector<64x32xf32>
    %28 = arith.mulf %27, %24 : vector<64x32xf32>
    %29 = arith.select %26, %24, %28 : vector<64x32xi1>, vector<64x32xf32>
    %30 = arith.truncf %29 : vector<64x32xf32> to vector<64x32xbf16>
    %c0_19 = arith.constant 0 : index
    %c0_20 = arith.constant 0 : index
    %31 = vector.load %arg8[%c0_19, %c0_20] : memref<32x32xbf16, #tpu.memory_space<vmem>>, vector<32x32xbf16>
    %cst_21 = arith.constant dense<0.000000e+00> : vector<64x32xf32>
    %32 = tpu.matmul %30, %31, %cst_21 {dimension_numbers = #tpu.dot_dimension_numbers<[1], [0], [0], [1], [0, 0, 1, 1], [], []>} : vector<64x32xbf16>, vector<32x32xbf16>, vector<64x32xf32> -> vector<64x32xf32>
    %c0_22 = arith.constant 0 : index
    %c0_23 = arith.constant 0 : index
    %33 = vector.load %arg9[%c0_22, %c0_23] : memref<32x32xbf16, #tpu.memory_space<vmem>>, vector<32x32xbf16>
    %cst_24 = arith.constant dense<0.000000e+00> : vector<64x32xf32>
    %34 = tpu.matmul %30, %33, %cst_24 {dimension_numbers = #tpu.dot_dimension_numbers<[1], [0], [0], [1], [0, 0, 1, 1], [], []>} : vector<64x32xbf16>, vector<32x32xbf16>, vector<64x32xf32> -> vector<64x32xf32>
    %c0_25 = arith.constant 0 : index
    %c0_26 = arith.constant 0 : index
    %35 = vector.load %arg10[%c0_25, %c0_26] : memref<32x32xbf16, #tpu.memory_space<vmem>>, vector<32x32xbf16>
    %cst_27 = arith.constant dense<0.000000e+00> : vector<64x32xf32>
    %36 = tpu.matmul %30, %35, %cst_27 {dimension_numbers = #tpu.dot_dimension_numbers<[1], [0], [0], [1], [0, 0, 1, 1], [], []>} : vector<64x32xbf16>, vector<32x32xbf16>, vector<64x32xf32> -> vector<64x32xf32>
    %cst_28 = arith.constant 0.176776692 : f32
    %37 = vector.broadcast %cst_28 : f32 to vector<64x32xf32>
    %38 = arith.mulf %32, %37 : vector<64x32xf32>
    %39 = arith.truncf %38 : vector<64x32xf32> to vector<64x32xbf16>
    %40 = arith.truncf %34 : vector<64x32xf32> to vector<64x32xbf16>
    %cst_29 = arith.constant dense<0.000000e+00> : vector<64x64xf32>
    %41 = tpu.matmul %39, %40, %cst_29 {dimension_numbers = #tpu.dot_dimension_numbers<[1], [1], [0], [0], [0, 0, 1, 0], [], []>} : vector<64x32xbf16>, vector<64x32xbf16>, vector<64x64xf32> -> vector<64x64xf32>
    %cst_30 = arith.constant dense<0xFF800000> : vector<64xf32>
    %42 = vector.multi_reduction <maximumf>, %41, %cst_30 [1] : vector<64x64xf32> to vector<64xf32>
    %43 = vector.shape_cast %42 : vector<64xf32> to vector<64x1xf32>
    %44 = vector.broadcast %43 : vector<64x1xf32> to vector<64x64xf32>
    %45 = arith.subf %41, %44 : vector<64x64xf32>
    %46 = math.exp %45 : vector<64x64xf32>
    %cst_31 = arith.constant dense<0.000000e+00> : vector<64xf32>
    %47 = vector.multi_reduction <add>, %46, %cst_31 [1] : vector<64x64xf32> to vector<64xf32>
    %48 = vector.shape_cast %47 : vector<64xf32> to vector<64x1xf32>
    %49 = tpu.reciprocal %48 {approx = true} : vector<64x1xf32> -> vector<64x1xf32>
    %50 = vector.broadcast %49 : vector<64x1xf32> to vector<64x64xf32>
    %51 = arith.mulf %46, %50 : vector<64x64xf32>
    %52 = arith.truncf %51 : vector<64x64xf32> to vector<64x64xbf16>
    %53 = arith.truncf %36 : vector<64x32xf32> to vector<64x32xbf16>
    %cst_32 = arith.constant dense<0.000000e+00> : vector<64x32xf32>
    %54 = tpu.matmul %52, %53, %cst_32 {dimension_numbers = #tpu.dot_dimension_numbers<[1], [0], [0], [1], [0, 0, 1, 1], [], []>} : vector<64x64xbf16>, vector<64x32xbf16>, vector<64x32xf32> -> vector<64x32xf32>
    %cst_33 = arith.constant dense<0xFF800000> : vector<32xf32>
    %55 = vector.multi_reduction <maximumf>, %54, %cst_33 [0] : vector<64x32xf32> to vector<32xf32>
    %56 = vector.shape_cast %55 : vector<32xf32> to vector<1x32xf32>
    %57 = arith.truncf %56 : vector<1x32xf32> to vector<1x32xbf16>
    %c0_34 = arith.constant 0 : index
    %c0_35 = arith.constant 0 : index
    %58 = vector.load %arg12[%c0_34, %c0_35] : memref<32x256xbf16, #tpu.memory_space<vmem>>, vector<32x256xbf16>
    %cst_36 = arith.constant dense<0.000000e+00> : vector<1x256xf32>
    %59 = tpu.matmul %57, %58, %cst_36 {dimension_numbers = #tpu.dot_dimension_numbers<[1], [0], [0], [1], [0, 0, 1, 1], [], []>} : vector<1x32xbf16>, vector<32x256xbf16>, vector<1x256xf32> -> vector<1x256xf32>
    %c0_37 = arith.constant 0 : index
    %c0_38 = arith.constant 0 : index
    %60 = vector.load %arg11[%c0_37, %c0_38] : memref<48x256xbf16, #tpu.memory_space<vmem>>, vector<48x256xbf16>
    %cst_39 = arith.constant dense<0.000000e+00> : vector<64x256xf32>
    %61 = tpu.matmul %2, %60, %cst_39 {dimension_numbers = #tpu.dot_dimension_numbers<[1], [0], [0], [1], [0, 0, 1, 1], [], []>} : vector<64x48xbf16>, vector<48x256xbf16>, vector<64x256xf32> -> vector<64x256xf32>
    %62 = vector.broadcast %59 : vector<1x256xf32> to vector<64x256xf32>
    %63 = arith.addf %61, %62 : vector<64x256xf32>
    %c0_40 = arith.constant 0 : index
    %c0_41 = arith.constant 0 : index
    %64 = vector.load %arg13[%c0_40, %c0_41] : memref<1x256xf32, #tpu.memory_space<vmem>>, vector<1x256xf32>
    %65 = vector.broadcast %64 : vector<1x256xf32> to vector<64x256xf32>
    %66 = arith.mulf %63, %65 : vector<64x256xf32>
    %c0_42 = arith.constant 0 : index
    %c0_43 = arith.constant 0 : index
    %67 = vector.load %arg14[%c0_42, %c0_43] : memref<1x256xf32, #tpu.memory_space<vmem>>, vector<1x256xf32>
    %68 = vector.broadcast %67 : vector<1x256xf32> to vector<64x256xf32>
    %69 = arith.addf %66, %68 : vector<64x256xf32>
    %cst_44 = arith.constant 0.000000e+00 : f32
    %70 = vector.broadcast %cst_44 : f32 to vector<64x256xf32>
    %71 = arith.cmpf ogt, %69, %70 : vector<64x256xf32>
    %cst_45 = arith.constant 2.000000e-01 : f32
    %72 = vector.broadcast %cst_45 : f32 to vector<64x256xf32>
    %73 = arith.mulf %72, %69 : vector<64x256xf32>
    %74 = arith.select %71, %69, %73 : vector<64x256xi1>, vector<64x256xf32>
    %75 = arith.truncf %74 : vector<64x256xf32> to vector<64x256xbf16>
    %c0_46 = arith.constant 0 : index
    %c0_47 = arith.constant 0 : index
    %76 = vector.load %arg15[%c0_46, %c0_47] : memref<256x128xbf16, #tpu.memory_space<vmem>>, vector<256x128xbf16>
    %cst_48 = arith.constant dense<0.000000e+00> : vector<64x128xf32>
    %77 = tpu.matmul %75, %76, %cst_48 {dimension_numbers = #tpu.dot_dimension_numbers<[1], [0], [0], [1], [0, 0, 1, 1], [], []>} : vector<64x256xbf16>, vector<256x128xbf16>, vector<64x128xf32> -> vector<64x128xf32>
    %c0_49 = arith.constant 0 : index
    %c0_50 = arith.constant 0 : index
    %78 = vector.load %arg16[%c0_49, %c0_50] : memref<1x128xf32, #tpu.memory_space<vmem>>, vector<1x128xf32>
    %79 = vector.broadcast %78 : vector<1x128xf32> to vector<64x128xf32>
    %80 = arith.mulf %77, %79 : vector<64x128xf32>
    %c0_51 = arith.constant 0 : index
    %c0_52 = arith.constant 0 : index
    %81 = vector.load %arg17[%c0_51, %c0_52] : memref<1x128xf32, #tpu.memory_space<vmem>>, vector<1x128xf32>
    %82 = vector.broadcast %81 : vector<1x128xf32> to vector<64x128xf32>
    %83 = arith.addf %80, %82 : vector<64x128xf32>
    %cst_53 = arith.constant 0.000000e+00 : f32
    %84 = vector.broadcast %cst_53 : f32 to vector<64x128xf32>
    %85 = arith.cmpf ogt, %83, %84 : vector<64x128xf32>
    %cst_54 = arith.constant 2.000000e-01 : f32
    %86 = vector.broadcast %cst_54 : f32 to vector<64x128xf32>
    %87 = arith.mulf %86, %83 : vector<64x128xf32>
    %88 = arith.select %85, %83, %87 : vector<64x128xi1>, vector<64x128xf32>
    %89 = arith.truncf %88 : vector<64x128xf32> to vector<64x128xbf16>
    %c0_55 = arith.constant 0 : index
    %c0_56 = arith.constant 0 : index
    %90 = vector.load %arg18[%c0_55, %c0_56] : memref<128x5xbf16, #tpu.memory_space<vmem>>, vector<128x5xbf16>
    %cst_57 = arith.constant dense<0.000000e+00> : vector<64x5xf32>
    %91 = tpu.matmul %89, %90, %cst_57 {dimension_numbers = #tpu.dot_dimension_numbers<[1], [0], [0], [1], [0, 0, 1, 1], [], []>} : vector<64x128xbf16>, vector<128x5xbf16>, vector<64x5xf32> -> vector<64x5xf32>
    %c0_58 = arith.constant 0 : index
    %c0_59 = arith.constant 0 : index
    %92 = vector.load %arg19[%c0_58, %c0_59] : memref<1x5xf32, #tpu.memory_space<vmem>>, vector<1x5xf32>
    %93 = vector.broadcast %92 : vector<1x5xf32> to vector<64x5xf32>
    %94 = arith.addf %91, %93 : vector<64x5xf32>
    %c0_60 = arith.constant 0 : index
    %c0_61 = arith.constant 0 : index
    %c0_62 = arith.constant 0 : index
    %95 = vector.load %arg20[%c0_60, %c0_61, %c0_62] : memref<1x64x5xf32, #tpu.memory_space<vmem>>, vector<1x64x5xf32>
    %96 = vector.shape_cast %95 : vector<1x64x5xf32> to vector<64x5xf32>
    %97 = vector.shape_cast %94 : vector<64x5xf32> to vector<1x64x5xf32>
    tpu.vector_store %arg20[%c0_60, %c0_61, %c0_62], %97 {strides = array<i32>} : memref<1x64x5xf32, #tpu.memory_space<vmem>>, vector<1x64x5xf32>,
    return
  }
  func.func @transform_0(%arg0: i32) -> (i32, i32, i32) {
    %c0_i32 = arith.constant 0 : i32
    %c0_i32_0 = arith.constant 0 : i32
    %c0_i32_1 = arith.constant 0 : i32
    return %arg0, %c0_i32, %c0_i32_0 : i32, i32, i32
  }
  func.func @transform_1(%arg0: i32) -> (i32, i32) {
    %c0_i32 = arith.constant 0 : i32
    %c0_i32_0 = arith.constant 0 : i32
    %c0_i32_1 = arith.constant 0 : i32
    return %c0_i32, %c0_i32_0 : i32, i32
  }
  func.func @transform_2(%arg0: i32) -> (i32, i32) {
    %c0_i32 = arith.constant 0 : i32
    %c0_i32_0 = arith.constant 0 : i32
    %c0_i32_1 = arith.constant 0 : i32
    return %c0_i32, %c0_i32_0 : i32, i32
  }
  func.func @transform_3(%arg0: i32) -> (i32, i32) {
    %c0_i32 = arith.constant 0 : i32
    %c0_i32_0 = arith.constant 0 : i32
    %c0_i32_1 = arith.constant 0 : i32
    return %c0_i32, %c0_i32_0 : i32, i32
  }
  func.func @transform_4(%arg0: i32) -> (i32, i32) {
    %c0_i32 = arith.constant 0 : i32
    %c0_i32_0 = arith.constant 0 : i32
    %c0_i32_1 = arith.constant 0 : i32
    return %c0_i32, %c0_i32_0 : i32, i32
  }
  func.func @transform_5(%arg0: i32) -> (i32, i32) {
    %c0_i32 = arith.constant 0 : i32
    %c0_i32_0 = arith.constant 0 : i32
    %c0_i32_1 = arith.constant 0 : i32
    return %c0_i32, %c0_i32_0 : i32, i32
  }
  func.func @transform_6(%arg0: i32) -> (i32, i32) {
    %c0_i32 = arith.constant 0 : i32
    %c0_i32_0 = arith.constant 0 : i32
    %c0_i32_1 = arith.constant 0 : i32
    return %c0_i32, %c0_i32_0 : i32, i32
  }
  func.func @transform_7(%arg0: i32) -> (i32, i32) {
    %c0_i32 = arith.constant 0 : i32
    %c0_i32_0 = arith.constant 0 : i32
    %c0_i32_1 = arith.constant 0 : i32
    return %c0_i32, %c0_i32_0 : i32, i32
  }
  func.func @transform_8(%arg0: i32) -> (i32, i32) {
    %c0_i32 = arith.constant 0 : i32
    %c0_i32_0 = arith.constant 0 : i32
    %c0_i32_1 = arith.constant 0 : i32
    return %c0_i32, %c0_i32_0 : i32, i32
  }
  func.func @transform_9(%arg0: i32) -> (i32, i32) {
    %c0_i32 = arith.constant 0 : i32
    %c0_i32_0 = arith.constant 0 : i32
    %c0_i32_1 = arith.constant 0 : i32
    return %c0_i32, %c0_i32_0 : i32, i32
  }
  func.func @transform_10(%arg0: i32) -> (i32, i32) {
    %c0_i32 = arith.constant 0 : i32
    %c0_i32_0 = arith.constant 0 : i32
    %c0_i32_1 = arith.constant 0 : i32
    return %c0_i32, %c0_i32_0 : i32, i32
  }
  func.func @transform_11(%arg0: i32) -> (i32, i32) {
    %c0_i32 = arith.constant 0 : i32
    %c0_i32_0 = arith.constant 0 : i32
    %c0_i32_1 = arith.constant 0 : i32
    return %c0_i32, %c0_i32_0 : i32, i32
  }
  func.func @transform_12(%arg0: i32) -> (i32, i32) {
    %c0_i32 = arith.constant 0 : i32
    %c0_i32_0 = arith.constant 0 : i32
    %c0_i32_1 = arith.constant 0 : i32
    return %c0_i32, %c0_i32_0 : i32, i32
  }
  func.func @transform_13(%arg0: i32) -> (i32, i32) {
    %c0_i32 = arith.constant 0 : i32
    %c0_i32_0 = arith.constant 0 : i32
    %c0_i32_1 = arith.constant 0 : i32
    return %c0_i32, %c0_i32_0 : i32, i32
  }
  func.func @transform_14(%arg0: i32) -> (i32, i32) {
    %c0_i32 = arith.constant 0 : i32
    %c0_i32_0 = arith.constant 0 : i32
    %c0_i32_1 = arith.constant 0 : i32
    return %c0_i32, %c0_i32_0 : i32, i32
  }
  func.func @transform_15(%arg0: i32) -> (i32, i32) {
    %c0_i32 = arith.constant 0 : i32
    %c0_i32_0 = arith.constant 0 : i32
    %c0_i32_1 = arith.constant 0 : i32
    return %c0_i32, %c0_i32_0 : i32, i32
  }
  func.func @transform_16(%arg0: i32) -> (i32, i32) {
    %c0_i32 = arith.constant 0 : i32
    %c0_i32_0 = arith.constant 0 : i32
    %c0_i32_1 = arith.constant 0 : i32
    return %c0_i32, %c0_i32_0 : i32, i32
  }
  func.func @transform_17(%arg0: i32) -> (i32, i32) {
    %c0_i32 = arith.constant 0 : i32
    %c0_i32_0 = arith.constant 0 : i32
    %c0_i32_1 = arith.constant 0 : i32
    return %c0_i32, %c0_i32_0 : i32, i32
  }
  func.func @transform_18(%arg0: i32) -> (i32, i32) {
    %c0_i32 = arith.constant 0 : i32
    %c0_i32_0 = arith.constant 0 : i32
    %c0_i32_1 = arith.constant 0 : i32
    return %c0_i32, %c0_i32_0 : i32, i32
  }
  func.func @transform_19(%arg0: i32) -> (i32, i32, i32) {
    %c0_i32 = arith.constant 0 : i32
    %c0_i32_0 = arith.constant 0 : i32
    %c0_i32_1 = arith.constant 0 : i32
    return %arg0, %c0_i32, %c0_i32_0 : i32, i32, i32
  }
}

</mosaic_0001>

<bundles_post_ra>
// kernel: dgcnn_seg_attention_forward.7
= control target key start
LH: loop header
LB: loop body
LE: loop exit
PB: predicated region body
PF: predicated region fallthrough
CT: control target
= control target key end

     0   :  { %s2672_s0 = inlined_call_operand.vmem [shape: f32[2,64,48], index: 0, kind: input, shape index: {}]   ;;  %s2673_s1 = inlined_call_operand.vmem [shape: bf16[48,32], index: 1, kind: input, shape index: {}]   ;;  %s2674_s2 = inlined_call_operand.vmem [shape: f32[1,32], index: 2, kind: input, shape index: {}]   ;;  %s2675_s3 = inlined_call_operand.vmem [shape: f32[1,32], index: 3, kind: input, shape index: {}]   ;;  %s2676_s4 = inlined_call_operand.vmem [shape: bf16[32,32], index: 4, kind: input, shape index: {}]   ;;  %s2677_s5 = inlined_call_operand.vmem [shape: f32[1,32], index: 5, kind: input, shape index: {}]   ;;  %s2678_s6 = inlined_call_operand.vmem [shape: f32[1,32], index: 6, kind: input, shape index: {}]   ;;  %s2679_s7 = inlined_call_operand.vmem [shape: bf16[32,32], index: 7, kind: input, shape index: {}]   ;;  %s2680_s8 = inlined_call_operand.vmem [shape: bf16[32,32], index: 8, kind: input, shape index: {}]   ;;  %s2681_s9 = inlined_call_operand.vmem [shape: bf16[32,32], index: 9, kind: input, shape index: {}]   ;;  %s2682_s10 = inlined_call_operand.vmem [shape: bf16[48,256], index: 10, kind: input, shape index: {}]   ;;  %s2683_s11 = inlined_call_operand.vmem [shape: bf16[32,256], index: 11, kind: input, shape index: {}]   ;;  %s2684_s12 = inlined_call_operand.vmem [shape: f32[1,256], index: 12, kind: input, shape index: {}]   ;;  %s2685_s13 = inlined_call_operand.vmem [shape: f32[1,256], index: 13, kind: input, shape index: {}]   ;;  %s2686_s14 = inlined_call_operand.vmem [shape: bf16[256,128], index: 14, kind: input, shape index: {}]   ;;  %s2687_s15 = inlined_call_operand.vmem [shape: f32[1,128], index: 15, kind: input, shape index: {}]   ;;  %s2688_s16 = inlined_call_operand.vmem [shape: f32[1,128], index: 16, kind: input, shape index: {}]   ;;  %s2689_s17 = inlined_call_operand.vmem [shape: bf16[128,5], index: 17, kind: input, shape index: {}]   ;;  %s2690_s18 = inlined_call_operand.vmem [shape: f32[1,5], index: 18, kind: input, shape index: {}]   ;;  %s2691_s19 = inlined_call_operand.vmem [shape: f32[2,64,5], index: 19, kind: output, shape index: {}]  }
   0x1   :  { %2693 = sst [smem:[#allocation2_spill]] %s2672_s0  ;;  %s2302_s0 = smov 0  }
   0x2   :  { %2694 = sst [smem:[#allocation3_spill]] %s2673_s1 }
   0x3   :  { %2695 = sst [smem:[#allocation4_spill]] %s2674_s2 }
   0x4   :  { %2696 = sst [smem:[#allocation5_spill]] %s2675_s3 }
   0x5 LB: > { %s1868_s30 = sadd.s32 4294967295, %s2200_s0   ;;  %p1872_p0 = scmp.ge.s32.totalorder %s2200_s0, 1  ;;  %s2200_s0 = sphi %s2302_s0, %s29_s0  }
   0x6   : > { %p537_p1 = scmp.lt.s32.totalorder %s2200_s0, 3 }
   0x8   : > { %p538_p2 = pnand %p1872_p0, %p537_p1 }
   0x9   : > { %s2697_s1 = sld [smem:[#allocation3_spill]] (!%p538_p2)  ;;  %p593_p3 = scmp.lt.s32.totalorder (!%p538_p2), %s1868_s30, 1 }
   0xa   : > { %541 = sbr.rel (%p538_p2) target bundleno = 1653 (0x675), region = 96  ;;  %s2698_s3 = sld [smem:[#allocation2_spill]] (!%p538_p2) }
   0xb   : > { %s2699_s25 = sld [smem:[#allocation4_spill]] (!%p538_p2) }
   0xc   : > { %s2700_s27 = sld [smem:[#allocation5_spill]] (!%p538_p2) }
   0xf   : > { %v2101_v0 = vld [vmem:[%s2697_s1 + $0x10] sm:$0xff]  ;;  %v2100_v1 = vld [vmem:[%s2697_s1 + $0x8] sm:$0xff]  ;;  %s2702_s30 = smov (!%p593_p3, %s1868_s30), 1  ;;  %v2099_v2 = vld [vmem:[%s2697_s1] sm:$0xff]  ;;  %vm640_vm0 = vcmask 392192   ;;  %vm750_vm3 = vcmask 261120  }
  0x10   : > { %658 = vmatpush.bf16.msra.mxu0 %v2101_v0  ;;  %2144 = vmatpush.bf16.msra.mxu1 %v2101_v0  ;;  %s2097_s23 = sshll.u32 %s2702_s30, 6  ;;  %v2103_v15 = vld [vmem:[%s2676_s4 + $0x8] sm:$0xff]  ;;  %v2102_v16 = vld [vmem:[%s2676_s4] sm:$0xff] }
  0x11   : > { %s597_s26 = scalar_lea.vmem %s2698_s3, %s2097_s23  ;;  %v2155_v17 = vld [vmem:[%s2699_s25] ss:$0 sm:$0xff]  ;;  %v2105_v63 = vld [vmem:[%s2679_s7 + $0x8] sm:$0xff]  ;;  %s602_s24 = scalar_lea.vmem %s2691_s19, %s2097_s23 }
  0x12   : > { %v604_v3 = vld [vmem:[%s597_s26] sm:$0xff]  ;;  %v605_v4 = vld [vmem:[%s597_s26 + $0x8] sm:$0xff]  ;;  %v610_v6 = vld [vmem:[%s597_s26 + $0x30] sm:$0xff]  ;;  %878 = vmatpush.bf16.msra.mxu2 %v2105_v63 }
  0x13   : > { %v2327_v5 = vpack.c.bf16 %v605_v4, %v604_v3  ;;  %v611_v7 = vld [vmem:[%s597_s26 + $0x38] sm:$0xff]  ;;  %v606_v9 = vld [vmem:[%s597_s26 + $0x10] sm:$0xff]  ;;  %v608_v12 = vld [vmem:[%s597_s26 + $0x20] sm:$0xff] }
  0x14   : > { %659 = vmatpush.bf16.msra.mxu0 %v2100_v1  ;;  %2145 = vmatpush.bf16.msra.mxu1 %v2100_v1  ;;  %v2331_v8 = vpack.c.bf16 %v611_v7, %v610_v6  ;;  %v607_v10 = vld [vmem:[%s597_s26 + $0x18] sm:$0xff]  ;;  %v609_v13 = vld [vmem:[%s597_s26 + $0x28] sm:$0xff]  ;;  %v2156_v20 = vld [vmem:[%s2700_s27] ss:$0 sm:$0xff] }
  0x15   : > { %v2335_v11 = vpack.c.bf16 %v607_v10, %v606_v9  ;;  %v2339_v14 = vpack.c.bf16 %v609_v13, %v608_v12  ;;  %v2107_v0 = vld [vmem:[%s2680_s8 + $0x8] sm:$0xff]  ;;  %v2106_v3 = vld [vmem:[%s2680_s8] sm:$0xff] }
  0x16   : > { %v2109_v1 = vld [vmem:[%s2681_s9 + $0x8] sm:$0xff]  ;;  %923 = vmatpush.bf16.msra.mxu3 %v2107_v0  ;;  %v2108_v4 = vld [vmem:[%s2681_s9] sm:$0xff] }
  0x17   : > { %v2157_v6 = vld [vmem:[%s2677_s5] ss:$0 sm:$0xff] }
  0x18   : > { %660 = vmatpush.bf16.msra.mxu0 %v2099_v2  ;;  %2146 = vmatpush.bf16.msra.mxu1 %v2099_v2  ;;  %v2104_v2 = vld [vmem:[%s2679_s7] sm:$0xff] }
  0x19   : > { %879 = vmatpush.bf16.msra.mxu2 %v2104_v2  ;;  %v2158_v10 = vld [vmem:[%s2678_s6] ss:$0 sm:$0xff] }
  0x1a   : > { %924 = vmatpush.bf16.msra.mxu3 %v2106_v3 }
  0x1b   : > { %1889 = vmatmul.msk.bf16.vlgmr.msra.gmra.mxu0 %vm640_vm0, %v2327_v5  ;;  %1892 = vmatmul.msk.bf16.vlgmr.msra.gmra.mxu1 %vm640_vm0, %v2331_v8 }
  0x1c   : > { %769 = vmatpush.bf16.msrb.mxu1 %v2103_v15 }
  0x20   : > { %770 = vmatpush.bf16.msrb.mxu1 %v2102_v16 }
  0x24   : > { %968 = vmatpush.bf16.msra.mxu1 %v2109_v1 }
  0x28   : > { %969 = vmatpush.bf16.msra.mxu1 %v2108_v4 }
  0x2b   : > { %1890 = vmatmul.msk.bf16.gmra.mxu0 %vm640_vm0, %v2335_v11 }
  0x3b   : > { %1891 = vmatmul.msk.bf16.gmra.mxu0 %vm640_vm0, %v2339_v14 }
  0x98   : > { %v662_v18 = vpop.f32.mrf.mxu0  ;;  %v677_v43 = vpop.f32.mrf.mxu1 }
  0x99   : > { %v686_v19 = vmul.f32 %v2155_v17, %v662_v18  ;;  %v692_v54 = vmul.f32 %v2155_v17, %v677_v43 }
  0x9b   : > { %v698_v21 = vadd.f32 %v2156_v20, %v686_v19  ;;  %v704_v56 = vadd.f32 %v2156_v20, %v692_v54 }
  0x9d   : > { %v714_v24 = vmul.f32 0.2, %v698_v21  ;;  %vm706_vm1 = vcmp.gt.f32.partialorder %v698_v21, 0.0  ;;  %v720_v58 = vmul.f32 0.2, %v704_v56  ;;  %vm712_vm8 = vcmp.gt.f32.partialorder %v704_v56, 0.0 }
  0x9f   : > { %v722_v27 = vsel %vm706_vm1, %v698_v21, %v714_v24  ;;  %v728_v60 = vsel %vm712_vm8, %v704_v56, %v720_v58 }
  0xa0   : > { %v664_v22 = vpop.f32.mrf.mxu0  ;;  %v679_v50 = vpop.f32.mrf.mxu1 }
  0xa1   : > { %v687_v23 = vmul.f32 %v2155_v17, %v664_v22  ;;  %v693_v55 = vmul.f32 %v2155_v17, %v679_v50 }
  0xa3   : > { %v699_v25 = vadd.f32 %v2156_v20, %v687_v23  ;;  %v705_v57 = vadd.f32 %v2156_v20, %v693_v55 }
  0xa5   : > { %vm707_vm2 = vcmp.gt.f32.partialorder %v699_v25, 0.0  ;;  %v715_v26 = vmul.f32 0.2, %v699_v25  ;;  %v721_v59 = vmul.f32 0.2, %v705_v57  ;;  %vm713_vm9 = vcmp.gt.f32.partialorder %v705_v57, 0.0 }
  0xa7   : > { %v723_v28 = vsel %vm707_vm2, %v699_v25, %v715_v26  ;;  %v729_v61 = vsel %vm713_vm9, %v705_v57, %v721_v59 }
  0xa8   : > { %v667_v29 = vpop.f32.mrf.mxu0  ;;  %v730_v30 = vpack.c.bf16 %v723_v28, %v722_v27  ;;  %v733_v62 = vpack.c.bf16 %v729_v61, %v728_v60 }
  0xa9   : > { %v688_v31 = vmul.f32 %v2155_v17, %v667_v29 }
  0xaa   : > { %1901 = vmatmul.msk.bf16.vlgmr.msrb.gmra.mxu1 %vm750_vm3, %v730_v30 }
  0xab   : > { %v700_v32 = vadd.f32 %v2156_v20, %v688_v31 }
  0xad   : > { %v716_v35 = vmul.f32 0.2, %v700_v32  ;;  %vm708_vm4 = vcmp.gt.f32.partialorder %v700_v32, 0.0 }
  0xaf   : > { %v724_v38 = vsel %vm708_vm4, %v700_v32, %v716_v35  ;;  %vm1060_vm4 = vcmask 523264  }
  0xb0   : > { %v669_v33 = vpop.f32.mrf.mxu0 }
  0xb1   : > { %v689_v34 = vmul.f32 %v2155_v17, %v669_v33 }
  0xb3   : > { %v701_v36 = vadd.f32 %v2156_v20, %v689_v34 }
  0xb5   : > { %vm709_vm5 = vcmp.gt.f32.partialorder %v701_v36, 0.0  ;;  %v717_v37 = vmul.f32 0.2, %v701_v36 }
  0xb7   : > { %v725_v39 = vsel %vm709_vm5, %v701_v36, %v717_v37 }
  0xb8   : > { %v672_v40 = vpop.f32.mrf.mxu0  ;;  %v731_v41 = vpack.c.bf16 %v725_v39, %v724_v38 }
  0xb9   : > { %v690_v42 = vmul.f32 %v2155_v17, %v672_v40 }
  0xba   : > { %1902 = vmatmul.msk.bf16.gmra.mxu1 %vm750_vm3, %v731_v41 }
  0xbb   : > { %v702_v44 = vadd.f32 %v2156_v20, %v690_v42 }
  0xbd   : > { %v718_v47 = vmul.f32 0.2, %v702_v44  ;;  %vm710_vm6 = vcmp.gt.f32.partialorder %v702_v44, 0.0 }
  0xbf   : > { %v726_v51 = vsel %vm710_vm6, %v702_v44, %v718_v47 }
  0xc0   : > { %v674_v45 = vpop.f32.mrf.mxu0 }
  0xc1   : > { %v691_v46 = vmul.f32 %v2155_v17, %v674_v45 }
  0xc3   : > { %v703_v48 = vadd.f32 %v2156_v20, %v691_v46 }
  0xc5   : > { %vm711_vm7 = vcmp.gt.f32.partialorder %v703_v48, 0.0  ;;  %v719_v49 = vmul.f32 0.2, %v703_v48 }
  0xc7   : > { %v727_v52 = vsel %vm711_vm7, %v703_v48, %v719_v49 }
  0xc8   : > { %v732_v53 = vpack.c.bf16 %v727_v52, %v726_v51 }
  0xca   : > { %1903 = vmatmul.msk.bf16.gmra.mxu1 %vm750_vm3, %v732_v53 }
  0xda   : > { %1904 = vmatmul.msk.bf16.gmra.mxu1 %vm750_vm3, %v733_v62 }
 0x127   : > { %v772_v7 = vpop.f32.mrf.mxu1 }
 0x128   : > { %v796_v9 = vmul.f32 %v2157_v6, %v772_v7 }
 0x12a   : > { %v808_v12 = vadd.f32 %v2158_v10, %v796_v9 }
 0x12c   : > { %v824_v16 = vmul.f32 0.2, %v808_v12  ;;  %vm816_vm10 = vcmp.gt.f32.partialorder %v808_v12, 0.0 }
 0x12e   : > { %v832_v19 = vsel %vm816_vm10, %v808_v12, %v824_v16 }
 0x12f   : > { %v774_v13 = vpop.f32.mrf.mxu1 }
 0x130   : > { %v797_v15 = vmul.f32 %v2157_v6, %v774_v13 }
 0x132   : > { %v809_v17 = vadd.f32 %v2158_v10, %v797_v15 }
 0x134   : > { %vm817_vm11 = vcmp.gt.f32.partialorder %v809_v17, 0.0  ;;  %v825_v18 = vmul.f32 0.2, %v809_v17 }
 0x136   : > { %v833_v20 = vsel %vm817_vm11, %v809_v17, %v825_v18 }
 0x137   : > { %v777_v21 = vpop.f32.mrf.mxu1  ;;  %v840_v22 = vpack.c.bf16 %v833_v20, %v832_v19 }
 0x138   : > { %v798_v23 = vmul.f32 %v2157_v6, %v777_v21 }
 0x139   : > { %1913 = vmatmul.msk.bf16.vlgmr.msra.gmra.mxu2 %vm750_vm3, %v840_v22  ;;  %1925 = vmatmul.msk.bf16.vlgmr.msra.gmra.mxu3 %vm750_vm3, %v840_v22 }
 0x13a   : > { %1937 = vmatmul.msk.bf16.vlgmr.msra.gmra.mxu1 %vm750_vm3, %v840_v22  ;;  %v810_v24 = vadd.f32 %v2158_v10, %v798_v23 }
 0x13c   : > { %v826_v27 = vmul.f32 0.2, %v810_v24  ;;  %vm818_vm12 = vcmp.gt.f32.partialorder %v810_v24, 0.0 }
 0x13e   : > { %v834_v30 = vsel %vm818_vm12, %v810_v24, %v826_v27 }
 0x13f   : > { %v779_v25 = vpop.f32.mrf.mxu1 }
 0x140   : > { %v799_v26 = vmul.f32 %v2157_v6, %v779_v25 }
 0x142   : > { %v811_v28 = vadd.f32 %v2158_v10, %v799_v26 }
 0x144   : > { %vm819_vm13 = vcmp.gt.f32.partialorder %v811_v28, 0.0  ;;  %v827_v29 = vmul.f32 0.2, %v811_v28 }
 0x146   : > { %v835_v31 = vsel %vm819_vm13, %v811_v28, %v827_v29 }
 0x147   : > { %v782_v32 = vpop.f32.mrf.mxu1  ;;  %v841_v33 = vpack.c.bf16 %v835_v31, %v834_v30 }
 0x148   : > { %v800_v34 = vmul.f32 %v2157_v6, %v782_v32 }
 0x149   : > { %1914 = vmatmul.msk.bf16.gmra.mxu2 %vm750_vm3, %v841_v33  ;;  %1926 = vmatmul.msk.bf16.gmra.mxu3 %vm750_vm3, %v841_v33 }
 0x14a   : > { %1938 = vmatmul.msk.bf16.gmra.mxu1 %vm750_vm3, %v841_v33  ;;  %v812_v35 = vadd.f32 %v2158_v10, %v800_v34 }
 0x14c   : > { %v828_v38 = vmul.f32 0.2, %v812_v35  ;;  %vm820_vm14 = vcmp.gt.f32.partialorder %v812_v35, 0.0 }
 0x14e   : > { %v836_v41 = vsel %vm820_vm14, %v812_v35, %v828_v38 }
 0x14f   : > { %v784_v36 = vpop.f32.mrf.mxu1 }
 0x150   : > { %v801_v37 = vmul.f32 %v2157_v6, %v784_v36 }
 0x152   : > { %v813_v39 = vadd.f32 %v2158_v10, %v801_v37 }
 0x154   : > { %vm821_vm15 = vcmp.gt.f32.partialorder %v813_v39, 0.0  ;;  %v829_v40 = vmul.f32 0.2, %v813_v39 }
 0x156   : > { %v837_v42 = vsel %vm821_vm15, %v813_v39, %v829_v40 }
 0x157   : > { %v787_v43 = vpop.f32.mrf.mxu1  ;;  %v842_v44 = vpack.c.bf16 %v837_v42, %v836_v41 }
 0x158   : > { %v802_v45 = vmul.f32 %v2157_v6, %v787_v43 }
 0x159   : > { %1915 = vmatmul.msk.bf16.gmra.mxu2 %vm750_vm3, %v842_v44  ;;  %1927 = vmatmul.msk.bf16.gmra.mxu3 %vm750_vm3, %v842_v44 }
 0x15a   : > { %1939 = vmatmul.msk.bf16.gmra.mxu1 %vm750_vm3, %v842_v44  ;;  %v814_v46 = vadd.f32 %v2158_v10, %v802_v45 }
 0x15c   : > { %v830_v49 = vmul.f32 0.2, %v814_v46  ;;  %vm822_vm1 = vcmp.gt.f32.partialorder %v814_v46, 0.0 }
 0x15e   : > { %v838_v52 = vsel %vm822_vm1, %v814_v46, %v830_v49 }
 0x15f   : > { %v789_v47 = vpop.f32.mrf.mxu1 }
 0x160   : > { %v803_v48 = vmul.f32 %v2157_v6, %v789_v47 }
 0x162   : > { %v815_v50 = vadd.f32 %v2158_v10, %v803_v48 }
 0x164   : > { %vm823_vm2 = vcmp.gt.f32.partialorder %v815_v50, 0.0  ;;  %v831_v51 = vmul.f32 0.2, %v815_v50 }
 0x166   : > { %v839_v53 = vsel %vm823_vm2, %v815_v50, %v831_v51 }
 0x167   : > { %v843_v54 = vpack.c.bf16 %v839_v53, %v838_v52 }
 0x169   : > { %1916 = vmatmul.msk.bf16.gmra.mxu2 %vm750_vm3, %v843_v54  ;;  %1928 = vmatmul.msk.bf16.gmra.mxu3 %vm750_vm3, %v843_v54 }
 0x16a   : > { %1940 = vmatmul.msk.bf16.gmra.mxu1 %vm750_vm3, %v843_v54 }
 0x1b7   : > { %v971_v55 = vpop.f32.mrf.mxu1 }
 0x1bc   : > { %v926_v56 = vpop.f32.mrf.mxu3  ;;  %v881_v16 = vpop.f32.mrf.mxu2 }
 0x1bd   : > { %v991_v27 = vmul.f32 0.17677669, %v881_v16 }
 0x1bf   : > { %v973_v57 = vpop.f32.mrf.mxu1 }
 0x1c0   : > { %v1153_v19 = vpack.c.bf16 %v973_v57, %v971_v55 }
 0x1c4   : > { %v928_v58 = vpop.f32.mrf.mxu3  ;;  %v883_v21 = vpop.f32.mrf.mxu2 }
 0x1c5   : > { %v1003_v59 = vpack.c.bf16 %v928_v58, %v926_v56  ;;  %v992_v26 = vmul.f32 0.17677669, %v883_v21 }
 0x1c7   : > { %v976_v60 = vpop.f32.mrf.mxu1  ;;  %v1020_v25 = vsel %vm750_vm3, %v1003_v59, 0  ;;  %v999_v28 = vpack.c.bf16 %v992_v26, %v991_v27 }
 0x1cc   : > { %v931_v61 = vpop.f32.mrf.mxu3  ;;  %v886_v24 = vpop.f32.mrf.mxu2 }
 0x1cd   : > { %v993_v32 = vmul.f32 0.17677669, %v886_v24 }
 0x1cf   : > { %v978_v62 = vpop.f32.mrf.mxu1 }
 0x1d0   : > { %v1154_v17 = vpack.c.bf16 %v978_v62, %v976_v60 }
 0x1d4   : > { %v933_v63 = vpop.f32.mrf.mxu3  ;;  %v888_v29 = vpop.f32.mrf.mxu2 }
 0x1d5   : > { %v1004_v22 = vpack.c.bf16 %v933_v63, %v931_v61  ;;  %v994_v31 = vmul.f32 0.17677669, %v888_v29 }
 0x1d7   : > { %v981_v0 = vpop.f32.mrf.mxu1  ;;  %v1023_v23 = vsel %vm750_vm3, %v1004_v22, 0  ;;  %v1000_v33 = vpack.c.bf16 %v994_v31, %v993_v32 }
 0x1dc   : > { %v936_v1 = vpop.f32.mrf.mxu3  ;;  %v891_v30 = vpop.f32.mrf.mxu2 }
 0x1dd   : > { %v995_v36 = vmul.f32 0.17677669, %v891_v30 }
 0x1df   : > { %v983_v2 = vpop.f32.mrf.mxu1 }
 0x1e0   : > { %v1155_v10 = vpack.c.bf16 %v983_v2, %v981_v0 }
 0x1e4   : > { %v938_v3 = vpop.f32.mrf.mxu3  ;;  %v893_v34 = vpop.f32.mrf.mxu2 }
 0x1e5   : > { %v1005_v18 = vpack.c.bf16 %v938_v3, %v936_v1  ;;  %v996_v35 = vmul.f32 0.17677669, %v893_v34 }
 0x1e7   : > { %v986_v4 = vpop.f32.mrf.mxu1  ;;  %v1026_v20 = vsel %vm750_vm3, %v1005_v18, 0  ;;  %v1001_v38 = vpack.c.bf16 %v996_v35, %v995_v36 }
 0x1ec   : > { %v941_v6 = vpop.f32.mrf.mxu3  ;;  %v896_v37 = vpop.f32.mrf.mxu2 }
 0x1ed   : > { %v997_v41 = vmul.f32 0.17677669, %v896_v37 }
 0x1ef   : > { %v988_v7 = vpop.f32.mrf.mxu1 }
 0x1f0   : > { %v1156_v9 = vpack.c.bf16 %v988_v7, %v986_v4 }
 0x1f2   : > { %1173 = vmatpush.bf16.msrb.mxu3 %v1156_v9 }
 0x1f4   : > { %v943_v12 = vpop.f32.mrf.mxu3  ;;  %v898_v39 = vpop.f32.mrf.mxu2 }
 0x1f5   : > { %v1006_v13 = vpack.c.bf16 %v943_v12, %v941_v6  ;;  %v998_v40 = vmul.f32 0.17677669, %v898_v39 }
 0x1f6   : > { %1174 = vmatpush.bf16.msrb.mxu3 %v1155_v10 }
 0x1f7   : > { %v1029_v15 = vsel %vm750_vm3, %v1006_v13, 0  ;;  %v1002_v42 = vpack.c.bf16 %v998_v40, %v997_v41 }
 0x1f8   : > { %1035 = vmatpush.bf16.xpose.msrb.mxu2 %v1029_v15 }
 0x1fa   : > { %1175 = vmatpush.bf16.msrb.mxu3 %v1154_v17 }
 0x1fe   : > { %1176 = vmatpush.bf16.msrb.mxu3 %v1153_v19 }
 0x200   : > { %1036 = vmatpush.bf16.xpose.msrb.mxu2 %v1026_v20 }
 0x208   : > { %1037 = vmatpush.bf16.xpose.msrb.mxu2 %v1023_v23 }
 0x210   : > { %1038 = vmatpush.bf16.xpose.msrb.mxu2 %v1020_v25 }
 0x217   : > { %1941 = vmatmul.msk.bf16.vlgmr.msrb.gmra.mxu2 %vm750_vm3, %v999_v28 }
 0x227   : > { %1942 = vmatmul.msk.bf16.gmra.mxu2 %vm750_vm3, %v1000_v33 }
 0x237   : > { %1943 = vmatmul.msk.bf16.gmra.mxu2 %vm750_vm3, %v1001_v38 }
 0x247   : > { %1944 = vmatmul.msk.bf16.gmra.mxu2 %vm750_vm3, %v1002_v42 }
 0x29a   : > { %v1040_v43 = vpop.f32.mrf.mxu2 }
 0x29b   : > { %v1061_v44 = vsel %vm1060_vm4, %v1040_v43, -inf }
 0x29c   : > { %1062 = vmax.xlane.f32.xlu0 %v1061_v44 }
 0x2a2   : > { %v1042_v45 = vpop.f32.mrf.mxu2 }
 0x2a3   : > { %v1064_v46 = vsel %vm1060_vm4, %v1042_v45, -inf }
 0x2a4   : > { %1065 = vmax.xlane.f32.xlu0 %v1064_v46 }
 0x2aa   : > { %v1045_v47 = vpop.f32.mrf.mxu2 }
 0x2ab   : > { %v1067_v48 = vsel %vm1060_vm4, %v1045_v47, -inf }
 0x2ac   : > { %1068 = vmax.xlane.f32.xlu1 %v1067_v48 }
 0x2b2   : > { %v1047_v49 = vpop.f32.mrf.mxu2 }
 0x2b3   : > { %v1070_v50 = vsel %vm1060_vm4, %v1047_v49, -inf }
 0x2b4   : > { %1071 = vmax.xlane.f32.xlu1 %v1070_v50 }
 0x2ba   : > { %v1050_v51 = vpop.f32.mrf.mxu2 }
 0x2bb   : > { %v1073_v52 = vsel %vm1060_vm4, %v1050_v51, -inf }
 0x2bc   : > { %1074 = vmax.xlane.f32.xlu2 %v1073_v52 }
 0x2c2   : > { %v1052_v53 = vpop.f32.mrf.mxu2 }
 0x2c3   : > { %v1076_v54 = vsel %vm1060_vm4, %v1052_v53, -inf }
 0x2c4   : > { %1077 = vmax.xlane.f32.xlu2 %v1076_v54 }
 0x2ca   : > { %v1055_v55 = vpop.f32.mrf.mxu2 }
 0x2cb   : > { %v1079_v56 = vsel %vm1060_vm4, %v1055_v55, -inf }
 0x2cc   : > { %1080 = vmax.xlane.f32.xlu0 %v1079_v56 }
 0x2d2   : > { %v1057_v57 = vpop.f32.mrf.mxu2 }
 0x2d3   : > { %v1082_v58 = vsel %vm1060_vm4, %v1057_v57, -inf }
 0x2d4   : > { %1083 = vmax.xlane.f32.xlu1 %v1082_v58 }
 0x30f   : > { %v1063_v59 = vpop.xlane.xlu0 %1062 }
 0x310   : > { %v1085_v60 = vsub.f32 %v1040_v43, %v1063_v59 }
 0x312   : > { %v1093_v61 = vmul.f32 1.442695, %v1085_v60 }
 0x314   : > { %2162 = vpow2.f32 %v1093_v61 }
 0x317   : > { %v1066_v62 = vpop.xlane.xlu0 %1065 }
 0x318   : > { %v1086_v63 = vsub.f32 %v1042_v45, %v1066_v62 }
 0x31a   : > { %v2163_v0 = vpop.eup %2162  ;;  %v1095_v1 = vmul.f32 1.442695, %v1086_v63 }
 0x31b   : > { %v1109_v2 = vsel %vm1060_vm4, %v2163_v0, 0.0 }
 0x31c   : > { %2164 = vpow2.f32 %v1095_v1  ;;  %1110 = vadd.xlane.f32.xlu2 %v1109_v2 }
 0x31f   : > { %v1069_v3 = vpop.xlane.xlu1 %1068 }
 0x320   : > { %v1087_v4 = vsub.f32 %v1045_v47, %v1069_v3  ;;  %v2118_v3 = vld [vmem:[%s2682_s10 + $0x24] sm:$0xf] }
 0x322   : > { %v2165_v6 = vpop.eup %2164  ;;  %v1097_v7 = vmul.f32 1.442695, %v1087_v4  ;;  %v1987_v4 = vld [vmem:[%s2682_s10 + $0x28] sm:$0xf0] }
 0x323   : > { %v1112_v9 = vsel %vm1060_vm4, %v2165_v6, 0.0 }
 0x324   : > { %2166 = vpow2.f32 %v1097_v7  ;;  %1113 = vadd.xlane.f32.xlu0 %v1112_v9  ;;  %v2116_v7 = vld [vmem:[%s2682_s10 + $0x14] sm:$0xf]  ;;  %v1979_v9 = vld [vmem:[%s2682_s10 + $0x18] sm:$0xf0] }
 0x327   : > { %v1072_v10 = vpop.xlane.xlu1 %1071 }
 0x328   : > { %v1088_v12 = vsub.f32 %v1047_v49, %v1072_v10 }
 0x32a   : > { %v2167_v13 = vpop.eup %2166  ;;  %v1099_v15 = vmul.f32 1.442695, %v1088_v12  ;;  %v1982_v12 = vor.u32 %v2116_v7, %v1979_v9  ;;  %v2127_v7 = vld [vmem:[%s2686_s14 + $0x38] sm:$0xff]  ;;  %v2129_v9 = vld [vmem:[%s2686_s14 + $0x48] sm:$0xff] }
 0x32b   : > { %v1115_v16 = vsel %vm1060_vm4, %v2167_v13, 0.0  ;;  %1597 = vmatpush.bf16.msra.mxu2 %v2127_v7 }
 0x32c   : > { %2168 = vpow2.f32 %v1099_v15  ;;  %1116 = vadd.xlane.f32.xlu1 %v1115_v16  ;;  %v1971_v15 = vld [vmem:[%s2682_s10 + $0x8] sm:$0xf0] }
 0x32f   : > { %v1075_v17 = vpop.xlane.xlu2 %1074 }
 0x330   : > { %v1089_v18 = vsub.f32 %v1050_v51, %v1075_v17 }
 0x332   : > { %v2169_v19 = vpop.eup %2168  ;;  %v1101_v20 = vmul.f32 1.442695, %v1089_v18 }
 0x333   : > { %v1118_v21 = vsel %vm1060_vm4, %v2169_v19, 0.0 }
 0x334   : > { %2170 = vpow2.f32 %v1101_v20  ;;  %1119 = vadd.xlane.f32.xlu2 %v1118_v21  ;;  %v1959_v21 = vld [vmem:[%s2683_s11 + $0x10] sm:$0xf] }
 0x337   : > { %v1078_v22 = vpop.xlane.xlu2 %1077 }
 0x338   : > { %v1090_v23 = vsub.f32 %v1052_v53, %v1078_v22  ;;  %v2113_v22 = vld [vmem:[%s2683_s11 + $0x14] sm:$0xf0] }
 0x33a   : > { %v2171_v24 = vpop.eup %2170  ;;  %v1103_v25 = vmul.f32 1.442695, %v1090_v23  ;;  %v1960_v23 = vor.u32 %v2113_v22, %v1959_v21  ;;  %v2122_v21 = vld [vmem:[%s2686_s14 + $0x10] sm:$0xff]  ;;  %v2121_v22 = vld [vmem:[%s2686_s14 + $0x8] sm:$0xff] }
 0x33b   : > { %v1121_v26 = vsel %vm1060_vm4, %v2171_v24, 0.0 }
 0x33c   : > { %2172 = vpow2.f32 %v1103_v25  ;;  %1122 = vadd.xlane.f32.xlu0 %v1121_v26  ;;  %v2111_v25 = vld [vmem:[%s2683_s11 + $0x4] sm:$0xf0]  ;;  %1253 = vmatpush.bf16.msrb.mxu0 %v1960_v23 }
 0x33f   : > { %v1081_v27 = vpop.xlane.xlu0 %1080 }
 0x340   : > { %v1091_v28 = vsub.f32 %v1055_v55, %v1081_v27 }
 0x342   : > { %v2173_v29 = vpop.eup %2172  ;;  %v1105_v30 = vmul.f32 1.442695, %v1091_v28  ;;  %v2112_v28 = vld [vmem:[%s2683_s11 + $0x14] sm:$0xf] }
 0x343   : > { %v1124_v31 = vsel %vm1060_vm4, %v2173_v29, 0.0 }
 0x344   : > { %2174 = vpow2.f32 %v1105_v30  ;;  %1125 = vadd.xlane.f32.xlu1 %v1124_v31  ;;  %v2110_v30 = vld [vmem:[%s2683_s11 + $0x4] sm:$0xf] }
 0x347   : > { %v1084_v32 = vpop.xlane.xlu1 %1083 }
 0x348   : > { %v1092_v33 = vsub.f32 %v1057_v57, %v1084_v32  ;;  %v1953_v32 = vld [vmem:[%s2683_s11 + $0x8] sm:$0xf0] }
 0x34a   : > { %v2175_v34 = vpop.eup %2174  ;;  %v1107_v35 = vmul.f32 1.442695, %v1092_v33 }
 0x34b   : > { %v1127_v36 = vsel %vm1060_vm4, %v2175_v34, 0.0 }
 0x34c   : > { %2176 = vpow2.f32 %v1107_v35  ;;  %1128 = vadd.xlane.f32.xlu2 %v1127_v36 }
 0x352   : > { %v2177_v37 = vpop.eup %2176 }
 0x353   : > { %v1130_v38 = vsel %vm1060_vm4, %v2177_v37, 0.0 }
 0x354   : > { %1131 = vadd.xlane.f32.xlu0 %v1130_v38 }
 0x38f   : > { %v1111_v39 = vpop.xlane.xlu2 %1110 }
 0x390   : > { %2178 = vrcp.f32 %v1111_v39 }
 0x396   : > { %v2179_v41 = vpop.eup %2178 }
 0x397   : > { %v1114_v40 = vpop.xlane.xlu0 %1113  ;;  %v1141_v43 = vmul.f32 %v2179_v41, %v2163_v0 }
 0x398   : > { %2180 = vrcp.f32 %v1114_v40 }
 0x39e   : > { %v2181_v42 = vpop.eup %2180 }
 0x39f   : > { %v1142_v44 = vmul.f32 %v2181_v42, %v2165_v6  ;;  %v1117_v46 = vpop.xlane.xlu1 %1116  ;;  %v1990_v6 = vor.u32 %v2118_v3, %v1987_v4  ;;  %v2135_v3 = vld [vmem:[%s2686_s14 + $0x78] sm:$0xff]  ;;  %v2134_v4 = vld [vmem:[%s2686_s14 + $0x70] sm:$0xff] }
 0x3a0   : > { %2182 = vrcp.f32 %v1117_v46  ;;  %1626 = vmatpush.bf16.msra.mxu3 %v2135_v3 }
 0x3a1   : > { %v1149_v45 = vpack.c.bf16 %v1142_v44, %v1141_v43  ;;  %1345 = vmatpush.bf16.msrb.mxu1 %v1990_v6  ;;  %v2130_v6 = vld [vmem:[%s2686_s14 + $0x50] sm:$0xff] }
 0x3a3   : > { %1945 = vmatmul.msk.bf16.vlgmr.msrb.gmra.mxu3 %vm1060_vm4, %v1149_v45 }
 0x3a4   : > { %1627 = vmatpush.bf16.msra.mxu3 %v2134_v4 }
 0x3a5   : > { %1346 = vmatpush.bf16.msrb.mxu1 %v1982_v12  ;;  %v2128_v12 = vld [vmem:[%s2686_s14 + $0x40] sm:$0xff] }
 0x3a6   : > { %v2183_v48 = vpop.eup %2182 }
 0x3a7   : > { %v1120_v47 = vpop.xlane.xlu2 %1119  ;;  %v1143_v50 = vmul.f32 %v2183_v48, %v2167_v13  ;;  %v2114_v13 = vld [vmem:[%s2682_s10 + $0x4] sm:$0xf] }
 0x3a8   : > { %2184 = vrcp.f32 %v1120_v47  ;;  %v1974_v16 = vor.u32 %v2114_v13, %v1971_v15  ;;  %v2125_v15 = vld [vmem:[%s2686_s14 + $0x28] sm:$0xff] }
 0x3aa   : > { %1347 = vmatpush.bf16.msrb.mxu1 %v1974_v16 }
 0x3ad   : > { %1995 = vmatmul.msk.bf16.vlgmr.msrb.gmra.mxu1 %vm640_vm0, %v2327_v5 }
 0x3ae   : > { %v2185_v49 = vpop.eup %2184 }
 0x3af   : > { %v1144_v51 = vmul.f32 %v2185_v49, %v2169_v19  ;;  %v1123_v53 = vpop.xlane.xlu0 %1122 }
 0x3b0   : > { %2186 = vrcp.f32 %v1123_v53 }
 0x3b1   : > { %v1150_v52 = vpack.c.bf16 %v1144_v51, %v1143_v50 }
 0x3b3   : > { %1946 = vmatmul.msk.bf16.gmra.mxu3 %vm1060_vm4, %v1150_v52 }
 0x3b6   : > { %v2187_v55 = vpop.eup %2186 }
 0x3b7   : > { %v1126_v54 = vpop.xlane.xlu1 %1125  ;;  %v1145_v57 = vmul.f32 %v2187_v55, %v2171_v24  ;;  %v1951_v24 = vld [vmem:[%s2683_s11] sm:$0xf] }
 0x3b8   : > { %2188 = vrcp.f32 %v1126_v54  ;;  %v1952_v27 = vor.u32 %v2111_v25, %v1951_v24  ;;  %v1369_v24 = vld [vmem:[%s2684_s12] sm:$0x3] }
 0x3ba   : > { %1254 = vmatpush.bf16.msrb.mxu0 %v1952_v27  ;;  %v2120_v27 = vld [vmem:[%s2686_s14] sm:$0xff] }
 0x3bd   : > { %1996 = vmatmul.msk.bf16.gmra.mxu1 %vm640_vm0, %v2335_v11 }
 0x3be   : > { %v2189_v56 = vpop.eup %2188 }
 0x3bf   : > { %v1146_v58 = vmul.f32 %v2189_v56, %v2173_v29  ;;  %v1129_v60 = vpop.xlane.xlu2 %1128  ;;  %v1961_v29 = vld [vmem:[%s2683_s11 + $0x18] sm:$0xf0]  ;;  %v1985_v56 = vld [vmem:[%s2682_s10 + $0x20] sm:$0xf] }
 0x3c0   : > { %2190 = vrcp.f32 %v1129_v60  ;;  %v1964_v31 = vor.u32 %v2112_v28, %v1961_v29  ;;  %v2565_v29 = vperm.slane %v1369_v24, 1 }
 0x3c1   : > { %v1151_v59 = vpack.c.bf16 %v1146_v58, %v1145_v57  ;;  %v2119_v57 = vld [vmem:[%s2682_s10 + $0x24] sm:$0xf0] }
 0x3c2   : > { %1266 = vmatpush.bf16.msra.mxu0 %v1964_v31 }
 0x3c3   : > { %1947 = vmatmul.msk.bf16.gmra.mxu3 %vm1060_vm4, %v1151_v59  ;;  %v1986_v59 = vor.u32 %v2119_v57, %v1985_v56 }
 0x3c6   : > { %v2191_v62 = vpop.eup %2190 }
 0x3c7   : > { %v1132_v61 = vpop.xlane.xlu0 %1131  ;;  %v1147_v0 = vmul.f32 %v2191_v62, %v2175_v34  ;;  %v1956_v34 = vor.u32 %v2110_v30, %v1953_v32  ;;  %v2117_v62 = vld [vmem:[%s2682_s10 + $0x14] sm:$0xf0] }
 0x3c8   : > { %2192 = vrcp.f32 %v1132_v61  ;;  %v1977_v61 = vld [vmem:[%s2682_s10 + $0x10] sm:$0xf] }
 0x3c9   : > { %1267 = vmatpush.bf16.msra.mxu0 %v1956_v34 }
 0x3cd   : > { %1997 = vmatmul.msk.bf16.gmra.mxu1 %vm640_vm0, %v2339_v14 }
 0x3ce   : > { %v2193_v63 = vpop.eup %2192 }
 0x3cf   : > { %v1148_v1 = vmul.f32 %v2193_v63, %v2177_v37  ;;  %v1978_v63 = vor.u32 %v2117_v62, %v1977_v61 }
 0x3d1   : > { %v1152_v2 = vpack.c.bf16 %v1148_v1, %v1147_v0  ;;  %v1969_v0 = vld [vmem:[%s2682_s10] sm:$0xf]  ;;  %v2115_v1 = vld [vmem:[%s2682_s10 + $0x4] sm:$0xf0] }
 0x3d3   : > { %1948 = vmatmul.msk.bf16.gmra.mxu3 %vm1060_vm4, %v1152_v2  ;;  %v1970_v2 = vor.u32 %v2115_v1, %v1969_v0 }
 0x3dd   : > { %1998 = vmatmul.msk.bf16.gmra.mxu1 %vm640_vm0, %v2331_v8 }
 0x426   : > { %v1178_v10 = vpop.f32.mrf.mxu3 }
 0x427   : > { %v1198_v41 = vsel %vm750_vm3, %v1178_v10, -inf  ;;  %v2126_v10 = vld [vmem:[%s2686_s14 + $0x30] sm:$0xff] }
 0x428   : > { %1598 = vmatpush.bf16.msra.mxu2 %v2126_v10 }
 0x42c   : > { %1599 = vmatpush.bf16.msra.mxu2 %v2125_v15 }
 0x42e   : > { %v1180_v17 = vpop.f32.mrf.mxu3 }
 0x42f   : > { %v1199_v36 = vsel %vm750_vm3, %v1180_v17, -inf  ;;  %v2124_v17 = vld [vmem:[%s2686_s14 + $0x20] sm:$0xff] }
 0x430   : > { %1600 = vmatpush.bf16.msra.mxu2 %v2124_v17 }
 0x436   : > { %v1183_v18 = vpop.f32.mrf.mxu3 }
 0x437   : > { %v1200_v42 = vsel %vm750_vm3, %v1183_v18, -inf }
 0x43e   : > { %v1185_v19 = vpop.f32.mrf.mxu3 }
 0x43f   : > { %v1201_v43 = vsel %vm750_vm3, %v1185_v19, -inf  ;;  %v2123_v19 = vld [vmem:[%s2686_s14 + $0x18] sm:$0xff] }
 0x440   : > { %1601 = vmatpush.bf16.msra.mxu2 %v2123_v19 }
 0x444   : > { %1602 = vmatpush.bf16.msra.mxu2 %v2122_v21 }
 0x446   : > { %v1188_v20 = vpop.f32.mrf.mxu3 }
 0x447   : > { %v1202_v37 = vsel %vm750_vm3, %v1188_v20, -inf }
 0x448   : > { %v1203_v45 = vmax.f32 %v1198_v41, %v1202_v37  ;;  %1603 = vmatpush.bf16.msra.mxu2 %v2121_v22 }
 0x44c   : > { %1604 = vmatpush.bf16.msra.mxu2 %v2120_v27 }
 0x44e   : > { %v1190_v26 = vpop.f32.mrf.mxu3 }
 0x44f   : > { %v1204_v35 = vsel %vm750_vm3, %v1190_v26, -inf  ;;  %v1391_v26 = vld [vmem:[%s2685_s13] sm:$0x3] }
 0x450   : > { %v1205_v39 = vmax.f32 %v1199_v36, %v1204_v35  ;;  %v2567_v30 = vperm.slane %v1391_v26, 1  ;;  %v2587_v56 = vperm.slane %v1391_v26, 0 }
 0x452   : > { %v1210_v48 = vmax.f32 %v1203_v45, %v1205_v39 }
 0x456   : > { %v1193_v33 = vpop.f32.mrf.mxu3 }
 0x457   : > { %v1206_v38 = vsel %vm750_vm3, %v1193_v33, -inf }
 0x458   : > { %v1207_v46 = vmax.f32 %v1200_v42, %v1206_v38 }
 0x45e   : > { %v1195_v40 = vpop.f32.mrf.mxu3 }
 0x45f   : > { %v1208_v44 = vsel %vm750_vm3, %v1195_v40, -inf }
 0x460   : > { %v1209_v47 = vmax.f32 %v1201_v43, %v1208_v44 }
 0x462   : > { %v1211_v49 = vmax.f32 %v1207_v46, %v1209_v47 }
 0x464   : > { %v1212_v50 = vmax.f32 %v1210_v48, %v1211_v49 }
 0x466   : > { %v1213_v51 = vrot.slane %v1212_v50, 4 }
 0x468   : > { %v1214_v52 = vmax.f32 %v1212_v50, %v1213_v51 }
 0x46a   : > { %v1215_v53 = vrot.slane %v1214_v52, 2 }
 0x46c   : > { %v1216_v54 = vmax.f32 %v1214_v52, %v1215_v53  ;;  %v2582_v52 = vperm.slane %v1369_v24, 0 }
 0x46e   : > { %v1217_v55 = vrot.slane %v1216_v54, 1 }
 0x470   : > { %v1218_v58 = vmax.f32 %v1216_v54, %v1217_v55 }
 0x472   : > { %v1219_v60 = vpack.c.bf16 %v1218_v58, %v1218_v58 }
 0x474   : > { %1965 = vmatmul.msk.bf16.vlgmr.msrb.gmra.mxu0 %vm750_vm3, %v1219_v60 }
 0x475   : > { %1316 = vmatpush.bf16.msrb.mxu0 %v1986_v59 }
 0x479   : > { %1317 = vmatpush.bf16.msrb.mxu0 %v1978_v63 }
 0x47d   : > { %1318 = vmatpush.bf16.msrb.mxu0 %v1970_v2 }
 0x484   : > { %1966 = vmatmul.msk.bf16.vlgmr.msra.gmra.mxu0 %vm750_vm3, %v1219_v60 }
 0x494   : > { %1991 = vmatmul.msk.bf16.vlgmr.msrb.gmra.mxu0 %vm640_vm0, %v2327_v5  ;;  %v2133_v5 = vld [vmem:[%s2686_s14 + $0x68] sm:$0xff] }
 0x495   : > { %1628 = vmatpush.bf16.msra.mxu3 %v2133_v5 }
 0x4a4   : > { %1992 = vmatmul.msk.bf16.gmra.mxu0 %vm640_vm0, %v2335_v11  ;;  %v2132_v11 = vld [vmem:[%s2686_s14 + $0x60] sm:$0xff] }
 0x4a5   : > { %1629 = vmatpush.bf16.msra.mxu3 %v2132_v11 }
 0x4b4   : > { %1993 = vmatmul.msk.bf16.gmra.mxu0 %vm640_vm0, %v2339_v14  ;;  %v2131_v14 = vld [vmem:[%s2686_s14 + $0x58] sm:$0xff] }
 0x4b5   : > { %1630 = vmatpush.bf16.msra.mxu3 %v2131_v14 }
 0x4b9   : > { %1631 = vmatpush.bf16.msra.mxu3 %v2130_v6 }
 0x4bd   : > { %1632 = vmatpush.bf16.msra.mxu3 %v2129_v9 }
 0x4c1   : > { %1633 = vmatpush.bf16.msra.mxu3 %v2128_v12 }
 0x4c4   : > { %1994 = vmatmul.msk.bf16.gmra.mxu0 %vm640_vm0, %v2331_v8  ;;  %v1349_v8 = vpop.f32.mrf.mxu1 }
 0x4cc   : > { %v1351_v13 = vpop.f32.mrf.mxu1 }
 0x4d4   : > { %v1354_v18 = vpop.f32.mrf.mxu1 }
 0x4dc   : > { %v1356_v23 = vpop.f32.mrf.mxu1 }
 0x4e4   : > { %v1359_v35 = vpop.f32.mrf.mxu1 }
 0x4ec   : > { %v1361_v50 = vpop.f32.mrf.mxu1 }
 0x4f1   : > { %v1256_v16 = vpop.f32.mrf.mxu0 }
 0x4f2   : > { %v2579_v48 = vperm.slane %v1256_v16, 0 }
 0x4f4   : > { %v1364_v2 = vpop.f32.mrf.mxu1 }
 0x4f9   : > { %v1258_v20 = vpop.f32.mrf.mxu0 }
 0x4fc   : > { %v1366_v17 = vpop.f32.mrf.mxu1 }
 0x501   : > { %v1269_v25 = vpop.f32.mrf.mxu0 }
 0x502   : > { %v2563_v28 = vperm.slane %v1269_v25, 0 }
 0x504   : > { %v1350_v31 = vadd.f32 %v1349_v8, %v2563_v28  ;;  %v1352_v32 = vadd.f32 %v1351_v13, %v2563_v28  ;;  %v1355_v39 = vadd.f32 %v1354_v18, %v2563_v28  ;;  %v1357_v40 = vadd.f32 %v1356_v23, %v2563_v28 }
 0x505   : > { %v1360_v60 = vadd.f32 %v1359_v35, %v2563_v28  ;;  %v1362_v61 = vadd.f32 %v1361_v50, %v2563_v28  ;;  %v1367_v21 = vadd.f32 %v1366_v17, %v2563_v28  ;;  %v1365_v23 = vadd.f32 %v1364_v2, %v2563_v28 }
 0x506   : > { %v1376_v33 = vmul.f32 %v2565_v29, %v1350_v31  ;;  %v1378_v34 = vmul.f32 %v2565_v29, %v1352_v32  ;;  %v1380_v46 = vmul.f32 %v2565_v29, %v1355_v39  ;;  %v1382_v47 = vmul.f32 %v2565_v29, %v1357_v40 }
 0x507   : > { %v1384_v5 = vmul.f32 %v2565_v29, %v1360_v60  ;;  %v1386_v8 = vmul.f32 %v2565_v29, %v1362_v61  ;;  %v1390_v32 = vmul.f32 %v2565_v29, %v1367_v21  ;;  %v2160_v21 = vld [vmem:[%s2688_s16] ss:$0 sm:$0xff] }
 0x508   : > { %v1398_v36 = vadd.f32 %v2567_v30, %v1376_v33  ;;  %v1400_v37 = vadd.f32 %v2567_v30, %v1378_v34  ;;  %v1402_v53 = vadd.f32 %v2567_v30, %v1380_v46  ;;  %v1404_v54 = vadd.f32 %v2567_v30, %v1382_v47 }
 0x509   : > { %v1271_v38 = vpop.f32.mrf.mxu0  ;;  %v1406_v9 = vadd.f32 %v2567_v30, %v1384_v5  ;;  %v1408_v15 = vadd.f32 %v2567_v30, %v1386_v8 }
 0x50a   : > { %vm1414_vm0 = vcmp.gt.f32.partialorder %v1398_v36, 0.0  ;;  %vm1416_vm3 = vcmp.gt.f32.partialorder %v1400_v37, 0.0  ;;  %v1430_v41 = vmul.f32 0.2, %v1398_v36  ;;  %v1432_v42 = vmul.f32 0.2, %v1400_v37 }
 0x50b   : > { %v1434_v57 = vmul.f32 0.2, %v1402_v53  ;;  %v1436_v58 = vmul.f32 0.2, %v1404_v54  ;;  %vm1418_vm5 = vcmp.gt.f32.partialorder %v1402_v53, 0.0  ;;  %vm1420_vm6 = vcmp.gt.f32.partialorder %v1404_v54, 0.0 }
 0x50c   : > { %v1446_v43 = vsel %vm1414_vm0, %v1398_v36, %v1430_v41  ;;  %v1448_v44 = vsel %vm1416_vm3, %v1400_v37, %v1432_v42  ;;  %v1438_v19 = vmul.f32 0.2, %v1406_v9  ;;  %v1440_v20 = vmul.f32 0.2, %v1408_v15 }
 0x50d   : > { %v1462_v45 = vpack.c.bf16 %v1448_v44, %v1446_v43  ;;  %v1450_v0 = vsel %vm1418_vm5, %v1402_v53, %v1434_v57  ;;  %v1452_v1 = vsel %vm1420_vm6, %v1404_v54, %v1436_v58  ;;  %vm1422_vm9 = vcmp.gt.f32.partialorder %v1406_v9, 0.0 }
 0x50e   : > { %v1464_v4 = vpack.c.bf16 %v1452_v1, %v1450_v0  ;;  %vm1424_vm10 = vcmp.gt.f32.partialorder %v1408_v15, 0.0  ;;  %v1454_v26 = vsel %vm1422_vm9, %v1406_v9, %v1438_v19  ;;  %v1388_v36 = vmul.f32 %v2565_v29, %v1365_v23  ;;  %v2139_v9 = vld [vmem:[%s2689_s17 + $0x18] sm:$0xff]  ;;  %v2159_v19 = vld [vmem:[%s2687_s15] ss:$0 sm:$0xff] }
 0x50f   : > { %1634 = vmatmul.bf16.vlgmr.msra.gmra.mxu3 %v1462_v45  ;;  %v1456_v27 = vsel %vm1424_vm10, %v1408_v15, %v1440_v20  ;;  %v1412_v37 = vadd.f32 %v2567_v30, %v1390_v32  ;;  %v2136_v15 = vld [vmem:[%s2689_s17] sm:$0xff] }
 0x510   : > { %v1466_v33 = vpack.c.bf16 %v1456_v27, %v1454_v26  ;;  %v1410_v42 = vadd.f32 %v2567_v30, %v1388_v36 }
 0x511   : > { %v1320_v49 = vpop.f32.mrf.mxu0  ;;  %v1444_v46 = vmul.f32 0.2, %v1412_v37  ;;  %vm1428_vm14 = vcmp.gt.f32.partialorder %v1412_v37, 0.0 }
 0x512   : > { %v1321_v51 = vadd.f32 %v1320_v49, %v2579_v48  ;;  %v1442_v45 = vmul.f32 0.2, %v1410_v42  ;;  %vm1426_vm13 = vcmp.gt.f32.partialorder %v1410_v42, 0.0 }
 0x514   : > { %v1375_v55 = vmul.f32 %v2582_v52, %v1321_v51  ;;  %v1458_v50 = vsel %vm1426_vm13, %v1410_v42, %v1442_v45  ;;  %v1460_v51 = vsel %vm1428_vm14, %v1412_v37, %v1444_v46 }
 0x515   : > { %v1468_v54 = vpack.c.bf16 %v1460_v51, %v1458_v50 }
 0x516   : > { %v1397_v62 = vadd.f32 %v2587_v56, %v1375_v55 }
 0x518   : > { %v1429_v11 = vmul.f32 0.2, %v1397_v62  ;;  %vm1413_vm7 = vcmp.gt.f32.partialorder %v1397_v62, 0.0 }
 0x519   : > { %v1322_v59 = vpop.f32.mrf.mxu0 }
 0x51a   : > { %v1323_v63 = vadd.f32 %v1322_v59, %v2579_v48  ;;  %v1445_v12 = vsel %vm1413_vm7, %v1397_v62, %v1429_v11 }
 0x51c   : > { %v1377_v3 = vmul.f32 %v2582_v52, %v1323_v63 }
 0x51e   : > { %v1399_v14 = vadd.f32 %v2587_v56, %v1377_v3 }
 0x51f   : > { %1639 = vmatmul.bf16.gmra.mxu3 %v1464_v4 }
 0x520   : > { %vm1415_vm8 = vcmp.gt.f32.partialorder %v1399_v14, 0.0  ;;  %v1431_v6 = vmul.f32 0.2, %v1399_v14 }
 0x521   : > { %v1325_v7 = vpop.f32.mrf.mxu0 }
 0x522   : > { %v1326_v10 = vadd.f32 %v1325_v7, %v2579_v48  ;;  %v1447_v13 = vsel %vm1415_vm8, %v1399_v14, %v1431_v6  ;;  %v2143_v7 = vld [vmem:[%s2689_s17 + $0x38] sm:$0xff] }
 0x523   : > { %v1461_v16 = vpack.c.bf16 %v1447_v13, %v1445_v12  ;;  %1775 = vmatpush.bf16.msra.mxu0 %v2143_v7  ;;  %v2137_v12 = vld [vmem:[%s2689_s17 + $0x8] sm:$0xff] }
 0x524   : > { %v1379_v18 = vmul.f32 %v2582_v52, %v1326_v10  ;;  %v2138_v10 = vld [vmem:[%s2689_s17 + $0x10] sm:$0xff] }
 0x525   : > { %1605 = vmatmul.bf16.vlgmr.msra.gmra.mxu2 %v1461_v16 }
 0x526   : > { %v1401_v24 = vadd.f32 %v2587_v56, %v1379_v18 }
 0x528   : > { %v1433_v35 = vmul.f32 0.2, %v1401_v24  ;;  %vm1417_vm11 = vcmp.gt.f32.partialorder %v1401_v24, 0.0 }
 0x529   : > { %v1327_v22 = vpop.f32.mrf.mxu0 }
 0x52a   : > { %v1328_v25 = vadd.f32 %v1327_v22, %v2579_v48  ;;  %v1449_v40 = vsel %vm1417_vm11, %v1401_v24, %v1433_v35  ;;  %vm1804_vm11 = vcmask 39936  }
 0x52c   : > { %v1381_v31 = vmul.f32 %v2582_v52, %v1328_v25 }
 0x52e   : > { %v1403_v34 = vadd.f32 %v2587_v56, %v1381_v31 }
 0x52f   : > { %1644 = vmatmul.bf16.gmra.mxu3 %v1466_v33 }
 0x530   : > { %vm1419_vm12 = vcmp.gt.f32.partialorder %v1403_v34, 0.0  ;;  %v1435_v28 = vmul.f32 0.2, %v1403_v34 }
 0x531   : > { %v1330_v38 = vpop.f32.mrf.mxu0 }
 0x532   : > { %v1331_v39 = vadd.f32 %v1330_v38, %v2579_v48  ;;  %v1451_v41 = vsel %vm1419_vm12, %v1403_v34, %v1435_v28 }
 0x533   : > { %v1463_v43 = vpack.c.bf16 %v1451_v41, %v1449_v40 }
 0x534   : > { %v1383_v44 = vmul.f32 %v2582_v52, %v1331_v39 }
 0x535   : > { %1610 = vmatmul.bf16.gmra.mxu2 %v1463_v43 }
 0x536   : > { %v1405_v47 = vadd.f32 %v2587_v56, %v1383_v44 }
 0x538   : > { %v1437_v55 = vmul.f32 0.2, %v1405_v47  ;;  %vm1421_vm15 = vcmp.gt.f32.partialorder %v1405_v47, 0.0 }
 0x539   : > { %v1332_v29 = vpop.f32.mrf.mxu0 }
 0x53a   : > { %v1333_v49 = vadd.f32 %v1332_v29, %v2579_v48  ;;  %v1453_v60 = vsel %vm1421_vm15, %v1405_v47, %v1437_v55 }
 0x53c   : > { %v1385_v53 = vmul.f32 %v2582_v52, %v1333_v49 }
 0x53e   : > { %v1407_v30 = vadd.f32 %v2587_v56, %v1385_v53 }
 0x53f   : > { %1649 = vmatmul.bf16.gmra.mxu3 %v1468_v54 }
 0x540   : > { %vm1423_vm1 = vcmp.gt.f32.partialorder %v1407_v30, 0.0  ;;  %v1439_v57 = vmul.f32 0.2, %v1407_v30 }
 0x541   : > { %v1335_v58 = vpop.f32.mrf.mxu0 }
 0x542   : > { %v1336_v59 = vadd.f32 %v1335_v58, %v2579_v48  ;;  %v1455_v61 = vsel %vm1423_vm1, %v1407_v30, %v1439_v57 }
 0x543   : > { %v1465_v62 = vpack.c.bf16 %v1455_v61, %v1453_v60 }
 0x544   : > { %v1387_v63 = vmul.f32 %v2582_v52, %v1336_v59 }
 0x545   : > { %1615 = vmatmul.bf16.gmra.mxu2 %v1465_v62 }
 0x546   : > { %v1409_v1 = vadd.f32 %v2587_v56, %v1387_v63 }
 0x548   : > { %v1441_v5 = vmul.f32 0.2, %v1409_v1  ;;  %vm1425_vm2 = vcmp.gt.f32.partialorder %v1409_v1, 0.0 }
 0x549   : > { %v1337_v0 = vpop.f32.mrf.mxu0 }
 0x54a   : > { %v1338_v2 = vadd.f32 %v1337_v0, %v2579_v48  ;;  %v1457_v14 = vsel %vm1425_vm2, %v1409_v1, %v1441_v5  ;;  %v2142_v48 = vld [vmem:[%s2689_s17 + $0x30] sm:$0xff] }
 0x54b   : > { %1776 = vmatpush.bf16.msra.mxu0 %v2142_v48 }
 0x54c   : > { %v1389_v3 = vmul.f32 %v2582_v52, %v1338_v2  ;;  %v2141_v52 = vld [vmem:[%s2689_s17 + $0x28] sm:$0xff] }
 0x54e   : > { %v1411_v4 = vadd.f32 %v2587_v56, %v1389_v3  ;;  %v2140_v56 = vld [vmem:[%s2689_s17 + $0x20] sm:$0xff] }
 0x54f   : > { %1777 = vmatpush.bf16.msra.mxu0 %v2141_v52 }
 0x550   : > { %vm1427_vm4 = vcmp.gt.f32.partialorder %v1411_v4, 0.0  ;;  %v1443_v11 = vmul.f32 0.2, %v1411_v4 }
 0x552   : > { %v1459_v8 = vsel %vm1427_vm4, %v1411_v4, %v1443_v11 }
 0x553   : > { %v1467_v6 = vpack.c.bf16 %v1459_v8, %v1457_v14  ;;  %1778 = vmatpush.bf16.msra.mxu0 %v2140_v56 }
 0x555   : > { %1620 = vmatmul.bf16.gmra.mxu2 %v1467_v6 }
 0x557   : > { %1779 = vmatpush.bf16.msra.mxu0 %v2139_v9 }
 0x55b   : > { %1780 = vmatpush.bf16.msra.mxu0 %v2138_v10 }
 0x55f   : > { %1781 = vmatpush.bf16.msra.mxu0 %v2137_v12  ;;  %v2161_v12 = vld [vmem:[%s2690_s18] ss:$0 sm:$0xff] }
 0x563   : > { %1782 = vmatpush.bf16.msra.mxu0 %v2136_v15 }
 0x592   : > { %v1635_v13 = vpop.f32.mrf.mxu3 }
 0x59a   : > { %v1637_v16 = vpop.f32.mrf.mxu3 }
 0x5a2   : > { %v1640_v22 = vpop.f32.mrf.mxu3 }
 0x5a8   : > { %v1606_v17 = vpop.f32.mrf.mxu2 }
 0x5a9   : > { %v1636_v18 = vadd.f32 %v1635_v13, %v1606_v17 }
 0x5aa   : > { %v1642_v33 = vpop.f32.mrf.mxu3 }
 0x5ab   : > { %v1659_v20 = vmul.f32 %v2159_v19, %v1636_v18 }
 0x5ad   : > { %v1671_v24 = vadd.f32 %v2160_v21, %v1659_v20 }
 0x5af   : > { %v1687_v27 = vmul.f32 0.2, %v1671_v24  ;;  %vm1679_vm0 = vcmp.gt.f32.partialorder %v1671_v24, 0.0 }
 0x5b0   : > { %v1608_v23 = vpop.f32.mrf.mxu2 }
 0x5b1   : > { %v1638_v25 = vadd.f32 %v1637_v16, %v1608_v23  ;;  %v1695_v36 = vsel %vm1679_vm0, %v1671_v24, %v1687_v27 }
 0x5b2   : > { %v1645_v42 = vpop.f32.mrf.mxu3 }
 0x5b3   : > { %v1660_v26 = vmul.f32 %v2159_v19, %v1638_v25 }
 0x5b5   : > { %v1672_v31 = vadd.f32 %v2160_v21, %v1660_v26 }
 0x5b7   : > { %vm1680_vm3 = vcmp.gt.f32.partialorder %v1672_v31, 0.0  ;;  %v1688_v32 = vmul.f32 0.2, %v1672_v31 }
 0x5b8   : > { %v1611_v34 = vpop.f32.mrf.mxu2 }
 0x5b9   : > { %v1641_v35 = vadd.f32 %v1640_v22, %v1611_v34  ;;  %v1696_v28 = vsel %vm1680_vm3, %v1672_v31, %v1688_v32 }
 0x5ba   : > { %v1703_v37 = vpack.c.bf16 %v1696_v28, %v1695_v36  ;;  %v1647_v53 = vpop.f32.mrf.mxu3 }
 0x5bb   : > { %v1661_v38 = vmul.f32 %v2159_v19, %v1641_v35 }
 0x5bc   : > { %1783 = vmatmul.bf16.vlgmr.msra.gmra.mxu0 %v1703_v37 }
 0x5bd   : > { %v1673_v40 = vadd.f32 %v2160_v21, %v1661_v38 }
 0x5bf   : > { %v1689_v45 = vmul.f32 0.2, %v1673_v40  ;;  %vm1681_vm5 = vcmp.gt.f32.partialorder %v1673_v40, 0.0 }
 0x5c0   : > { %v1613_v39 = vpop.f32.mrf.mxu2 }
 0x5c1   : > { %v1643_v41 = vadd.f32 %v1642_v33, %v1613_v39  ;;  %v1697_v49 = vsel %vm1681_vm5, %v1673_v40, %v1689_v45 }
 0x5c2   : > { %v1650_v61 = vpop.f32.mrf.mxu3 }
 0x5c3   : > { %v1662_v43 = vmul.f32 %v2159_v19, %v1643_v41 }
 0x5c5   : > { %v1674_v44 = vadd.f32 %v2160_v21, %v1662_v43 }
 0x5c7   : > { %vm1682_vm6 = vcmp.gt.f32.partialorder %v1674_v44, 0.0  ;;  %v1690_v46 = vmul.f32 0.2, %v1674_v44 }
 0x5c8   : > { %v1616_v29 = vpop.f32.mrf.mxu2 }
 0x5c9   : > { %v1646_v47 = vadd.f32 %v1645_v42, %v1616_v29  ;;  %v1698_v50 = vsel %vm1682_vm6, %v1674_v44, %v1690_v46 }
 0x5ca   : > { %v1704_v51 = vpack.c.bf16 %v1698_v50, %v1697_v49  ;;  %v1652_v5 = vpop.f32.mrf.mxu3 }
 0x5cb   : > { %v1663_v54 = vmul.f32 %v2159_v19, %v1646_v47 }
 0x5cc   : > { %1788 = vmatmul.bf16.gmra.mxu0 %v1704_v51 }
 0x5cd   : > { %v1675_v55 = vadd.f32 %v2160_v21, %v1663_v54 }
 0x5cf   : > { %v1691_v60 = vmul.f32 0.2, %v1675_v55  ;;  %vm1683_vm7 = vcmp.gt.f32.partialorder %v1675_v55, 0.0 }
 0x5d0   : > { %v1618_v30 = vpop.f32.mrf.mxu2 }
 0x5d1   : > { %v1648_v57 = vadd.f32 %v1647_v53, %v1618_v30  ;;  %v1699_v1 = vsel %vm1683_vm7, %v1675_v55, %v1691_v60 }
 0x5d3   : > { %v1664_v58 = vmul.f32 %v2159_v19, %v1648_v57 }
 0x5d5   : > { %v1676_v59 = vadd.f32 %v2160_v21, %v1664_v58 }
 0x5d7   : > { %vm1684_vm8 = vcmp.gt.f32.partialorder %v1676_v59, 0.0  ;;  %v1692_v62 = vmul.f32 0.2, %v1676_v59 }
 0x5d8   : > { %v1621_v63 = vpop.f32.mrf.mxu2 }
 0x5d9   : > { %v1651_v0 = vadd.f32 %v1650_v61, %v1621_v63  ;;  %v1700_v2 = vsel %vm1684_vm8, %v1676_v59, %v1692_v62 }
 0x5da   : > { %v1705_v3 = vpack.c.bf16 %v1700_v2, %v1699_v1 }
 0x5db   : > { %v1665_v4 = vmul.f32 %v2159_v19, %v1651_v0 }
 0x5dc   : > { %1793 = vmatmul.bf16.gmra.mxu0 %v1705_v3 }
 0x5dd   : > { %v1677_v14 = vadd.f32 %v2160_v21, %v1665_v4 }
 0x5df   : > { %v1693_v7 = vmul.f32 0.2, %v1677_v14  ;;  %vm1685_vm9 = vcmp.gt.f32.partialorder %v1677_v14, 0.0 }
 0x5e0   : > { %v1623_v11 = vpop.f32.mrf.mxu2 }
 0x5e1   : > { %v1653_v8 = vadd.f32 %v1652_v5, %v1623_v11  ;;  %v1701_v56 = vsel %vm1685_vm9, %v1677_v14, %v1693_v7 }
 0x5e3   : > { %v1666_v6 = vmul.f32 %v2159_v19, %v1653_v8 }
 0x5e5   : > { %v1678_v48 = vadd.f32 %v2160_v21, %v1666_v6 }
 0x5e7   : > { %v1694_v52 = vmul.f32 0.2, %v1678_v48  ;;  %vm1686_vm10 = vcmp.gt.f32.partialorder %v1678_v48, 0.0 }
 0x5e9   : > { %v1702_v9 = vsel %vm1686_vm10, %v1678_v48, %v1694_v52 }
 0x5ea   : > { %v1706_v10 = vpack.c.bf16 %v1702_v9, %v1701_v56 }
 0x5ec   : > { %1798 = vmatmul.bf16.gmra.mxu0 %v1706_v10 }
 0x639   : > { %v1784_v13 = vpop.f32.mrf.mxu0 }
 0x63a   : > { %v1785_v15 = vadd.f32 %v2161_v12, %v1784_v13 }
 0x63c   : > { %1805 = vst.msk [vmem:[%s602_s24] sm:$0xff] %vm1804_vm11, %v1785_v15 }
 0x641   : > { %v1786_v16 = vpop.f32.mrf.mxu0 }
 0x642   : > { %v1787_v17 = vadd.f32 %v2161_v12, %v1786_v16 }
 0x644   : > { %1806 = vst.msk [vmem:[%s602_s24 + $0x8] sm:$0xff] %vm1804_vm11, %v1787_v17 }
 0x649   : > { %v1789_v18 = vpop.f32.mrf.mxu0 }
 0x64a   : > { %v1790_v19 = vadd.f32 %v2161_v12, %v1789_v18 }
 0x64c   : > { %1807 = vst.msk [vmem:[%s602_s24 + $0x10] sm:$0xff] %vm1804_vm11, %v1790_v19 }
 0x651   : > { %v1791_v20 = vpop.f32.mrf.mxu0 }
 0x652   : > { %v1792_v21 = vadd.f32 %v2161_v12, %v1791_v20 }
 0x654   : > { %1808 = vst.msk [vmem:[%s602_s24 + $0x18] sm:$0xff] %vm1804_vm11, %v1792_v21 }
 0x659   : > { %v1794_v22 = vpop.f32.mrf.mxu0 }
 0x65a   : > { %v1795_v23 = vadd.f32 %v2161_v12, %v1794_v22 }
 0x65c   : > { %1809 = vst.msk [vmem:[%s602_s24 + $0x20] sm:$0xff] %vm1804_vm11, %v1795_v23 }
 0x661   : > { %v1796_v24 = vpop.f32.mrf.mxu0 }
 0x662   : > { %v1797_v25 = vadd.f32 %v2161_v12, %v1796_v24 }
 0x664   : > { %1810 = vst.msk [vmem:[%s602_s24 + $0x28] sm:$0xff] %vm1804_vm11, %v1797_v25 }
 0x669   : > { %v1799_v26 = vpop.f32.mrf.mxu0 }
 0x66a   : > { %v1800_v27 = vadd.f32 %v2161_v12, %v1799_v26 }
 0x66c   : > { %1811 = vst.msk [vmem:[%s602_s24 + $0x30] sm:$0xff] %vm1804_vm11, %v1800_v27 }
 0x671   : > { %v1801_v31 = vpop.f32.mrf.mxu0 }
 0x672   : > { %v1802_v32 = vadd.f32 %v2161_v12, %v1801_v31 }
 0x674   : > { %1812 = vst.msk [vmem:[%s602_s24 + $0x38] sm:$0xff] %vm1804_vm11, %v1802_v32 }
 0x675 PF: > { %s29_s0 = sadd.s32 1, %s2200_s0  }
 0x676   : > { %p26_p4 = scmp.ge.s32.totalorder %s29_s0, 4  }
 0x678   :  { %28 = sbr.rel (!%p26_p4) target bundleno = 5 (0x5), region = 126 }

// kernel: dgcnn_seg_attention_forward.5
= control target key start
LH: loop header
LB: loop body
LE: loop exit
PB: predicated region body
PF: predicated region fallthrough
CT: control target
= control target key end

     0   :  { %s3994_s30 = smov 0   ;;  %s3996_s10 = smov 0   ;;  %s5781_s0 = inlined_call_operand.vmem [shape: f32[2,64,16], index: 0, kind: input, shape index: {}, may-alias: {0,1}]   ;;  %s5782_s1 = inlined_call_operand.vmem [shape: f32[2,64,16], index: 1, kind: input, shape index: {}, may-alias: {0,1}]   ;;  %s5783_s2 = inlined_call_operand.vmem [shape: bf16[16,16], index: 2, kind: input, shape index: {}]   ;;  %s5784_s3 = inlined_call_operand.vmem [shape: bf16[16,16], index: 3, kind: input, shape index: {}]   ;;  %s5785_s4 = inlined_call_operand.vmem [shape: f32[1,16], index: 4, kind: input, shape index: {}]   ;;  %s5786_s5 = inlined_call_operand.vmem [shape: f32[1,16], index: 5, kind: input, shape index: {}]   ;;  %s5787_s6 = inlined_call_operand.vmem [shape: bf16[16,16], index: 6, kind: input, shape index: {}]   ;;  %s5788_s7 = inlined_call_operand.vmem [shape: f32[1,16], index: 7, kind: input, shape index: {}]   ;;  %s5789_s8 = inlined_call_operand.vmem [shape: f32[1,16], index: 8, kind: input, shape index: {}]   ;;  %s5790_s9 = inlined_call_operand.vmem [shape: f32[2,64,16], index: 9, kind: output, shape index: {}]  }
   0x1   :  { %s3998_s11 = smov 0  }
   0x2 LB: > { %s31_s12 = sadd.s32 1, %s3936_s10  ;;  %p3596_p0 = scmp.ge.s32.totalorder %s3940_s11, 1  ;;  %s3940_s11 = sphi %s3998_s11, %s19_s11   ;;  %s3936_s10 = sphi %s3996_s10, %s5819_s10   ;;  %s3932_s30 = sphi %s3994_s30, %s5818_s30  }
   0x3   : > { %p33_p1 = scmp.ge.s32.totalorder %s31_s12, 2  ;;  %p318_p2 = scmp.lt.s32.totalorder %s3940_s11, 3 }
   0x5   : > { %s5821_s12 = smov (%p33_p1, %s31_s12), 0  ;;  %p319_p3 = pnand %p3596_p0, %p318_p2 }
   0x7   : > { %322 = sbr.rel (%p319_p3) target bundleno = 2661 (0xa65), region = 56 }
   0xc   : > { %p368_p4 = scmp.lt.s32.totalorder %s3932_s30, 1  ;;  %vm409_vm0 = vcmask 130048   ;;  %v3942_v17 = vmov 1.0   ;;  %vm635_vm1 = vcmask 523264   ;;  %v571_v55 = vlaneseq }
   0xe   : > { %s5823_s30 = smov (!%p368_p4, %s3932_s30), 1  ;;  %v572_v56 = vand.u32 127, %v571_v55 }
   0xf   : > { %s4012_s13 = sshll.u32 %s5823_s30, 6 }
  0x10   : > { %s4018_s16 = scalar_lea.vmem %s5782_s1, %s4012_s13  ;;  %s4095_s19 = scalar_lea.vmem %s5781_s0, %s4012_s13  ;;  %v4183_v57 = vcvt.s32.f32 %v572_v56 }
  0x11   : > { %v4021_v0 = vld [vmem:[%s4018_s16 + $0x38] sm:$0xff]  ;;  %v4024_v1 = vld [vmem:[%s4018_s16 + $0x30] sm:$0xff]  ;;  %v4036_v4 = vld [vmem:[%s4018_s16 + $0x28] sm:$0xff]  ;;  %s5677_s27 = scalar_lea.vmem %s5790_s9, %s4012_s13 }
  0x12   : > { %3603 = vmatpush.xpose.msk.msra.mxu0 %vm409_vm0, %v4021_v0  ;;  %v506_v2 = vmul.f32 %v4021_v0, %v4021_v0  ;;  %3844 = vmatpush.msra.mxu3 %v4021_v0  ;;  %v505_v3 = vmul.f32 %v4024_v1, %v4024_v1  ;;  %v4042_v5 = vld [vmem:[%s4018_s16 + $0x20] sm:$0xff]  ;;  %v504_v6 = vmul.f32 %v4036_v4, %v4036_v4  ;;  %v4049_v7 = vld [vmem:[%s4018_s16 + $0x18] sm:$0xff]  ;;  %v4055_v8 = vld [vmem:[%s4018_s16 + $0x10] sm:$0xff]  ;;  %v4186_v58 = vsub.f32 0.0, %v4183_v57 }
  0x13   : > { %v503_v9 = vmul.f32 %v4042_v5, %v4042_v5  ;;  %v4062_v10 = vld [vmem:[%s4018_s16 + $0x8] sm:$0xff]  ;;  %v4068_v11 = vld [vmem:[%s4018_s16] sm:$0xff]  ;;  %v502_v12 = vmul.f32 %v4049_v7, %v4049_v7  ;;  %v501_v13 = vmul.f32 %v4055_v8, %v4055_v8  ;;  %v4125_v19 = vld [vmem:[%s4095_s19 + $0x10] sm:$0xff] }
  0x14   : > { %3619 = vmatpush.xpose.msk.msra.mxu1 %vm409_vm0, %v506_v2  ;;  %3845 = vmatpush.msra.mxu3 %v4024_v1  ;;  %v500_v14 = vmul.f32 %v4062_v10, %v4062_v10  ;;  %v499_v15 = vmul.f32 %v4068_v11, %v4068_v11  ;;  %v4105_v16 = vld [vmem:[%s4095_s19] sm:$0xff]  ;;  %v4116_v18 = vld [vmem:[%s4095_s19 + $0x8] sm:$0xff]  ;;  %v4131_v20 = vld [vmem:[%s4095_s19 + $0x18] sm:$0xff] }
  0x15   : > { %v4136_v21 = vld [vmem:[%s4095_s19 + $0x20] sm:$0xff]  ;;  %v4141_v22 = vld [vmem:[%s4095_s19 + $0x28] sm:$0xff]  ;;  %v4146_v23 = vld [vmem:[%s4095_s19 + $0x30] sm:$0xff] }
  0x16   : > { %3604 = vmatpush.xpose.msk.msra.mxu0 %vm409_vm0, %v4024_v1  ;;  %3846 = vmatpush.msra.mxu3 %v4036_v4  ;;  %v4151_v24 = vld [vmem:[%s4095_s19 + $0x38] sm:$0xff] }
  0x18   : > { %3620 = vmatpush.xpose.msk.msra.mxu1 %vm409_vm0, %v505_v3  ;;  %3847 = vmatpush.msra.mxu3 %v4042_v5 }
  0x1a   : > { %3605 = vmatpush.xpose.msk.msra.mxu0 %vm409_vm0, %v4036_v4  ;;  %3848 = vmatpush.msra.mxu3 %v4049_v7 }
  0x1c   : > { %3621 = vmatpush.xpose.msk.msra.mxu1 %vm409_vm0, %v504_v6  ;;  %3849 = vmatpush.msra.mxu3 %v4055_v8 }
  0x1e   : > { %3606 = vmatpush.xpose.msk.msra.mxu0 %vm409_vm0, %v4042_v5  ;;  %3850 = vmatpush.msra.mxu3 %v4062_v10 }
  0x20   : > { %3622 = vmatpush.xpose.msk.msra.mxu1 %vm409_vm0, %v503_v9  ;;  %3851 = vmatpush.msra.mxu3 %v4068_v11 }
  0x22   : > { %1136 = vmatpush.msrb.mxu3 %v4021_v0  ;;  %3607 = vmatpush.xpose.msk.msra.mxu0 %vm409_vm0, %v4049_v7 }
  0x24   : > { %1137 = vmatpush.msrb.mxu3 %v4024_v1  ;;  %3623 = vmatpush.xpose.msk.msra.mxu1 %vm409_vm0, %v502_v12 }
  0x26   : > { %1138 = vmatpush.msrb.mxu3 %v4036_v4  ;;  %3608 = vmatpush.xpose.msk.msra.mxu0 %vm409_vm0, %v4055_v8 }
  0x28   : > { %1139 = vmatpush.msrb.mxu3 %v4042_v5  ;;  %3624 = vmatpush.xpose.msk.msra.mxu1 %vm409_vm0, %v501_v13 }
  0x2a   : > { %1140 = vmatpush.msrb.mxu3 %v4049_v7  ;;  %3609 = vmatpush.xpose.msk.msra.mxu0 %vm409_vm0, %v4062_v10 }
  0x2c   : > { %1141 = vmatpush.msrb.mxu3 %v4055_v8  ;;  %3625 = vmatpush.xpose.msk.msra.mxu1 %vm409_vm0, %v500_v14 }
  0x2e   : > { %1142 = vmatpush.msrb.mxu3 %v4062_v10  ;;  %3610 = vmatpush.xpose.msk.msra.mxu0 %vm409_vm0, %v4068_v11 }
  0x30   : > { %1143 = vmatpush.msrb.mxu3 %v4068_v11  ;;  %3626 = vmatpush.xpose.msk.msra.mxu1 %vm409_vm0, %v499_v15 }
  0x31   : > { %3611 = vmatmul.msk.f32.vlgmr.msra.gmra.mxu0 %vm409_vm0, %v4105_v16 }
  0x32   : > { %765 = vmatpush.msrb.mxu0 %v4021_v0 }
  0x33   : > { %3627 = vmatmul.msk.f32.vlgmr.msra.gmra.mxu1 %vm409_vm0, %v3942_v17 }
  0x34   : > { %766 = vmatpush.msrb.mxu0 %v4024_v1 }
  0x36   : > { %767 = vmatpush.msrb.mxu0 %v4036_v4 }
  0x38   : > { %768 = vmatpush.msrb.mxu0 %v4042_v5 }
  0x39   : > { %3612 = vmatmul.msk.f32.gmra.mxu0 %vm409_vm0, %v4116_v18 }
  0x3a   : > { %769 = vmatpush.msrb.mxu0 %v4049_v7 }
  0x3c   : > { %770 = vmatpush.msrb.mxu0 %v4055_v8 }
  0x3e   : > { %771 = vmatpush.msrb.mxu0 %v4062_v10 }
  0x40   : > { %772 = vmatpush.msrb.mxu0 %v4068_v11 }
  0x41   : > { %3613 = vmatmul.msk.f32.gmra.mxu0 %vm409_vm0, %v4125_v19 }
  0x49   : > { %3614 = vmatmul.msk.f32.gmra.mxu0 %vm409_vm0, %v4131_v20 }
  0x51   : > { %3615 = vmatmul.msk.f32.gmra.mxu0 %vm409_vm0, %v4136_v21 }
  0x59   : > { %3616 = vmatmul.msk.f32.gmra.mxu0 %vm409_vm0, %v4141_v22 }
  0x61   : > { %3617 = vmatmul.msk.f32.gmra.mxu0 %vm409_vm0, %v4146_v23 }
  0x69   : > { %3618 = vmatmul.msk.f32.gmra.mxu0 %vm409_vm0, %v4151_v24 }
  0xae   : > { %v475_v25 = vpop.f32.mrf.mxu0 }
  0xaf   : > { %v554_v26 = vmul.f32 2.0, %v475_v25 }
  0xb0   : > { %v551_v27 = vpop.f32.mrf.mxu1 }
  0xb1   : > { %v562_v28 = vperm.slane %v551_v27, 0 }
  0xb3   : > { %v4155_v29 = vsub.f32 %v554_v26, %v562_v28 }
  0xb5   : > { %v636_v30 = vsel %vm635_vm1, %v4155_v29, -inf }
  0xb6   : > { %637 = vmax.xlane.f32.xlu0 %v636_v30  ;;  %v478_v31 = vpop.f32.mrf.mxu0 }
  0xb7   : > { %v555_v32 = vmul.f32 2.0, %v478_v31 }
  0xb9   : > { %v4159_v33 = vsub.f32 %v555_v32, %v562_v28 }
  0xbb   : > { %v639_v34 = vsel %vm635_vm1, %v4159_v33, -inf }
  0xbe   : > { %640 = vmax.xlane.f32.xlu0 %v639_v34  ;;  %v481_v35 = vpop.f32.mrf.mxu0 }
  0xbf   : > { %v556_v36 = vmul.f32 2.0, %v481_v35 }
  0xc1   : > { %v4163_v37 = vsub.f32 %v556_v36, %v562_v28 }
  0xc3   : > { %v642_v38 = vsel %vm635_vm1, %v4163_v37, -inf }
  0xc4   : > { %643 = vmax.xlane.f32.xlu1 %v642_v38 }
  0xc6   : > { %v484_v39 = vpop.f32.mrf.mxu0 }
  0xc7   : > { %v557_v40 = vmul.f32 2.0, %v484_v39 }
  0xc9   : > { %v4167_v41 = vsub.f32 %v557_v40, %v562_v28 }
  0xcb   : > { %v645_v42 = vsel %vm635_vm1, %v4167_v41, -inf }
  0xcc   : > { %646 = vmax.xlane.f32.xlu1 %v645_v42  ;;  %v5791_v42 = vmov 0.0  }
  0xce   : > { %v487_v43 = vpop.f32.mrf.mxu0 }
  0xcf   : > { %v558_v44 = vmul.f32 2.0, %v487_v43 }
  0xd1   : > { %v4171_v45 = vsub.f32 %v558_v44, %v562_v28 }
  0xd3   : > { %v648_v46 = vsel %vm635_vm1, %v4171_v45, -inf }
  0xd4   : > { %649 = vmax.xlane.f32.xlu2 %v648_v46 }
  0xd6   : > { %v490_v47 = vpop.f32.mrf.mxu0 }
  0xd7   : > { %v559_v48 = vmul.f32 2.0, %v490_v47 }
  0xd9   : > { %v4175_v49 = vsub.f32 %v559_v48, %v562_v28 }
  0xdb   : > { %v651_v50 = vsel %vm635_vm1, %v4175_v49, -inf }
  0xdc   : > { %652 = vmax.xlane.f32.xlu2 %v651_v50 }
  0xde   : > { %v493_v51 = vpop.f32.mrf.mxu0 }
  0xdf   : > { %v560_v52 = vmul.f32 2.0, %v493_v51 }
  0xe1   : > { %v4179_v53 = vsub.f32 %v560_v52, %v562_v28 }
  0xe3   : > { %v654_v54 = vsel %vm635_vm1, %v4179_v53, -inf }
  0xe4   : > { %655 = vmax.xlane.f32.xlu1 %v654_v54 }
  0xe6   : > { %v496_v59 = vpop.f32.mrf.mxu0 }
  0xe7   : > { %v561_v62 = vmul.f32 2.0, %v496_v59 }
  0xe9   : > { %v4191_v2 = vsub.f32 %v561_v62, %v562_v28 }
  0xeb   : > { %v657_v12 = vsel %vm635_vm1, %v4191_v2, -inf }
 0x129   : > { %v638_v60 = vpop.xlane.xlu0 %637 }
 0x12a   : > { %vm660_vm2 = vcmp.eq.f32.partialorder %v4155_v29, %v638_v60 }
 0x12b   : > { %v669_v61 = vsel %vm660_vm2, %v4186_v58, -64.0 }
 0x12c   : > { %v677_v63 = vsel %vm635_vm1, %v669_v61, -inf }
 0x12d   : > { %678 = vmax.xlane.f32.xlu0 %v677_v63 }
 0x131   : > { %v641_v3 = vpop.xlane.xlu0 %640 }
 0x132   : > { %vm661_vm3 = vcmp.eq.f32.partialorder %v4159_v33, %v641_v3 }
 0x133   : > { %v670_v6 = vsel %vm661_vm3, %v4186_v58, -64.0 }
 0x134   : > { %v680_v9 = vsel %vm635_vm1, %v670_v6, -inf }
 0x135   : > { %681 = vmax.xlane.f32.xlu2 %v680_v9  ;;  %658 = vmax.xlane.f32.xlu0 %v657_v12 }
 0x137   : > { %v644_v13 = vpop.xlane.xlu1 %643 }
 0x138   : > { %vm662_vm4 = vcmp.eq.f32.partialorder %v4163_v37, %v644_v13 }
 0x139   : > { %v671_v14 = vsel %vm662_vm4, %v4186_v58, -64.0 }
 0x13a   : > { %v683_v15 = vsel %vm635_vm1, %v671_v14, -inf }
 0x13b   : > { %684 = vmax.xlane.f32.xlu1 %v683_v15 }
 0x13f   : > { %v647_v17 = vpop.xlane.xlu1 %646 }
 0x140   : > { %vm663_vm5 = vcmp.eq.f32.partialorder %v4167_v41, %v647_v17 }
 0x141   : > { %v672_v25 = vsel %vm663_vm5, %v4186_v58, -64.0 }
 0x142   : > { %v686_v26 = vsel %vm635_vm1, %v672_v25, -inf }
 0x143   : > { %687 = vmax.xlane.f32.xlu2 %v686_v26 }
 0x147   : > { %v650_v27 = vpop.xlane.xlu2 %649 }
 0x148   : > { %vm664_vm6 = vcmp.eq.f32.partialorder %v4171_v45, %v650_v27 }
 0x149   : > { %v673_v28 = vsel %vm664_vm6, %v4186_v58, -64.0 }
 0x14a   : > { %v689_v30 = vsel %vm635_vm1, %v673_v28, -inf }
 0x14b   : > { %690 = vmax.xlane.f32.xlu0 %v689_v30 }
 0x14f   : > { %v653_v31 = vpop.xlane.xlu2 %652 }
 0x150   : > { %vm665_vm7 = vcmp.eq.f32.partialorder %v4175_v49, %v653_v31 }
 0x151   : > { %v674_v32 = vsel %vm665_vm7, %v4186_v58, -64.0 }
 0x152   : > { %v692_v34 = vsel %vm635_vm1, %v674_v32, -inf  ;;  %v3841_v32 = vld [vmem:[%s5784_s3] sm:$0xff] }
 0x153   : > { %693 = vmax.xlane.f32.xlu1 %v692_v34  ;;  %605 = vmatpush.bf16.msra.mxu2 %v3841_v32  ;;  %v574_v34 = vpack.c.bf16 %v4116_v18, %v4105_v16 }
 0x156   : > { %3632 = vmatmul.msk.bf16.vlgmr.msra.gmra.mxu2 %vm409_vm0, %v574_v34 }
 0x157   : > { %v656_v35 = vpop.xlane.xlu1 %655 }
 0x158   : > { %vm666_vm8 = vcmp.eq.f32.partialorder %v4179_v53, %v656_v35 }
 0x159   : > { %v675_v36 = vsel %vm666_vm8, %v4186_v58, -64.0 }
 0x15a   : > { %v695_v38 = vsel %vm635_vm1, %v675_v36, -inf }
 0x15b   : > { %696 = vmax.xlane.f32.xlu0 %v695_v38  ;;  %v575_v38 = vpack.c.bf16 %v4131_v20, %v4125_v19 }
 0x166   : > { %3633 = vmatmul.msk.bf16.gmra.mxu2 %vm409_vm0, %v575_v38 }
 0x1a0   : > { %v679_v39 = vpop.xlane.xlu0 %678 }
 0x1a1   : > { %v701_v40 = vsub.f32 0.0, %v679_v39 }
 0x1a3   : > { %vm709_vm9 = vcmp.eq.f32.partialorder %v4183_v57, %v701_v40 }
 0x1a4   : > { %v3636_v43 = vsel %vm709_vm9, 1.0, %v5791_v42  ;;  %v4216_v44 = vsel %vm709_vm9, -inf, %v4155_v29 }
 0x1a5   : > { %3644 = vmatmul.msk.f32.vlgmr.msrb.gmra.mxu0 %vm635_vm1, %v3636_v43  ;;  %v1008_v46 = vsel %vm635_vm1, %v4216_v44, -inf }
 0x1a6   : > { %1009 = vmax.xlane.f32.xlu2 %v1008_v46 }
 0x1a8   : > { %v682_v47 = vpop.xlane.xlu2 %681  ;;  %v659_v48 = vpop.xlane.xlu0 %658 }
 0x1a9   : > { %v702_v50 = vsub.f32 0.0, %v682_v47  ;;  %vm667_vm10 = vcmp.eq.f32.partialorder %v4191_v2, %v659_v48 }
 0x1aa   : > { %v676_v51 = vsel %vm667_vm10, %v4186_v58, -64.0 }
 0x1ab   : > { %vm710_vm11 = vcmp.eq.f32.partialorder %v4183_v57, %v702_v50  ;;  %v698_v55 = vsel %vm635_vm1, %v676_v51, -inf }
 0x1ac   : > { %v3637_v52 = vsel %vm710_vm11, 1.0, %v5791_v42  ;;  %v4226_v29 = vsel %vm710_vm11, -inf, %v4159_v33 }
 0x1ad   : > { %3645 = vmatmul.msk.f32.gmra.mxu0 %vm635_vm1, %v3637_v52  ;;  %v1011_v54 = vsel %vm635_vm1, %v4226_v29, -inf }
 0x1ae   : > { %1012 = vmax.xlane.f32.xlu1 %v1011_v54  ;;  %v685_v56 = vpop.xlane.xlu1 %684  ;;  %699 = vmax.xlane.f32.xlu2 %v698_v55 }
 0x1af   : > { %v703_v59 = vsub.f32 0.0, %v685_v56 }
 0x1b1   : > { %vm711_vm12 = vcmp.eq.f32.partialorder %v4183_v57, %v703_v59 }
 0x1b2   : > { %v4234_v60 = vsel %vm711_vm12, -inf, %v4163_v37  ;;  %v3638_v61 = vsel %vm711_vm12, 1.0, %v5791_v42 }
 0x1b3   : > { %v1014_v33 = vsel %vm635_vm1, %v4234_v60, -inf }
 0x1b4   : > { %1015 = vmax.xlane.f32.xlu0 %v1014_v33 }
 0x1b5   : > { %3646 = vmatmul.msk.f32.gmra.mxu0 %vm635_vm1, %v3638_v61 }
 0x1b6   : > { %v688_v62 = vpop.xlane.xlu2 %687 }
 0x1b7   : > { %v704_v63 = vsub.f32 0.0, %v688_v62 }
 0x1b9   : > { %vm712_vm13 = vcmp.eq.f32.partialorder %v4183_v57, %v704_v63 }
 0x1ba   : > { %v3639_v3 = vsel %vm712_vm13, 1.0, %v5791_v42  ;;  %v4243_v6 = vsel %vm712_vm13, -inf, %v4167_v41 }
 0x1bb   : > { %3647 = vmatmul.msk.f32.vlgmr.msra.gmra.mxu3 %vm635_vm1, %v3639_v3  ;;  %v1017_v37 = vsel %vm635_vm1, %v4243_v6, -inf }
 0x1bc   : > { %1018 = vmax.xlane.f32.xlu1 %v1017_v37 }
 0x1be   : > { %v691_v9 = vpop.xlane.xlu0 %690 }
 0x1bf   : > { %v705_v12 = vsub.f32 0.0, %v691_v9 }
 0x1c1   : > { %vm713_vm14 = vcmp.eq.f32.partialorder %v4183_v57, %v705_v12 }
 0x1c2   : > { %v3640_v13 = vsel %vm713_vm14, 1.0, %v5791_v42  ;;  %v4251_v14 = vsel %vm713_vm14, -inf, %v4171_v45 }
 0x1c3   : > { %3648 = vmatmul.msk.f32.gmra.mxu3 %vm635_vm1, %v3640_v13  ;;  %v1020_v41 = vsel %vm635_vm1, %v4251_v14, -inf }
 0x1c4   : > { %1021 = vmax.xlane.f32.xlu2 %v1020_v41 }
 0x1c6   : > { %v694_v15 = vpop.xlane.xlu1 %693 }
 0x1c7   : > { %v706_v17 = vsub.f32 0.0, %v694_v15 }
 0x1c9   : > { %vm714_vm15 = vcmp.eq.f32.partialorder %v4183_v57, %v706_v17 }
 0x1ca   : > { %v3641_v25 = vsel %vm714_vm15, 1.0, %v5791_v42  ;;  %v4259_v26 = vsel %vm714_vm15, -inf, %v4175_v49 }
 0x1cb   : > { %3649 = vmatmul.msk.f32.gmra.mxu3 %vm635_vm1, %v3641_v25  ;;  %v1023_v45 = vsel %vm635_vm1, %v4259_v26, -inf }
 0x1cc   : > { %1024 = vmax.xlane.f32.xlu0 %v1023_v45 }
 0x1ce   : > { %v697_v27 = vpop.xlane.xlu0 %696 }
 0x1cf   : > { %v707_v28 = vsub.f32 0.0, %v697_v27 }
 0x1d1   : > { %vm715_vm2 = vcmp.eq.f32.partialorder %v4183_v57, %v707_v28 }
 0x1d2   : > { %v3642_v30 = vsel %vm715_vm2, 1.0, %v5791_v42  ;;  %v4267_v31 = vsel %vm715_vm2, -inf, %v4179_v53  ;;  %v4281_v53 = vld [vmem:[%s5783_s2] sm:$0xff] }
 0x1d3   : > { %3650 = vmatmul.msk.f32.gmra.mxu3 %vm635_vm1, %v3642_v30  ;;  %v1026_v49 = vsel %vm635_vm1, %v4267_v31, -inf  ;;  %835 = vmatpush.bf16.msrb.mxu1 %v4281_v53 }
 0x1d4   : > { %1027 = vmax.xlane.f32.xlu2 %v1026_v49  ;;  %1200 = vmatpush.bf16.msra.mxu0 %v4281_v53 }
 0x1d5   : > { %1555 = vmatpush.bf16.msra.mxu3 %v4281_v53 }
 0x219   : > { %v1010_v35 = vpop.xlane.xlu2 %1009 }
 0x21a   : > { %vm1032_vm3 = vcmp.eq.f32.partialorder %v4216_v44, %v1010_v35 }
 0x21b   : > { %v1040_v36 = vsel %vm1032_vm3, %v4186_v58, -64.0 }
 0x21c   : > { %v1048_v39 = vsel %vm635_vm1, %v1040_v36, -inf }
 0x21d   : > { %1049 = vmax.xlane.f32.xlu1 %v1048_v39 }
 0x221   : > { %v1013_v40 = vpop.xlane.xlu1 %1012  ;;  %v700_v43 = vpop.xlane.xlu2 %699 }
 0x222   : > { %vm1033_vm4 = vcmp.eq.f32.partialorder %v4226_v29, %v1013_v40  ;;  %v708_v46 = vsub.f32 0.0, %v700_v43  ;;  %v774_v47 = vpop.f32.mrf.mxu0 }
 0x223   : > { %v1041_v48 = vsel %vm1033_vm4, %v4186_v58, -64.0  ;;  %v798_v61 = vsub.f32 %v774_v47, %v4105_v16 }
 0x224   : > { %vm716_vm5 = vcmp.eq.f32.partialorder %v4183_v57, %v708_v46  ;;  %v1051_v50 = vsel %vm635_vm1, %v1041_v48, -inf  ;;  %v577_v46 = vpack.c.bf16 %v4151_v24, %v4146_v23 }
 0x225   : > { %1052 = vmax.xlane.f32.xlu0 %v1051_v50  ;;  %v3643_v51 = vsel %vm716_vm5, 1.0, %v5791_v42  ;;  %v4298_v52 = vsel %vm716_vm5, -inf, %v4191_v2  ;;  %v576_v2 = vpack.c.bf16 %v4141_v22, %v4136_v21 }
 0x226   : > { %3651 = vmatmul.msk.f32.gmra.mxu3 %vm635_vm1, %v3643_v51  ;;  %v1029_v54 = vsel %vm635_vm1, %v4298_v52, -inf }
 0x227   : > { %1030 = vmax.xlane.f32.xlu1 %v1029_v54  ;;  %v1016_v55 = vpop.xlane.xlu0 %1015  ;;  %3634 = vmatmul.msk.bf16.gmra.mxu2 %vm409_vm0, %v576_v2 }
 0x228   : > { %vm1034_vm6 = vcmp.eq.f32.partialorder %v4234_v60, %v1016_v55 }
 0x229   : > { %v1042_v56 = vsel %vm1034_vm6, %v4186_v58, -64.0 }
 0x22a   : > { %v777_v59 = vpop.f32.mrf.mxu0  ;;  %v1054_v33 = vsel %vm635_vm1, %v1042_v56, -inf }
 0x22b   : > { %v799_v62 = vsub.f32 %v777_v59, %v4116_v18  ;;  %1055 = vmax.xlane.f32.xlu2 %v1054_v33  ;;  %v4346_v33 = vld [vmem:[%s5787_s6] sm:$0xff] }
 0x22c   : > { %932 = vmatpush.bf16.msrb.mxu2 %v4346_v33  ;;  %1285 = vmatpush.bf16.msra.mxu1 %v4346_v33 }
 0x22d   : > { %v806_v63 = vpack.c.bf16 %v799_v62, %v798_v61  ;;  %1640 = vmatpush.bf16.msrb.mxu0 %v4346_v33 }
 0x22f   : > { %v1019_v3 = vpop.xlane.xlu1 %1018  ;;  %3656 = vmatmul.msk.bf16.vlgmr.msrb.gmra.mxu1 %vm409_vm0, %v806_v63 }
 0x230   : > { %vm1035_vm7 = vcmp.eq.f32.partialorder %v4243_v6, %v1019_v3  ;;  %1491 = vmatpush.msra.mxu2 %v4021_v0  ;;  %1846 = vmatpush.msrb.mxu1 %v4021_v0 }
 0x231   : > { %v1043_v37 = vsel %vm1035_vm7, %v4186_v58, -64.0 }
 0x232   : > { %v1057_v9 = vsel %vm635_vm1, %v1043_v37, -inf  ;;  %v780_v15 = vpop.f32.mrf.mxu0  ;;  %1492 = vmatpush.msra.mxu2 %v4024_v1  ;;  %1847 = vmatpush.msrb.mxu1 %v4024_v1 }
 0x233   : > { %1058 = vmax.xlane.f32.xlu0 %v1057_v9  ;;  %v800_v25 = vsub.f32 %v780_v15, %v4125_v19  ;;  %v4376_v15 = vpop.f32.mrf.mxu2 }
 0x234   : > { %1493 = vmatpush.msra.mxu2 %v4036_v4  ;;  %1848 = vmatpush.msrb.mxu1 %v4036_v4 }
 0x236   : > { %1494 = vmatpush.msra.mxu2 %v4042_v5  ;;  %1849 = vmatpush.msrb.mxu1 %v4042_v5 }
 0x237   : > { %v1022_v12 = vpop.xlane.xlu2 %1021  ;;  %3635 = vmatmul.msk.bf16.gmra.mxu2 %vm409_vm0, %v577_v46 }
 0x238   : > { %vm1036_vm8 = vcmp.eq.f32.partialorder %v4251_v14, %v1022_v12  ;;  %1495 = vmatpush.msra.mxu2 %v4049_v7  ;;  %1850 = vmatpush.msrb.mxu1 %v4049_v7 }
 0x239   : > { %v1044_v13 = vsel %vm1036_vm8, %v4186_v58, -64.0 }
 0x23a   : > { %v1060_v41 = vsel %vm635_vm1, %v1044_v13, -inf  ;;  %1496 = vmatpush.msra.mxu2 %v4055_v8  ;;  %1851 = vmatpush.msrb.mxu1 %v4055_v8 }
 0x23b   : > { %1061 = vmax.xlane.f32.xlu1 %v1060_v41 }
 0x23c   : > { %1497 = vmatpush.msra.mxu2 %v4062_v10  ;;  %1852 = vmatpush.msrb.mxu1 %v4062_v10 }
 0x23e   : > { %v783_v17 = vpop.f32.mrf.mxu3  ;;  %1498 = vmatpush.msra.mxu2 %v4068_v11  ;;  %1853 = vmatpush.msrb.mxu1 %v4068_v11 }
 0x23f   : > { %v801_v45 = vsub.f32 %v783_v17, %v4131_v20  ;;  %v1025_v27 = vpop.xlane.xlu0 %1024 }
 0x240   : > { %vm1037_vm9 = vcmp.eq.f32.partialorder %v4259_v26, %v1025_v27 }
 0x241   : > { %v807_v28 = vpack.c.bf16 %v801_v45, %v800_v25  ;;  %v1045_v30 = vsel %vm1037_vm9, %v4186_v58, -64.0 }
 0x242   : > { %v1063_v49 = vsel %vm635_vm1, %v1045_v30, -inf }
 0x243   : > { %3657 = vmatmul.msk.bf16.gmra.mxu1 %vm409_vm0, %v807_v28  ;;  %1064 = vmax.xlane.f32.xlu2 %v1063_v49 }
 0x246   : > { %v786_v32 = vpop.f32.mrf.mxu3 }
 0x247   : > { %v1028_v34 = vpop.xlane.xlu2 %1027  ;;  %v802_v39 = vsub.f32 %v786_v32, %v4136_v21 }
 0x248   : > { %vm1038_vm10 = vcmp.eq.f32.partialorder %v4267_v31, %v1028_v34 }
 0x249   : > { %v1046_v35 = vsel %vm1038_vm10, %v4186_v58, -64.0 }
 0x24a   : > { %v1066_v36 = vsel %vm635_vm1, %v1046_v35, -inf }
 0x24b   : > { %1067 = vmax.xlane.f32.xlu0 %v1066_v36 }
 0x24e   : > { %v789_v38 = vpop.f32.mrf.mxu3 }
 0x24f   : > { %v803_v40 = vsub.f32 %v789_v38, %v4141_v22  ;;  %v4404_v38 = vpop.f32.mrf.mxu2 }
 0x251   : > { %v808_v43 = vpack.c.bf16 %v803_v40, %v802_v39  ;;  %v4410_v40 = vld [vmem:[%s5786_s5] ss:$0 sm:$0xff] }
 0x253   : > { %3658 = vmatmul.msk.bf16.gmra.mxu1 %vm409_vm0, %v808_v43 }
 0x290   : > { %v1050_v47 = vpop.xlane.xlu1 %1049 }
 0x291   : > { %v1072_v48 = vsub.f32 0.0, %v1050_v47 }
 0x293   : > { %vm1080_vm11 = vcmp.eq.f32.partialorder %v4183_v57, %v1072_v48 }
 0x294   : > { %v3668_v50 = vsel %vm1080_vm11, 1.0, %v5791_v42  ;;  %v4336_v51 = vsel %vm1080_vm11, -inf, %v4216_v44 }
 0x295   : > { %3676 = vmatmul.msk.f32.vlgmr.msrb.gmra.mxu3 %vm635_vm1, %v3668_v50  ;;  %v1363_v54 = vsel %vm635_vm1, %v4336_v51, -inf }
 0x296   : > { %1364 = vmax.xlane.f32.xlu2 %v1363_v54  ;;  %1995 = vmatpush.bf16.msrb.mxu3 %v4346_v33 }
 0x298   : > { %v1053_v55 = vpop.xlane.xlu0 %1052 }
 0x299   : > { %v1073_v56 = vsub.f32 0.0, %v1053_v55 }
 0x29a   : > { %v1031_v59 = vpop.xlane.xlu1 %1030 }
 0x29b   : > { %vm1081_vm12 = vcmp.eq.f32.partialorder %v4183_v57, %v1073_v56  ;;  %vm1039_vm13 = vcmp.eq.f32.partialorder %v4298_v52, %v1031_v59 }
 0x29c   : > { %v3669_v44 = vsel %vm1081_vm12, 1.0, %v5791_v42  ;;  %v1047_v61 = vsel %vm1039_vm13, %v4186_v58, -64.0  ;;  %v4351_v62 = vsel %vm1081_vm12, -inf, %v4226_v29  ;;  %v792_v29 = vpop.f32.mrf.mxu3 }
 0x29d   : > { %3677 = vmatmul.msk.f32.gmra.mxu3 %vm635_vm1, %v3669_v44  ;;  %v1069_v2 = vsel %vm635_vm1, %v1047_v61, -inf  ;;  %v1366_v63 = vsel %vm635_vm1, %v4351_v62, -inf  ;;  %v804_v25 = vsub.f32 %v792_v29, %v4146_v23  ;;  %v4423_v44 = vpop.f32.mrf.mxu2 }
 0x29e   : > { %1070 = vmax.xlane.f32.xlu1 %v1069_v2  ;;  %v1056_v3 = vpop.xlane.xlu2 %1055  ;;  %1367 = vmax.xlane.f32.xlu0 %v1366_v63 }
 0x29f   : > { %v1074_v37 = vsub.f32 0.0, %v1056_v3 }
 0x2a1   : > { %vm1082_vm14 = vcmp.eq.f32.partialorder %v4183_v57, %v1074_v37 }
 0x2a2   : > { %v4366_v9 = vsel %vm1082_vm14, -inf, %v4234_v60  ;;  %v3670_v12 = vsel %vm1082_vm14, 1.0, %v5791_v42 }
 0x2a3   : > { %v1369_v13 = vsel %vm635_vm1, %v4366_v9, -inf }
 0x2a5   : > { %3678 = vmatmul.msk.f32.gmra.mxu3 %vm635_vm1, %v3670_v12 }
 0x2a6   : > { %1370 = vmax.xlane.f32.xlu1 %v1369_v13  ;;  %v1059_v41 = vpop.xlane.xlu0 %1058 }
 0x2a7   : > { %v1075_v60 = vsub.f32 0.0, %v1059_v41 }
 0x2a9   : > { %vm1083_vm15 = vcmp.eq.f32.partialorder %v4183_v57, %v1075_v60  ;;  %v795_v17 = vpop.f32.mrf.mxu3 }
 0x2aa   : > { %v805_v45 = vsub.f32 %v795_v17, %v4151_v24  ;;  %v4386_v27 = vsel %vm1083_vm15, -inf, %v4243_v6  ;;  %v3671_v32 = vsel %vm1083_vm15, 1.0, %v5791_v42  ;;  %v4398_v6 = vld [vmem:[%s5785_s4] ss:$0 sm:$0xff] }
 0x2ab   : > { %v1372_v28 = vsel %vm635_vm1, %v4386_v27, -inf }
 0x2ac   : > { %v809_v30 = vpack.c.bf16 %v805_v45, %v804_v25  ;;  %v837_v49 = vpop.f32.mrf.mxu1  ;;  %1373 = vmax.xlane.f32.xlu2 %v1372_v28  ;;  %v4441_v45 = vpop.f32.mrf.mxu2 }
 0x2ad   : > { %v838_v34 = vadd.f32 %v837_v49, %v4376_v15  ;;  %3679 = vmatmul.msk.f32.gmra.mxu3 %vm635_vm1, %v3671_v32 }
 0x2ae   : > { %v1062_v35 = vpop.xlane.xlu1 %1061  ;;  %3659 = vmatmul.msk.bf16.gmra.mxu1 %vm409_vm0, %v809_v30 }
 0x2af   : > { %v1076_v36 = vsub.f32 0.0, %v1062_v35  ;;  %v860_v39 = vmul.f32 %v4398_v6, %v838_v34 }
 0x2b1   : > { %vm1084_vm2 = vcmp.eq.f32.partialorder %v4183_v57, %v1076_v36  ;;  %v871_v50 = vadd.f32 %v4410_v40, %v860_v39 }
 0x2b2   : > { %v4414_v43 = vsel %vm1084_vm2, -inf, %v4251_v14  ;;  %v3672_v48 = vsel %vm1084_vm2, 1.0, %v5791_v42 }
 0x2b3   : > { %v1375_v46 = vsel %vm635_vm1, %v4414_v43, -inf  ;;  %v887_v14 = vmul.f32 0.2, %v871_v50  ;;  %vm879_vm4 = vcmp.gt.f32.partialorder %v871_v50, 0.0 }
 0x2b4   : > { %v839_v47 = vpop.f32.mrf.mxu1  ;;  %1376 = vmax.xlane.f32.xlu0 %v1375_v46  ;;  %v4451_v36 = vpop.f32.mrf.mxu2 }
 0x2b5   : > { %v840_v54 = vadd.f32 %v839_v47, %v4404_v38  ;;  %3680 = vmatmul.msk.f32.gmra.mxu3 %vm635_vm1, %v3672_v48  ;;  %v895_v29 = vsel %vm879_vm4, %v871_v50, %v887_v14 }
 0x2b6   : > { %v1065_v55 = vpop.xlane.xlu2 %1064 }
 0x2b7   : > { %v861_v56 = vmul.f32 %v4398_v6, %v840_v54  ;;  %v1077_v59 = vsub.f32 0.0, %v1065_v55 }
 0x2b9   : > { %v872_v61 = vadd.f32 %v4410_v40, %v861_v56  ;;  %vm1085_vm3 = vcmp.eq.f32.partialorder %v4183_v57, %v1077_v59 }
 0x2ba   : > { %v4428_v2 = vsel %vm1085_vm3, -inf, %v4259_v26  ;;  %v3673_v37 = vsel %vm1085_vm3, 1.0, %v5791_v42 }
 0x2bb   : > { %vm880_vm5 = vcmp.gt.f32.partialorder %v872_v61, 0.0  ;;  %v888_v63 = vmul.f32 0.2, %v872_v61  ;;  %v1378_v3 = vsel %vm635_vm1, %v4428_v2, -inf }
 0x2bc   : > { %1379 = vmax.xlane.f32.xlu1 %v1378_v3  ;;  %v4457_v14 = vpop.f32.mrf.mxu2 }
 0x2bd   : > { %3681 = vmatmul.msk.f32.gmra.mxu3 %vm635_vm1, %v3673_v37  ;;  %v896_v12 = vsel %vm880_vm5, %v872_v61, %v888_v63 }
 0x2be   : > { %v1068_v13 = vpop.xlane.xlu0 %1067  ;;  %v903_v41 = vpack.c.bf16 %v896_v12, %v895_v29 }
 0x2bf   : > { %v1078_v60 = vsub.f32 0.0, %v1068_v13 }
 0x2c0   : > { %v842_v17 = vpop.f32.mrf.mxu1  ;;  %3664 = vmatmul.msk.bf16.vlgmr.msrb.gmra.mxu2 %vm409_vm0, %v903_v41 }
 0x2c1   : > { %vm1086_vm6 = vcmp.eq.f32.partialorder %v4183_v57, %v1078_v60  ;;  %v843_v26 = vadd.f32 %v842_v17, %v4423_v44  ;;  %1910 = vmatpush.bf16.msrb.mxu2 %v4281_v53 }
 0x2c2   : > { %v4439_v25 = vsel %vm1086_vm6, -inf, %v4267_v31  ;;  %v3674_v30 = vsel %vm1086_vm6, 1.0, %v5791_v42 }
 0x2c3   : > { %v1381_v28 = vsel %vm635_vm1, %v4439_v25, -inf  ;;  %v862_v49 = vmul.f32 %v4398_v6, %v843_v26 }
 0x2c4   : > { %1382 = vmax.xlane.f32.xlu0 %v1381_v28 }
 0x2c5   : > { %3682 = vmatmul.msk.f32.gmra.mxu3 %vm635_vm1, %v3674_v30  ;;  %v873_v34 = vadd.f32 %v4410_v40, %v862_v49 }
 0x2c7   : > { %v889_v39 = vmul.f32 0.2, %v873_v34  ;;  %vm881_vm7 = vcmp.gt.f32.partialorder %v873_v34, 0.0 }
 0x2c8   : > { %v844_v32 = vpop.f32.mrf.mxu1 }
 0x2c9   : > { %v845_v35 = vadd.f32 %v844_v32, %v4441_v45  ;;  %v897_v54 = vsel %vm881_vm7, %v873_v34, %v889_v39 }
 0x2cb   : > { %v863_v31 = vmul.f32 %v4398_v6, %v845_v35 }
 0x2cd   : > { %v874_v46 = vadd.f32 %v4410_v40, %v863_v31 }
 0x2cf   : > { %vm882_vm8 = vcmp.gt.f32.partialorder %v874_v46, 0.0  ;;  %v890_v47 = vmul.f32 0.2, %v874_v46 }
 0x2d0   : > { %v847_v48 = vpop.f32.mrf.mxu1 }
 0x2d1   : > { %v848_v50 = vadd.f32 %v847_v48, %v4451_v36  ;;  %v898_v55 = vsel %vm882_vm8, %v874_v46, %v890_v47 }
 0x2d2   : > { %v904_v56 = vpack.c.bf16 %v898_v55, %v897_v54 }
 0x2d3   : > { %v864_v59 = vmul.f32 %v4398_v6, %v848_v50 }
 0x2d4   : > { %3665 = vmatmul.msk.bf16.gmra.mxu2 %vm409_vm0, %v904_v56 }
 0x2d5   : > { %v875_v63 = vadd.f32 %v4410_v40, %v864_v59 }
 0x2d7   : > { %v891_v29 = vmul.f32 0.2, %v875_v63  ;;  %vm883_vm9 = vcmp.gt.f32.partialorder %v875_v63, 0.0 }
 0x2d8   : > { %v849_v61 = vpop.f32.mrf.mxu1 }
 0x2d9   : > { %v850_v3 = vadd.f32 %v849_v61, %v4457_v14  ;;  %v899_v41 = vsel %vm883_vm9, %v875_v63, %v891_v29 }
 0x2db   : > { %v865_v37 = vmul.f32 %v4398_v6, %v850_v3 }
 0x2dd   : > { %v876_v12 = vadd.f32 %v4410_v40, %v865_v37 }
 0x2df   : > { %vm884_vm10 = vcmp.gt.f32.partialorder %v876_v12, 0.0  ;;  %v892_v13 = vmul.f32 0.2, %v876_v12 }
 0x2e1   : > { %v900_v60 = vsel %vm884_vm10, %v876_v12, %v892_v13  ;;  %v4488_v12 = vpop.f32.mrf.mxu2 }
 0x2e2   : > { %v905_v17 = vpack.c.bf16 %v900_v60, %v899_v41 }
 0x2e4   : > { %3666 = vmatmul.msk.bf16.gmra.mxu2 %vm409_vm0, %v905_v17 }
 0x309   : > { %v1365_v26 = vpop.xlane.xlu2 %1364 }
 0x30a   : > { %vm1387_vm11 = vcmp.eq.f32.partialorder %v4336_v51, %v1365_v26 }
 0x30b   : > { %v1395_v28 = vsel %vm1387_vm11, %v4186_v58, -64.0 }
 0x30c   : > { %v1403_v30 = vsel %vm635_vm1, %v1395_v28, -inf  ;;  %v4503_v28 = vpop.f32.mrf.mxu2 }
 0x30d   : > { %1404 = vmax.xlane.f32.xlu2 %v1403_v30 }
 0x311   : > { %v1071_v49 = vpop.xlane.xlu1 %1070  ;;  %v1368_v32 = vpop.xlane.xlu0 %1367 }
 0x312   : > { %v1079_v34 = vsub.f32 0.0, %v1071_v49  ;;  %vm1388_vm12 = vcmp.eq.f32.partialorder %v4351_v62, %v1368_v32 }
 0x313   : > { %v1396_v35 = vsel %vm1388_vm12, %v4186_v58, -64.0 }
 0x314   : > { %vm1087_vm13 = vcmp.eq.f32.partialorder %v4183_v57, %v1079_v34  ;;  %v1406_v31 = vsel %vm635_vm1, %v1396_v35, -inf }
 0x315   : > { %1407 = vmax.xlane.f32.xlu1 %v1406_v31  ;;  %v3675_v39 = vsel %vm1087_vm13, 1.0, %v5791_v42  ;;  %v4473_v46 = vsel %vm1087_vm13, -inf, %v4298_v52 }
 0x316   : > { %3683 = vmatmul.msk.f32.gmra.mxu3 %vm635_vm1, %v3675_v39  ;;  %v1384_v47 = vsel %vm635_vm1, %v4473_v46, -inf }
 0x317   : > { %1385 = vmax.xlane.f32.xlu2 %v1384_v47 }
 0x318   : > { %v1145_v48 = vpop.f32.mrf.mxu3 }
 0x319   : > { %v1371_v50 = vpop.xlane.xlu1 %1370  ;;  %v1169_v59 = vsub.f32 %v1145_v48, %v4105_v16 }
 0x31a   : > { %vm1389_vm14 = vcmp.eq.f32.partialorder %v4366_v9, %v1371_v50 }
 0x31b   : > { %v1397_v54 = vsel %vm1389_vm14, %v4186_v58, -64.0 }
 0x31c   : > { %v1409_v55 = vsel %vm635_vm1, %v1397_v54, -inf }
 0x31d   : > { %1410 = vmax.xlane.f32.xlu0 %v1409_v55 }
 0x31f   : > { %v1374_v56 = vpop.xlane.xlu2 %1373 }
 0x320   : > { %vm1390_vm15 = vcmp.eq.f32.partialorder %v4386_v27, %v1374_v56  ;;  %v1148_v52 = vpop.f32.mrf.mxu3 }
 0x321   : > { %v1170_v61 = vsub.f32 %v1148_v52, %v4116_v18  ;;  %v1398_v63 = vsel %vm1390_vm15, %v4186_v58, -64.0 }
 0x322   : > { %v1412_v3 = vsel %vm635_vm1, %v1398_v63, -inf }
 0x323   : > { %v1177_v37 = vpack.c.bf16 %v1170_v61, %v1169_v59  ;;  %1413 = vmax.xlane.f32.xlu1 %v1412_v3 }
 0x325   : > { %3684 = vmatmul.msk.bf16.vlgmr.msra.gmra.mxu0 %vm409_vm0, %v1177_v37 }
 0x326   : > { %2201 = vmatpush.msra.mxu0 %v4021_v0 }
 0x327   : > { %v1377_v29 = vpop.xlane.xlu0 %1376 }
 0x328   : > { %vm1391_vm2 = vcmp.eq.f32.partialorder %v4414_v43, %v1377_v29  ;;  %v1151_v13 = vpop.f32.mrf.mxu3  ;;  %2202 = vmatpush.msra.mxu0 %v4024_v1 }
 0x329   : > { %v1399_v16 = vsel %vm1391_vm2, %v4186_v58, -64.0  ;;  %v1171_v26 = vsub.f32 %v1151_v13, %v4125_v19 }
 0x32a   : > { %v1415_v18 = vsel %vm635_vm1, %v1399_v16, -inf  ;;  %2203 = vmatpush.msra.mxu0 %v4036_v4 }
 0x32b   : > { %v852_v41 = vpop.f32.mrf.mxu1  ;;  %1416 = vmax.xlane.f32.xlu2 %v1415_v18 }
 0x32c   : > { %v853_v60 = vadd.f32 %v852_v41, %v4488_v12  ;;  %2204 = vmatpush.msra.mxu0 %v4042_v5 }
 0x32e   : > { %2205 = vmatpush.msra.mxu0 %v4049_v7  ;;  %v866_v17 = vmul.f32 %v4398_v6, %v853_v60 }
 0x32f   : > { %v1380_v0 = vpop.xlane.xlu1 %1379 }
 0x330   : > { %vm1392_vm3 = vcmp.eq.f32.partialorder %v4428_v2, %v1380_v0  ;;  %v1154_v1 = vpop.f32.mrf.mxu3  ;;  %2206 = vmatpush.msra.mxu0 %v4055_v8  ;;  %v877_v32 = vadd.f32 %v4410_v40, %v866_v17 }
 0x331   : > { %v1172_v4 = vsub.f32 %v1154_v1, %v4131_v20  ;;  %v1400_v30 = vsel %vm1392_vm3, %v4186_v58, -64.0 }
 0x332   : > { %v1418_v5 = vsel %vm635_vm1, %v1400_v30, -inf  ;;  %2207 = vmatpush.msra.mxu0 %v4062_v10  ;;  %v893_v20 = vmul.f32 0.2, %v877_v32  ;;  %vm885_vm5 = vcmp.gt.f32.partialorder %v877_v32, 0.0 }
 0x333   : > { %v1178_v7 = vpack.c.bf16 %v1172_v4, %v1171_v26  ;;  %v854_v49 = vpop.f32.mrf.mxu1  ;;  %1419 = vmax.xlane.f32.xlu0 %v1418_v5 }
 0x334   : > { %v855_v34 = vadd.f32 %v854_v49, %v4503_v28  ;;  %2208 = vmatpush.msra.mxu0 %v4068_v11  ;;  %v901_v11 = vsel %vm885_vm5, %v877_v32, %v893_v20 }
 0x335   : > { %3685 = vmatmul.msk.bf16.gmra.mxu0 %vm409_vm0, %v1178_v7 }
 0x336   : > { %v867_v8 = vmul.f32 %v4398_v6, %v855_v34 }
 0x337   : > { %v1383_v19 = vpop.xlane.xlu0 %1382 }
 0x338   : > { %v878_v35 = vadd.f32 %v4410_v40, %v867_v8  ;;  %vm1393_vm4 = vcmp.eq.f32.partialorder %v4439_v25, %v1383_v19  ;;  %v1157_v10 = vpop.f32.mrf.mxu3 }
 0x339   : > { %v1401_v31 = vsel %vm1393_vm4, %v4186_v58, -64.0  ;;  %v1173_v55 = vsub.f32 %v1157_v10, %v4136_v21 }
 0x33a   : > { %v1421_v39 = vsel %vm635_vm1, %v1401_v31, -inf  ;;  %vm886_vm6 = vcmp.gt.f32.partialorder %v878_v35, 0.0  ;;  %v894_v47 = vmul.f32 0.2, %v878_v35 }
 0x33b   : > { %1422 = vmax.xlane.f32.xlu2 %v1421_v39 }
 0x33c   : > { %v902_v48 = vsel %vm886_vm6, %v878_v35, %v894_v47 }
 0x33d   : > { %v906_v50 = vpack.c.bf16 %v902_v48, %v901_v11 }
 0x33f   : > { %3667 = vmatmul.msk.bf16.gmra.mxu2 %vm409_vm0, %v906_v50 }
 0x340   : > { %v1160_v54 = vpop.f32.mrf.mxu3 }
 0x341   : > { %v1174_v56 = vsub.f32 %v1160_v54, %v4141_v22 }
 0x343   : > { %v1179_v52 = vpack.c.bf16 %v1174_v56, %v1173_v55 }
 0x345   : > { %3686 = vmatmul.msk.bf16.gmra.mxu0 %vm409_vm0, %v1179_v52 }
 0x348   : > { %v1163_v0 = vpop.f32.mrf.mxu3 }
 0x349   : > { %v1175_v7 = vsub.f32 %v1163_v0, %v4146_v23 }
 0x380   : > { %v1405_v59 = vpop.xlane.xlu2 %1404 }
 0x381   : > { %v1427_v61 = vsub.f32 0.0, %v1405_v59 }
 0x383   : > { %vm1435_vm7 = vcmp.eq.f32.partialorder %v4183_v57, %v1427_v61 }
 0x384   : > { %v3692_v63 = vsel %vm1435_vm7, 1.0, %v5791_v42  ;;  %v4524_v3 = vsel %vm1435_vm7, -inf, %v4336_v51 }
 0x385   : > { %3700 = vmatmul.msk.f32.vlgmr.msra.gmra.mxu2 %vm635_vm1, %v3692_v63  ;;  %v1718_v37 = vsel %vm635_vm1, %v4524_v3, -inf }
 0x386   : > { %1719 = vmax.xlane.f32.xlu1 %v1718_v37  ;;  %2350 = vmatpush.bf16.msra.mxu2 %v4346_v33 }
 0x388   : > { %v1408_v21 = vpop.xlane.xlu1 %1407 }
 0x389   : > { %v1428_v22 = vsub.f32 0.0, %v1408_v21 }
 0x38a   : > { %v1386_v29 = vpop.xlane.xlu2 %1385 }
 0x38b   : > { %vm1436_vm8 = vcmp.eq.f32.partialorder %v4183_v57, %v1428_v22  ;;  %vm1394_vm9 = vcmp.eq.f32.partialorder %v4473_v46, %v1386_v29 }
 0x38c   : > { %v3693_v13 = vsel %vm1436_vm8, 1.0, %v5791_v42  ;;  %v1402_v51 = vsel %vm1394_vm9, %v4186_v58, -64.0  ;;  %v4535_v16 = vsel %vm1436_vm8, -inf, %v4351_v62 }
 0x38d   : > { %3701 = vmatmul.msk.f32.gmra.mxu2 %vm635_vm1, %v3693_v13  ;;  %v1424_v18 = vsel %vm635_vm1, %v1402_v51, -inf  ;;  %v1721_v41 = vsel %vm635_vm1, %v4535_v16, -inf }
 0x38e   : > { %1425 = vmax.xlane.f32.xlu1 %v1424_v18  ;;  %1722 = vmax.xlane.f32.xlu0 %v1721_v41 }
 0x390   : > { %v1411_v60 = vpop.xlane.xlu0 %1410 }
 0x391   : > { %v1429_v17 = vsub.f32 0.0, %v1411_v60 }
 0x393   : > { %vm1437_vm10 = vcmp.eq.f32.partialorder %v4183_v57, %v1429_v17 }
 0x394   : > { %v3694_v1 = vsel %vm1437_vm10, 1.0, %v5791_v42  ;;  %v4544_v26 = vsel %vm1437_vm10, -inf, %v4366_v9 }
 0x395   : > { %3702 = vmatmul.msk.f32.gmra.mxu2 %vm635_vm1, %v3694_v1  ;;  %v1724_v62 = vsel %vm635_vm1, %v4544_v26, -inf }
 0x396   : > { %v1414_v4 = vpop.xlane.xlu1 %1413  ;;  %1725 = vmax.xlane.f32.xlu2 %v1724_v62  ;;  %v4597_v62 = vpop.f32.mrf.mxu2 }
 0x397   : > { %v1430_v30 = vsub.f32 0.0, %v1414_v4 }
 0x399   : > { %vm1438_vm11 = vcmp.eq.f32.partialorder %v4183_v57, %v1430_v30  ;;  %v1166_v5 = vpop.f32.mrf.mxu3 }
 0x39a   : > { %v1176_v49 = vsub.f32 %v1166_v5, %v4151_v24  ;;  %v4553_v32 = vsel %vm1438_vm11, -inf, %v4386_v27  ;;  %v3695_v8 = vsel %vm1438_vm11, 1.0, %v5791_v42 }
 0x39b   : > { %v1727_v9 = vsel %vm635_vm1, %v4553_v32, -inf }
 0x39c   : > { %v1180_v34 = vpack.c.bf16 %v1176_v49, %v1175_v7  ;;  %1728 = vmax.xlane.f32.xlu0 %v1727_v9 }
 0x39d   : > { %3703 = vmatmul.msk.f32.gmra.mxu2 %vm635_vm1, %v3695_v8 }
 0x39e   : > { %3687 = vmatmul.msk.bf16.gmra.mxu0 %vm409_vm0, %v1180_v34  ;;  %v1417_v19 = vpop.xlane.xlu2 %1416 }
 0x39f   : > { %v1431_v20 = vsub.f32 0.0, %v1417_v19  ;;  %v4603_v19 = vpop.f32.mrf.mxu2 }
 0x3a0   : > { %5793 = vst [vmem:[#allocation2_spill] sm:$0xff] %v4603_v19 }
 0x3a1   : > { %vm1439_vm12 = vcmp.eq.f32.partialorder %v4183_v57, %v1431_v20 }
 0x3a2   : > { %v1202_v23 = vpop.f32.mrf.mxu0  ;;  %v4562_v24 = vsel %vm1439_vm12, -inf, %v4414_v43  ;;  %v3696_v10 = vsel %vm1439_vm12, 1.0, %v5791_v42 }
 0x3a3   : > { %v1203_v27 = vadd.f32 %v1202_v23, %v4376_v15  ;;  %v1730_v35 = vsel %vm635_vm1, %v4562_v24, -inf }
 0x3a4   : > { %1731 = vmax.xlane.f32.xlu1 %v1730_v35 }
 0x3a5   : > { %3704 = vmatmul.msk.f32.gmra.mxu2 %vm635_vm1, %v3696_v10  ;;  %v1222_v39 = vmul.f32 %v4398_v6, %v1203_v27 }
 0x3a6   : > { %v1420_v31 = vpop.xlane.xlu0 %1419 }
 0x3a7   : > { %v1432_v47 = vsub.f32 0.0, %v1420_v31  ;;  %v1230_v48 = vadd.f32 %v4410_v40, %v1222_v39  ;;  %v4609_v39 = vpop.f32.mrf.mxu2 }
 0x3a9   : > { %vm1440_vm13 = vcmp.eq.f32.partialorder %v4183_v57, %v1432_v47  ;;  %v1246_v59 = vmul.f32 0.2, %v1230_v48  ;;  %vm1238_vm14 = vcmp.gt.f32.partialorder %v1230_v48, 0.0 }
 0x3aa   : > { %v1204_v11 = vpop.f32.mrf.mxu0  ;;  %v4572_v43 = vsel %vm1440_vm13, -inf, %v4428_v2  ;;  %v3697_v55 = vsel %vm1440_vm13, 1.0, %v5791_v42 }
 0x3ab   : > { %v1205_v50 = vadd.f32 %v1204_v11, %v4404_v38  ;;  %v1733_v54 = vsel %vm635_vm1, %v4572_v43, -inf  ;;  %v1254_v22 = vsel %vm1238_vm14, %v1230_v48, %v1246_v59 }
 0x3ac   : > { %1734 = vmax.xlane.f32.xlu2 %v1733_v54 }
 0x3ad   : > { %v1223_v56 = vmul.f32 %v4398_v6, %v1205_v50  ;;  %3705 = vmatmul.msk.f32.gmra.mxu2 %vm635_vm1, %v3697_v55 }
 0x3ae   : > { %v1423_v52 = vpop.xlane.xlu2 %1422 }
 0x3af   : > { %v1231_v61 = vadd.f32 %v4410_v40, %v1223_v56  ;;  %v1433_v2 = vsub.f32 0.0, %v1423_v52  ;;  %v4612_v54 = vpop.f32.mrf.mxu2 }
 0x3b0   : > { %5794 = vst [vmem:[#allocation3_spill] sm:$0xff] %v4612_v54 }
 0x3b1   : > { %vm1239_vm15 = vcmp.gt.f32.partialorder %v1231_v61, 0.0  ;;  %v1247_v63 = vmul.f32 0.2, %v1231_v61  ;;  %vm1441_vm2 = vcmp.eq.f32.partialorder %v4183_v57, %v1433_v2 }
 0x3b2   : > { %v1207_v37 = vpop.f32.mrf.mxu0  ;;  %v4584_v21 = vsel %vm1441_vm2, -inf, %v4439_v25  ;;  %v3698_v41 = vsel %vm1441_vm2, 1.0, %v5791_v42 }
 0x3b3   : > { %v1255_v29 = vsel %vm1239_vm15, %v1231_v61, %v1247_v63  ;;  %v1208_v13 = vadd.f32 %v1207_v37, %v4423_v44  ;;  %v1736_v51 = vsel %vm635_vm1, %v4584_v21, -inf }
 0x3b4   : > { %v1262_v18 = vpack.c.bf16 %v1255_v29, %v1254_v22  ;;  %1737 = vmax.xlane.f32.xlu1 %v1736_v51 }
 0x3b5   : > { %3706 = vmatmul.msk.f32.gmra.mxu2 %vm635_vm1, %v3698_v41  ;;  %v1224_v60 = vmul.f32 %v4398_v6, %v1208_v13 }
 0x3b6   : > { %3688 = vmatmul.msk.bf16.vlgmr.msra.gmra.mxu1 %vm409_vm0, %v1262_v18 }
 0x3b7   : > { %2265 = vmatpush.bf16.msra.mxu1 %v4281_v53  ;;  %v1232_v0 = vadd.f32 %v4410_v40, %v1224_v60  ;;  %v4614_v55 = vpop.f32.mrf.mxu2 }
 0x3b9   : > { %v1248_v4 = vmul.f32 0.2, %v1232_v0  ;;  %vm1240_vm3 = vcmp.gt.f32.partialorder %v1232_v0, 0.0 }
 0x3ba   : > { %v1209_v25 = vpop.f32.mrf.mxu0 }
 0x3bb   : > { %v1210_v17 = vadd.f32 %v1209_v25, %v4441_v45  ;;  %v1256_v9 = vsel %vm1240_vm3, %v1232_v0, %v1248_v4 }
 0x3bd   : > { %v1225_v1 = vmul.f32 %v4398_v6, %v1210_v17 }
 0x3bf   : > { %v1233_v30 = vadd.f32 %v4410_v40, %v1225_v1  ;;  %v4616_v56 = vpop.f32.mrf.mxu2 }
 0x3c0   : > { %5795 = vst [vmem:[#allocation4_spill] sm:$0xff] %v4616_v56 }
 0x3c1   : > { %vm1241_vm4 = vcmp.gt.f32.partialorder %v1233_v30, 0.0  ;;  %v1249_v5 = vmul.f32 0.2, %v1233_v30 }
 0x3c2   : > { %v1212_v7 = vpop.f32.mrf.mxu0 }
 0x3c3   : > { %v1213_v49 = vadd.f32 %v1212_v7, %v4451_v36  ;;  %v1257_v53 = vsel %vm1241_vm4, %v1233_v30, %v1249_v5  ;;  %v4641_v30 = vld [vmem:[%s4095_s19] sm:$0xff]  ;;  %v4645_v7 = vld [vmem:[%s4095_s19 + $0x8] sm:$0xff] }
 0x3c4   : > { %v1263_v34 = vpack.c.bf16 %v1257_v53, %v1256_v9 }
 0x3c5   : > { %v1226_v8 = vmul.f32 %v4398_v6, %v1213_v49 }
 0x3c6   : > { %3689 = vmatmul.msk.bf16.gmra.mxu1 %vm409_vm0, %v1263_v34 }
 0x3c7   : > { %v1234_v23 = vadd.f32 %v4410_v40, %v1226_v8  ;;  %v4618_v52 = vpop.f32.mrf.mxu2  ;;  %v4652_v8 = vld [vmem:[%s4018_s16 + $0x38] sm:$0xff] }
 0x3c9   : > { %v1250_v10 = vmul.f32 0.2, %v1234_v23  ;;  %vm1242_vm5 = vcmp.gt.f32.partialorder %v1234_v23, 0.0 }
 0x3ca   : > { %v1214_v20 = vpop.f32.mrf.mxu0 }
 0x3cb   : > { %v1215_v27 = vadd.f32 %v1214_v20, %v4457_v14  ;;  %v1258_v11 = vsel %vm1242_vm5, %v1234_v23, %v1250_v10 }
 0x3cd   : > { %v1227_v35 = vmul.f32 %v4398_v6, %v1215_v27  ;;  %v4657_v27 = vld [vmem:[%s4018_s16 + $0x30] sm:$0xff] }
 0x3cf   : > { %v1235_v31 = vadd.f32 %v4410_v40, %v1227_v35  ;;  %v4623_v63 = vpop.f32.mrf.mxu2 }
 0x3d0   : > { %5796 = vst [vmem:[#allocation5_spill] sm:$0xff] %v4623_v63 }
 0x3d1   : > { %vm1243_vm6 = vcmp.gt.f32.partialorder %v1235_v31, 0.0  ;;  %v1251_v47 = vmul.f32 0.2, %v1235_v31 }
 0x3d3   : > { %v1259_v48 = vsel %vm1243_vm6, %v1235_v31, %v1251_v47  ;;  %v4663_v31 = vld [vmem:[%s4018_s16 + $0x28] sm:$0xff] }
 0x3d4   : > { %v1264_v50 = vpack.c.bf16 %v1259_v48, %v1258_v11  ;;  %v4668_v48 = vld [vmem:[%s4018_s16 + $0x20] sm:$0xff] }
 0x3d6   : > { %3690 = vmatmul.msk.bf16.gmra.mxu1 %vm409_vm0, %v1264_v50  ;;  %v4672_v50 = vld [vmem:[%s4018_s16 + $0x18] sm:$0xff] }
 0x3f9   : > { %v1720_v59 = vpop.xlane.xlu1 %1719 }
 0x3fa   : > { %vm1742_vm7 = vcmp.eq.f32.partialorder %v4524_v3, %v1720_v59 }
 0x3fb   : > { %v1750_v61 = vsel %vm1742_vm7, %v4186_v58, -64.0 }
 0x3fc   : > { %v1758_v2 = vsel %vm635_vm1, %v1750_v61, -inf }
 0x3fd   : > { %1759 = vmax.xlane.f32.xlu0 %v1758_v2 }
 0x401   : > { %v1426_v37 = vpop.xlane.xlu1 %1425  ;;  %v1723_v22 = vpop.xlane.xlu0 %1722 }
 0x402   : > { %v1434_v29 = vsub.f32 0.0, %v1426_v37  ;;  %vm1743_vm8 = vcmp.eq.f32.partialorder %v4535_v16, %v1723_v22  ;;  %v4678_v37 = vld [vmem:[%s4018_s16 + $0x10] sm:$0xff] }
 0x403   : > { %v1751_v13 = vsel %vm1743_vm8, %v4186_v58, -64.0  ;;  %v4682_v22 = vld [vmem:[%s4095_s19 + $0x10] sm:$0xff] }
 0x404   : > { %vm1442_vm9 = vcmp.eq.f32.partialorder %v4183_v57, %v1434_v29  ;;  %v1761_v51 = vsel %vm635_vm1, %v1751_v13, -inf  ;;  %v4686_v13 = vld [vmem:[%s4095_s19 + $0x18] sm:$0xff] }
 0x405   : > { %1762 = vmax.xlane.f32.xlu2 %v1761_v51  ;;  %v3699_v18 = vsel %vm1442_vm9, 1.0, %v5791_v42  ;;  %v4631_v41 = vsel %vm1442_vm9, -inf, %v4473_v46 }
 0x406   : > { %3707 = vmatmul.msk.f32.gmra.mxu2 %vm635_vm1, %v3699_v18  ;;  %v1739_v60 = vsel %vm635_vm1, %v4631_v41, -inf }
 0x407   : > { %1740 = vmax.xlane.f32.xlu0 %v1739_v60 }
 0x408   : > { %v1500_v25 = vpop.f32.mrf.mxu2 }
 0x409   : > { %v1726_v0 = vpop.xlane.xlu2 %1725  ;;  %v1524_v5 = vsub.f32 %v1500_v25, %v4641_v30  ;;  %v4692_v25 = vld [vmem:[%s4018_s16 + $0x8] sm:$0xff] }
 0x40a   : > { %vm1744_vm10 = vcmp.eq.f32.partialorder %v4544_v26, %v1726_v0 }
 0x40b   : > { %v1752_v17 = vsel %vm1744_vm10, %v4186_v58, -64.0 }
 0x40c   : > { %v1764_v1 = vsel %vm635_vm1, %v1752_v17, -inf }
 0x40d   : > { %1765 = vmax.xlane.f32.xlu1 %v1764_v1 }
 0x40f   : > { %v1729_v4 = vpop.xlane.xlu0 %1728 }
 0x410   : > { %vm1745_vm11 = vcmp.eq.f32.partialorder %v4553_v32, %v1729_v4  ;;  %v1503_v46 = vpop.f32.mrf.mxu2 }
 0x411   : > { %v1525_v49 = vsub.f32 %v1503_v46, %v4645_v7  ;;  %v1753_v9 = vsel %vm1745_vm11, %v4186_v58, -64.0  ;;  %v4698_v46 = vld [vmem:[%s4018_s16] sm:$0xff] }
 0x412   : > { %v1767_v53 = vsel %vm635_vm1, %v1753_v9, -inf }
 0x413   : > { %v1532_v34 = vpack.c.bf16 %v1525_v49, %v1524_v5  ;;  %1768 = vmax.xlane.f32.xlu2 %v1767_v53 }
 0x415   : > { %3708 = vmatmul.msk.bf16.vlgmr.msra.gmra.mxu3 %vm409_vm0, %v1532_v34 }
 0x416   : > { %2556 = vmatpush.msra.mxu3 %v4652_v8 }
 0x417   : > { %v1732_v20 = vpop.xlane.xlu1 %1731 }
 0x418   : > { %vm1746_vm12 = vcmp.eq.f32.partialorder %v4562_v24, %v1732_v20  ;;  %v1506_v23 = vpop.f32.mrf.mxu2  ;;  %2557 = vmatpush.msra.mxu3 %v4657_v27 }
 0x419   : > { %v1754_v35 = vsel %vm1746_vm12, %v4186_v58, -64.0  ;;  %v1526_v29 = vsub.f32 %v1506_v23, %v4682_v22  ;;  %v4709_v23 = vld [vmem:[%s5788_s7] ss:$0 sm:$0xff] }
 0x41a   : > { %v1770_v10 = vsel %vm635_vm1, %v1754_v35, -inf  ;;  %2558 = vmatpush.msra.mxu3 %v4663_v31 }
 0x41b   : > { %v1217_v47 = vpop.f32.mrf.mxu0  ;;  %1771 = vmax.xlane.f32.xlu0 %v1770_v10 }
 0x41c   : > { %v1218_v11 = vadd.f32 %v1217_v47, %v4488_v12  ;;  %2559 = vmatpush.msra.mxu3 %v4668_v48 }
 0x41e   : > { %2560 = vmatpush.msra.mxu3 %v4672_v50  ;;  %v1228_v61 = vmul.f32 %v4398_v6, %v1218_v11 }
 0x41f   : > { %v1735_v59 = vpop.xlane.xlu2 %1734 }
 0x420   : > { %vm1747_vm13 = vcmp.eq.f32.partialorder %v4572_v43, %v1735_v59  ;;  %v1509_v2 = vpop.f32.mrf.mxu2  ;;  %2561 = vmatpush.msra.mxu3 %v4678_v37  ;;  %v1236_v1 = vadd.f32 %v4410_v40, %v1228_v61  ;;  %v957_v61 = vmul.f32 %v4709_v23, %v4597_v62 }
 0x421   : > { %v1527_v51 = vsub.f32 %v1509_v2, %v4686_v13  ;;  %v1755_v18 = vsel %vm1747_vm13, %v4186_v58, -64.0  ;;  %v4717_v2 = vld [vmem:[%s5789_s8] ss:$0 sm:$0xff] }
 0x422   : > { %v1773_v60 = vsel %vm635_vm1, %v1755_v18, -inf  ;;  %2562 = vmatpush.msra.mxu3 %v4692_v25  ;;  %v1252_v9 = vmul.f32 0.2, %v1236_v1  ;;  %vm1244_vm15 = vcmp.gt.f32.partialorder %v1236_v1, 0.0 }
 0x423   : > { %v1533_v0 = vpack.c.bf16 %v1527_v51, %v1526_v29  ;;  %v1219_v17 = vpop.f32.mrf.mxu0  ;;  %1774 = vmax.xlane.f32.xlu1 %v1773_v60  ;;  %v4721_v51 = vld [vmem:[%s4095_s19 + $0x20] sm:$0xff]  ;;  %v4725_v60 = vld [vmem:[%s4095_s19 + $0x28] sm:$0xff] }
 0x424   : > { %v1220_v4 = vadd.f32 %v1219_v17, %v4503_v28  ;;  %2563 = vmatpush.msra.mxu3 %v4698_v46  ;;  %v1260_v47 = vsel %vm1244_vm15, %v1236_v1, %v1252_v9  ;;  %v968_v17 = vadd.f32 %v4717_v2, %v957_v61 }
 0x425   : > { %3709 = vmatmul.msk.bf16.gmra.mxu3 %vm409_vm0, %v1533_v0 }
 0x426   : > { %v1229_v5 = vmul.f32 %v4398_v6, %v1220_v4  ;;  %vm976_vm3 = vcmp.gt.f32.partialorder %v968_v17, 0.0 }
 0x427   : > { %v1738_v49 = vpop.xlane.xlu1 %1737 }
 0x428   : > { %v1237_v53 = vadd.f32 %v4410_v40, %v1229_v5  ;;  %vm1748_vm14 = vcmp.eq.f32.partialorder %v4584_v21, %v1738_v49  ;;  %v1512_v34 = vpop.f32.mrf.mxu2  ;;  %v984_v5 = vmul.f32 0.2, %v968_v17 }
 0x429   : > { %v1756_v20 = vsel %vm1748_vm14, %v4186_v58, -64.0  ;;  %v1528_v18 = vsub.f32 %v1512_v34, %v4721_v51 }
 0x42a   : > { %v1776_v35 = vsel %vm635_vm1, %v1756_v20, -inf  ;;  %vm1245_vm2 = vcmp.gt.f32.partialorder %v1237_v53, 0.0  ;;  %v1253_v10 = vmul.f32 0.2, %v1237_v53 }
 0x42b   : > { %1777 = vmax.xlane.f32.xlu2 %v1776_v35 }
 0x42c   : > { %v1261_v11 = vsel %vm1245_vm2, %v1237_v53, %v1253_v10  ;;  %v4732_v53 = vsel %vm976_vm3, %v968_v17, %v984_v5  ;;  %v959_v10 = vmul.f32 %v4709_v23, %v4609_v39  ;;  %v961_v39 = vmul.f32 %v4709_v23, %v4614_v55 }
 0x42d   : > { %v1265_v59 = vpack.c.bf16 %v1261_v11, %v1260_v47 }
 0x42e   : > { %v970_v47 = vadd.f32 %v4717_v2, %v959_v10 }
 0x42f   : > { %3691 = vmatmul.msk.bf16.gmra.mxu1 %vm409_vm0, %v1265_v59 }
 0x430   : > { %v1515_v29 = vpop.f32.mrf.mxu2  ;;  %v986_v61 = vmul.f32 0.2, %v970_v47  ;;  %vm978_vm5 = vcmp.gt.f32.partialorder %v970_v47, 0.0 }
 0x431   : > { %v1529_v0 = vsub.f32 %v1515_v29, %v4725_v60 }
 0x433   : > { %v1534_v1 = vpack.c.bf16 %v1529_v0, %v1528_v18  ;;  %v1287_v62 = vpop.f32.mrf.mxu1  ;;  %v4745_v0 = vsel %vm978_vm5, %v970_v47, %v986_v61 }
 0x434   : > { %v1307_v4 = vmul.f32 %v4709_v23, %v1287_v62 }
 0x435   : > { %3710 = vmatmul.msk.bf16.gmra.mxu3 %vm409_vm0, %v1534_v1 }
 0x436   : > { %v1315_v49 = vadd.f32 %v4717_v2, %v1307_v4  ;;  %v972_v4 = vadd.f32 %v4717_v2, %v961_v39 }
 0x438   : > { %vm1323_vm4 = vcmp.gt.f32.partialorder %v1315_v49, 0.0  ;;  %v1331_v9 = vmul.f32 0.2, %v1315_v49  ;;  %vm980_vm7 = vcmp.gt.f32.partialorder %v972_v4, 0.0 }
 0x43a   : > { %v4734_v34 = vsel %vm1323_vm4, %v1315_v49, %v1331_v9  ;;  %v988_v9 = vmul.f32 0.2, %v972_v4 }
 0x43b   : > { %v4738_v35 = vpop.f32.mrf.mxu1 }
 0x43c   : > { %5797 = vst [vmem:[#allocation6_spill] sm:$0xff] %v4738_v35 }
 0x443   : > { %v1292_v11 = vpop.f32.mrf.mxu1 }
 0x444   : > { %v1309_v59 = vmul.f32 %v4709_v23, %v1292_v11  ;;  %v4758_v11 = vsel %vm980_vm7, %v972_v4, %v988_v9 }
 0x446   : > { %v1317_v29 = vadd.f32 %v4717_v2, %v1309_v59 }
 0x448   : > { %vm1325_vm6 = vcmp.gt.f32.partialorder %v1317_v29, 0.0  ;;  %v1333_v18 = vmul.f32 0.2, %v1317_v29 }
 0x44a   : > { %v4747_v17 = vsel %vm1325_vm6, %v1317_v29, %v1333_v18 }
 0x44b   : > { %v4751_v62 = vpop.f32.mrf.mxu1 }
 0x44c   : > { %5798 = vst [vmem:[#allocation7_spill] sm:$0xff] %v4751_v62 }
 0x453   : > { %v1297_v5 = vpop.f32.mrf.mxu1 }
 0x454   : > { %v1311_v49 = vmul.f32 %v4709_v23, %v1297_v5 }
 0x456   : > { %v1319_v10 = vadd.f32 %v4717_v2, %v1311_v49 }
 0x458   : > { %vm1327_vm8 = vcmp.gt.f32.partialorder %v1319_v10, 0.0  ;;  %v1335_v47 = vmul.f32 0.2, %v1319_v10 }
 0x45a   : > { %v4760_v59 = vsel %vm1327_vm8, %v1319_v10, %v1335_v47 }
 0x470   : > { %v1760_v29 = vpop.xlane.xlu0 %1759 }
 0x471   : > { %v1782_v55 = vsub.f32 0.0, %v1760_v29 }
 0x473   : > { %vm1790_vm9 = vcmp.eq.f32.partialorder %v4183_v57, %v1782_v55 }
 0x474   : > { %v3716_v18 = vsel %vm1790_vm9, 1.0, %v5791_v42  ;;  %v4767_v39 = vsel %vm1790_vm9, -inf, %v4524_v3 }
 0x475   : > { %3724 = vmatmul.msk.f32.vlgmr.msrb.gmra.mxu1 %vm635_vm1, %v3716_v18  ;;  %v2073_v4 = vsel %vm635_vm1, %v4767_v39, -inf  ;;  %v1518_v18 = vpop.f32.mrf.mxu2 }
 0x476   : > { %2074 = vmax.xlane.f32.xlu1 %v2073_v4  ;;  %2705 = vmatpush.bf16.msrb.mxu1 %v4346_v33 }
 0x478   : > { %v1763_v5 = vpop.xlane.xlu2 %1762 }
 0x479   : > { %v1783_v49 = vsub.f32 0.0, %v1763_v5 }
 0x47a   : > { %v1741_v9 = vpop.xlane.xlu0 %1740 }
 0x47b   : > { %vm1791_vm10 = vcmp.eq.f32.partialorder %v4183_v57, %v1783_v49  ;;  %vm1749_vm11 = vcmp.eq.f32.partialorder %v4631_v41, %v1741_v9 }
 0x47c   : > { %v3717_v10 = vsel %vm1791_vm10, 1.0, %v5791_v42  ;;  %v4777_v3 = vsel %vm1791_vm10, -inf, %v4535_v16  ;;  %v1757_v47 = vsel %vm1749_vm11, %v4186_v58, -64.0 }
 0x47d   : > { %3725 = vmatmul.msk.f32.gmra.mxu1 %vm635_vm1, %v3717_v10  ;;  %v2076_v29 = vsel %vm635_vm1, %v4777_v3, -inf  ;;  %v1779_v33 = vsel %vm635_vm1, %v1757_v47, -inf }
 0x47e   : > { %2077 = vmax.xlane.f32.xlu2 %v2076_v29  ;;  %1780 = vmax.xlane.f32.xlu0 %v1779_v33  ;;  %v4794_v29 = vld [vmem:[%s4095_s19 + $0x30] sm:$0xff] }
 0x47f   : > { %v1530_v33 = vsub.f32 %v1518_v18, %v4794_v29 }
 0x480   : > { %v1766_v55 = vpop.xlane.xlu1 %1765 }
 0x481   : > { %v1784_v4 = vsub.f32 0.0, %v1766_v55  ;;  %v4798_v55 = vld [vmem:[%s4095_s19 + $0x38] sm:$0xff] }
 0x483   : > { %vm1792_vm12 = vcmp.eq.f32.partialorder %v4183_v57, %v1784_v4 }
 0x484   : > { %v3718_v16 = vsel %vm1792_vm12, 1.0, %v5791_v42  ;;  %v4787_v5 = vsel %vm1792_vm12, -inf, %v4544_v26 }
 0x485   : > { %3726 = vmatmul.msk.f32.gmra.mxu1 %vm635_vm1, %v3718_v16  ;;  %v2079_v49 = vsel %vm635_vm1, %v4787_v5, -inf }
 0x486   : > { %v1769_v9 = vpop.xlane.xlu2 %1768  ;;  %2080 = vmax.xlane.f32.xlu0 %v2079_v49 }
 0x487   : > { %v1785_v10 = vsub.f32 0.0, %v1769_v9 }
 0x489   : > { %vm1793_vm13 = vcmp.eq.f32.partialorder %v4183_v57, %v1785_v10  ;;  %v1521_v47 = vpop.f32.mrf.mxu2 }
 0x48a   : > { %v1531_v26 = vsub.f32 %v1521_v47, %v4798_v55  ;;  %v4802_v4 = vsel %vm1793_vm13, -inf, %v4553_v32  ;;  %v3719_v49 = vsel %vm1793_vm13, 1.0, %v5791_v42 }
 0x48b   : > { %v2082_v16 = vsel %vm635_vm1, %v4802_v4, -inf }
 0x48c   : > { %v1535_v61 = vpack.c.bf16 %v1531_v26, %v1530_v33  ;;  %2083 = vmax.xlane.f32.xlu1 %v2082_v16 }
 0x48d   : > { %3727 = vmatmul.msk.f32.gmra.mxu1 %vm635_vm1, %v3719_v49 }
 0x48e   : > { %3711 = vmatmul.msk.bf16.gmra.mxu3 %vm409_vm0, %v1535_v61  ;;  %v1772_v9 = vpop.xlane.xlu0 %1771 }
 0x48f   : > { %v1786_v18 = vsub.f32 0.0, %v1772_v9 }
 0x491   : > { %vm1794_vm14 = vcmp.eq.f32.partialorder %v4183_v57, %v1786_v18 }
 0x492   : > { %v4811_v10 = vsel %vm1794_vm14, -inf, %v4562_v24  ;;  %v3720_v47 = vsel %vm1794_vm14, 1.0, %v5791_v42 }
 0x493   : > { %v2085_v32 = vsel %vm635_vm1, %v4811_v10, -inf }
 0x494   : > { %2086 = vmax.xlane.f32.xlu2 %v2085_v32 }
 0x495   : > { %3728 = vmatmul.msk.f32.gmra.mxu1 %vm635_vm1, %v3720_v47 }
 0x496   : > { %v1775_v33 = vpop.xlane.xlu1 %1774 }
 0x497   : > { %v1787_v26 = vsub.f32 0.0, %v1775_v33 }
 0x498   : > { %v1557_v16 = vpop.f32.mrf.mxu3 }
 0x499   : > { %vm1795_vm15 = vcmp.eq.f32.partialorder %v4183_v57, %v1787_v26  ;;  %v1558_v61 = vadd.f32 %v1557_v16, %v4376_v15 }
 0x49a   : > { %v4820_v49 = vsel %vm1795_vm15, -inf, %v4572_v43  ;;  %v3721_v9 = vsel %vm1795_vm15, 1.0, %v5791_v42 }
 0x49b   : > { %v2088_v24 = vsel %vm635_vm1, %v4820_v49, -inf  ;;  %v1577_v18 = vmul.f32 %v4398_v6, %v1558_v61  ;;  %v4836_v61 = vpop.f32.mrf.mxu1 }
 0x49c   : > { %2089 = vmax.xlane.f32.xlu0 %v2088_v24  ;;  %5799 = vst [vmem:[#allocation8_spill] sm:$0xff] %v4836_v61 }
 0x49d   : > { %3729 = vmatmul.msk.f32.gmra.mxu1 %vm635_vm1, %v3721_v9  ;;  %v1585_v26 = vadd.f32 %v4410_v40, %v1577_v18 }
 0x49e   : > { %v1778_v32 = vpop.xlane.xlu2 %1777 }
 0x49f   : > { %v1788_v47 = vsub.f32 0.0, %v1778_v32  ;;  %v1601_v32 = vmul.f32 0.2, %v1585_v26  ;;  %vm1593_vm3 = vcmp.gt.f32.partialorder %v1585_v26, 0.0 }
 0x4a0   : > { %v1559_v33 = vpop.f32.mrf.mxu3 }
 0x4a1   : > { %vm1796_vm2 = vcmp.eq.f32.partialorder %v4183_v57, %v1788_v47  ;;  %v1560_v43 = vadd.f32 %v1559_v33, %v4404_v38 }
 0x4a2   : > { %v4831_v16 = vsel %vm1796_vm2, -inf, %v4584_v21  ;;  %v3722_v9 = vsel %vm1796_vm2, 1.0, %v5791_v42  ;;  %v963_v21 = vmul.f32 %v4709_v23, %v4618_v52  ;;  %v4851_v52 = vld [vmem:[%s5783_s2] sm:$0xff] }
 0x4a3   : > { %v1578_v24 = vmul.f32 %v4398_v6, %v1560_v43  ;;  %v2091_v1 = vsel %vm635_vm1, %v4831_v16, -inf  ;;  %v1609_v43 = vsel %vm1593_vm3, %v1585_v26, %v1601_v32 }
 0x4a4   : > { %2092 = vmax.xlane.f32.xlu2 %v2091_v1  ;;  %v974_v1 = vadd.f32 %v4717_v2, %v963_v21  ;;  %v4864_v21 = vld [vmem:[%s5785_s4] ss:$0 sm:$0xff] }
 0x4a5   : > { %v1586_v18 = vadd.f32 %v4410_v40, %v1578_v24  ;;  %3730 = vmatmul.msk.f32.gmra.mxu1 %vm635_vm1, %v3722_v9 }
 0x4a6   : > { %v990_v26 = vmul.f32 0.2, %v974_v1  ;;  %vm982_vm5 = vcmp.gt.f32.partialorder %v974_v1, 0.0 }
 0x4a7   : > { %vm1594_vm4 = vcmp.gt.f32.partialorder %v1586_v18, 0.0  ;;  %v1602_v47 = vmul.f32 0.2, %v1586_v18 }
 0x4a8   : > { %v1562_v33 = vpop.f32.mrf.mxu3 }
 0x4a9   : > { %v1610_v20 = vsel %vm1594_vm4, %v1586_v18, %v1602_v47  ;;  %v1563_v63 = vadd.f32 %v1562_v33, %v4423_v44 }
 0x4aa   : > { %v1617_v61 = vpack.c.bf16 %v1610_v20, %v1609_v43 }
 0x4ab   : > { %v1579_v24 = vmul.f32 %v4398_v6, %v1563_v63  ;;  %v4857_v63 = vsel %vm982_vm5, %v974_v1, %v990_v26 }
 0x4ac   : > { %v1302_v42 = vpop.f32.mrf.mxu1  ;;  %3712 = vmatmul.msk.bf16.vlgmr.msrb.gmra.mxu0 %vm409_vm0, %v1617_v61 }
 0x4ad   : > { %v1313_v9 = vmul.f32 %v4709_v23, %v1302_v42  ;;  %2620 = vmatpush.bf16.msrb.mxu0 %v4851_v52  ;;  %v1587_v18 = vadd.f32 %v4410_v40, %v1579_v24  ;;  %v4872_v40 = vld [vmem:[%s5786_s5] ss:$0 sm:$0xff] }
 0x4af   : > { %v1321_v32 = vadd.f32 %v4717_v2, %v1313_v9  ;;  %v1603_v43 = vmul.f32 0.2, %v1587_v18  ;;  %vm1595_vm7 = vcmp.gt.f32.partialorder %v1587_v18, 0.0 }
 0x4b0   : > { %v1564_v20 = vpop.f32.mrf.mxu3 }
 0x4b1   : > { %vm1329_vm6 = vcmp.gt.f32.partialorder %v1321_v32, 0.0  ;;  %v1337_v61 = vmul.f32 0.2, %v1321_v32  ;;  %v1565_v6 = vadd.f32 %v1564_v20, %v4441_v45 }
 0x4b3   : > { %v4859_v42 = vsel %vm1329_vm6, %v1321_v32, %v1337_v61  ;;  %v1580_v47 = vmul.f32 %v4864_v21, %v1565_v6  ;;  %v1611_v32 = vsel %vm1595_vm7, %v1587_v18, %v1603_v43 }
 0x4b5   : > { %v1588_v1 = vadd.f32 %v4872_v40, %v1580_v47 }
 0x4b7   : > { %vm1596_vm8 = vcmp.gt.f32.partialorder %v1588_v1, 0.0  ;;  %v1604_v24 = vmul.f32 0.2, %v1588_v1 }
 0x4b8   : > { %v1567_v9 = vpop.f32.mrf.mxu3 }
 0x4b9   : > { %v1568_v26 = vadd.f32 %v1567_v9, %v4451_v36  ;;  %v1612_v20 = vsel %vm1596_vm8, %v1588_v1, %v1604_v24 }
 0x4ba   : > { %v1618_v61 = vpack.c.bf16 %v1612_v20, %v1611_v32 }
 0x4bb   : > { %v1581_v6 = vmul.f32 %v4864_v21, %v1568_v26  ;;  %v4883_v26 = vpop.f32.mrf.mxu1 }
 0x4bc   : > { %3713 = vmatmul.msk.bf16.gmra.mxu0 %vm409_vm0, %v1618_v61  ;;  %5800 = vst [vmem:[#allocation9_spill] sm:$0xff] %v4883_v26 }
 0x4bd   : > { %v1589_v56 = vadd.f32 %v4872_v40, %v1581_v6  ;;  %v5801_v6 = vmov 0.0  }
 0x4bf   : > { %v1605_v62 = vmul.f32 0.2, %v1589_v56  ;;  %vm1597_vm9 = vcmp.gt.f32.partialorder %v1589_v56, 0.0 }
 0x4c0   : > { %v1569_v33 = vpop.f32.mrf.mxu3 }
 0x4c1   : > { %v1570_v54 = vadd.f32 %v1569_v33, %v4457_v14  ;;  %v1613_v18 = vsel %vm1597_vm9, %v1589_v56, %v1605_v62 }
 0x4c3   : > { %v1582_v47 = vmul.f32 %v4864_v21, %v1570_v54 }
 0x4c5   : > { %v1590_v19 = vadd.f32 %v4872_v40, %v1582_v47 }
 0x4c7   : > { %vm1598_vm10 = vcmp.gt.f32.partialorder %v1590_v19, 0.0  ;;  %v1606_v9 = vmul.f32 0.2, %v1590_v19 }
 0x4c9   : > { %v1614_v43 = vsel %vm1598_vm10, %v1590_v19, %v1606_v9 }
 0x4ca   : > { %v1619_v1 = vpack.c.bf16 %v1614_v43, %v1613_v18 }
 0x4cc   : > { %3714 = vmatmul.msk.bf16.gmra.mxu0 %vm409_vm0, %v1619_v1 }
 0x4e9   : > { %v2075_v24 = vpop.xlane.xlu1 %2074 }
 0x4ea   : > { %vm2097_vm11 = vcmp.eq.f32.partialorder %v4767_v39, %v2075_v24 }
 0x4eb   : > { %v2105_v33 = vsel %vm2097_vm11, %v4186_v58, -64.0 }
 0x4ec   : > { %v2113_v54 = vsel %vm635_vm1, %v2105_v33, -inf }
 0x4ed   : > { %2114 = vmax.xlane.f32.xlu1 %v2113_v54 }
 0x4f1   : > { %v2078_v32 = vpop.xlane.xlu2 %2077  ;;  %v1781_v20 = vpop.xlane.xlu0 %1780 }
 0x4f2   : > { %vm2098_vm12 = vcmp.eq.f32.partialorder %v4777_v3, %v2078_v32  ;;  %v1789_v61 = vsub.f32 0.0, %v1781_v20  ;;  %v1855_v56 = vpop.f32.mrf.mxu1 }
 0x4f3   : > { %v2106_v19 = vsel %vm2098_vm12, %v4186_v58, -64.0  ;;  %v1879_v24 = vsub.f32 %v1855_v56, %v4641_v30 }
 0x4f4   : > { %vm1797_vm13 = vcmp.eq.f32.partialorder %v4183_v57, %v1789_v61  ;;  %v2116_v62 = vsel %vm635_vm1, %v2106_v19, -inf }
 0x4f5   : > { %2117 = vmax.xlane.f32.xlu0 %v2116_v62  ;;  %v3723_v47 = vsel %vm1797_vm13, 1.0, %v5801_v6  ;;  %v4894_v9 = vsel %vm1797_vm13, -inf, %v4631_v41 }
 0x4f6   : > { %3731 = vmatmul.msk.f32.gmra.mxu1 %vm635_vm1, %v3723_v47  ;;  %v2094_v18 = vsel %vm635_vm1, %v4894_v9, -inf }
 0x4f7   : > { %2095 = vmax.xlane.f32.xlu1 %v2094_v18 }
 0x4f9   : > { %v2081_v43 = vpop.xlane.xlu0 %2080 }
 0x4fa   : > { %vm2099_vm14 = vcmp.eq.f32.partialorder %v4787_v5, %v2081_v43  ;;  %v1858_v1 = vpop.f32.mrf.mxu1 }
 0x4fb   : > { %v1880_v33 = vsub.f32 %v1858_v1, %v4645_v7  ;;  %v2107_v54 = vsel %vm2099_vm14, %v4186_v58, -64.0 }
 0x4fc   : > { %v2119_v32 = vsel %vm635_vm1, %v2107_v54, -inf }
 0x4fd   : > { %v1887_v41 = vpack.c.bf16 %v1880_v33, %v1879_v24  ;;  %2120 = vmax.xlane.f32.xlu2 %v2119_v32 }
 0x4ff   : > { %v2084_v20 = vpop.xlane.xlu1 %2083  ;;  %3732 = vmatmul.msk.bf16.vlgmr.msrb.gmra.mxu2 %vm409_vm0, %v1887_v41 }
 0x500   : > { %vm2100_vm15 = vcmp.eq.f32.partialorder %v4802_v4, %v2084_v20  ;;  %2911 = vmatpush.msrb.mxu2 %v4652_v8 }
 0x501   : > { %v2108_v61 = vsel %vm2100_vm15, %v4186_v58, -64.0 }
 0x502   : > { %v1861_v19 = vpop.f32.mrf.mxu1  ;;  %v2122_v56 = vsel %vm635_vm1, %v2108_v61, -inf  ;;  %2912 = vmatpush.msrb.mxu2 %v4657_v27 }
 0x503   : > { %2123 = vmax.xlane.f32.xlu0 %v2122_v56  ;;  %v1881_v1 = vsub.f32 %v1861_v19, %v4682_v22 }
 0x504   : > { %2913 = vmatpush.msrb.mxu2 %v4663_v31 }
 0x506   : > { %2914 = vmatpush.msrb.mxu2 %v4668_v48 }
 0x507   : > { %v2087_v62 = vpop.xlane.xlu2 %2086 }
 0x508   : > { %vm2101_vm2 = vcmp.eq.f32.partialorder %v4811_v10, %v2087_v62  ;;  %2915 = vmatpush.msrb.mxu2 %v4672_v50 }
 0x509   : > { %v2109_v47 = vsel %vm2101_vm2, %v4186_v58, -64.0 }
 0x50a   : > { %v1864_v18 = vpop.f32.mrf.mxu1  ;;  %v2125_v43 = vsel %vm635_vm1, %v2109_v47, -inf  ;;  %2916 = vmatpush.msrb.mxu2 %v4678_v37 }
 0x50b   : > { %v1882_v24 = vsub.f32 %v1864_v18, %v4686_v13  ;;  %2126 = vmax.xlane.f32.xlu1 %v2125_v43 }
 0x50c   : > { %2917 = vmatpush.msrb.mxu2 %v4692_v25 }
 0x50d   : > { %v1888_v33 = vpack.c.bf16 %v1882_v24, %v1881_v1 }
 0x50e   : > { %2918 = vmatpush.msrb.mxu2 %v4698_v46 }
 0x50f   : > { %3733 = vmatmul.msk.bf16.gmra.mxu2 %vm409_vm0, %v1888_v33  ;;  %v2090_v54 = vpop.xlane.xlu0 %2089 }
 0x510   : > { %vm2102_vm3 = vcmp.eq.f32.partialorder %v4820_v49, %v2090_v54 }
 0x511   : > { %v1572_v32 = vpop.f32.mrf.mxu3  ;;  %v2110_v41 = vsel %vm2102_vm3, %v4186_v58, -64.0 }
 0x512   : > { %v1573_v20 = vadd.f32 %v1572_v32, %v4488_v12  ;;  %v1867_v61 = vpop.f32.mrf.mxu1  ;;  %v2128_v19 = vsel %vm635_vm1, %v2110_v41, -inf }
 0x513   : > { %2129 = vmax.xlane.f32.xlu2 %v2128_v19  ;;  %v1883_v54 = vsub.f32 %v1867_v61, %v4721_v51 }
 0x514   : > { %v1583_v56 = vmul.f32 %v4864_v21, %v1573_v20 }
 0x516   : > { %v1591_v43 = vadd.f32 %v4872_v40, %v1583_v56 }
 0x517   : > { %v2093_v62 = vpop.xlane.xlu2 %2092 }
 0x518   : > { %vm2103_vm4 = vcmp.eq.f32.partialorder %v4831_v16, %v2093_v62  ;;  %v1607_v19 = vmul.f32 0.2, %v1591_v43  ;;  %vm1599_vm5 = vcmp.gt.f32.partialorder %v1591_v43, 0.0 }
 0x519   : > { %v1574_v47 = vpop.f32.mrf.mxu3  ;;  %v2111_v18 = vsel %vm2103_vm4, %v4186_v58, -64.0 }
 0x51a   : > { %v1575_v1 = vadd.f32 %v1574_v47, %v4503_v28  ;;  %v1870_v24 = vpop.f32.mrf.mxu1  ;;  %v2131_v33 = vsel %vm635_vm1, %v2111_v18, -inf  ;;  %v1615_v47 = vsel %vm1599_vm5, %v1591_v43, %v1607_v19 }
 0x51b   : > { %v1884_v32 = vsub.f32 %v1870_v24, %v4725_v60  ;;  %2132 = vmax.xlane.f32.xlu1 %v2131_v33 }
 0x51c   : > { %v1584_v41 = vmul.f32 %v4864_v21, %v1575_v1 }
 0x51d   : > { %v1889_v20 = vpack.c.bf16 %v1884_v32, %v1883_v54  ;;  %v5802_v54 = vmax.f32 %v4732_v53, %v4734_v34 }
 0x51e   : > { %v1592_v62 = vadd.f32 %v4872_v40, %v1584_v41 }
 0x51f   : > { %3734 = vmatmul.msk.bf16.gmra.mxu2 %vm409_vm0, %v1889_v20 }
 0x520   : > { %vm1600_vm6 = vcmp.gt.f32.partialorder %v1592_v62, 0.0  ;;  %v1608_v56 = vmul.f32 0.2, %v1592_v62 }
 0x522   : > { %v1616_v26 = vsel %vm1600_vm6, %v1592_v62, %v1608_v56  ;;  %v5803_v62 = vmax.f32 %v4745_v0, %v4747_v17 }
 0x523   : > { %v1620_v35 = vpack.c.bf16 %v1616_v26, %v1615_v47 }
 0x525   : > { %3715 = vmatmul.msk.bf16.gmra.mxu0 %vm409_vm0, %v1620_v35 }
 0x529   : > { %v1642_v61 = vpop.f32.mrf.mxu0 }
 0x52a   : > { %v1662_v18 = vmul.f32 %v4709_v23, %v1642_v61 }
 0x52c   : > { %v1670_v24 = vadd.f32 %v4717_v2, %v1662_v18 }
 0x52e   : > { %vm1678_vm7 = vcmp.gt.f32.partialorder %v1670_v24, 0.0  ;;  %v1686_v1 = vmul.f32 0.2, %v1670_v24 }
 0x530   : > { %v1694_v33 = vsel %vm1678_vm7, %v1670_v24, %v1686_v1  ;;  %v5805_v1 = vmax.f32 %v4758_v11, %v4760_v59  ;;  %v4974_v11 = vld [vmem:[%s5787_s6] sm:$0xff] }
 0x531   : > { %v4943_v32 = vmax.f32 %v5802_v54, %v1694_v33  ;;  %v4945_v41 = vpop.f32.mrf.mxu0 }
 0x539   : > { %v1647_v43 = vpop.f32.mrf.mxu0 }
 0x53a   : > { %v1664_v26 = vmul.f32 %v4709_v23, %v1647_v43 }
 0x53c   : > { %v1672_v35 = vadd.f32 %v4717_v2, %v1664_v26 }
 0x53e   : > { %vm1680_vm8 = vcmp.gt.f32.partialorder %v1672_v35, 0.0  ;;  %v1688_v20 = vmul.f32 0.2, %v1672_v35 }
 0x540   : > { %v1696_v19 = vsel %vm1680_vm8, %v1672_v35, %v1688_v20 }
 0x541   : > { %v4952_v56 = vmax.f32 %v5803_v62, %v1696_v19  ;;  %v4954_v47 = vpop.f32.mrf.mxu0  ;;  %v1873_v19 = vpop.f32.mrf.mxu1 }
 0x542   : > { %5804 = vst [vmem:[#allocation10_spill] sm:$0xff] %v4954_v47 }
 0x549   : > { %v1652_v53 = vpop.f32.mrf.mxu0 }
 0x54a   : > { %v1666_v34 = vmul.f32 %v4709_v23, %v1652_v53 }
 0x54c   : > { %v1674_v61 = vadd.f32 %v4717_v2, %v1666_v34 }
 0x54e   : > { %vm1682_vm9 = vcmp.gt.f32.partialorder %v1674_v61, 0.0  ;;  %v1690_v18 = vmul.f32 0.2, %v1674_v61 }
 0x550   : > { %v1698_v24 = vsel %vm1682_vm9, %v1674_v61, %v1690_v18 }
 0x551   : > { %v4961_v33 = vmax.f32 %v5805_v1, %v1698_v24 }
 0x560   : > { %v2115_v54 = vpop.xlane.xlu1 %2114 }
 0x561   : > { %v2137_v43 = vsub.f32 0.0, %v2115_v54  ;;  %v1885_v54 = vsub.f32 %v1873_v19, %v4794_v29 }
 0x563   : > { %vm2145_vm10 = vcmp.eq.f32.partialorder %v4183_v57, %v2137_v43 }
 0x564   : > { %v3740_v0 = vsel %vm2145_vm10, 1.0, %v5801_v6  ;;  %v4966_v17 = vsel %vm2145_vm10, -inf, %v4767_v39 }
 0x565   : > { %3748 = vmatmul.msk.f32.vlgmr.msra.gmra.mxu0 %vm635_vm1, %v3740_v0  ;;  %v2428_v26 = vsel %vm635_vm1, %v4966_v17, -inf }
 0x566   : > { %2429 = vmax.xlane.f32.xlu0 %v2428_v26  ;;  %3060 = vmatpush.bf16.msra.mxu0 %v4974_v11 }
 0x568   : > { %v2118_v59 = vpop.xlane.xlu0 %2117 }
 0x569   : > { %v2138_v35 = vsub.f32 0.0, %v2118_v59 }
 0x56a   : > { %v2096_v20 = vpop.xlane.xlu1 %2095 }
 0x56b   : > { %vm2146_vm11 = vcmp.eq.f32.partialorder %v4183_v57, %v2138_v35  ;;  %vm2104_vm12 = vcmp.eq.f32.partialorder %v4894_v9, %v2096_v20 }
 0x56c   : > { %v3741_v39 = vsel %vm2146_vm11, 1.0, %v5801_v6  ;;  %v2112_v62 = vsel %vm2104_vm12, %v4186_v58, -64.0  ;;  %v4982_v53 = vsel %vm2146_vm11, -inf, %v4777_v3 }
 0x56d   : > { %3749 = vmatmul.msk.f32.gmra.mxu0 %vm635_vm1, %v3741_v39  ;;  %v2134_v34 = vsel %vm635_vm1, %v2112_v62, -inf  ;;  %v2431_v61 = vsel %vm635_vm1, %v4982_v53, -inf }
 0x56e   : > { %2135 = vmax.xlane.f32.xlu0 %v2134_v34  ;;  %2432 = vmax.xlane.f32.xlu2 %v2431_v61 }
 0x570   : > { %v2121_v18 = vpop.xlane.xlu2 %2120 }
 0x571   : > { %v2139_v24 = vsub.f32 0.0, %v2121_v18 }
 0x573   : > { %vm2147_vm13 = vcmp.eq.f32.partialorder %v4183_v57, %v2139_v24  ;;  %v1876_v1 = vpop.f32.mrf.mxu1 }
 0x574   : > { %v1886_v43 = vsub.f32 %v1876_v1, %v4798_v55  ;;  %v3742_v3 = vsel %vm2147_vm13, 1.0, %v5801_v6  ;;  %v4993_v0 = vsel %vm2147_vm13, -inf, %v4787_v5 }
 0x575   : > { %3750 = vmatmul.msk.f32.gmra.mxu0 %vm635_vm1, %v3742_v3  ;;  %v2434_v26 = vsel %vm635_vm1, %v4993_v0, -inf }
 0x576   : > { %v1890_v59 = vpack.c.bf16 %v1886_v43, %v1885_v54  ;;  %2435 = vmax.xlane.f32.xlu1 %v2434_v26  ;;  %v2124_v35 = vpop.xlane.xlu0 %2123 }
 0x577   : > { %v2140_v20 = vsub.f32 0.0, %v2124_v35 }
 0x578   : > { %3735 = vmatmul.msk.bf16.gmra.mxu2 %vm409_vm0, %v1890_v59 }
 0x579   : > { %vm2148_vm14 = vcmp.eq.f32.partialorder %v4183_v57, %v2140_v20 }
 0x57a   : > { %v5001_v19 = vsel %vm2148_vm14, -inf, %v4802_v4  ;;  %v3743_v39 = vsel %vm2148_vm14, 1.0, %v5801_v6 }
 0x57b   : > { %v2437_v5 = vsel %vm635_vm1, %v5001_v19, -inf }
 0x57c   : > { %2438 = vmax.xlane.f32.xlu2 %v2437_v5 }
 0x57d   : > { %3751 = vmatmul.msk.f32.gmra.mxu0 %vm635_vm1, %v3743_v39 }
 0x57e   : > { %v2127_v62 = vpop.xlane.xlu1 %2126 }
 0x57f   : > { %v2141_v34 = vsub.f32 0.0, %v2127_v62 }
 0x581   : > { %vm2149_vm15 = vcmp.eq.f32.partialorder %v4183_v57, %v2141_v34 }
 0x582   : > { %v1912_v61 = vpop.f32.mrf.mxu2  ;;  %v5009_v18 = vsel %vm2149_vm15, -inf, %v4811_v10  ;;  %v3744_v1 = vsel %vm2149_vm15, 1.0, %v5801_v6 }
 0x583   : > { %v1913_v24 = vadd.f32 %v1912_v61, %v4376_v15  ;;  %v2440_v4 = vsel %vm635_vm1, %v5009_v18, -inf }
 0x584   : > { %2441 = vmax.xlane.f32.xlu0 %v2440_v4 }
 0x585   : > { %3752 = vmatmul.msk.f32.gmra.mxu0 %vm635_vm1, %v3744_v1  ;;  %v1932_v43 = vmul.f32 %v4864_v21, %v1913_v24 }
 0x586   : > { %v2130_v54 = vpop.xlane.xlu2 %2129 }
 0x587   : > { %v2142_v3 = vsub.f32 0.0, %v2130_v54  ;;  %v1940_v59 = vadd.f32 %v4872_v40, %v1932_v43 }
 0x589   : > { %vm2150_vm2 = vcmp.eq.f32.partialorder %v4183_v57, %v2142_v3  ;;  %v1956_v34 = vmul.f32 0.2, %v1940_v59  ;;  %vm1948_vm3 = vcmp.gt.f32.partialorder %v1940_v59, 0.0 }
 0x58a   : > { %v1914_v26 = vpop.f32.mrf.mxu2  ;;  %v5019_v10 = vsel %vm2150_vm2, -inf, %v4820_v49  ;;  %v3745_v5 = vsel %vm2150_vm2, 1.0, %v5801_v6 }
 0x58b   : > { %v1915_v35 = vadd.f32 %v1914_v26, %v4404_v38  ;;  %v2443_v20 = vsel %vm635_vm1, %v5019_v10, -inf  ;;  %v1964_v54 = vsel %vm1948_vm3, %v1940_v59, %v1956_v34 }
 0x58c   : > { %2444 = vmax.xlane.f32.xlu1 %v2443_v20 }
 0x58d   : > { %v1933_v39 = vmul.f32 %v4864_v21, %v1915_v35  ;;  %3753 = vmatmul.msk.f32.gmra.mxu0 %vm635_vm1, %v3745_v5 }
 0x58e   : > { %v2133_v62 = vpop.xlane.xlu1 %2132 }
 0x58f   : > { %v1941_v61 = vadd.f32 %v4872_v40, %v1933_v39  ;;  %v2143_v49 = vsub.f32 0.0, %v2133_v62 }
 0x591   : > { %vm1949_vm4 = vcmp.gt.f32.partialorder %v1941_v61, 0.0  ;;  %v1957_v24 = vmul.f32 0.2, %v1941_v61  ;;  %vm2151_vm5 = vcmp.eq.f32.partialorder %v4183_v57, %v2143_v49 }
 0x592   : > { %v1917_v4 = vpop.f32.mrf.mxu2  ;;  %v5031_v1 = vsel %vm2151_vm5, -inf, %v4831_v16  ;;  %v3746_v20 = vsel %vm2151_vm5, 1.0, %v5801_v6  ;;  %v5041_v16 = vpop.f32.mrf.mxu0 }
 0x593   : > { %v1965_v43 = vsel %vm1949_vm4, %v1941_v61, %v1957_v24  ;;  %v1918_v3 = vadd.f32 %v1917_v4, %v4423_v44  ;;  %v2446_v26 = vsel %vm635_vm1, %v5031_v1, -inf  ;;  %5806 = vst [vmem:[#allocation11_spill] sm:$0xff] %v5041_v16  ;;  %v5807_v16 = vmax.f32 %v4857_v63, %v4859_v42 }
 0x594   : > { %v1972_v35 = vpack.c.bf16 %v1965_v43, %v1964_v54  ;;  %2447 = vmax.xlane.f32.xlu0 %v2446_v26 }
 0x595   : > { %3754 = vmatmul.msk.f32.gmra.mxu0 %vm635_vm1, %v3746_v20  ;;  %v1934_v5 = vmul.f32 %v4864_v21, %v1918_v3 }
 0x596   : > { %3736 = vmatmul.msk.bf16.vlgmr.msrb.gmra.mxu3 %vm409_vm0, %v1972_v35 }
 0x597   : > { %2975 = vmatpush.bf16.msrb.mxu3 %v4851_v52  ;;  %v1942_v39 = vadd.f32 %v4872_v40, %v1934_v5 }
 0x599   : > { %v1958_v61 = vmul.f32 0.2, %v1942_v39  ;;  %vm1950_vm6 = vcmp.gt.f32.partialorder %v1942_v39, 0.0 }
 0x59a   : > { %v1919_v59 = vpop.f32.mrf.mxu2 }
 0x59b   : > { %v1920_v62 = vadd.f32 %v1919_v59, %v4441_v45  ;;  %v1966_v26 = vsel %vm1950_vm6, %v1942_v39, %v1958_v61 }
 0x59d   : > { %v1935_v34 = vmul.f32 %v4864_v21, %v1920_v62 }
 0x59f   : > { %v1943_v49 = vadd.f32 %v4872_v40, %v1935_v34 }
 0x5a1   : > { %vm1951_vm7 = vcmp.gt.f32.partialorder %v1943_v49, 0.0  ;;  %v1959_v24 = vmul.f32 0.2, %v1943_v49 }
 0x5a2   : > { %v1657_v4 = vpop.f32.mrf.mxu0  ;;  %v1922_v54 = vpop.f32.mrf.mxu2 }
 0x5a3   : > { %v1668_v43 = vmul.f32 %v4709_v23, %v1657_v4  ;;  %v1923_v3 = vadd.f32 %v1922_v54, %v4451_v36  ;;  %v1967_v35 = vsel %vm1951_vm7, %v1943_v49, %v1959_v24 }
 0x5a4   : > { %v1973_v20 = vpack.c.bf16 %v1967_v35, %v1966_v26 }
 0x5a5   : > { %v1676_v5 = vadd.f32 %v4717_v2, %v1668_v43  ;;  %v1936_v62 = vmul.f32 %v4864_v21, %v1923_v3 }
 0x5a6   : > { %3737 = vmatmul.msk.bf16.gmra.mxu3 %vm409_vm0, %v1973_v20 }
 0x5a7   : > { %vm1684_vm8 = vcmp.gt.f32.partialorder %v1676_v5, 0.0  ;;  %v1692_v59 = vmul.f32 0.2, %v1676_v5  ;;  %v1944_v54 = vadd.f32 %v4872_v40, %v1936_v62 }
 0x5a9   : > { %v1700_v34 = vsel %vm1684_vm8, %v1676_v5, %v1692_v59  ;;  %v1960_v49 = vmul.f32 0.2, %v1944_v54  ;;  %vm1952_vm9 = vcmp.gt.f32.partialorder %v1944_v54, 0.0 }
 0x5aa   : > { %v5055_v47 = vmax.f32 %v5807_v16, %v1700_v34  ;;  %v1924_v4 = vpop.f32.mrf.mxu2  ;;  %v5062_v42 = vpop.f32.mrf.mxu0 }
 0x5ab   : > { %v1925_v39 = vadd.f32 %v1924_v4, %v4457_v14  ;;  %v1968_v3 = vsel %vm1952_vm9, %v1944_v54, %v1960_v49 }
 0x5ad   : > { %v1937_v61 = vmul.f32 %v4864_v21, %v1925_v39 }
 0x5af   : > { %v1945_v24 = vadd.f32 %v4872_v40, %v1937_v61 }
 0x5b1   : > { %vm1953_vm10 = vcmp.gt.f32.partialorder %v1945_v24, 0.0  ;;  %v1961_v43 = vmul.f32 0.2, %v1945_v24 }
 0x5b3   : > { %v1969_v26 = vsel %vm1953_vm10, %v1945_v24, %v1961_v43 }
 0x5b4   : > { %v1974_v35 = vpack.c.bf16 %v1969_v26, %v1968_v3 }
 0x5b6   : > { %3738 = vmatmul.msk.bf16.gmra.mxu3 %vm409_vm0, %v1974_v35 }
 0x5d9   : > { %v2430_v63 = vpop.xlane.xlu0 %2429 }
 0x5da   : > { %vm2452_vm11 = vcmp.eq.f32.partialorder %v4966_v17, %v2430_v63 }
 0x5db   : > { %v2460_v16 = vsel %vm2452_vm11, %v4186_v58, -64.0 }
 0x5dc   : > { %v2468_v20 = vsel %vm635_vm1, %v2460_v16, -inf }
 0x5dd   : > { %2469 = vmax.xlane.f32.xlu2 %v2468_v20 }
 0x5e1   : > { %v2433_v5 = vpop.xlane.xlu2 %2432  ;;  %v2136_v59 = vpop.xlane.xlu0 %2135 }
 0x5e2   : > { %vm2453_vm12 = vcmp.eq.f32.partialorder %v4982_v53, %v2433_v5  ;;  %v2144_v62 = vsub.f32 0.0, %v2136_v59  ;;  %v2210_v34 = vpop.f32.mrf.mxu0 }
 0x5e3   : > { %v2461_v4 = vsel %vm2453_vm12, %v4186_v58, -64.0  ;;  %v2234_v3 = vsub.f32 %v2210_v34, %v4641_v30 }
 0x5e4   : > { %vm2152_vm13 = vcmp.eq.f32.partialorder %v4183_v57, %v2144_v62  ;;  %v2471_v54 = vsel %vm635_vm1, %v2461_v4, -inf }
 0x5e5   : > { %2472 = vmax.xlane.f32.xlu1 %v2471_v54  ;;  %v3747_v39 = vsel %vm2152_vm13, 1.0, %v5801_v6  ;;  %v5073_v61 = vsel %vm2152_vm13, -inf, %v4894_v9 }
 0x5e6   : > { %3755 = vmatmul.msk.f32.gmra.mxu0 %vm635_vm1, %v3747_v39  ;;  %v2449_v49 = vsel %vm635_vm1, %v5073_v61, -inf }
 0x5e7   : > { %2450 = vmax.xlane.f32.xlu2 %v2449_v49 }
 0x5e9   : > { %v2436_v24 = vpop.xlane.xlu1 %2435 }
 0x5ea   : > { %vm2454_vm14 = vcmp.eq.f32.partialorder %v4993_v0, %v2436_v24  ;;  %v2213_v43 = vpop.f32.mrf.mxu0 }
 0x5eb   : > { %v2235_v26 = vsub.f32 %v2213_v43, %v4645_v7  ;;  %v2462_v35 = vsel %vm2454_vm14, %v4186_v58, -64.0 }
 0x5ec   : > { %v2474_v63 = vsel %vm635_vm1, %v2462_v35, -inf }
 0x5ed   : > { %v2242_v9 = vpack.c.bf16 %v2235_v26, %v2234_v3  ;;  %2475 = vmax.xlane.f32.xlu0 %v2474_v63 }
 0x5ef   : > { %3756 = vmatmul.msk.bf16.vlgmr.msra.gmra.mxu1 %vm409_vm0, %v2242_v9  ;;  %v2439_v16 = vpop.xlane.xlu2 %2438 }
 0x5f0   : > { %vm2455_vm15 = vcmp.eq.f32.partialorder %v5001_v19, %v2439_v16  ;;  %3266 = vmatpush.msra.mxu1 %v4652_v8 }
 0x5f1   : > { %v2463_v20 = vsel %vm2455_vm15, %v4186_v58, -64.0 }
 0x5f2   : > { %v2216_v5 = vpop.f32.mrf.mxu0  ;;  %v2477_v30 = vsel %vm635_vm1, %v2463_v20, -inf  ;;  %3267 = vmatpush.msra.mxu1 %v4657_v27 }
 0x5f3   : > { %2478 = vmax.xlane.f32.xlu1 %v2477_v30  ;;  %v2236_v34 = vsub.f32 %v2216_v5, %v4682_v22 }
 0x5f4   : > { %3268 = vmatpush.msra.mxu1 %v4663_v31 }
 0x5f6   : > { %3269 = vmatpush.msra.mxu1 %v4668_v48 }
 0x5f7   : > { %v2442_v7 = vpop.xlane.xlu0 %2441 }
 0x5f8   : > { %vm2456_vm2 = vcmp.eq.f32.partialorder %v5009_v18, %v2442_v7  ;;  %3270 = vmatpush.msra.mxu1 %v4672_v50 }
 0x5f9   : > { %v2464_v59 = vsel %vm2456_vm2, %v4186_v58, -64.0 }
 0x5fa   : > { %v2219_v8 = vpop.f32.mrf.mxu0  ;;  %v2480_v62 = vsel %vm635_vm1, %v2464_v59, -inf  ;;  %3271 = vmatpush.msra.mxu1 %v4678_v37 }
 0x5fb   : > { %v2237_v27 = vsub.f32 %v2219_v8, %v4686_v13  ;;  %v1927_v4 = vpop.f32.mrf.mxu2  ;;  %2481 = vmax.xlane.f32.xlu2 %v2480_v62 }
 0x5fc   : > { %v1928_v31 = vadd.f32 %v1927_v4, %v4488_v12  ;;  %3272 = vmatpush.msra.mxu1 %v4692_v25 }
 0x5fd   : > { %v2243_v48 = vpack.c.bf16 %v2237_v27, %v2236_v34 }
 0x5fe   : > { %3273 = vmatpush.msra.mxu1 %v4698_v46  ;;  %v1938_v54 = vmul.f32 %v4864_v21, %v1928_v31 }
 0x5ff   : > { %v2445_v50 = vpop.xlane.xlu1 %2444  ;;  %3757 = vmatmul.msk.bf16.gmra.mxu1 %vm409_vm0, %v2243_v48  ;;  %v5128_v48 = vld [vmem:[%s5788_s7] ss:$0 sm:$0xff] }
 0x600   : > { %vm2457_vm3 = vcmp.eq.f32.partialorder %v5019_v10, %v2445_v50  ;;  %v1946_v49 = vadd.f32 %v4872_v40, %v1938_v54 }
 0x601   : > { %v2465_v37 = vsel %vm2457_vm3, %v4186_v58, -64.0 }
 0x602   : > { %v2222_v22 = vpop.f32.mrf.mxu0  ;;  %v2483_v13 = vsel %vm635_vm1, %v2465_v37, -inf  ;;  %v1962_v43 = vmul.f32 0.2, %v1946_v49  ;;  %vm1954_vm5 = vcmp.gt.f32.partialorder %v1946_v49, 0.0 }
 0x603   : > { %v1929_v39 = vpop.f32.mrf.mxu2  ;;  %2484 = vmax.xlane.f32.xlu0 %v2483_v13  ;;  %v2238_v16 = vsub.f32 %v2222_v22, %v4721_v51 }
 0x604   : > { %v1930_v25 = vadd.f32 %v1929_v39, %v4503_v28  ;;  %v1970_v5 = vsel %vm1954_vm5, %v1946_v49, %v1962_v43 }
 0x606   : > { %v1939_v46 = vmul.f32 %v4864_v21, %v1930_v25  ;;  %v5142_v25 = vld [vmem:[%s5789_s8] ss:$0 sm:$0xff] }
 0x607   : > { %v2448_v24 = vpop.xlane.xlu0 %2447 }
 0x608   : > { %v1947_v3 = vadd.f32 %v4872_v40, %v1939_v46  ;;  %vm2458_vm4 = vcmp.eq.f32.partialorder %v5031_v1, %v2448_v24 }
 0x609   : > { %v2466_v26 = vsel %vm2458_vm4, %v4186_v58, -64.0 }
 0x60a   : > { %vm1955_vm6 = vcmp.gt.f32.partialorder %v1947_v3, 0.0  ;;  %v1963_v35 = vmul.f32 0.2, %v1947_v3  ;;  %v2225_v63 = vpop.f32.mrf.mxu0  ;;  %v2486_v9 = vsel %vm635_vm1, %v2466_v26, -inf }
 0x60b   : > { %v2239_v20 = vsub.f32 %v2225_v63, %v4725_v60  ;;  %2487 = vmax.xlane.f32.xlu1 %v2486_v9 }
 0x60c   : > { %v1971_v30 = vsel %vm1955_vm6, %v1947_v3, %v1963_v35 }
 0x60d   : > { %v2244_v7 = vpack.c.bf16 %v2239_v20, %v2238_v16  ;;  %v1975_v59 = vpack.c.bf16 %v1971_v30, %v1970_v5 }
 0x60f   : > { %3739 = vmatmul.msk.bf16.gmra.mxu3 %vm409_vm0, %v1975_v59  ;;  %3758 = vmatmul.msk.bf16.gmra.mxu1 %vm409_vm0, %v2244_v7 }
 0x612   : > { %v2228_v30 = vpop.f32.mrf.mxu0 }
 0x619   : > { %v1997_v8 = vpop.f32.mrf.mxu3 }
 0x61a   : > { %v2017_v62 = vmul.f32 %v4709_v23, %v1997_v8 }
 0x61c   : > { %v2025_v34 = vadd.f32 %v4717_v2, %v2017_v62 }
 0x61e   : > { %vm2033_vm7 = vcmp.gt.f32.partialorder %v2025_v34, 0.0  ;;  %v2041_v27 = vmul.f32 0.2, %v2025_v34 }
 0x620   : > { %v5119_v4 = vsel %vm2033_vm7, %v2025_v34, %v2041_v27 }
 0x621   : > { %v2057_v51 = vmax.f32 %v4943_v32, %v5119_v4  ;;  %v5123_v60 = vpop.f32.mrf.mxu3 }
 0x629   : > { %v2002_v31 = vpop.f32.mrf.mxu3 }
 0x62a   : > { %v2019_v50 = vmul.f32 %v5128_v48, %v2002_v31  ;;  %v2240_v31 = vsub.f32 %v2228_v30, %v4794_v29 }
 0x62c   : > { %v2027_v23 = vadd.f32 %v4717_v2, %v2019_v50 }
 0x62e   : > { %vm2035_vm8 = vcmp.gt.f32.partialorder %v2027_v23, 0.0  ;;  %v2043_v54 = vmul.f32 0.2, %v2027_v23 }
 0x630   : > { %v5132_v37 = vsel %vm2035_vm8, %v2027_v23, %v2043_v54 }
 0x631   : > { %v2059_v22 = vmax.f32 %v4952_v56, %v5132_v37  ;;  %v5136_v13 = vpop.f32.mrf.mxu3 }
 0x639   : > { %v2007_v39 = vpop.f32.mrf.mxu3 }
 0x63a   : > { %v2021_v49 = vmul.f32 %v5128_v48, %v2007_v39 }
 0x63c   : > { %v2029_v46 = vadd.f32 %v5142_v25, %v2021_v49 }
 0x63e   : > { %vm2037_vm9 = vcmp.gt.f32.partialorder %v2029_v46, 0.0  ;;  %v2045_v2 = vmul.f32 0.2, %v2029_v46 }
 0x640   : > { %v5145_v24 = vsel %vm2037_vm9, %v2029_v46, %v2045_v2 }
 0x641   : > { %v2061_v43 = vmax.f32 %v4961_v33, %v5145_v24 }
 0x650   : > { %v2470_v3 = vpop.xlane.xlu2 %2469 }
 0x651   : > { %v2492_v26 = vsub.f32 0.0, %v2470_v3 }
 0x653   : > { %vm2500_vm10 = vcmp.eq.f32.partialorder %v4183_v57, %v2492_v26 }
 0x654   : > { %v3764_v35 = vsel %vm2500_vm10, 1.0, %v5801_v6  ;;  %v5152_v63 = vsel %vm2500_vm10, -inf, %v4966_v17 }
 0x655   : > { %3772 = vmatmul.msk.f32.vlgmr.msra.gmra.mxu3 %vm635_vm1, %v3764_v35  ;;  %v2783_v9 = vsel %vm635_vm1, %v5152_v63, -inf }
 0x656   : > { %2784 = vmax.xlane.f32.xlu0 %v2783_v9  ;;  %3415 = vmatpush.bf16.msra.mxu3 %v4974_v11 }
 0x658   : > { %v2473_v16 = vpop.xlane.xlu1 %2472 }
 0x659   : > { %v2493_v20 = vsub.f32 0.0, %v2473_v16 }
 0x65a   : > { %v2451_v5 = vpop.xlane.xlu2 %2450 }
 0x65b   : > { %vm2501_vm11 = vcmp.eq.f32.partialorder %v4183_v57, %v2493_v20  ;;  %vm2459_vm12 = vcmp.eq.f32.partialorder %v5073_v61, %v2451_v5 }
 0x65c   : > { %v3765_v7 = vsel %vm2501_vm11, 1.0, %v5801_v6  ;;  %v2467_v17 = vsel %vm2459_vm12, %v4186_v58, -64.0  ;;  %v5163_v59 = vsel %vm2501_vm11, -inf, %v4982_v53 }
 0x65d   : > { %3773 = vmatmul.msk.f32.gmra.mxu3 %vm635_vm1, %v3765_v7  ;;  %v2489_v8 = vsel %vm635_vm1, %v2467_v17, -inf  ;;  %v2786_v11 = vsel %vm635_vm1, %v5163_v59, -inf }
 0x65e   : > { %2490 = vmax.xlane.f32.xlu2 %v2489_v8  ;;  %2787 = vmax.xlane.f32.xlu1 %v2786_v11 }
 0x660   : > { %v2476_v62 = vpop.xlane.xlu0 %2475 }
 0x661   : > { %v2494_v34 = vsub.f32 0.0, %v2476_v62 }
 0x663   : > { %vm2502_vm13 = vcmp.eq.f32.partialorder %v4183_v57, %v2494_v34  ;;  %v2231_v27 = vpop.f32.mrf.mxu0 }
 0x664   : > { %v2241_v50 = vsub.f32 %v2231_v27, %v4798_v55  ;;  %v3766_v53 = vsel %vm2502_vm13, 1.0, %v5801_v6  ;;  %v5174_v23 = vsel %vm2502_vm13, -inf, %v4993_v0 }
 0x665   : > { %3774 = vmatmul.msk.f32.gmra.mxu3 %vm635_vm1, %v3766_v53  ;;  %v2789_v54 = vsel %vm635_vm1, %v5174_v23, -inf }
 0x666   : > { %v2245_v39 = vpack.c.bf16 %v2241_v50, %v2240_v31  ;;  %v2479_v49 = vpop.xlane.xlu1 %2478  ;;  %2790 = vmax.xlane.f32.xlu2 %v2789_v54 }
 0x667   : > { %v2495_v46 = vsub.f32 0.0, %v2479_v49 }
 0x668   : > { %3759 = vmatmul.msk.bf16.gmra.mxu1 %vm409_vm0, %v2245_v39 }
 0x669   : > { %vm2503_vm14 = vcmp.eq.f32.partialorder %v4183_v57, %v2495_v46 }
 0x66a   : > { %v5182_v29 = vsel %vm2503_vm14, -inf, %v5001_v19  ;;  %v3767_v2 = vsel %vm2503_vm14, 1.0, %v5801_v6 }
 0x66b   : > { %v2792_v55 = vsel %vm635_vm1, %v5182_v29, -inf }
 0x66c   : > { %v2267_v0 = vpop.f32.mrf.mxu1  ;;  %2793 = vmax.xlane.f32.xlu0 %v2792_v55 }
 0x66d   : > { %v2268_v3 = vadd.f32 %v2267_v0, %v4376_v15  ;;  %3775 = vmatmul.msk.f32.gmra.mxu3 %vm635_vm1, %v3767_v2 }
 0x66e   : > { %v2482_v26 = vpop.xlane.xlu2 %2481 }
 0x66f   : > { %v2496_v35 = vsub.f32 0.0, %v2482_v26  ;;  %v2287_v9 = vmul.f32 %v4864_v21, %v2268_v3 }
 0x671   : > { %vm2504_vm15 = vcmp.eq.f32.partialorder %v4183_v57, %v2496_v35  ;;  %v2295_v30 = vadd.f32 %v4872_v40, %v2287_v9 }
 0x672   : > { %v5192_v19 = vsel %vm2504_vm15, -inf, %v5009_v18  ;;  %v3768_v5 = vsel %vm2504_vm15, 1.0, %v5801_v6 }
 0x673   : > { %v2795_v16 = vsel %vm635_vm1, %v5192_v19, -inf  ;;  %v2311_v62 = vmul.f32 0.2, %v2295_v30  ;;  %vm2303_vm3 = vcmp.gt.f32.partialorder %v2295_v30, 0.0 }
 0x674   : > { %v2269_v20 = vpop.f32.mrf.mxu1  ;;  %2796 = vmax.xlane.f32.xlu1 %v2795_v16 }
 0x675   : > { %v2270_v7 = vadd.f32 %v2269_v20, %v4404_v38  ;;  %3776 = vmatmul.msk.f32.gmra.mxu3 %vm635_vm1, %v3768_v5  ;;  %v2319_v54 = vsel %vm2303_vm3, %v2295_v30, %v2311_v62 }
 0x676   : > { %v2485_v17 = vpop.xlane.xlu0 %2484 }
 0x677   : > { %v2288_v8 = vmul.f32 %v4864_v21, %v2270_v7  ;;  %v2497_v11 = vsub.f32 0.0, %v2485_v17 }
 0x679   : > { %v2296_v18 = vadd.f32 %v4872_v40, %v2288_v8  ;;  %vm2505_vm2 = vcmp.eq.f32.partialorder %v4183_v57, %v2497_v11 }
 0x67a   : > { %v5204_v34 = vsel %vm2505_vm2, -inf, %v5019_v10  ;;  %v3769_v53 = vsel %vm2505_vm2, 1.0, %v5801_v6 }
 0x67b   : > { %vm2304_vm4 = vcmp.gt.f32.partialorder %v2296_v18, 0.0  ;;  %v2312_v27 = vmul.f32 0.2, %v2296_v18  ;;  %v2798_v31 = vsel %vm635_vm1, %v5204_v34, -inf }
 0x67c   : > { %v2272_v50 = vpop.f32.mrf.mxu1  ;;  %2799 = vmax.xlane.f32.xlu2 %v2798_v31 }
 0x67d   : > { %v2320_v39 = vsel %vm2304_vm4, %v2296_v18, %v2312_v27  ;;  %v2273_v49 = vadd.f32 %v2272_v50, %v4423_v44  ;;  %3777 = vmatmul.msk.f32.gmra.mxu3 %vm635_vm1, %v3769_v53 }
 0x67e   : > { %v2327_v46 = vpack.c.bf16 %v2320_v39, %v2319_v54  ;;  %v2488_v55 = vpop.xlane.xlu1 %2487 }
 0x67f   : > { %v2498_v0 = vsub.f32 0.0, %v2488_v55  ;;  %v2289_v10 = vmul.f32 %v4864_v21, %v2273_v49 }
 0x680   : > { %3760 = vmatmul.msk.bf16.vlgmr.msra.gmra.mxu2 %vm409_vm0, %v2327_v46 }
 0x681   : > { %vm2506_vm5 = vcmp.eq.f32.partialorder %v4183_v57, %v2498_v0  ;;  %3330 = vmatpush.bf16.msra.mxu2 %v4851_v52  ;;  %v2297_v9 = vadd.f32 %v4872_v40, %v2289_v10 }
 0x682   : > { %v5216_v2 = vsel %vm2506_vm5, -inf, %v5031_v1  ;;  %v3770_v35 = vsel %vm2506_vm5, 1.0, %v5801_v6  ;;  %v5226_v1 = vpop.f32.mrf.mxu3 }
 0x683   : > { %v2801_v3 = vsel %vm635_vm1, %v5216_v2, -inf  ;;  %v2313_v5 = vmul.f32 0.2, %v2297_v9  ;;  %vm2305_vm6 = vcmp.gt.f32.partialorder %v2297_v9, 0.0 }
 0x684   : > { %v2274_v26 = vpop.f32.mrf.mxu1  ;;  %2802 = vmax.xlane.f32.xlu1 %v2801_v3 }
 0x685   : > { %v2275_v16 = vadd.f32 %v2274_v26, %v4441_v45  ;;  %3778 = vmatmul.msk.f32.gmra.mxu3 %vm635_vm1, %v3770_v35  ;;  %v2321_v8 = vsel %vm2305_vm6, %v2297_v9, %v2313_v5 }
 0x687   : > { %v2290_v20 = vmul.f32 %v4864_v21, %v2275_v16 }
 0x689   : > { %v2298_v52 = vadd.f32 %v4872_v40, %v2290_v20 }
 0x68b   : > { %vm2306_vm7 = vcmp.gt.f32.partialorder %v2298_v52, 0.0  ;;  %v2314_v30 = vmul.f32 0.2, %v2298_v52 }
 0x68c   : > { %v2277_v7 = vpop.f32.mrf.mxu1 }
 0x68d   : > { %v2278_v17 = vadd.f32 %v2277_v7, %v4451_v36  ;;  %v2322_v11 = vsel %vm2306_vm7, %v2298_v52, %v2314_v30 }
 0x68e   : > { %v2328_v62 = vpack.c.bf16 %v2322_v11, %v2321_v8 }
 0x68f   : > { %v2291_v18 = vmul.f32 %v4864_v21, %v2278_v17 }
 0x690   : > { %3761 = vmatmul.msk.bf16.gmra.mxu2 %vm409_vm0, %v2328_v62 }
 0x691   : > { %v2299_v53 = vadd.f32 %v4872_v40, %v2291_v18 }
 0x692   : > { %v2012_v27 = vpop.f32.mrf.mxu3 }
 0x693   : > { %v2023_v31 = vmul.f32 %v5128_v48, %v2012_v27  ;;  %v2315_v55 = vmul.f32 0.2, %v2299_v53  ;;  %vm2307_vm9 = vcmp.gt.f32.partialorder %v2299_v53, 0.0 }
 0x694   : > { %v2279_v50 = vpop.f32.mrf.mxu1 }
 0x695   : > { %v2031_v54 = vadd.f32 %v5142_v25, %v2023_v31  ;;  %v2280_v39 = vadd.f32 %v2279_v50, %v4457_v14  ;;  %v2323_v35 = vsel %vm2307_vm9, %v2299_v53, %v2315_v55 }
 0x697   : > { %vm2039_vm8 = vcmp.gt.f32.partialorder %v2031_v54, 0.0  ;;  %v2047_v49 = vmul.f32 0.2, %v2031_v54  ;;  %v2292_v46 = vmul.f32 %v4864_v21, %v2280_v39  ;;  %v5263_v39 = vld [vmem:[%s4095_s19] sm:$0xff] }
 0x699   : > { %v5236_v0 = vsel %vm2039_vm8, %v2031_v54, %v2047_v49  ;;  %v2300_v10 = vadd.f32 %v4872_v40, %v2292_v46  ;;  %v5267_v46 = vld [vmem:[%s4095_s19 + $0x8] sm:$0xff] }
 0x69a   : > { %v2063_v3 = vmax.f32 %v5055_v47, %v5236_v0  ;;  %v5245_v40 = vpop.f32.mrf.mxu3 }
 0x69b   : > { %vm2308_vm10 = vcmp.gt.f32.partialorder %v2300_v10, 0.0  ;;  %v2316_v26 = vmul.f32 0.2, %v2300_v10 }
 0x69d   : > { %v2324_v9 = vsel %vm2308_vm10, %v2300_v10, %v2316_v26 }
 0x69e   : > { %v2329_v16 = vpack.c.bf16 %v2324_v9, %v2323_v35 }
 0x6a0   : > { %3762 = vmatmul.msk.bf16.gmra.mxu2 %vm409_vm0, %v2329_v16 }
 0x6c9   : > { %v2785_v20 = vpop.xlane.xlu0 %2784 }
 0x6ca   : > { %vm2807_vm11 = vcmp.eq.f32.partialorder %v5152_v63, %v2785_v20 }
 0x6cb   : > { %v2815_v21 = vsel %vm2807_vm11, %v4186_v58, -64.0 }
 0x6cc   : > { %v2823_v5 = vsel %vm635_vm1, %v2815_v21, -inf }
 0x6cd   : > { %2824 = vmax.xlane.f32.xlu0 %v2823_v5 }
 0x6d1   : > { %v2491_v52 = vpop.xlane.xlu2 %2490  ;;  %v2788_v30 = vpop.xlane.xlu1 %2787 }
 0x6d2   : > { %v2499_v7 = vsub.f32 0.0, %v2491_v52  ;;  %vm2808_vm12 = vcmp.eq.f32.partialorder %v5163_v59, %v2788_v30  ;;  %v5279_v52 = vld [vmem:[%s5785_s4] ss:$0 sm:$0xff] }
 0x6d3   : > { %v2816_v17 = vsel %vm2808_vm12, %v4186_v58, -64.0 }
 0x6d4   : > { %vm2507_vm13 = vcmp.eq.f32.partialorder %v4183_v57, %v2499_v7  ;;  %v2826_v8 = vsel %vm635_vm1, %v2816_v17, -inf }
 0x6d5   : > { %2827 = vmax.xlane.f32.xlu2 %v2826_v8  ;;  %v3771_v11 = vsel %vm2507_vm13, 1.0, %v5801_v6  ;;  %v5253_v62 = vsel %vm2507_vm13, -inf, %v5073_v61  ;;  %v5286_v8 = vld [vmem:[%s5786_s5] ss:$0 sm:$0xff] }
 0x6d6   : > { %3779 = vmatmul.msk.f32.gmra.mxu3 %vm635_vm1, %v3771_v11  ;;  %v2804_v18 = vsel %vm635_vm1, %v5253_v62, -inf }
 0x6d7   : > { %2805 = vmax.xlane.f32.xlu0 %v2804_v18 }
 0x6d8   : > { %v2565_v27 = vpop.f32.mrf.mxu3 }
 0x6d9   : > { %v2791_v31 = vpop.xlane.xlu2 %2790  ;;  %v2589_v49 = vsub.f32 %v2565_v27, %v5263_v39 }
 0x6da   : > { %vm2809_vm14 = vcmp.eq.f32.partialorder %v5174_v23, %v2791_v31 }
 0x6db   : > { %v2817_v50 = vsel %vm2809_vm14, %v4186_v58, -64.0 }
 0x6dc   : > { %v2829_v53 = vsel %vm635_vm1, %v2817_v50, -inf }
 0x6dd   : > { %2830 = vmax.xlane.f32.xlu1 %v2829_v53  ;;  %v5293_v53 = vld [vmem:[%s4095_s19 + $0x10] sm:$0xff] }
 0x6df   : > { %v2794_v54 = vpop.xlane.xlu0 %2793 }
 0x6e0   : > { %vm2810_vm15 = vcmp.eq.f32.partialorder %v5182_v29, %v2794_v54  ;;  %v2568_v61 = vpop.f32.mrf.mxu3 }
 0x6e1   : > { %v2590_v55 = vsub.f32 %v2568_v61, %v5267_v46  ;;  %v2818_v10 = vsel %vm2810_vm15, %v4186_v58, -64.0  ;;  %v5297_v61 = vld [vmem:[%s4095_s19 + $0x18] sm:$0xff] }
 0x6e2   : > { %v2832_v26 = vsel %vm635_vm1, %v2818_v10, -inf }
 0x6e3   : > { %v2597_v35 = vpack.c.bf16 %v2590_v55, %v2589_v49  ;;  %2833 = vmax.xlane.f32.xlu2 %v2832_v26 }
 0x6e5   : > { %v2282_v9 = vpop.f32.mrf.mxu1  ;;  %3780 = vmatmul.msk.bf16.vlgmr.msrb.gmra.mxu0 %vm409_vm0, %v2597_v35 }
 0x6e6   : > { %v2283_v16 = vadd.f32 %v2282_v9, %v4488_v12 }
 0x6e7   : > { %v2797_v20 = vpop.xlane.xlu1 %2796 }
 0x6e8   : > { %vm2811_vm2 = vcmp.eq.f32.partialorder %v5192_v19, %v2797_v20  ;;  %v2571_v21 = vpop.f32.mrf.mxu3  ;;  %v2293_v30 = vmul.f32 %v5279_v52, %v2283_v16 }
 0x6e9   : > { %v2819_v5 = vsel %vm2811_vm2, %v4186_v58, -64.0  ;;  %v2591_v54 = vsub.f32 %v2571_v21, %v5293_v53 }
 0x6ea   : > { %v2835_v7 = vsel %vm635_vm1, %v2819_v5, -inf  ;;  %v2301_v11 = vadd.f32 %v5286_v8, %v2293_v30 }
 0x6eb   : > { %2836 = vmax.xlane.f32.xlu0 %v2835_v7 }
 0x6ec   : > { %v2317_v10 = vmul.f32 0.2, %v2301_v11  ;;  %vm2309_vm4 = vcmp.gt.f32.partialorder %v2301_v11, 0.0 }
 0x6ed   : > { %v2284_v17 = vpop.f32.mrf.mxu1 }
 0x6ee   : > { %v2285_v18 = vadd.f32 %v2284_v17, %v4503_v28  ;;  %v2325_v20 = vsel %vm2309_vm4, %v2301_v11, %v2317_v10 }
 0x6ef   : > { %v2800_v27 = vpop.xlane.xlu2 %2799 }
 0x6f0   : > { %v2294_v31 = vmul.f32 %v5279_v52, %v2285_v18  ;;  %vm2812_vm3 = vcmp.eq.f32.partialorder %v5204_v34, %v2800_v27  ;;  %v2574_v50 = vpop.f32.mrf.mxu3 }
 0x6f1   : > { %v2592_v49 = vsub.f32 %v2574_v50, %v5297_v61  ;;  %v2820_v55 = vsel %vm2812_vm3, %v4186_v58, -64.0 }
 0x6f2   : > { %v2302_v26 = vadd.f32 %v5286_v8, %v2294_v31  ;;  %v2838_v35 = vsel %vm635_vm1, %v2820_v55, -inf  ;;  %v5309_v31 = vld [vmem:[%s4095_s19 + $0x20] sm:$0xff] }
 0x6f3   : > { %v2598_v9 = vpack.c.bf16 %v2592_v49, %v2591_v54  ;;  %2839 = vmax.xlane.f32.xlu1 %v2838_v35  ;;  %v5313_v54 = vld [vmem:[%s4095_s19 + $0x28] sm:$0xff] }
 0x6f4   : > { %vm2310_vm5 = vcmp.gt.f32.partialorder %v2302_v26, 0.0  ;;  %v2318_v16 = vmul.f32 0.2, %v2302_v26 }
 0x6f5   : > { %3781 = vmatmul.msk.bf16.gmra.mxu0 %vm409_vm0, %v2598_v9 }
 0x6f6   : > { %v2326_v21 = vsel %vm2310_vm5, %v2302_v26, %v2318_v16 }
 0x6f7   : > { %v2803_v5 = vpop.xlane.xlu1 %2802  ;;  %v2330_v30 = vpack.c.bf16 %v2326_v21, %v2325_v20 }
 0x6f8   : > { %vm2813_vm6 = vcmp.eq.f32.partialorder %v5216_v2, %v2803_v5  ;;  %v2577_v7 = vpop.f32.mrf.mxu3 }
 0x6f9   : > { %3763 = vmatmul.msk.bf16.gmra.mxu2 %vm409_vm0, %v2330_v30  ;;  %v2821_v17 = vsel %vm2813_vm6, %v4186_v58, -64.0  ;;  %v2593_v50 = vsub.f32 %v2577_v7, %v5309_v31 }
 0x6fa   : > { %v2841_v18 = vsel %vm635_vm1, %v2821_v17, -inf }
 0x6fb   : > { %2842 = vmax.xlane.f32.xlu0 %v2841_v18 }
 0x700   : > { %v2580_v27 = vpop.f32.mrf.mxu3 }
 0x701   : > { %v2594_v11 = vsub.f32 %v2580_v27, %v5313_v54 }
 0x703   : > { %v2599_v49 = vpack.c.bf16 %v2594_v11, %v2593_v50  ;;  %v2352_v55 = vpop.f32.mrf.mxu2 }
 0x704   : > { %v2372_v10 = vmul.f32 %v5128_v48, %v2352_v55 }
 0x705   : > { %3782 = vmatmul.msk.bf16.gmra.mxu0 %vm409_vm0, %v2599_v49 }
 0x706   : > { %v2380_v26 = vadd.f32 %v5142_v25, %v2372_v10 }
 0x708   : > { %vm2388_vm7 = vcmp.gt.f32.partialorder %v2380_v26, 0.0  ;;  %v2396_v35 = vmul.f32 0.2, %v2380_v26 }
 0x70a   : > { %v2404_v9 = vsel %vm2388_vm7, %v2380_v26, %v2396_v35 }
 0x70b   : > { %v5322_v16 = vmax.f32 %v2057_v51, %v2404_v9  ;;  %v5324_v20 = vpop.f32.mrf.mxu2 }
 0x713   : > { %v2357_v21 = vpop.f32.mrf.mxu2 }
 0x714   : > { %v2374_v5 = vmul.f32 %v5128_v48, %v2357_v21 }
 0x716   : > { %v2382_v30 = vadd.f32 %v5142_v25, %v2374_v5 }
 0x718   : > { %vm2390_vm8 = vcmp.gt.f32.partialorder %v2382_v30, 0.0  ;;  %v2398_v7 = vmul.f32 0.2, %v2382_v30 }
 0x71a   : > { %v2406_v17 = vsel %vm2390_vm8, %v2382_v30, %v2398_v7  ;;  %v2583_v30 = vpop.f32.mrf.mxu3 }
 0x71b   : > { %v5331_v18 = vmax.f32 %v2059_v22, %v2406_v17  ;;  %v5333_v27 = vpop.f32.mrf.mxu2 }
 0x723   : > { %v2362_v32 = vpop.f32.mrf.mxu2 }
 0x724   : > { %v2376_v4 = vmul.f32 %v5128_v48, %v2362_v32 }
 0x726   : > { %v2384_v51 = vadd.f32 %v5142_v25, %v2376_v4 }
 0x728   : > { %vm2392_vm9 = vcmp.gt.f32.partialorder %v2384_v51, 0.0  ;;  %v2400_v50 = vmul.f32 0.2, %v2384_v51 }
 0x72a   : > { %v2408_v11 = vsel %vm2392_vm9, %v2384_v51, %v2400_v50 }
 0x72b   : > { %v5340_v49 = vmax.f32 %v2061_v43, %v2408_v11  ;;  %v5371_v11 = vld [vmem:[%s4095_s19 + $0x30] sm:$0xff] }
 0x740   : > { %v2825_v55 = vpop.xlane.xlu0 %2824 }
 0x741   : > { %v2847_v10 = vsub.f32 0.0, %v2825_v55  ;;  %v2595_v55 = vsub.f32 %v2583_v30, %v5371_v11 }
 0x743   : > { %vm2855_vm10 = vcmp.eq.f32.partialorder %v4183_v57, %v2847_v10  ;;  %v5375_v10 = vld [vmem:[%s4095_s19 + $0x38] sm:$0xff] }
 0x744   : > { %v3788_v56 = vsel %vm2855_vm10, 1.0, %v5801_v6  ;;  %v5345_v37 = vsel %vm2855_vm10, -inf, %v5152_v63 }
 0x745   : > { %3796 = vmatmul.msk.f32.vlgmr.msrb.gmra.mxu2 %vm635_vm1, %v3788_v56  ;;  %v3138_v22 = vsel %vm635_vm1, %v5345_v37, -inf }
 0x746   : > { %3139 = vmax.xlane.f32.xlu2 %v3138_v22 }
 0x748   : > { %v2828_v26 = vpop.xlane.xlu2 %2827 }
 0x749   : > { %v2848_v35 = vsub.f32 0.0, %v2828_v26 }
 0x74a   : > { %v2806_v33 = vpop.xlane.xlu0 %2805 }
 0x74b   : > { %vm2856_vm11 = vcmp.eq.f32.partialorder %v4183_v57, %v2848_v35  ;;  %vm2814_vm12 = vcmp.eq.f32.partialorder %v5253_v62, %v2806_v33 }
 0x74c   : > { %v3789_v24 = vsel %vm2856_vm11, 1.0, %v5801_v6  ;;  %v5354_v43 = vsel %vm2856_vm11, -inf, %v5163_v59  ;;  %v2822_v63 = vsel %vm2814_vm12, %v4186_v58, -64.0 }
 0x74d   : > { %3797 = vmatmul.msk.f32.gmra.mxu2 %vm635_vm1, %v3789_v24  ;;  %v3141_v9 = vsel %vm635_vm1, %v5354_v43, -inf  ;;  %v2844_v21 = vsel %vm635_vm1, %v2822_v63, -inf }
 0x74e   : > { %3142 = vmax.xlane.f32.xlu1 %v3141_v9  ;;  %2845 = vmax.xlane.f32.xlu2 %v2844_v21 }
 0x750   : > { %v2831_v5 = vpop.xlane.xlu1 %2830 }
 0x751   : > { %v2849_v7 = vsub.f32 0.0, %v2831_v5 }
 0x753   : > { %vm2857_vm13 = vcmp.eq.f32.partialorder %v4183_v57, %v2849_v7 }
 0x754   : > { %v3790_v59 = vsel %vm2857_vm13, 1.0, %v5801_v6  ;;  %v5364_v17 = vsel %vm2857_vm13, -inf, %v5174_v23 }
 0x755   : > { %3798 = vmatmul.msk.f32.gmra.mxu2 %vm635_vm1, %v3790_v59  ;;  %v3144_v32 = vsel %vm635_vm1, %v5364_v17, -inf }
 0x756   : > { %3145 = vmax.xlane.f32.xlu0 %v3144_v32  ;;  %v2834_v4 = vpop.xlane.xlu2 %2833 }
 0x757   : > { %v2850_v51 = vsub.f32 0.0, %v2834_v4 }
 0x759   : > { %v2586_v50 = vpop.f32.mrf.mxu3  ;;  %vm2858_vm14 = vcmp.eq.f32.partialorder %v4183_v57, %v2850_v51 }
 0x75a   : > { %v2596_v23 = vsub.f32 %v2586_v50, %v5375_v10  ;;  %v5379_v56 = vsel %vm2858_vm14, -inf, %v5182_v29  ;;  %v3791_v35 = vsel %vm2858_vm14, 1.0, %v5801_v6 }
 0x75b   : > { %v3147_v22 = vsel %vm635_vm1, %v5379_v56, -inf }
 0x75c   : > { %v2600_v26 = vpack.c.bf16 %v2596_v23, %v2595_v55  ;;  %3148 = vmax.xlane.f32.xlu1 %v3147_v22 }
 0x75d   : > { %3799 = vmatmul.msk.f32.gmra.mxu2 %vm635_vm1, %v3791_v35 }
 0x75e   : > { %3783 = vmatmul.msk.bf16.gmra.mxu0 %vm409_vm0, %v2600_v26  ;;  %v2837_v33 = vpop.xlane.xlu0 %2836 }
 0x75f   : > { %v2851_v24 = vsub.f32 0.0, %v2837_v33 }
 0x761   : > { %vm2859_vm15 = vcmp.eq.f32.partialorder %v4183_v57, %v2851_v24 }
 0x762   : > { %v2622_v63 = vpop.f32.mrf.mxu0  ;;  %v5388_v9 = vsel %vm2859_vm15, -inf, %v5192_v19  ;;  %v3792_v5 = vsel %vm2859_vm15, 1.0, %v5801_v6 }
 0x763   : > { %v2623_v29 = vadd.f32 %v2622_v63, %v4376_v15  ;;  %v3150_v21 = vsel %vm635_vm1, %v5388_v9, -inf }
 0x764   : > { %3151 = vmax.xlane.f32.xlu2 %v3150_v21 }
 0x765   : > { %3800 = vmatmul.msk.f32.gmra.mxu2 %vm635_vm1, %v3792_v5  ;;  %v2642_v7 = vmul.f32 %v5279_v52, %v2623_v29 }
 0x766   : > { %v2840_v30 = vpop.xlane.xlu1 %2839 }
 0x767   : > { %v2852_v59 = vsub.f32 0.0, %v2840_v30  ;;  %v2650_v4 = vadd.f32 %v5286_v8, %v2642_v7  ;;  %v5415_v7 = vpop.f32.mrf.mxu2 }
 0x769   : > { %vm2860_vm2 = vcmp.eq.f32.partialorder %v4183_v57, %v2852_v59  ;;  %v2666_v26 = vmul.f32 0.2, %v2650_v4  ;;  %vm2658_vm3 = vcmp.gt.f32.partialorder %v2650_v4, 0.0 }
 0x76a   : > { %v2624_v32 = vpop.f32.mrf.mxu0  ;;  %v5398_v19 = vsel %vm2860_vm2, -inf, %v5204_v34  ;;  %v3793_v55 = vsel %vm2860_vm2, 1.0, %v5801_v6 }
 0x76b   : > { %v2625_v51 = vadd.f32 %v2624_v32, %v4404_v38  ;;  %v3153_v50 = vsel %vm635_vm1, %v5398_v19, -inf  ;;  %v2674_v29 = vsel %vm2658_vm3, %v2650_v4, %v2666_v26 }
 0x76c   : > { %3154 = vmax.xlane.f32.xlu0 %v3153_v50 }
 0x76d   : > { %v2643_v23 = vmul.f32 %v5279_v52, %v2625_v51  ;;  %3801 = vmatmul.msk.f32.gmra.mxu2 %vm635_vm1, %v3793_v55 }
 0x76e   : > { %v2843_v22 = vpop.xlane.xlu0 %2842 }
 0x76f   : > { %v2651_v35 = vadd.f32 %v5286_v8, %v2643_v23  ;;  %v2853_v34 = vsub.f32 0.0, %v2843_v22 }
 0x771   : > { %vm2659_vm4 = vcmp.gt.f32.partialorder %v2651_v35, 0.0  ;;  %v2667_v33 = vmul.f32 0.2, %v2651_v35  ;;  %vm2861_vm5 = vcmp.eq.f32.partialorder %v4183_v57, %v2853_v34 }
 0x772   : > { %v2627_v24 = vpop.f32.mrf.mxu0  ;;  %v5410_v63 = vsel %vm2861_vm5, -inf, %v5216_v2  ;;  %v3794_v32 = vsel %vm2861_vm5, 1.0, %v5801_v6 }
 0x773   : > { %v2675_v21 = vsel %vm2659_vm4, %v2651_v35, %v2667_v33  ;;  %v2628_v5 = vadd.f32 %v2627_v24, %v4423_v44  ;;  %v3156_v30 = vsel %vm635_vm1, %v5410_v63, -inf }
 0x774   : > { %v2682_v59 = vpack.c.bf16 %v2675_v21, %v2674_v29  ;;  %3157 = vmax.xlane.f32.xlu2 %v3156_v30 }
 0x775   : > { %3802 = vmatmul.msk.f32.gmra.mxu2 %vm635_vm1, %v3794_v32  ;;  %v2644_v2 = vmul.f32 %v5279_v52, %v2628_v5 }
 0x776   : > { %3784 = vmatmul.msk.bf16.vlgmr.msrb.gmra.mxu1 %vm409_vm0, %v2682_v59 }
 0x777   : > { %v2652_v4 = vadd.f32 %v5286_v8, %v2644_v2 }
 0x779   : > { %v2668_v26 = vmul.f32 0.2, %v2652_v4  ;;  %vm2660_vm6 = vcmp.gt.f32.partialorder %v2652_v4, 0.0 }
 0x77a   : > { %v2629_v51 = vpop.f32.mrf.mxu0 }
 0x77b   : > { %v2630_v50 = vadd.f32 %v2629_v51, %v4441_v45  ;;  %v2676_v30 = vsel %vm2660_vm6, %v2652_v4, %v2668_v26 }
 0x77c   : > { %v2367_v55 = vpop.f32.mrf.mxu2 }
 0x77d   : > { %v2645_v23 = vmul.f32 %v5279_v52, %v2630_v50  ;;  %v2378_v22 = vmul.f32 %v5128_v48, %v2367_v55 }
 0x77f   : > { %v2653_v35 = vadd.f32 %v5286_v8, %v2645_v23  ;;  %v2386_v34 = vadd.f32 %v5142_v25, %v2378_v22 }
 0x781   : > { %vm2661_vm7 = vcmp.gt.f32.partialorder %v2653_v35, 0.0  ;;  %v2669_v33 = vmul.f32 0.2, %v2653_v35  ;;  %vm2394_vm8 = vcmp.gt.f32.partialorder %v2386_v34, 0.0  ;;  %v2402_v24 = vmul.f32 0.2, %v2386_v34 }
 0x782   : > { %v2632_v29 = vpop.f32.mrf.mxu0 }
 0x783   : > { %v2410_v21 = vsel %vm2394_vm8, %v2386_v34, %v2402_v24  ;;  %v2633_v5 = vadd.f32 %v2632_v29, %v4451_v36  ;;  %v2677_v59 = vsel %vm2661_vm7, %v2653_v35, %v2669_v33 }
 0x784   : > { %v5431_v32 = vmax.f32 %v2063_v3, %v2410_v21  ;;  %v2683_v2 = vpack.c.bf16 %v2677_v59, %v2676_v30  ;;  %v5443_v29 = vpop.f32.mrf.mxu2 }
 0x785   : > { %v2646_v51 = vmul.f32 %v5279_v52, %v2633_v5 }
 0x786   : > { %3785 = vmatmul.msk.bf16.gmra.mxu1 %vm409_vm0, %v2683_v2 }
 0x787   : > { %v2654_v55 = vadd.f32 %v5286_v8, %v2646_v51 }
 0x789   : > { %v2670_v34 = vmul.f32 0.2, %v2654_v55  ;;  %vm2662_vm9 = vcmp.gt.f32.partialorder %v2654_v55, 0.0 }
 0x78a   : > { %v2634_v50 = vpop.f32.mrf.mxu0 }
 0x78b   : > { %v2635_v23 = vadd.f32 %v2634_v50, %v4457_v14  ;;  %v2678_v0 = vsel %vm2662_vm9, %v2654_v55, %v2670_v34 }
 0x78d   : > { %v2647_v22 = vmul.f32 %v5279_v52, %v2635_v23 }
 0x78f   : > { %v2655_v4 = vadd.f32 %v5286_v8, %v2647_v22 }
 0x791   : > { %vm2663_vm10 = vcmp.gt.f32.partialorder %v2655_v4, 0.0  ;;  %v2671_v47 = vmul.f32 0.2, %v2655_v4 }
 0x793   : > { %v2679_v3 = vsel %vm2663_vm10, %v2655_v4, %v2671_v47 }
 0x794   : > { %v2684_v26 = vpack.c.bf16 %v2679_v3, %v2678_v0 }
 0x796   : > { %3786 = vmatmul.msk.bf16.gmra.mxu1 %vm409_vm0, %v2684_v26 }
 0x7b9   : > { %v3140_v35 = vpop.xlane.xlu2 %3139 }
 0x7ba   : > { %vm3162_vm11 = vcmp.eq.f32.partialorder %v5345_v37, %v3140_v35 }
 0x7bb   : > { %v3170_v33 = vsel %vm3162_vm11, %v4186_v58, -64.0 }
 0x7bc   : > { %v3178_v24 = vsel %vm635_vm1, %v3170_v33, -inf }
 0x7bd   : > { %3179 = vmax.xlane.f32.xlu1 %v3178_v24 }
 0x7c1   : > { %v3143_v21 = vpop.xlane.xlu1 %3142  ;;  %v2846_v5 = vpop.xlane.xlu2 %2845 }
 0x7c2   : > { %vm3163_vm12 = vcmp.eq.f32.partialorder %v5354_v43, %v3143_v21  ;;  %v2854_v30 = vsub.f32 0.0, %v2846_v5 }
 0x7c3   : > { %v3171_v59 = vsel %vm3163_vm12, %v4186_v58, -64.0 }
 0x7c4   : > { %vm2862_vm13 = vcmp.eq.f32.partialorder %v4183_v57, %v2854_v30  ;;  %v3181_v2 = vsel %vm635_vm1, %v3171_v59, -inf }
 0x7c5   : > { %3182 = vmax.xlane.f32.xlu0 %v3181_v2  ;;  %v3795_v37 = vsel %vm2862_vm13, 1.0, %v5801_v6  ;;  %v5451_v51 = vsel %vm2862_vm13, -inf, %v5253_v62 }
 0x7c6   : > { %3803 = vmatmul.msk.f32.gmra.mxu2 %vm635_vm1, %v3795_v37  ;;  %v3159_v50 = vsel %vm635_vm1, %v5451_v51, -inf }
 0x7c7   : > { %3160 = vmax.xlane.f32.xlu1 %v3159_v50 }
 0x7c8   : > { %v2920_v43 = vpop.f32.mrf.mxu2 }
 0x7c9   : > { %v3146_v55 = vpop.xlane.xlu0 %3145  ;;  %v2944_v4 = vsub.f32 %v2920_v43, %v5263_v39 }
 0x7ca   : > { %vm3164_vm14 = vcmp.eq.f32.partialorder %v5364_v17, %v3146_v55 }
 0x7cb   : > { %v3172_v23 = vsel %vm3164_vm14, %v4186_v58, -64.0 }
 0x7cc   : > { %v3184_v22 = vsel %vm635_vm1, %v3172_v23, -inf }
 0x7cd   : > { %3185 = vmax.xlane.f32.xlu2 %v3184_v22 }
 0x7cf   : > { %v3149_v34 = vpop.xlane.xlu1 %3148 }
 0x7d0   : > { %vm3165_vm15 = vcmp.eq.f32.partialorder %v5379_v56, %v3149_v34  ;;  %v2923_v62 = vpop.f32.mrf.mxu2 }
 0x7d1   : > { %v2945_v47 = vsub.f32 %v2923_v62, %v5267_v46  ;;  %v3173_v0 = vsel %vm3165_vm15, %v4186_v58, -64.0 }
 0x7d2   : > { %v3187_v3 = vsel %vm635_vm1, %v3173_v0, -inf }
 0x7d3   : > { %v2952_v26 = vpack.c.bf16 %v2945_v47, %v2944_v4  ;;  %3188 = vmax.xlane.f32.xlu0 %v3187_v3 }
 0x7d5   : > { %3804 = vmatmul.msk.bf16.vlgmr.msrb.gmra.mxu3 %vm409_vm0, %v2952_v26 }
 0x7d7   : > { %v3152_v17 = vpop.xlane.xlu2 %3151 }
 0x7d8   : > { %vm3166_vm2 = vcmp.eq.f32.partialorder %v5388_v9, %v3152_v17  ;;  %v2926_v35 = vpop.f32.mrf.mxu2  ;;  %v5808_v17 = vld [vmem:[#allocation6_spill] sm:$0xff] }
 0x7d9   : > { %v3174_v33 = vsel %vm3166_vm2, %v4186_v58, -64.0  ;;  %v2946_v2 = vsub.f32 %v2926_v35, %v5293_v53  ;;  %v1308_v35 = vmul.f32 %v5128_v48, %v5808_v17 }
 0x7da   : > { %v3190_v56 = vsel %vm635_vm1, %v3174_v33, -inf }
 0x7db   : > { %v2637_v24 = vpop.f32.mrf.mxu0  ;;  %3191 = vmax.xlane.f32.xlu1 %v3190_v56 }
 0x7dc   : > { %v2638_v21 = vadd.f32 %v2637_v24, %v4488_v12 }
 0x7de   : > { %v2648_v30 = vmul.f32 %v5279_v52, %v2638_v21  ;;  %v5809_v21 = vld [vmem:[#allocation2_spill] sm:$0xff] }
 0x7df   : > { %v3155_v5 = vpop.xlane.xlu0 %3154 }
 0x7e0   : > { %vm3167_vm3 = vcmp.eq.f32.partialorder %v5398_v19, %v3155_v5  ;;  %v2929_v59 = vpop.f32.mrf.mxu2  ;;  %v2656_v23 = vadd.f32 %v5286_v8, %v2648_v30  ;;  %v958_v5 = vmul.f32 %v5128_v48, %v5809_v21  ;;  %v1316_v30 = vadd.f32 %v5142_v25, %v1308_v35 }
 0x7e1   : > { %v2947_v37 = vsub.f32 %v2929_v59, %v5297_v61  ;;  %v3175_v9 = vsel %vm3167_vm3, %v4186_v58, -64.0  ;;  %v2018_v59 = vmul.f32 %v5128_v48, %v5123_v60 }
 0x7e2   : > { %v3193_v50 = vsel %vm635_vm1, %v3175_v9, -inf  ;;  %v2672_v62 = vmul.f32 0.2, %v2656_v23  ;;  %vm2664_vm5 = vcmp.gt.f32.partialorder %v2656_v23, 0.0  ;;  %vm1324_vm7 = vcmp.gt.f32.partialorder %v1316_v30, 0.0 }
 0x7e3   : > { %v2953_v43 = vpack.c.bf16 %v2947_v37, %v2946_v2  ;;  %v2639_v55 = vpop.f32.mrf.mxu0  ;;  %3194 = vmax.xlane.f32.xlu2 %v3193_v50  ;;  %v969_v50 = vadd.f32 %v5142_v25, %v958_v5  ;;  %v5810_v5 = vld [vmem:[#allocation7_spill] sm:$0xff] }
 0x7e4   : > { %v2640_v22 = vadd.f32 %v2639_v55, %v4503_v28  ;;  %v2680_v33 = vsel %vm2664_vm5, %v2656_v23, %v2672_v62  ;;  %v2373_v55 = vmul.f32 %v5128_v48, %v5324_v20 }
 0x7e5   : > { %3805 = vmatmul.msk.bf16.gmra.mxu3 %vm409_vm0, %v2953_v43  ;;  %v985_v60 = vmul.f32 0.2, %v969_v50  ;;  %vm977_vm8 = vcmp.gt.f32.partialorder %v969_v50, 0.0 }
 0x7e6   : > { %v2649_v19 = vmul.f32 %v5279_v52, %v2640_v22  ;;  %v1332_v22 = vmul.f32 0.2, %v1316_v30 }
 0x7e7   : > { %v3158_v34 = vpop.xlane.xlu2 %3157 }
 0x7e8   : > { %v2657_v4 = vadd.f32 %v5286_v8, %v2649_v19  ;;  %vm3168_vm4 = vcmp.eq.f32.partialorder %v5410_v63, %v3158_v34  ;;  %v2932_v47 = vpop.f32.mrf.mxu2  ;;  %v1663_v63 = vmul.f32 %v5128_v48, %v4945_v41  ;;  %v2026_v19 = vadd.f32 %v5142_v25, %v2018_v59 }
 0x7e9   : > { %v3176_v0 = vsel %vm3168_vm4, %v4186_v58, -64.0  ;;  %v2948_v37 = vsub.f32 %v2932_v47, %v5309_v31 }
 0x7ea   : > { %vm2665_vm6 = vcmp.gt.f32.partialorder %v2657_v4, 0.0  ;;  %v2673_v3 = vmul.f32 0.2, %v2657_v4  ;;  %v3196_v26 = vsel %vm635_vm1, %v3176_v0, -inf  ;;  %v1671_v43 = vadd.f32 %v5142_v25, %v1663_v63 }
 0x7eb   : > { %3197 = vmax.xlane.f32.xlu0 %v3196_v26  ;;  %v1340_v0 = vsel %vm1324_vm7, %v1316_v30, %v1332_v22  ;;  %v2042_v20 = vmul.f32 0.2, %v2026_v19  ;;  %vm2034_vm11 = vcmp.gt.f32.partialorder %v2026_v19, 0.0  ;;  %v993_v26 = vsel %vm977_vm8, %v969_v50, %v985_v60  ;;  %v5812_v50 = vld [vmem:[#allocation10_spill] sm:$0xff] }
 0x7ec   : > { %v2681_v56 = vsel %vm2665_vm6, %v2657_v4, %v2673_v3  ;;  %v1687_v62 = vmul.f32 0.2, %v1671_v43  ;;  %v2381_v4 = vadd.f32 %v5142_v25, %v2373_v55  ;;  %vm1679_vm9 = vcmp.gt.f32.partialorder %v1671_v43, 0.0 }
 0x7ed   : > { %v2685_v24 = vpack.c.bf16 %v2681_v56, %v2680_v33  ;;  %v1348_v56 = vmax.f32 %v993_v26, %v1340_v0  ;;  %v1310_v63 = vmul.f32 %v5128_v48, %v5810_v5  ;;  %v2050_v59 = vsel %vm2034_vm11, %v2026_v19, %v2042_v20 }
 0x7ee   : > { %v1695_v17 = vsel %vm1679_vm9, %v1671_v43, %v1687_v62  ;;  %v2397_v35 = vmul.f32 0.2, %v2381_v4  ;;  %vm2389_vm12 = vcmp.gt.f32.partialorder %v2381_v4, 0.0  ;;  %v1665_v43 = vmul.f32 %v5128_v48, %v5812_v50 }
 0x7ef   : > { %3787 = vmatmul.msk.bf16.gmra.mxu1 %vm409_vm0, %v2685_v24  ;;  %v1318_v22 = vadd.f32 %v5142_v25, %v1310_v63  ;;  %v2375_v0 = vmul.f32 %v5128_v48, %v5333_v27 }
 0x7f0   : > { %v2935_v2 = vpop.f32.mrf.mxu2  ;;  %v2405_v55 = vsel %vm2389_vm12, %v2381_v4, %v2397_v35 }
 0x7f1   : > { %v2949_v9 = vsub.f32 %v2935_v2, %v5313_v54  ;;  %v1703_v2 = vmax.f32 %v1348_v56, %v1695_v17  ;;  %v1334_v26 = vmul.f32 0.2, %v1318_v22  ;;  %vm1326_vm14 = vcmp.gt.f32.partialorder %v1318_v22, 0.0 }
 0x7f3   : > { %v2954_v41 = vpack.c.bf16 %v2949_v9, %v2948_v37  ;;  %v2707_v23 = vpop.f32.mrf.mxu1  ;;  %v5811_v37 = vld [vmem:[#allocation3_spill] sm:$0xff]  ;;  %v1342_v27 = vsel %vm1326_vm14, %v1318_v22, %v1334_v26 }
 0x7f4   : > { %v2727_v34 = vmul.f32 %v5128_v48, %v2707_v23  ;;  %v960_v9 = vmul.f32 %v5128_v48, %v5811_v37  ;;  %v2058_v23 = vmax.f32 %v1703_v2, %v2050_v59 }
 0x7f5   : > { %3806 = vmatmul.msk.bf16.gmra.mxu3 %vm409_vm0, %v2954_v41 }
 0x7f6   : > { %v2735_v47 = vadd.f32 %v5142_v25, %v2727_v34  ;;  %v2020_v34 = vmul.f32 %v5128_v48, %v5136_v13  ;;  %v5519_v60 = vmax.f32 %v2058_v23, %v2405_v55  ;;  %v971_v62 = vadd.f32 %v5142_v25, %v960_v9 }
 0x7f8   : > { %vm2743_vm10 = vcmp.gt.f32.partialorder %v2735_v47, 0.0  ;;  %v2751_v3 = vmul.f32 0.2, %v2735_v47  ;;  %v2028_v13 = vadd.f32 %v5142_v25, %v2020_v34  ;;  %v987_v35 = vmul.f32 0.2, %v971_v62 }
 0x7f9   : > { %vm979_vm15 = vcmp.gt.f32.partialorder %v971_v62, 0.0 }
 0x7fa   : > { %v5504_v33 = vsel %vm2743_vm10, %v2735_v47, %v2751_v3  ;;  %v1673_v47 = vadd.f32 %v5142_v25, %v1665_v43  ;;  %v2044_v63 = vmul.f32 0.2, %v2028_v13  ;;  %vm2036_vm4 = vcmp.gt.f32.partialorder %v2028_v13, 0.0 }
 0x7fb   : > { %v2767_v24 = vmax.f32 %v5322_v16, %v5504_v33  ;;  %v2709_v21 = vpop.f32.mrf.mxu1 }
 0x7fc   : > { %v2728_v30 = vmul.f32 %v5128_v48, %v2709_v21  ;;  %v1689_v56 = vmul.f32 0.2, %v1673_v47  ;;  %v2383_v21 = vadd.f32 %v5142_v25, %v2375_v0  ;;  %vm1681_vm2 = vcmp.gt.f32.partialorder %v1673_v47, 0.0 }
 0x7fd   : > { %v2052_v55 = vsel %vm2036_vm4, %v2028_v13, %v2044_v63 }
 0x7fe   : > { %v2736_v41 = vadd.f32 %v5142_v25, %v2728_v30  ;;  %v995_v30 = vsel %vm979_vm15, %v971_v62, %v987_v35  ;;  %v1697_v2 = vsel %vm1681_vm2, %v1673_v47, %v1689_v56  ;;  %v2399_v37 = vmul.f32 0.2, %v2383_v21  ;;  %v5554_v35 = vld [vmem:[%s5789_s8] ss:$0 sm:$0xff] }
 0x7ff   : > { %vm2391_vm5 = vcmp.gt.f32.partialorder %v2383_v21, 0.0 }
 0x800   : > { %vm2744_vm13 = vcmp.gt.f32.partialorder %v2736_v41, 0.0  ;;  %v2752_v19 = vmul.f32 0.2, %v2736_v41  ;;  %v2407_v34 = vsel %vm2391_vm5, %v2383_v21, %v2399_v37 }
 0x802   : > { %v5525_v4 = vsel %vm2744_vm13, %v2736_v41, %v2752_v19  ;;  %v5540_v41 = vld [vmem:[%s5788_s7] ss:$0 sm:$0xff] }
 0x803   : > { %v2768_v20 = vmax.f32 %v5519_v60, %v5525_v4  ;;  %v2712_v3 = vpop.f32.mrf.mxu1  ;;  %v5814_v4 = vld [vmem:[#allocation8_spill] sm:$0xff] }
 0x804   : > { %v2729_v17 = vmul.f32 %v5128_v48, %v2712_v3  ;;  %v1350_v48 = vmax.f32 %v995_v30, %v1342_v27 }
 0x806   : > { %v2737_v5 = vadd.f32 %v5142_v25, %v2729_v17  ;;  %v1705_v22 = vmax.f32 %v1350_v48, %v1697_v2 }
 0x808   : > { %vm2745_vm3 = vcmp.gt.f32.partialorder %v2737_v5, 0.0  ;;  %v2753_v59 = vmul.f32 0.2, %v2737_v5  ;;  %v2060_v62 = vmax.f32 %v1705_v22, %v2052_v55  ;;  %v2938_v22 = vpop.f32.mrf.mxu2 }
 0x80a   : > { %v5533_v9 = vsel %vm2745_vm3, %v2737_v5, %v2753_v59  ;;  %v5544_v0 = vmax.f32 %v2060_v62, %v2407_v34 }
 0x80b   : > { %v2769_v50 = vmax.f32 %v5331_v18, %v5533_v9  ;;  %v2714_v43 = vpop.f32.mrf.mxu1  ;;  %v2377_v18 = vmul.f32 %v5540_v41, %v5415_v7 }
 0x80c   : > { %v2730_v23 = vmul.f32 %v5540_v41, %v2714_v43 }
 0x80e   : > { %v2738_v19 = vadd.f32 %v5142_v25, %v2730_v23 }
 0x810   : > { %vm2746_vm6 = vcmp.gt.f32.partialorder %v2738_v19, 0.0  ;;  %v2754_v47 = vmul.f32 0.2, %v2738_v19 }
 0x812   : > { %v5546_v3 = vsel %vm2746_vm6, %v2738_v19, %v2754_v47 }
 0x813   : > { %v2770_v26 = vmax.f32 %v5544_v0, %v5546_v3  ;;  %v2717_v13 = vpop.f32.mrf.mxu1 }
 0x814   : > { %v2731_v17 = vmul.f32 %v5540_v41, %v2717_v13 }
 0x816   : > { %v2739_v25 = vadd.f32 %v5554_v35, %v2731_v17 }
 0x818   : > { %vm2747_vm7 = vcmp.gt.f32.partialorder %v2739_v25, 0.0  ;;  %v2755_v56 = vmul.f32 0.2, %v2739_v25 }
 0x81a   : > { %v5557_v21 = vsel %vm2747_vm7, %v2739_v25, %v2755_v56 }
 0x81b   : > { %v2771_v5 = vmax.f32 %v5340_v49, %v5557_v21 }
 0x830   : > { %v3180_v27 = vpop.xlane.xlu1 %3179 }
 0x831   : > { %v3202_v63 = vsub.f32 0.0, %v3180_v27 }
 0x833   : > { %vm3210_vm8 = vcmp.eq.f32.partialorder %v4183_v57, %v3202_v63 }
 0x834   : > { %v3812_v59 = vsel %vm3210_vm8, 1.0, %v5801_v6 }
 0x835   : > { %3820 = vmatmul.msk.f32.vlgmr.msra.gmra.mxu1 %vm635_vm1, %v3812_v59 }
 0x838   : > { %v3183_v30 = vpop.xlane.xlu0 %3182 }
 0x839   : > { %v3203_v2 = vsub.f32 0.0, %v3183_v30 }
 0x83a   : > { %v3161_v37 = vpop.xlane.xlu1 %3160 }
 0x83b   : > { %vm3211_vm9 = vcmp.eq.f32.partialorder %v4183_v57, %v3203_v2  ;;  %vm3169_vm10 = vcmp.eq.f32.partialorder %v5451_v51, %v3161_v37 }
 0x83c   : > { %v3813_v48 = vsel %vm3211_vm9, 1.0, %v5801_v6  ;;  %v3177_v43 = vsel %vm3169_vm10, %v4186_v58, -64.0  ;;  %v2950_v58 = vsub.f32 %v2938_v22, %v5371_v11 }
 0x83d   : > { %3821 = vmatmul.msk.f32.gmra.mxu1 %vm635_vm1, %v3813_v48  ;;  %v3199_v55 = vsel %vm635_vm1, %v3177_v43, -inf }
 0x83e   : > { %3200 = vmax.xlane.f32.xlu1 %v3199_v55 }
 0x840   : > { %v3186_v23 = vpop.xlane.xlu2 %3185 }
 0x841   : > { %v3204_v34 = vsub.f32 0.0, %v3186_v23 }
 0x843   : > { %vm3212_vm11 = vcmp.eq.f32.partialorder %v4183_v57, %v3204_v34 }
 0x844   : > { %v3814_v19 = vsel %vm3212_vm11, 1.0, %v5801_v6 }
 0x845   : > { %3822 = vmatmul.msk.f32.gmra.mxu1 %vm635_vm1, %v3814_v19 }
 0x846   : > { %v3189_v62 = vpop.xlane.xlu0 %3188 }
 0x847   : > { %v3205_v51 = vsub.f32 0.0, %v3189_v62 }
 0x849   : > { %vm3213_vm12 = vcmp.eq.f32.partialorder %v4183_v57, %v3205_v51  ;;  %v2941_v47 = vpop.f32.mrf.mxu2  ;;  %v5591_v51 = vpop.f32.mrf.mxu1 }
 0x84a   : > { %v2951_v13 = vsub.f32 %v2941_v47, %v5375_v10  ;;  %v3815_v25 = vsel %vm3213_vm12, 1.0, %v5801_v6 }
 0x84c   : > { %v2955_v17 = vpack.c.bf16 %v2951_v13, %v2950_v58 }
 0x84d   : > { %3823 = vmatmul.msk.f32.gmra.mxu1 %vm635_vm1, %v3815_v25 }
 0x84e   : > { %v3192_v56 = vpop.xlane.xlu1 %3191  ;;  %3807 = vmatmul.msk.bf16.gmra.mxu3 %vm409_vm0, %v2955_v17 }
 0x84f   : > { %v3206_v27 = vsub.f32 0.0, %v3192_v56 }
 0x851   : > { %vm3214_vm13 = vcmp.eq.f32.partialorder %v4183_v57, %v3206_v27 }
 0x852   : > { %v3816_v63 = vsel %vm3214_vm13, 1.0, %v5801_v6 }
 0x855   : > { %3824 = vmatmul.msk.f32.gmra.mxu1 %vm635_vm1, %v3816_v63 }
 0x856   : > { %v3195_v59 = vpop.xlane.xlu2 %3194 }
 0x857   : > { %v3207_v30 = vsub.f32 0.0, %v3195_v59 }
 0x858   : > { %v2977_v2 = vpop.f32.mrf.mxu3 }
 0x859   : > { %vm3215_vm14 = vcmp.eq.f32.partialorder %v4183_v57, %v3207_v30  ;;  %v2978_v37 = vadd.f32 %v2977_v2, %v4376_v15 }
 0x85a   : > { %v3817_v48 = vsel %vm3215_vm14, 1.0, %v5801_v6 }
 0x85b   : > { %v2997_v43 = vmul.f32 %v5279_v52, %v2978_v37 }
 0x85d   : > { %3825 = vmatmul.msk.f32.gmra.mxu1 %vm635_vm1, %v3817_v48  ;;  %v3005_v34 = vadd.f32 %v5286_v8, %v2997_v43 }
 0x85e   : > { %v3198_v55 = vpop.xlane.xlu0 %3197 }
 0x85f   : > { %v3208_v23 = vsub.f32 0.0, %v3198_v55  ;;  %v3021_v58 = vmul.f32 0.2, %v3005_v34  ;;  %vm3013_vm2 = vcmp.gt.f32.partialorder %v3005_v34, 0.0 }
 0x860   : > { %v2979_v22 = vpop.f32.mrf.mxu3 }
 0x861   : > { %vm3216_vm15 = vcmp.eq.f32.partialorder %v4183_v57, %v3208_v23  ;;  %v2980_v19 = vadd.f32 %v2979_v22, %v4404_v38  ;;  %v3029_v56 = vsel %vm3013_vm2, %v3005_v34, %v3021_v58 }
 0x862   : > { %v3818_v47 = vsel %vm3216_vm15, 1.0, %v5801_v6 }
 0x863   : > { %v2998_v62 = vmul.f32 %v5279_v52, %v2980_v19 }
 0x865   : > { %v3006_v13 = vadd.f32 %v5286_v8, %v2998_v62  ;;  %3826 = vmatmul.msk.f32.gmra.mxu1 %vm635_vm1, %v3818_v47 }
 0x867   : > { %vm3014_vm3 = vcmp.gt.f32.partialorder %v3006_v13, 0.0  ;;  %v3022_v17 = vmul.f32 0.2, %v3006_v13 }
 0x868   : > { %v2982_v25 = vpop.f32.mrf.mxu3 }
 0x869   : > { %v3030_v27 = vsel %vm3014_vm3, %v3006_v13, %v3022_v17  ;;  %v2983_v63 = vadd.f32 %v2982_v25, %v4423_v44 }
 0x86a   : > { %v3037_v59 = vpack.c.bf16 %v3030_v27, %v3029_v56 }
 0x86b   : > { %v2999_v2 = vmul.f32 %v5279_v52, %v2983_v63 }
 0x86c   : > { %v2722_v30 = vpop.f32.mrf.mxu1  ;;  %3808 = vmatmul.msk.bf16.vlgmr.msra.gmra.mxu0 %vm409_vm0, %v3037_v59 }
 0x86d   : > { %v2733_v37 = vmul.f32 %v5540_v41, %v2722_v30  ;;  %v3007_v55 = vadd.f32 %v5286_v8, %v2999_v2 }
 0x86f   : > { %v2741_v48 = vadd.f32 %v5554_v35, %v2733_v37  ;;  %v3023_v47 = vmul.f32 0.2, %v3007_v55  ;;  %vm3015_vm5 = vcmp.gt.f32.partialorder %v3007_v55, 0.0 }
 0x870   : > { %v2984_v43 = vpop.f32.mrf.mxu3 }
 0x871   : > { %vm2749_vm4 = vcmp.gt.f32.partialorder %v2741_v48, 0.0  ;;  %v2757_v23 = vmul.f32 0.2, %v2741_v48  ;;  %v2985_v22 = vadd.f32 %v2984_v43, %v4441_v45  ;;  %v3031_v56 = vsel %vm3015_vm5, %v3007_v55, %v3023_v47 }
 0x873   : > { %v5603_v34 = vsel %vm2749_vm4, %v2741_v48, %v2757_v23  ;;  %v3000_v19 = vmul.f32 %v5279_v52, %v2985_v22 }
 0x874   : > { %v2773_v62 = vmax.f32 %v5431_v32, %v5603_v34 }
 0x875   : > { %v3008_v58 = vadd.f32 %v5286_v8, %v3000_v19 }
 0x877   : > { %vm3016_vm6 = vcmp.gt.f32.partialorder %v3008_v58, 0.0  ;;  %v3024_v13 = vmul.f32 0.2, %v3008_v58 }
 0x878   : > { %v2987_v17 = vpop.f32.mrf.mxu3 }
 0x879   : > { %v2988_v25 = vadd.f32 %v2987_v17, %v4451_v36  ;;  %v3032_v27 = vsel %vm3016_vm6, %v3008_v58, %v3024_v13  ;;  %v5617_v58 = vpop.f32.mrf.mxu1 }
 0x87a   : > { %v3038_v63 = vpack.c.bf16 %v3032_v27, %v3031_v56 }
 0x87b   : > { %v3001_v59 = vmul.f32 %v5279_v52, %v2988_v25 }
 0x87c   : > { %3809 = vmatmul.msk.bf16.gmra.mxu0 %vm409_vm0, %v3038_v63 }
 0x87d   : > { %v3009_v2 = vadd.f32 %v5286_v8, %v3001_v59 }
 0x87f   : > { %v3025_v43 = vmul.f32 0.2, %v3009_v2  ;;  %vm3017_vm7 = vcmp.gt.f32.partialorder %v3009_v2, 0.0 }
 0x880   : > { %v2989_v30 = vpop.f32.mrf.mxu3 }
 0x881   : > { %v2990_v37 = vadd.f32 %v2989_v30, %v4457_v14  ;;  %v3033_v55 = vsel %vm3017_vm7, %v3009_v2, %v3025_v43 }
 0x883   : > { %v3002_v48 = vmul.f32 %v5279_v52, %v2990_v37 }
 0x885   : > { %v3010_v23 = vadd.f32 %v5286_v8, %v3002_v48 }
 0x887   : > { %vm3018_vm8 = vcmp.gt.f32.partialorder %v3010_v23, 0.0  ;;  %v3026_v22 = vmul.f32 0.2, %v3010_v23 }
 0x889   : > { %v3034_v19 = vsel %vm3018_vm8, %v3010_v23, %v3026_v22 }
 0x88a   : > { %v3039_v47 = vpack.c.bf16 %v3034_v19, %v3033_v55 }
 0x88c   : > { %3810 = vmatmul.msk.bf16.gmra.mxu0 %vm409_vm0, %v3039_v47 }
 0x8b1   : > { %v3201_v13 = vpop.xlane.xlu1 %3200 }
 0x8b2   : > { %v3209_v17 = vsub.f32 0.0, %v3201_v13  ;;  %v3275_v25 = vpop.f32.mrf.mxu1 }
 0x8b3   : > { %v3299_v63 = vsub.f32 %v3275_v25, %v5263_v39 }
 0x8b4   : > { %vm3217_vm9 = vcmp.eq.f32.partialorder %v4183_v57, %v3209_v17 }
 0x8b5   : > { %v3819_v56 = vsel %vm3217_vm9, 1.0, %v5801_v6 }
 0x8b6   : > { %3827 = vmatmul.msk.f32.gmra.mxu1 %vm635_vm1, %v3819_v56 }
 0x8ba   : > { %v3278_v27 = vpop.f32.mrf.mxu1 }
 0x8bb   : > { %v3300_v59 = vsub.f32 %v3278_v27, %v5267_v46 }
 0x8bd   : > { %v3307_v30 = vpack.c.bf16 %v3300_v59, %v3299_v63 }
 0x8bf   : > { %3828 = vmatmul.msk.bf16.vlgmr.msra.gmra.mxu2 %vm409_vm0, %v3307_v30 }
 0x8c2   : > { %v3281_v2 = vpop.f32.mrf.mxu1 }
 0x8c3   : > { %v3301_v48 = vsub.f32 %v3281_v2, %v5293_v53 }
 0x8ca   : > { %v3284_v37 = vpop.f32.mrf.mxu1 }
 0x8cb   : > { %v3302_v43 = vsub.f32 %v3284_v37, %v5297_v61 }
 0x8cd   : > { %v3308_v23 = vpack.c.bf16 %v3302_v43, %v3301_v48 }
 0x8cf   : > { %3829 = vmatmul.msk.bf16.gmra.mxu2 %vm409_vm0, %v3308_v23 }
 0x8d1   : > { %v2992_v57 = vpop.f32.mrf.mxu3 }
 0x8d2   : > { %v2993_v6 = vadd.f32 %v2992_v57, %v4488_v12  ;;  %v3287_v22 = vpop.f32.mrf.mxu1 }
 0x8d3   : > { %v3303_v13 = vsub.f32 %v3287_v22, %v5309_v31 }
 0x8d4   : > { %v3003_v39 = vmul.f32 %v5279_v52, %v2993_v6 }
 0x8d6   : > { %v3011_v46 = vadd.f32 %v5286_v8, %v3003_v39 }
 0x8d8   : > { %v3027_v25 = vmul.f32 0.2, %v3011_v46  ;;  %vm3019_vm1 = vcmp.gt.f32.partialorder %v3011_v46, 0.0 }
 0x8d9   : > { %v2994_v55 = vpop.f32.mrf.mxu3 }
 0x8da   : > { %v2995_v19 = vadd.f32 %v2994_v55, %v4503_v28  ;;  %v3290_v47 = vpop.f32.mrf.mxu1  ;;  %v3035_v63 = vsel %vm3019_vm1, %v3011_v46, %v3027_v25 }
 0x8db   : > { %v3304_v53 = vsub.f32 %v3290_v47, %v5313_v54 }
 0x8dc   : > { %v3004_v61 = vmul.f32 %v5279_v52, %v2995_v19 }
 0x8dd   : > { %v3309_v17 = vpack.c.bf16 %v3304_v53, %v3303_v13 }
 0x8de   : > { %v3012_v56 = vadd.f32 %v5286_v8, %v3004_v61 }
 0x8df   : > { %3830 = vmatmul.msk.bf16.gmra.mxu2 %vm409_vm0, %v3309_v17 }
 0x8e0   : > { %vm3020_vm10 = vcmp.gt.f32.partialorder %v3012_v56, 0.0  ;;  %v3028_v27 = vmul.f32 0.2, %v3012_v56 }
 0x8e2   : > { %v3036_v59 = vsel %vm3020_vm10, %v3012_v56, %v3028_v27  ;;  %v3293_v2 = vpop.f32.mrf.mxu1 }
 0x8e3   : > { %v3040_v30 = vpack.c.bf16 %v3036_v59, %v3035_v63  ;;  %v3305_v54 = vsub.f32 %v3293_v2, %v5371_v11 }
 0x8e5   : > { %3811 = vmatmul.msk.bf16.gmra.mxu0 %vm409_vm0, %v3040_v30 }
 0x933   : > { %v3296_v31 = vpop.f32.mrf.mxu1 }
 0x934   : > { %v3306_v37 = vsub.f32 %v3296_v31, %v5375_v10 }
 0x936   : > { %v3310_v48 = vpack.c.bf16 %v3306_v37, %v3305_v54 }
 0x938   : > { %3831 = vmatmul.msk.bf16.gmra.mxu2 %vm409_vm0, %v3310_v48 }
 0x942   : > { %v3332_v43 = vpop.f32.mrf.mxu2 }
 0x943   : > { %v3333_v23 = vadd.f32 %v3332_v43, %v4376_v15 }
 0x945   : > { %v3352_v57 = vmul.f32 %v5279_v52, %v3333_v23 }
 0x947   : > { %v3360_v22 = vadd.f32 %v5286_v8, %v3352_v57 }
 0x949   : > { %v3376_v46 = vmul.f32 0.2, %v3360_v22  ;;  %vm3368_vm11 = vcmp.gt.f32.partialorder %v3360_v22, 0.0 }
 0x94a   : > { %v3334_v6 = vpop.f32.mrf.mxu2 }
 0x94b   : > { %v3335_v39 = vadd.f32 %v3334_v6, %v4404_v38  ;;  %v3384_v47 = vsel %vm3368_vm11, %v3360_v22, %v3376_v46  ;;  %v3916_v38 = vld [vmem:[%s5785_s4] ss:$0 sm:$0xff] }
 0x94d   : > { %v3353_v55 = vmul.f32 %v5279_v52, %v3335_v39 }
 0x94f   : > { %v3361_v11 = vadd.f32 %v5286_v8, %v3353_v55  ;;  %v3917_v8 = vld [vmem:[%s5786_s5] ss:$0 sm:$0xff] }
 0x951   : > { %vm3369_vm12 = vcmp.gt.f32.partialorder %v3361_v11, 0.0  ;;  %v3377_v10 = vmul.f32 0.2, %v3361_v11 }
 0x952   : > { %v3337_v19 = vpop.f32.mrf.mxu2 }
 0x953   : > { %v3385_v13 = vsel %vm3369_vm12, %v3361_v11, %v3377_v10  ;;  %v3338_v15 = vadd.f32 %v3337_v19, %v4423_v44  ;;  %v3062_v19 = vpop.f32.mrf.mxu0 }
 0x954   : > { %v3392_v53 = vpack.c.bf16 %v3385_v13, %v3384_v47 }
 0x955   : > { %v3354_v61 = vmul.f32 %v3916_v38, %v3338_v15 }
 0x956   : > { %3832 = vmatmul.msk.bf16.vlgmr.msra.gmra.mxu3 %vm409_vm0, %v3392_v53 }
 0x957   : > { %v3362_v17 = vadd.f32 %v3917_v8, %v3354_v61 }
 0x959   : > { %v3378_v27 = vmul.f32 0.2, %v3362_v17  ;;  %vm3370_vm13 = vcmp.gt.f32.partialorder %v3362_v17, 0.0 }
 0x95a   : > { %v3339_v52 = vpop.f32.mrf.mxu2 }
 0x95b   : > { %v3340_v25 = vadd.f32 %v3339_v52, %v4441_v45  ;;  %v3386_v2 = vsel %vm3370_vm13, %v3362_v17, %v3378_v27 }
 0x95d   : > { %v3355_v56 = vmul.f32 %v3916_v38, %v3340_v25 }
 0x95f   : > { %v3363_v63 = vadd.f32 %v3917_v8, %v3355_v56  ;;  %v3064_v56 = vpop.f32.mrf.mxu0 }
 0x961   : > { %vm3371_vm14 = vcmp.gt.f32.partialorder %v3363_v63, 0.0  ;;  %v3379_v44 = vmul.f32 0.2, %v3363_v63 }
 0x962   : > { %v3342_v59 = vpop.f32.mrf.mxu2 }
 0x963   : > { %v3343_v30 = vadd.f32 %v3342_v59, %v4451_v36  ;;  %v3387_v31 = vsel %vm3371_vm14, %v3363_v63, %v3379_v44 }
 0x964   : > { %v3393_v54 = vpack.c.bf16 %v3387_v31, %v3386_v2 }
 0x965   : > { %v3356_v37 = vmul.f32 %v3916_v38, %v3343_v30 }
 0x966   : > { %3833 = vmatmul.msk.bf16.gmra.mxu3 %vm409_vm0, %v3393_v54 }
 0x967   : > { %v3364_v43 = vadd.f32 %v3917_v8, %v3356_v37  ;;  %v3067_v44 = vpop.f32.mrf.mxu0 }
 0x969   : > { %v3380_v57 = vmul.f32 0.2, %v3364_v43  ;;  %vm3372_vm15 = vcmp.gt.f32.partialorder %v3364_v43, 0.0 }
 0x96a   : > { %v3344_v48 = vpop.f32.mrf.mxu2 }
 0x96b   : > { %v3345_v23 = vadd.f32 %v3344_v48, %v4457_v14  ;;  %v3388_v39 = vsel %vm3372_vm15, %v3364_v43, %v3380_v57  ;;  %v3084_v43 = vmul.f32 %v5540_v41, %v3067_v44 }
 0x96d   : > { %v3357_v45 = vmul.f32 %v3916_v38, %v3345_v23  ;;  %v3092_v33 = vadd.f32 %v5554_v35, %v3084_v43  ;;  %v2732_v43 = vmul.f32 %v5540_v41, %v5591_v51 }
 0x96f   : > { %v3365_v6 = vadd.f32 %v3917_v8, %v3357_v45  ;;  %v3069_v45 = vpop.f32.mrf.mxu0  ;;  %vm3100_vm9 = vcmp.gt.f32.partialorder %v3092_v33, 0.0 }
 0x971   : > { %vm3373_vm2 = vcmp.gt.f32.partialorder %v3365_v6, 0.0  ;;  %v3381_v22 = vmul.f32 0.2, %v3365_v6 }
 0x973   : > { %v3389_v55 = vsel %vm3373_vm2, %v3365_v6, %v3381_v22 }
 0x974   : > { %v3394_v46 = vpack.c.bf16 %v3389_v55, %v3388_v39 }
 0x976   : > { %3834 = vmatmul.msk.bf16.gmra.mxu3 %vm409_vm0, %v3394_v46  ;;  %v3108_v46 = vmul.f32 0.2, %v3092_v33 }
 0x9bb   : > { %v3347_v36 = vpop.f32.mrf.mxu2 }
 0x9bc   : > { %v3348_v11 = vadd.f32 %v3347_v36, %v4488_v12  ;;  %v3082_v12 = vmul.f32 %v5540_v41, %v3062_v19  ;;  %v3085_v36 = vmul.f32 %v5540_v41, %v3069_v45 }
 0x9be   : > { %v3358_v10 = vmul.f32 %v3916_v38, %v3348_v11  ;;  %v3090_v63 = vadd.f32 %v5554_v35, %v3082_v12 }
 0x9c0   : > { %v3366_v13 = vadd.f32 %v3917_v8, %v3358_v10  ;;  %v3106_v59 = vmul.f32 0.2, %v3090_v63  ;;  %vm3098_vm5 = vcmp.gt.f32.partialorder %v3090_v63, 0.0 }
 0x9c2   : > { %v3382_v53 = vmul.f32 0.2, %v3366_v13  ;;  %vm3374_vm3 = vcmp.gt.f32.partialorder %v3366_v13, 0.0  ;;  %v3114_v30 = vsel %vm3098_vm5, %v3090_v63, %v3106_v59 }
 0x9c3   : > { %v3349_v47 = vpop.f32.mrf.mxu2  ;;  %v3122_v37 = vmax.f32 %v2767_v24, %v3114_v30 }
 0x9c4   : > { %v3350_v14 = vadd.f32 %v3349_v47, %v4503_v28  ;;  %v3390_v17 = vsel %vm3374_vm3, %v3366_v13, %v3382_v53  ;;  %v3083_v28 = vmul.f32 %v5540_v41, %v3064_v56  ;;  %v3072_v13 = vpop.f32.mrf.mxu0 }
 0x9c5   : > { %v3086_v12 = vmul.f32 %v5540_v41, %v3072_v13 }
 0x9c6   : > { %v3359_v15 = vmul.f32 %v3916_v38, %v3350_v14  ;;  %v3091_v2 = vadd.f32 %v5554_v35, %v3083_v28  ;;  %v3116_v14 = vsel %vm3100_vm9, %v3092_v33, %v3108_v46 }
 0x9c7   : > { %v3124_v56 = vmax.f32 %v2769_v50, %v3116_v14  ;;  %v3094_v50 = vadd.f32 %v5554_v35, %v3086_v12 }
 0x9c8   : > { %v3367_v61 = vadd.f32 %v3917_v8, %v3359_v15  ;;  %v3107_v48 = vmul.f32 0.2, %v3091_v2  ;;  %vm3099_vm7 = vcmp.gt.f32.partialorder %v3091_v2, 0.0  ;;  %v3093_v15 = vadd.f32 %v5554_v35, %v3085_v36 }
 0x9c9   : > { %vm3102_vm15 = vcmp.gt.f32.partialorder %v3094_v50, 0.0 }
 0x9ca   : > { %vm3375_vm4 = vcmp.gt.f32.partialorder %v3367_v61, 0.0  ;;  %v3383_v52 = vmul.f32 0.2, %v3367_v61  ;;  %v3115_v16 = vsel %vm3099_vm7, %v3091_v2, %v3107_v48  ;;  %vm3101_vm10 = vcmp.gt.f32.partialorder %v3093_v15, 0.0 }
 0x9cb   : > { %v3123_v55 = vmax.f32 %v2768_v20, %v3115_v16  ;;  %v1312_v20 = vmul.f32 %v5540_v41, %v5814_v4 }
 0x9cc   : > { %v3391_v25 = vsel %vm3375_vm4, %v3367_v61, %v3383_v52  ;;  %v5813_v61 = vld [vmem:[#allocation4_spill] sm:$0xff]  ;;  %v3074_v48 = vpop.f32.mrf.mxu0 }
 0x9cd   : > { %v3395_v27 = vpack.c.bf16 %v3391_v25, %v3390_v17  ;;  %v962_v60 = vmul.f32 %v5540_v41, %v5813_v61  ;;  %v5815_v17 = vld [vmem:[#allocation11_spill] sm:$0xff]  ;;  %v1320_v59 = vadd.f32 %v5554_v35, %v1312_v20 }
 0x9ce   : > { %v1667_v25 = vmul.f32 %v5540_v41, %v5815_v17 }
 0x9cf   : > { %3835 = vmatmul.msk.bf16.gmra.mxu3 %vm409_vm0, %v3395_v27  ;;  %v3109_v27 = vmul.f32 0.2, %v3093_v15  ;;  %v973_v44 = vadd.f32 %v5554_v35, %v962_v60  ;;  %vm1328_vm13 = vcmp.gt.f32.partialorder %v1320_v59, 0.0 }
 0x9d0   : > { %v1675_v2 = vadd.f32 %v5554_v35, %v1667_v25 }
 0x9d1   : > { %v3117_v9 = vsel %vm3101_vm10, %v3093_v15, %v3109_v27  ;;  %vm981_vm11 = vcmp.gt.f32.partialorder %v973_v44, 0.0 }
 0x9d2   : > { %vm1683_vm14 = vcmp.gt.f32.partialorder %v1675_v2, 0.0  ;;  %v1691_v45 = vmul.f32 0.2, %v1675_v2  ;;  %v3125_v7 = vmax.f32 %v2770_v26, %v3117_v9 }
 0x9d4   : > { %v1699_v0 = vsel %vm1683_vm14, %v1675_v2, %v1691_v45  ;;  %v2734_v45 = vmul.f32 %v5540_v41, %v5617_v58 }
 0x9d9   : > { %v3417_v38 = vpop.f32.mrf.mxu3 }
 0x9da   : > { %v3437_v8 = vmul.f32 %v5540_v41, %v3417_v38 }
 0x9dc   : > { %v3445_v31 = vadd.f32 %v5554_v35, %v3437_v8  ;;  %v2022_v8 = vmul.f32 %v5540_v41, %v5226_v1 }
 0x9de   : > { %vm3453_vm6 = vcmp.gt.f32.partialorder %v3445_v31, 0.0  ;;  %v3461_v54 = vmul.f32 0.2, %v3445_v31  ;;  %v2030_v1 = vadd.f32 %v5554_v35, %v2022_v8 }
 0x9e0   : > { %v3469_v23 = vsel %vm3453_vm6, %v3445_v31, %v3461_v54  ;;  %v989_v54 = vmul.f32 0.2, %v973_v44  ;;  %vm2038_vm2 = vcmp.gt.f32.partialorder %v2030_v1, 0.0 }
 0x9e1   : > { %v3477_v57 = vmax.f32 %v3122_v37, %v3469_v23  ;;  %v3419_v6 = vpop.f32.mrf.mxu3  ;;  %v1336_v37 = vmul.f32 0.2, %v1320_v59 }
 0x9e2   : > { %v3438_v22 = vmul.f32 %v5540_v41, %v3419_v6  ;;  %v3110_v6 = vmul.f32 0.2, %v3094_v50  ;;  %v997_v36 = vsel %vm981_vm11, %v973_v44, %v989_v54 }
 0x9e3   : > { %3485 = vst.msk [vmem:[%s5677_s27] sm:$0xff] %vm409_vm0, %v3477_v57  ;;  %v2385_v57 = vadd.f32 %v5554_v35, %v2377_v18  ;;  %v1344_v51 = vsel %vm1328_vm13, %v1320_v59, %v1336_v37  ;;  %v1669_v18 = vmul.f32 %v5540_v41, %v5062_v42 }
 0x9e4   : > { %v3446_v24 = vadd.f32 %v5554_v35, %v3438_v22  ;;  %v3087_v22 = vmul.f32 %v5540_v41, %v3074_v48  ;;  %v3118_v26 = vsel %vm3102_vm15, %v3094_v50, %v3110_v6  ;;  %v2379_v48 = vmul.f32 %v5540_v41, %v5443_v29 }
 0x9e5   : > { %v2401_v3 = vmul.f32 0.2, %v2385_v57  ;;  %vm2393_vm3 = vcmp.gt.f32.partialorder %v2385_v57, 0.0  ;;  %v1677_v37 = vadd.f32 %v5554_v35, %v1669_v18 }
 0x9e6   : > { %vm3454_vm8 = vcmp.gt.f32.partialorder %v3446_v24, 0.0  ;;  %v3462_v39 = vmul.f32 0.2, %v3446_v24 }
 0x9e7   : > { %v2409_v61 = vsel %vm2393_vm3, %v2385_v57, %v2401_v3  ;;  %v2387_v57 = vadd.f32 %v5554_v35, %v2379_v48 }
 0x9e8   : > { %v3470_v11 = vsel %vm3454_vm8, %v3446_v24, %v3462_v39  ;;  %v2046_v39 = vmul.f32 0.2, %v2030_v1 }
 0x9e9   : > { %v3478_v10 = vmax.f32 %v3123_v55, %v3470_v11  ;;  %v3422_v19 = vpop.f32.mrf.mxu3  ;;  %v2740_v55 = vadd.f32 %v5554_v35, %v2732_v43  ;;  %v3095_v11 = vadd.f32 %v5554_v35, %v3087_v22 }
 0x9ea   : > { %v3439_v47 = vmul.f32 %v5540_v41, %v3422_v19  ;;  %v1352_v19 = vmax.f32 %v997_v36, %v1344_v51 }
 0x9eb   : > { %3486 = vst.msk [vmem:[%s5677_s27 + $0x8] sm:$0xff] %vm409_vm0, %v3478_v10  ;;  %v2756_v13 = vmul.f32 0.2, %v2740_v55  ;;  %vm2748_vm5 = vcmp.gt.f32.partialorder %v2740_v55, 0.0  ;;  %v3111_v60 = vmul.f32 0.2, %v3095_v11 }
 0x9ec   : > { %v3447_v53 = vadd.f32 %v5554_v35, %v3439_v47  ;;  %v2054_v47 = vsel %vm2038_vm2, %v2030_v1, %v2046_v39  ;;  %v1707_v15 = vmax.f32 %v1352_v19, %v1699_v0  ;;  %vm3103_vm6 = vcmp.gt.f32.partialorder %v3095_v11, 0.0 }
 0x9ed   : > { %v2764_v25 = vsel %vm2748_vm5, %v2740_v55, %v2756_v13  ;;  %v3119_v12 = vsel %vm3103_vm6, %v3095_v11, %v3111_v60  ;;  %v2403_v55 = vmul.f32 0.2, %v2387_v57 }
 0x9ee   : > { %vm3455_vm1 = vcmp.gt.f32.partialorder %v3447_v53, 0.0  ;;  %v3463_v52 = vmul.f32 0.2, %v3447_v53  ;;  %v2062_v20 = vmax.f32 %v1707_v15, %v2054_v47 }
 0x9f0   : > { %v3471_v63 = vsel %vm3455_vm1, %v3447_v53, %v3463_v52  ;;  %v3126_v53 = vmax.f32 %v2771_v5, %v3118_v26  ;;  %v2417_v27 = vmax.f32 %v2062_v20, %v2409_v61  ;;  %vm1685_vm1 = vcmp.gt.f32.partialorder %v1677_v37, 0.0 }
 0x9f1   : > { %v3479_v28 = vmax.f32 %v3124_v56, %v3471_v63  ;;  %v3424_v38 = vpop.f32.mrf.mxu3 }
 0x9f2   : > { %v3440_v30 = vmul.f32 %v5540_v41, %v3424_v38  ;;  %v2772_v44 = vmax.f32 %v2417_v27, %v2764_v25  ;;  %v5816_v38 = vld [vmem:[#allocation9_spill] sm:$0xff] }
 0x9f3   : > { %3487 = vst.msk [vmem:[%s5677_s27 + $0x10] sm:$0xff] %vm409_vm0, %v3479_v28  ;;  %v3077_v28 = vpop.f32.mrf.mxu0  ;;  %v1314_v8 = vmul.f32 %v5540_v41, %v5816_v38 }
 0x9f4   : > { %v3448_v31 = vadd.f32 %v5554_v35, %v3440_v30  ;;  %v3127_v21 = vmax.f32 %v2772_v44, %v3119_v12  ;;  %v5817_v30 = vld [vmem:[#allocation5_spill] sm:$0xff]  ;;  %v3088_v9 = vmul.f32 %v5540_v41, %v3077_v28 }
 0x9f5   : > { %v964_v2 = vmul.f32 %v5540_v41, %v5817_v30  ;;  %v1322_v50 = vadd.f32 %v5554_v35, %v1314_v8 }
 0x9f6   : > { %vm3456_vm12 = vcmp.gt.f32.partialorder %v3448_v31, 0.0  ;;  %v3464_v23 = vmul.f32 0.2, %v3448_v31  ;;  %v3096_v1 = vadd.f32 %v5554_v35, %v3088_v9 }
 0x9f7   : > { %v975_v54 = vadd.f32 %v5554_v35, %v964_v2  ;;  %vm1330_vm9 = vcmp.gt.f32.partialorder %v1322_v50, 0.0 }
 0x9f8   : > { %v3472_v16 = vsel %vm3456_vm12, %v3448_v31, %v3464_v23  ;;  %v2024_v31 = vmul.f32 %v5540_v41, %v5245_v40  ;;  %v1338_v23 = vmul.f32 0.2, %v1322_v50  ;;  %v1693_v40 = vmul.f32 0.2, %v1677_v37 }
 0x9f9   : > { %v3480_v33 = vmax.f32 %v3125_v7, %v3472_v16  ;;  %v3427_v24 = vpop.f32.mrf.mxu3  ;;  %vm983_vm8 = vcmp.gt.f32.partialorder %v975_v54, 0.0  ;;  %v991_v7 = vmul.f32 0.2, %v975_v54  ;;  %v3112_v6 = vmul.f32 0.2, %v3096_v1 }
 0x9fa   : > { %v3441_v46 = vmul.f32 %v5540_v41, %v3427_v24  ;;  %v2032_v42 = vadd.f32 %v5554_v35, %v2024_v31  ;;  %vm3104_vm10 = vcmp.gt.f32.partialorder %v3096_v1, 0.0  ;;  %v1346_v16 = vsel %vm1330_vm9, %v1322_v50, %v1338_v23 }
 0x9fb   : > { %3488 = vst.msk [vmem:[%s5677_s27 + $0x18] sm:$0xff] %vm409_vm0, %v3480_v33  ;;  %v3079_v43 = vpop.f32.mrf.mxu0  ;;  %v2742_v24 = vadd.f32 %v5554_v35, %v2734_v45  ;;  %v999_v39 = vsel %vm983_vm8, %v975_v54, %v991_v7  ;;  %v1701_v58 = vsel %vm1685_vm1, %v1677_v37, %v1693_v40  ;;  %vm2395_vm12 = vcmp.gt.f32.partialorder %v2387_v57, 0.0 }
 0x9fc   : > { %v3449_v10 = vadd.f32 %v5554_v35, %v3441_v46  ;;  %v3089_v22 = vmul.f32 %v5540_v41, %v3079_v43  ;;  %v2048_v33 = vmul.f32 0.2, %v2032_v42  ;;  %vm2040_vm11 = vcmp.gt.f32.partialorder %v2032_v42, 0.0 }
 0x9fd   : > { %v3120_v46 = vsel %vm3104_vm10, %v3096_v1, %v3112_v6  ;;  %v1354_v3 = vmax.f32 %v999_v39, %v1346_v16  ;;  %v2758_v11 = vmul.f32 0.2, %v2742_v24  ;;  %vm2750_vm14 = vcmp.gt.f32.partialorder %v2742_v24, 0.0 }
 0x9fe   : > { %vm3457_vm4 = vcmp.gt.f32.partialorder %v3449_v10, 0.0  ;;  %v3465_v14 = vmul.f32 0.2, %v3449_v10  ;;  %v3097_v36 = vadd.f32 %v5554_v35, %v3089_v22  ;;  %v2056_v26 = vsel %vm2040_vm11, %v2032_v42, %v2048_v33 }
 0x9ff   : > { %v1709_v19 = vmax.f32 %v1354_v3, %v1701_v58  ;;  %v3128_v47 = vmax.f32 %v2773_v62, %v3120_v46  ;;  %v2411_v13 = vsel %vm2395_vm12, %v2387_v57, %v2403_v55 }
 0xa00   : > { %v3473_v4 = vsel %vm3457_vm4, %v3449_v10, %v3465_v14  ;;  %v3113_v14 = vmul.f32 0.2, %v3097_v36  ;;  %vm3105_vm15 = vcmp.gt.f32.partialorder %v3097_v36, 0.0 }
 0xa01   : > { %v3481_v52 = vmax.f32 %v3126_v53, %v3473_v4  ;;  %v3429_v17 = vpop.f32.mrf.mxu3  ;;  %v2064_v53 = vmax.f32 %v1709_v19, %v2056_v26  ;;  %v2766_v4 = vsel %vm2750_vm14, %v2742_v24, %v2758_v11 }
 0xa02   : > { %v3442_v56 = vmul.f32 %v5540_v41, %v3429_v17  ;;  %v3121_v17 = vsel %vm3105_vm15, %v3097_v36, %v3113_v14 }
 0xa03   : > { %3489 = vst.msk [vmem:[%s5677_s27 + $0x20] sm:$0xff] %vm409_vm0, %v3481_v52  ;;  %v2419_v52 = vmax.f32 %v2064_v53, %v2411_v13 }
 0xa04   : > { %v3450_v63 = vadd.f32 %v5554_v35, %v3442_v56 }
 0xa05   : > { %v2774_v56 = vmax.f32 %v2419_v52, %v2766_v4 }
 0xa06   : > { %vm3458_vm7 = vcmp.gt.f32.partialorder %v3450_v63, 0.0  ;;  %v3466_v49 = vmul.f32 0.2, %v3450_v63 }
 0xa07   : > { %v3129_v34 = vmax.f32 %v2774_v56, %v3121_v17 }
 0xa08   : > { %v3474_v5 = vsel %vm3458_vm7, %v3450_v63, %v3466_v49 }
 0xa09   : > { %v3482_v59 = vmax.f32 %v3127_v21, %v3474_v5 }
 0xa0b   : > { %3490 = vst.msk [vmem:[%s5677_s27 + $0x28] sm:$0xff] %vm409_vm0, %v3482_v59 }
 0xa52   : > { %v3432_v29 = vpop.f32.mrf.mxu3 }
 0xa53   : > { %v3443_v51 = vmul.f32 %v5540_v41, %v3432_v29 }
 0xa55   : > { %v3451_v0 = vadd.f32 %v5554_v35, %v3443_v51 }
 0xa57   : > { %vm3459_vm13 = vcmp.gt.f32.partialorder %v3451_v0, 0.0  ;;  %v3467_v10 = vmul.f32 0.2, %v3451_v0 }
 0xa59   : > { %v3475_v15 = vsel %vm3459_vm13, %v3451_v0, %v3467_v10 }
 0xa5a   : > { %v3483_v61 = vmax.f32 %v3128_v47, %v3475_v15  ;;  %v3434_v60 = vpop.f32.mrf.mxu3 }
 0xa5b   : > { %v3444_v20 = vmul.f32 %v5540_v41, %v3434_v60 }
 0xa5c   : > { %3491 = vst.msk [vmem:[%s5677_s27 + $0x30] sm:$0xff] %vm409_vm0, %v3483_v61 }
 0xa5d   : > { %v3452_v25 = vadd.f32 %v5554_v35, %v3444_v20 }
 0xa5f   : > { %vm3460_vm2 = vcmp.gt.f32.partialorder %v3452_v25, 0.0  ;;  %v3468_v32 = vmul.f32 0.2, %v3452_v25 }
 0xa61   : > { %v3476_v62 = vsel %vm3460_vm2, %v3452_v25, %v3468_v32 }
 0xa62   : > { %v3484_v27 = vmax.f32 %v3129_v34, %v3476_v62 }
 0xa64   : > { %3492 = vst.msk [vmem:[%s5677_s27 + $0x38] sm:$0xff] %vm409_vm0, %v3484_v27 }
 0xa65 PF: > { %s19_s11 = sadd.s32 1, %s3940_s11   ;;  %s5818_s30 = smov %s3936_s10 }
 0xa66   : > { %p16_p5 = scmp.ge.s32.totalorder %s19_s11, 4   ;;  %s5819_s10 = smov %s5821_s12 }
 0xa68   :  { %18 = sbr.rel (!%p16_p5) target bundleno = 2 (0x2), region = 89 }

// kernel: dgcnn_seg_attention_forward.4
= control target key start
LH: loop header
LB: loop body
LE: loop exit
PB: predicated region body
PF: predicated region fallthrough
CT: control target
= control target key end

     0   :  { %s3982_s30 = smov 0   ;;  %s3984_s10 = smov 0   ;;  %s5764_s0 = inlined_call_operand.vmem [shape: f32[2,64,3], index: 0, kind: input, shape index: {}, may-alias: {0,1}]   ;;  %s5765_s1 = inlined_call_operand.vmem [shape: f32[2,64,3], index: 1, kind: input, shape index: {}, may-alias: {0,1}]   ;;  %s5766_s2 = inlined_call_operand.vmem [shape: bf16[3,16], index: 2, kind: input, shape index: {}]   ;;  %s5767_s3 = inlined_call_operand.vmem [shape: bf16[3,16], index: 3, kind: input, shape index: {}]   ;;  %s5768_s4 = inlined_call_operand.vmem [shape: f32[1,16], index: 4, kind: input, shape index: {}]   ;;  %s5769_s5 = inlined_call_operand.vmem [shape: f32[1,16], index: 5, kind: input, shape index: {}]   ;;  %s5770_s6 = inlined_call_operand.vmem [shape: bf16[16,16], index: 6, kind: input, shape index: {}]   ;;  %s5771_s7 = inlined_call_operand.vmem [shape: f32[1,16], index: 7, kind: input, shape index: {}]   ;;  %s5772_s8 = inlined_call_operand.vmem [shape: f32[1,16], index: 8, kind: input, shape index: {}]   ;;  %s5773_s9 = inlined_call_operand.vmem [shape: f32[2,64,16], index: 9, kind: output, shape index: {}]  }
   0x1   :  { %s3986_s11 = smov 0  }
   0x2 LB: > { %s31_s12 = sadd.s32 1, %s3923_s10  ;;  %p3593_p0 = scmp.ge.s32.totalorder %s3927_s11, 1  ;;  %s3927_s11 = sphi %s3986_s11, %s19_s11   ;;  %s3923_s10 = sphi %s3984_s10, %s5802_s10   ;;  %s3919_s30 = sphi %s3982_s30, %s5801_s30  }
   0x3   : > { %p33_p1 = scmp.ge.s32.totalorder %s31_s12, 2  ;;  %p318_p2 = scmp.lt.s32.totalorder %s3927_s11, 3 }
   0x5   : > { %s5804_s12 = smov (%p33_p1, %s31_s12), 0  ;;  %p319_p3 = pnand %p3593_p0, %p318_p2 }
   0x7   : > { %322 = sbr.rel (%p319_p3) target bundleno = 2661 (0xa65), region = 56 }
   0xc   : > { %p368_p4 = scmp.lt.s32.totalorder %s3919_s30, 1  ;;  %vm409_vm0 = vcmask 23552   ;;  %v3929_v17 = vmov 1.0   ;;  %vm634_vm1 = vcmask 523264   ;;  %v571_v55 = vlaneseq }
   0xe   : > { %s5806_s30 = smov (!%p368_p4, %s3919_s30), 1  ;;  %v572_v56 = vand.u32 127, %v571_v55 }
   0xf   : > { %s4000_s13 = sshll.u32 %s5806_s30, 6 }
  0x10   : > { %s4006_s16 = scalar_lea.vmem %s5765_s1, %s4000_s13  ;;  %s4083_s19 = scalar_lea.vmem %s5764_s0, %s4000_s13  ;;  %v4171_v57 = vcvt.s32.f32 %v572_v56 }
  0x11   : > { %v4009_v0 = vld [vmem:[%s4006_s16 + $0x38] sm:$0xff]  ;;  %v4012_v1 = vld [vmem:[%s4006_s16 + $0x30] sm:$0xff]  ;;  %v4024_v4 = vld [vmem:[%s4006_s16 + $0x28] sm:$0xff]  ;;  %s5660_s25 = scalar_lea.vmem %s5773_s9, %s4000_s13 }
  0x12   : > { %3600 = vmatpush.xpose.msk.msra.mxu0 %vm409_vm0, %v4009_v0  ;;  %v506_v2 = vmul.f32 %v4009_v0, %v4009_v0  ;;  %3831 = vmatpush.msra.mxu3 %v4009_v0  ;;  %v505_v3 = vmul.f32 %v4012_v1, %v4012_v1  ;;  %v4030_v5 = vld [vmem:[%s4006_s16 + $0x20] sm:$0xff]  ;;  %v504_v6 = vmul.f32 %v4024_v4, %v4024_v4  ;;  %v4037_v7 = vld [vmem:[%s4006_s16 + $0x18] sm:$0xff]  ;;  %v4043_v8 = vld [vmem:[%s4006_s16 + $0x10] sm:$0xff]  ;;  %v4174_v58 = vsub.f32 0.0, %v4171_v57 }
  0x13   : > { %v503_v9 = vmul.f32 %v4030_v5, %v4030_v5  ;;  %v4050_v10 = vld [vmem:[%s4006_s16 + $0x8] sm:$0xff]  ;;  %v4056_v11 = vld [vmem:[%s4006_s16] sm:$0xff]  ;;  %v502_v12 = vmul.f32 %v4037_v7, %v4037_v7  ;;  %v501_v13 = vmul.f32 %v4043_v8, %v4043_v8  ;;  %v4113_v19 = vld [vmem:[%s4083_s19 + $0x10] sm:$0xff] }
  0x14   : > { %3616 = vmatpush.xpose.msk.msra.mxu1 %vm409_vm0, %v506_v2  ;;  %3832 = vmatpush.msra.mxu3 %v4012_v1  ;;  %v500_v14 = vmul.f32 %v4050_v10, %v4050_v10  ;;  %v499_v15 = vmul.f32 %v4056_v11, %v4056_v11  ;;  %v4093_v16 = vld [vmem:[%s4083_s19] sm:$0xff]  ;;  %v4104_v18 = vld [vmem:[%s4083_s19 + $0x8] sm:$0xff]  ;;  %v4119_v20 = vld [vmem:[%s4083_s19 + $0x18] sm:$0xff] }
  0x15   : > { %v4124_v21 = vld [vmem:[%s4083_s19 + $0x20] sm:$0xff]  ;;  %v4129_v22 = vld [vmem:[%s4083_s19 + $0x28] sm:$0xff]  ;;  %v4134_v23 = vld [vmem:[%s4083_s19 + $0x30] sm:$0xff] }
  0x16   : > { %3601 = vmatpush.xpose.msk.msra.mxu0 %vm409_vm0, %v4012_v1  ;;  %3833 = vmatpush.msra.mxu3 %v4024_v4  ;;  %v4139_v24 = vld [vmem:[%s4083_s19 + $0x38] sm:$0xff] }
  0x18   : > { %3617 = vmatpush.xpose.msk.msra.mxu1 %vm409_vm0, %v505_v3  ;;  %3834 = vmatpush.msra.mxu3 %v4030_v5 }
  0x1a   : > { %3602 = vmatpush.xpose.msk.msra.mxu0 %vm409_vm0, %v4024_v4  ;;  %3835 = vmatpush.msra.mxu3 %v4037_v7 }
  0x1c   : > { %3618 = vmatpush.xpose.msk.msra.mxu1 %vm409_vm0, %v504_v6  ;;  %3836 = vmatpush.msra.mxu3 %v4043_v8 }
  0x1e   : > { %3603 = vmatpush.xpose.msk.msra.mxu0 %vm409_vm0, %v4030_v5  ;;  %3837 = vmatpush.msra.mxu3 %v4050_v10 }
  0x20   : > { %3619 = vmatpush.xpose.msk.msra.mxu1 %vm409_vm0, %v503_v9  ;;  %3838 = vmatpush.msra.mxu3 %v4056_v11 }
  0x22   : > { %1133 = vmatpush.msrb.mxu3 %v4009_v0  ;;  %3604 = vmatpush.xpose.msk.msra.mxu0 %vm409_vm0, %v4037_v7 }
  0x24   : > { %1134 = vmatpush.msrb.mxu3 %v4012_v1  ;;  %3620 = vmatpush.xpose.msk.msra.mxu1 %vm409_vm0, %v502_v12 }
  0x26   : > { %1135 = vmatpush.msrb.mxu3 %v4024_v4  ;;  %3605 = vmatpush.xpose.msk.msra.mxu0 %vm409_vm0, %v4043_v8 }
  0x28   : > { %1136 = vmatpush.msrb.mxu3 %v4030_v5  ;;  %3621 = vmatpush.xpose.msk.msra.mxu1 %vm409_vm0, %v501_v13 }
  0x2a   : > { %1137 = vmatpush.msrb.mxu3 %v4037_v7  ;;  %3606 = vmatpush.xpose.msk.msra.mxu0 %vm409_vm0, %v4050_v10 }
  0x2c   : > { %1138 = vmatpush.msrb.mxu3 %v4043_v8  ;;  %3622 = vmatpush.xpose.msk.msra.mxu1 %vm409_vm0, %v500_v14 }
  0x2e   : > { %1139 = vmatpush.msrb.mxu3 %v4050_v10  ;;  %3607 = vmatpush.xpose.msk.msra.mxu0 %vm409_vm0, %v4056_v11 }
  0x30   : > { %1140 = vmatpush.msrb.mxu3 %v4056_v11  ;;  %3623 = vmatpush.xpose.msk.msra.mxu1 %vm409_vm0, %v499_v15 }
  0x31   : > { %3608 = vmatmul.msk.f32.vlgmr.msra.gmra.mxu0 %vm409_vm0, %v4093_v16 }
  0x32   : > { %764 = vmatpush.msrb.mxu0 %v4009_v0 }
  0x33   : > { %3624 = vmatmul.msk.f32.vlgmr.msra.gmra.mxu1 %vm409_vm0, %v3929_v17 }
  0x34   : > { %765 = vmatpush.msrb.mxu0 %v4012_v1 }
  0x36   : > { %766 = vmatpush.msrb.mxu0 %v4024_v4 }
  0x38   : > { %767 = vmatpush.msrb.mxu0 %v4030_v5 }
  0x39   : > { %3609 = vmatmul.msk.f32.gmra.mxu0 %vm409_vm0, %v4104_v18 }
  0x3a   : > { %768 = vmatpush.msrb.mxu0 %v4037_v7 }
  0x3c   : > { %769 = vmatpush.msrb.mxu0 %v4043_v8 }
  0x3e   : > { %770 = vmatpush.msrb.mxu0 %v4050_v10 }
  0x40   : > { %771 = vmatpush.msrb.mxu0 %v4056_v11 }
  0x41   : > { %3610 = vmatmul.msk.f32.gmra.mxu0 %vm409_vm0, %v4113_v19 }
  0x49   : > { %3611 = vmatmul.msk.f32.gmra.mxu0 %vm409_vm0, %v4119_v20 }
  0x51   : > { %3612 = vmatmul.msk.f32.gmra.mxu0 %vm409_vm0, %v4124_v21 }
  0x59   : > { %3613 = vmatmul.msk.f32.gmra.mxu0 %vm409_vm0, %v4129_v22 }
  0x61   : > { %3614 = vmatmul.msk.f32.gmra.mxu0 %vm409_vm0, %v4134_v23 }
  0x69   : > { %3615 = vmatmul.msk.f32.gmra.mxu0 %vm409_vm0, %v4139_v24 }
  0xae   : > { %v475_v25 = vpop.f32.mrf.mxu0 }
  0xaf   : > { %v554_v26 = vmul.f32 2.0, %v475_v25 }
  0xb0   : > { %v551_v27 = vpop.f32.mrf.mxu1 }
  0xb1   : > { %v562_v28 = vperm.slane %v551_v27, 0 }
  0xb3   : > { %v4143_v29 = vsub.f32 %v554_v26, %v562_v28 }
  0xb5   : > { %v635_v30 = vsel %vm634_vm1, %v4143_v29, -inf }
  0xb6   : > { %636 = vmax.xlane.f32.xlu0 %v635_v30  ;;  %v478_v31 = vpop.f32.mrf.mxu0 }
  0xb7   : > { %v555_v32 = vmul.f32 2.0, %v478_v31 }
  0xb9   : > { %v4147_v33 = vsub.f32 %v555_v32, %v562_v28 }
  0xbb   : > { %v638_v34 = vsel %vm634_vm1, %v4147_v33, -inf }
  0xbe   : > { %639 = vmax.xlane.f32.xlu0 %v638_v34  ;;  %v481_v35 = vpop.f32.mrf.mxu0 }
  0xbf   : > { %v556_v36 = vmul.f32 2.0, %v481_v35 }
  0xc1   : > { %v4151_v37 = vsub.f32 %v556_v36, %v562_v28 }
  0xc3   : > { %v641_v38 = vsel %vm634_vm1, %v4151_v37, -inf }
  0xc4   : > { %642 = vmax.xlane.f32.xlu1 %v641_v38 }
  0xc6   : > { %v484_v39 = vpop.f32.mrf.mxu0 }
  0xc7   : > { %v557_v40 = vmul.f32 2.0, %v484_v39 }
  0xc9   : > { %v4155_v41 = vsub.f32 %v557_v40, %v562_v28 }
  0xcb   : > { %v644_v42 = vsel %vm634_vm1, %v4155_v41, -inf }
  0xcc   : > { %645 = vmax.xlane.f32.xlu1 %v644_v42  ;;  %v5774_v42 = vmov 0.0  }
  0xce   : > { %v487_v43 = vpop.f32.mrf.mxu0 }
  0xcf   : > { %v558_v44 = vmul.f32 2.0, %v487_v43 }
  0xd1   : > { %v4159_v45 = vsub.f32 %v558_v44, %v562_v28 }
  0xd3   : > { %v647_v46 = vsel %vm634_vm1, %v4159_v45, -inf }
  0xd4   : > { %648 = vmax.xlane.f32.xlu2 %v647_v46 }
  0xd6   : > { %v490_v47 = vpop.f32.mrf.mxu0 }
  0xd7   : > { %v559_v48 = vmul.f32 2.0, %v490_v47 }
  0xd9   : > { %v4163_v49 = vsub.f32 %v559_v48, %v562_v28 }
  0xdb   : > { %v650_v50 = vsel %vm634_vm1, %v4163_v49, -inf }
  0xdc   : > { %651 = vmax.xlane.f32.xlu2 %v650_v50 }
  0xde   : > { %v493_v51 = vpop.f32.mrf.mxu0 }
  0xdf   : > { %v560_v52 = vmul.f32 2.0, %v493_v51 }
  0xe1   : > { %v4167_v53 = vsub.f32 %v560_v52, %v562_v28 }
  0xe3   : > { %v653_v54 = vsel %vm634_vm1, %v4167_v53, -inf }
  0xe4   : > { %654 = vmax.xlane.f32.xlu1 %v653_v54 }
  0xe6   : > { %v496_v59 = vpop.f32.mrf.mxu0 }
  0xe7   : > { %v561_v62 = vmul.f32 2.0, %v496_v59 }
  0xe9   : > { %v4179_v2 = vsub.f32 %v561_v62, %v562_v28 }
  0xeb   : > { %v656_v12 = vsel %vm634_vm1, %v4179_v2, -inf }
 0x129   : > { %v637_v60 = vpop.xlane.xlu0 %636 }
 0x12a   : > { %vm659_vm2 = vcmp.eq.f32.partialorder %v4143_v29, %v637_v60 }
 0x12b   : > { %v668_v61 = vsel %vm659_vm2, %v4174_v58, -64.0 }
 0x12c   : > { %v676_v63 = vsel %vm634_vm1, %v668_v61, -inf }
 0x12d   : > { %677 = vmax.xlane.f32.xlu0 %v676_v63 }
 0x131   : > { %v640_v3 = vpop.xlane.xlu0 %639 }
 0x132   : > { %vm660_vm3 = vcmp.eq.f32.partialorder %v4147_v33, %v640_v3 }
 0x133   : > { %v669_v6 = vsel %vm660_vm3, %v4174_v58, -64.0  ;;  %vm591_vm3 = vcmask 1040384  }
 0x134   : > { %v679_v9 = vsel %vm634_vm1, %v669_v6, -inf }
 0x135   : > { %680 = vmax.xlane.f32.xlu2 %v679_v9  ;;  %657 = vmax.xlane.f32.xlu0 %v656_v12 }
 0x137   : > { %v643_v13 = vpop.xlane.xlu1 %642 }
 0x138   : > { %vm661_vm4 = vcmp.eq.f32.partialorder %v4151_v37, %v643_v13 }
 0x139   : > { %v670_v14 = vsel %vm661_vm4, %v4174_v58, -64.0  ;;  %vm592_vm4 = vcmask 1041408  }
 0x13a   : > { %v682_v15 = vsel %vm634_vm1, %v670_v14, -inf }
 0x13b   : > { %683 = vmax.xlane.f32.xlu1 %v682_v15 }
 0x13f   : > { %v646_v17 = vpop.xlane.xlu1 %645 }
 0x140   : > { %vm662_vm5 = vcmp.eq.f32.partialorder %v4155_v41, %v646_v17 }
 0x141   : > { %v671_v25 = vsel %vm662_vm5, %v4174_v58, -64.0 }
 0x142   : > { %v685_v26 = vsel %vm634_vm1, %v671_v25, -inf }
 0x143   : > { %686 = vmax.xlane.f32.xlu2 %v685_v26 }
 0x147   : > { %v649_v27 = vpop.xlane.xlu2 %648 }
 0x148   : > { %vm663_vm6 = vcmp.eq.f32.partialorder %v4159_v45, %v649_v27 }
 0x149   : > { %v672_v28 = vsel %vm663_vm6, %v4174_v58, -64.0 }
 0x14a   : > { %v688_v30 = vsel %vm634_vm1, %v672_v28, -inf }
 0x14b   : > { %689 = vmax.xlane.f32.xlu0 %v688_v30 }
 0x14f   : > { %v652_v31 = vpop.xlane.xlu2 %651 }
 0x150   : > { %vm664_vm7 = vcmp.eq.f32.partialorder %v4163_v49, %v652_v31 }
 0x151   : > { %v673_v32 = vsel %vm664_vm7, %v4174_v58, -64.0 }
 0x152   : > { %v691_v34 = vsel %vm634_vm1, %v673_v32, -inf  ;;  %v3931_v32 = vmov 65535  }
 0x153   : > { %692 = vmax.xlane.f32.xlu1 %v691_v34  ;;  %v593_v34 = vsel %vm591_vm3, 4294967295, %v3931_v32 }
 0x157   : > { %v655_v35 = vpop.xlane.xlu1 %654 }
 0x158   : > { %vm665_vm8 = vcmp.eq.f32.partialorder %v4167_v53, %v655_v35  ;;  %v578_v35 = vld [vmem:[%s5767_s3] sm:$0x3] }
 0x159   : > { %v674_v36 = vsel %vm665_vm8, %v4174_v58, -64.0 }
 0x15a   : > { %v694_v38 = vsel %vm634_vm1, %v674_v36, -inf  ;;  %v594_v36 = vsel %vm592_vm4, %v593_v34, 0 }
 0x15b   : > { %695 = vmax.xlane.f32.xlu0 %v694_v38  ;;  %v596_v38 = vand.u32 %v594_v36, %v578_v35 }
 0x15d   : > { %605 = vmatpush.bf16.msra.mxu2 %v596_v38 }
 0x1a0   : > { %v678_v39 = vpop.xlane.xlu0 %677 }
 0x1a1   : > { %v700_v40 = vsub.f32 0.0, %v678_v39 }
 0x1a3   : > { %vm708_vm9 = vcmp.eq.f32.partialorder %v4171_v57, %v700_v40  ;;  %v574_v40 = vpack.c.bf16 %v4104_v18, %v4093_v16 }
 0x1a4   : > { %v3629_v43 = vsel %vm708_vm9, 1.0, %v5774_v42  ;;  %v4204_v44 = vsel %vm708_vm9, -inf, %v4143_v29 }
 0x1a5   : > { %3637 = vmatmul.msk.f32.vlgmr.msrb.gmra.mxu0 %vm634_vm1, %v3629_v43  ;;  %v1005_v46 = vsel %vm634_vm1, %v4204_v44, -inf  ;;  %3625 = vmatmul.msk.bf16.vlgmr.msra.gmra.mxu2 %vm409_vm0, %v574_v40 }
 0x1a6   : > { %1006 = vmax.xlane.f32.xlu2 %v1005_v46 }
 0x1a8   : > { %v681_v47 = vpop.xlane.xlu2 %680  ;;  %v658_v48 = vpop.xlane.xlu0 %657 }
 0x1a9   : > { %v701_v50 = vsub.f32 0.0, %v681_v47  ;;  %vm666_vm10 = vcmp.eq.f32.partialorder %v4179_v2, %v658_v48  ;;  %v575_v47 = vpack.c.bf16 %v4119_v20, %v4113_v19 }
 0x1aa   : > { %v675_v51 = vsel %vm666_vm10, %v4174_v58, -64.0 }
 0x1ab   : > { %vm709_vm11 = vcmp.eq.f32.partialorder %v4171_v57, %v701_v50  ;;  %v697_v55 = vsel %vm634_vm1, %v675_v51, -inf }
 0x1ac   : > { %v3630_v52 = vsel %vm709_vm11, 1.0, %v5774_v42  ;;  %v4214_v29 = vsel %vm709_vm11, -inf, %v4147_v33 }
 0x1ad   : > { %3638 = vmatmul.msk.f32.gmra.mxu0 %vm634_vm1, %v3630_v52  ;;  %v1008_v54 = vsel %vm634_vm1, %v4214_v29, -inf }
 0x1ae   : > { %1009 = vmax.xlane.f32.xlu1 %v1008_v54  ;;  %v684_v56 = vpop.xlane.xlu1 %683  ;;  %698 = vmax.xlane.f32.xlu2 %v697_v55 }
 0x1af   : > { %v702_v59 = vsub.f32 0.0, %v684_v56 }
 0x1b1   : > { %vm710_vm12 = vcmp.eq.f32.partialorder %v4171_v57, %v702_v59 }
 0x1b2   : > { %v4222_v60 = vsel %vm710_vm12, -inf, %v4151_v37  ;;  %v3631_v61 = vsel %vm710_vm12, 1.0, %v5774_v42 }
 0x1b3   : > { %v1011_v33 = vsel %vm634_vm1, %v4222_v60, -inf }
 0x1b4   : > { %1012 = vmax.xlane.f32.xlu0 %v1011_v33 }
 0x1b5   : > { %3639 = vmatmul.msk.f32.gmra.mxu0 %vm634_vm1, %v3631_v61  ;;  %3626 = vmatmul.msk.bf16.gmra.mxu2 %vm409_vm0, %v575_v47 }
 0x1b6   : > { %v687_v62 = vpop.xlane.xlu2 %686 }
 0x1b7   : > { %v703_v63 = vsub.f32 0.0, %v687_v62 }
 0x1b9   : > { %vm711_vm13 = vcmp.eq.f32.partialorder %v4171_v57, %v703_v63 }
 0x1ba   : > { %v3632_v3 = vsel %vm711_vm13, 1.0, %v5774_v42  ;;  %v4231_v6 = vsel %vm711_vm13, -inf, %v4155_v41 }
 0x1bb   : > { %3640 = vmatmul.msk.f32.vlgmr.msra.gmra.mxu3 %vm634_vm1, %v3632_v3  ;;  %v1014_v37 = vsel %vm634_vm1, %v4231_v6, -inf }
 0x1bc   : > { %1015 = vmax.xlane.f32.xlu1 %v1014_v37 }
 0x1be   : > { %v690_v9 = vpop.xlane.xlu0 %689 }
 0x1bf   : > { %v704_v12 = vsub.f32 0.0, %v690_v9 }
 0x1c1   : > { %vm712_vm14 = vcmp.eq.f32.partialorder %v4171_v57, %v704_v12 }
 0x1c2   : > { %v3633_v13 = vsel %vm712_vm14, 1.0, %v5774_v42  ;;  %v4239_v14 = vsel %vm712_vm14, -inf, %v4159_v45 }
 0x1c3   : > { %3641 = vmatmul.msk.f32.gmra.mxu3 %vm634_vm1, %v3633_v13  ;;  %v1017_v41 = vsel %vm634_vm1, %v4239_v14, -inf }
 0x1c4   : > { %1018 = vmax.xlane.f32.xlu2 %v1017_v41 }
 0x1c6   : > { %v693_v15 = vpop.xlane.xlu1 %692 }
 0x1c7   : > { %v705_v17 = vsub.f32 0.0, %v693_v15 }
 0x1c9   : > { %vm713_vm15 = vcmp.eq.f32.partialorder %v4171_v57, %v705_v17 }
 0x1ca   : > { %v3634_v25 = vsel %vm713_vm15, 1.0, %v5774_v42  ;;  %v4247_v26 = vsel %vm713_vm15, -inf, %v4163_v49 }
 0x1cb   : > { %3642 = vmatmul.msk.f32.gmra.mxu3 %vm634_vm1, %v3634_v25  ;;  %v1020_v45 = vsel %vm634_vm1, %v4247_v26, -inf }
 0x1cc   : > { %1021 = vmax.xlane.f32.xlu0 %v1020_v45 }
 0x1ce   : > { %v696_v27 = vpop.xlane.xlu0 %695 }
 0x1cf   : > { %v706_v28 = vsub.f32 0.0, %v696_v27 }
 0x1d1   : > { %vm714_vm2 = vcmp.eq.f32.partialorder %v4171_v57, %v706_v28 }
 0x1d2   : > { %v3635_v30 = vsel %vm714_vm2, 1.0, %v5774_v42  ;;  %v4255_v31 = vsel %vm714_vm2, -inf, %v4167_v53  ;;  %v627_v53 = vld [vmem:[%s5766_s2] sm:$0x3] }
 0x1d3   : > { %3643 = vmatmul.msk.f32.gmra.mxu3 %vm634_vm1, %v3635_v30  ;;  %v1023_v49 = vsel %vm634_vm1, %v4255_v31, -inf  ;;  %v4266_v39 = vand.u32 %v627_v53, %v594_v36 }
 0x1d4   : > { %1024 = vmax.xlane.f32.xlu2 %v1023_v49 }
 0x1d5   : > { %831 = vmatpush.bf16.msrb.mxu1 %v4266_v39  ;;  %1197 = vmatpush.bf16.msra.mxu0 %v4266_v39 }
 0x1d6   : > { %1552 = vmatpush.bf16.msra.mxu3 %v4266_v39 }
 0x219   : > { %v1007_v43 = vpop.xlane.xlu2 %1006 }
 0x21a   : > { %vm1029_vm5 = vcmp.eq.f32.partialorder %v4204_v44, %v1007_v43 }
 0x21b   : > { %v1037_v46 = vsel %vm1029_vm5, %v4174_v58, -64.0 }
 0x21c   : > { %v1045_v48 = vsel %vm634_vm1, %v1037_v46, -inf }
 0x21d   : > { %1046 = vmax.xlane.f32.xlu1 %v1045_v48 }
 0x221   : > { %v1010_v50 = vpop.xlane.xlu1 %1009  ;;  %v699_v51 = vpop.xlane.xlu2 %698 }
 0x222   : > { %vm1030_vm6 = vcmp.eq.f32.partialorder %v4214_v29, %v1010_v50  ;;  %v707_v52 = vsub.f32 0.0, %v699_v51  ;;  %v773_v54 = vpop.f32.mrf.mxu0 }
 0x223   : > { %v1038_v55 = vsel %vm1030_vm6, %v4174_v58, -64.0  ;;  %v797_v9 = vsub.f32 %v773_v54, %v4093_v16 }
 0x224   : > { %vm715_vm7 = vcmp.eq.f32.partialorder %v4171_v57, %v707_v52  ;;  %v1048_v56 = vsel %vm634_vm1, %v1038_v55, -inf  ;;  %v577_v52 = vpack.c.bf16 %v4139_v24, %v4134_v23 }
 0x225   : > { %1049 = vmax.xlane.f32.xlu0 %v1048_v56  ;;  %v3636_v59 = vsel %vm715_vm7, 1.0, %v5774_v42  ;;  %v4286_v33 = vsel %vm715_vm7, -inf, %v4179_v2  ;;  %v576_v2 = vpack.c.bf16 %v4129_v22, %v4124_v21 }
 0x226   : > { %3644 = vmatmul.msk.f32.gmra.mxu3 %vm634_vm1, %v3636_v59  ;;  %v1026_v61 = vsel %vm634_vm1, %v4286_v33, -inf }
 0x227   : > { %1027 = vmax.xlane.f32.xlu1 %v1026_v61  ;;  %v1013_v62 = vpop.xlane.xlu0 %1012  ;;  %3627 = vmatmul.msk.bf16.gmra.mxu2 %vm409_vm0, %v576_v2 }
 0x228   : > { %vm1031_vm8 = vcmp.eq.f32.partialorder %v4222_v60, %v1013_v62 }
 0x229   : > { %v1039_v63 = vsel %vm1031_vm8, %v4174_v58, -64.0  ;;  %vm909_vm8 = vcmask 130048  }
 0x22a   : > { %v776_v3 = vpop.f32.mrf.mxu0  ;;  %v1051_v37 = vsel %vm634_vm1, %v1039_v63, -inf }
 0x22b   : > { %v798_v12 = vsub.f32 %v776_v3, %v4104_v18  ;;  %1052 = vmax.xlane.f32.xlu2 %v1051_v37  ;;  %v4334_v37 = vld [vmem:[%s5770_s6] sm:$0xff] }
 0x22c   : > { %929 = vmatpush.bf16.msrb.mxu2 %v4334_v37  ;;  %1282 = vmatpush.bf16.msra.mxu1 %v4334_v37 }
 0x22d   : > { %v805_v13 = vpack.c.bf16 %v798_v12, %v797_v9  ;;  %1637 = vmatpush.bf16.msrb.mxu0 %v4334_v37 }
 0x22f   : > { %v1016_v41 = vpop.xlane.xlu1 %1015  ;;  %3645 = vmatmul.msk.bf16.vlgmr.msrb.gmra.mxu1 %vm409_vm0, %v805_v13 }
 0x230   : > { %vm1032_vm9 = vcmp.eq.f32.partialorder %v4231_v6, %v1016_v41  ;;  %1488 = vmatpush.msra.mxu2 %v4009_v0  ;;  %1843 = vmatpush.msrb.mxu1 %v4009_v0 }
 0x231   : > { %v1040_v15 = vsel %vm1032_vm9, %v4174_v58, -64.0 }
 0x232   : > { %v1054_v17 = vsel %vm634_vm1, %v1040_v15, -inf  ;;  %v779_v28 = vpop.f32.mrf.mxu0  ;;  %1489 = vmatpush.msra.mxu2 %v4012_v1  ;;  %1844 = vmatpush.msrb.mxu1 %v4012_v1 }
 0x233   : > { %1055 = vmax.xlane.f32.xlu0 %v1054_v17  ;;  %v799_v49 = vsub.f32 %v779_v28, %v4113_v19  ;;  %v4364_v28 = vpop.f32.mrf.mxu2 }
 0x234   : > { %1490 = vmatpush.msra.mxu2 %v4024_v4  ;;  %1845 = vmatpush.msrb.mxu1 %v4024_v4 }
 0x236   : > { %1491 = vmatpush.msra.mxu2 %v4030_v5  ;;  %1846 = vmatpush.msrb.mxu1 %v4030_v5 }
 0x237   : > { %v1019_v25 = vpop.xlane.xlu2 %1018  ;;  %3628 = vmatmul.msk.bf16.gmra.mxu2 %vm409_vm0, %v577_v52 }
 0x238   : > { %vm1033_vm10 = vcmp.eq.f32.partialorder %v4239_v14, %v1019_v25  ;;  %1492 = vmatpush.msra.mxu2 %v4037_v7  ;;  %1847 = vmatpush.msrb.mxu1 %v4037_v7 }
 0x239   : > { %v1041_v45 = vsel %vm1033_vm10, %v4174_v58, -64.0 }
 0x23a   : > { %v1057_v27 = vsel %vm634_vm1, %v1041_v45, -inf  ;;  %1493 = vmatpush.msra.mxu2 %v4043_v8  ;;  %1848 = vmatpush.msrb.mxu1 %v4043_v8 }
 0x23b   : > { %1058 = vmax.xlane.f32.xlu1 %v1057_v27 }
 0x23c   : > { %1494 = vmatpush.msra.mxu2 %v4050_v10  ;;  %1849 = vmatpush.msrb.mxu1 %v4050_v10 }
 0x23e   : > { %v782_v30 = vpop.f32.mrf.mxu3  ;;  %1495 = vmatpush.msra.mxu2 %v4056_v11  ;;  %1850 = vmatpush.msrb.mxu1 %v4056_v11 }
 0x23f   : > { %v800_v32 = vsub.f32 %v782_v30, %v4119_v20  ;;  %v1022_v34 = vpop.xlane.xlu0 %1021 }
 0x240   : > { %vm1034_vm11 = vcmp.eq.f32.partialorder %v4247_v26, %v1022_v34 }
 0x241   : > { %v806_v35 = vpack.c.bf16 %v800_v32, %v799_v49  ;;  %v1042_v36 = vsel %vm1034_vm11, %v4174_v58, -64.0 }
 0x242   : > { %v1060_v38 = vsel %vm634_vm1, %v1042_v36, -inf }
 0x243   : > { %3646 = vmatmul.msk.bf16.gmra.mxu1 %vm409_vm0, %v806_v35  ;;  %1061 = vmax.xlane.f32.xlu2 %v1060_v38 }
 0x246   : > { %v785_v53 = vpop.f32.mrf.mxu3 }
 0x247   : > { %v1025_v40 = vpop.xlane.xlu2 %1024  ;;  %v801_v48 = vsub.f32 %v785_v53, %v4124_v21 }
 0x248   : > { %vm1035_vm12 = vcmp.eq.f32.partialorder %v4255_v31, %v1025_v40 }
 0x249   : > { %v1043_v43 = vsel %vm1035_vm12, %v4174_v58, -64.0 }
 0x24a   : > { %v1063_v46 = vsel %vm634_vm1, %v1043_v43, -inf }
 0x24b   : > { %1064 = vmax.xlane.f32.xlu0 %v1063_v46 }
 0x24e   : > { %v788_v47 = vpop.f32.mrf.mxu3 }
 0x24f   : > { %v802_v50 = vsub.f32 %v788_v47, %v4129_v22  ;;  %v4392_v47 = vpop.f32.mrf.mxu2 }
 0x251   : > { %v807_v51 = vpack.c.bf16 %v802_v50, %v801_v48  ;;  %v4398_v50 = vld [vmem:[%s5769_s5] ss:$0 sm:$0xff] }
 0x253   : > { %3647 = vmatmul.msk.bf16.gmra.mxu1 %vm409_vm0, %v807_v51 }
 0x290   : > { %v1047_v54 = vpop.xlane.xlu1 %1046 }
 0x291   : > { %v1069_v55 = vsub.f32 0.0, %v1047_v54 }
 0x293   : > { %vm1077_vm13 = vcmp.eq.f32.partialorder %v4171_v57, %v1069_v55 }
 0x294   : > { %v3657_v56 = vsel %vm1077_vm13, 1.0, %v5774_v42  ;;  %v4324_v59 = vsel %vm1077_vm13, -inf, %v4204_v44 }
 0x295   : > { %3665 = vmatmul.msk.f32.vlgmr.msrb.gmra.mxu3 %vm634_vm1, %v3657_v56  ;;  %v1360_v61 = vsel %vm634_vm1, %v4324_v59, -inf }
 0x296   : > { %1361 = vmax.xlane.f32.xlu2 %v1360_v61  ;;  %1992 = vmatpush.bf16.msrb.mxu3 %v4334_v37 }
 0x298   : > { %v1050_v62 = vpop.xlane.xlu0 %1049 }
 0x299   : > { %v1070_v63 = vsub.f32 0.0, %v1050_v62 }
 0x29a   : > { %v1028_v3 = vpop.xlane.xlu1 %1027 }
 0x29b   : > { %vm1078_vm14 = vcmp.eq.f32.partialorder %v4171_v57, %v1070_v63  ;;  %vm1036_vm15 = vcmp.eq.f32.partialorder %v4286_v33, %v1028_v3 }
 0x29c   : > { %v3658_v44 = vsel %vm1078_vm14, 1.0, %v5774_v42  ;;  %v1044_v9 = vsel %vm1036_vm15, %v4174_v58, -64.0  ;;  %v4339_v12 = vsel %vm1078_vm14, -inf, %v4214_v29  ;;  %v791_v29 = vpop.f32.mrf.mxu3 }
 0x29d   : > { %3666 = vmatmul.msk.f32.gmra.mxu3 %vm634_vm1, %v3658_v44  ;;  %v1066_v2 = vsel %vm634_vm1, %v1044_v9, -inf  ;;  %v1363_v13 = vsel %vm634_vm1, %v4339_v12, -inf  ;;  %v803_v49 = vsub.f32 %v791_v29, %v4134_v23  ;;  %v4411_v44 = vpop.f32.mrf.mxu2 }
 0x29e   : > { %1067 = vmax.xlane.f32.xlu1 %v1066_v2  ;;  %v1053_v41 = vpop.xlane.xlu2 %1052  ;;  %1364 = vmax.xlane.f32.xlu0 %v1363_v13 }
 0x29f   : > { %v1071_v15 = vsub.f32 0.0, %v1053_v41 }
 0x2a1   : > { %vm1079_vm2 = vcmp.eq.f32.partialorder %v4171_v57, %v1071_v15 }
 0x2a2   : > { %v4354_v17 = vsel %vm1079_vm2, -inf, %v4222_v60  ;;  %v3659_v25 = vsel %vm1079_vm2, 1.0, %v5774_v42 }
 0x2a3   : > { %v1366_v45 = vsel %vm634_vm1, %v4354_v17, -inf }
 0x2a5   : > { %3667 = vmatmul.msk.f32.gmra.mxu3 %vm634_vm1, %v3659_v25 }
 0x2a6   : > { %1367 = vmax.xlane.f32.xlu1 %v1366_v45  ;;  %v1056_v27 = vpop.xlane.xlu0 %1055 }
 0x2a7   : > { %v1072_v60 = vsub.f32 0.0, %v1056_v27 }
 0x2a9   : > { %vm1080_vm3 = vcmp.eq.f32.partialorder %v4171_v57, %v1072_v60  ;;  %v794_v30 = vpop.f32.mrf.mxu3 }
 0x2aa   : > { %v804_v32 = vsub.f32 %v794_v30, %v4139_v24  ;;  %v4374_v34 = vsel %vm1080_vm3, -inf, %v4231_v6  ;;  %v3660_v53 = vsel %vm1080_vm3, 1.0, %v5774_v42  ;;  %v4386_v6 = vld [vmem:[%s5768_s4] ss:$0 sm:$0xff] }
 0x2ab   : > { %v1369_v35 = vsel %vm634_vm1, %v4374_v34, -inf }
 0x2ac   : > { %v808_v36 = vpack.c.bf16 %v804_v32, %v803_v49  ;;  %v833_v38 = vpop.f32.mrf.mxu1  ;;  %1370 = vmax.xlane.f32.xlu2 %v1369_v35  ;;  %v4429_v32 = vpop.f32.mrf.mxu2 }
 0x2ad   : > { %v834_v40 = vadd.f32 %v833_v38, %v4364_v28  ;;  %3668 = vmatmul.msk.f32.gmra.mxu3 %vm634_vm1, %v3660_v53 }
 0x2ae   : > { %v1059_v43 = vpop.xlane.xlu1 %1058  ;;  %3648 = vmatmul.msk.bf16.gmra.mxu1 %vm409_vm0, %v808_v36 }
 0x2af   : > { %v1073_v46 = vsub.f32 0.0, %v1059_v43  ;;  %v856_v48 = vmul.f32 %v4386_v6, %v834_v40 }
 0x2b1   : > { %vm1081_vm4 = vcmp.eq.f32.partialorder %v4171_v57, %v1073_v46  ;;  %v867_v56 = vadd.f32 %v4398_v50, %v856_v48 }
 0x2b2   : > { %v4402_v51 = vsel %vm1081_vm4, -inf, %v4239_v14  ;;  %v3661_v55 = vsel %vm1081_vm4, 1.0, %v5774_v42 }
 0x2b3   : > { %v1372_v52 = vsel %vm634_vm1, %v4402_v51, -inf  ;;  %v883_v14 = vmul.f32 0.2, %v867_v56  ;;  %vm875_vm6 = vcmp.gt.f32.partialorder %v867_v56, 0.0 }
 0x2b4   : > { %v835_v54 = vpop.f32.mrf.mxu1  ;;  %1373 = vmax.xlane.f32.xlu0 %v1372_v52  ;;  %v4439_v46 = vpop.f32.mrf.mxu2 }
 0x2b5   : > { %v836_v61 = vadd.f32 %v835_v54, %v4392_v47  ;;  %3669 = vmatmul.msk.f32.gmra.mxu3 %vm634_vm1, %v3661_v55  ;;  %v891_v29 = vsel %vm875_vm6, %v867_v56, %v883_v14 }
 0x2b6   : > { %v1062_v62 = vpop.xlane.xlu2 %1061 }
 0x2b7   : > { %v857_v63 = vmul.f32 %v4386_v6, %v836_v61  ;;  %v1074_v3 = vsub.f32 0.0, %v1062_v62 }
 0x2b9   : > { %v868_v9 = vadd.f32 %v4398_v50, %v857_v63  ;;  %vm1082_vm5 = vcmp.eq.f32.partialorder %v4171_v57, %v1074_v3 }
 0x2ba   : > { %v4416_v2 = vsel %vm1082_vm5, -inf, %v4247_v26  ;;  %v3662_v15 = vsel %vm1082_vm5, 1.0, %v5774_v42 }
 0x2bb   : > { %vm876_vm7 = vcmp.gt.f32.partialorder %v868_v9, 0.0  ;;  %v884_v13 = vmul.f32 0.2, %v868_v9  ;;  %v1375_v41 = vsel %vm634_vm1, %v4416_v2, -inf }
 0x2bc   : > { %1376 = vmax.xlane.f32.xlu1 %v1375_v41  ;;  %v4445_v14 = vpop.f32.mrf.mxu2 }
 0x2bd   : > { %3670 = vmatmul.msk.f32.gmra.mxu3 %vm634_vm1, %v3662_v15  ;;  %v892_v25 = vsel %vm876_vm7, %v868_v9, %v884_v13 }
 0x2be   : > { %v1065_v45 = vpop.xlane.xlu0 %1064  ;;  %v899_v27 = vpack.c.bf16 %v892_v25, %v891_v29 }
 0x2bf   : > { %v1075_v60 = vsub.f32 0.0, %v1065_v45 }
 0x2c0   : > { %v838_v30 = vpop.f32.mrf.mxu1  ;;  %3653 = vmatmul.msk.bf16.vlgmr.msrb.gmra.mxu2 %vm909_vm8, %v899_v27 }
 0x2c1   : > { %vm1083_vm9 = vcmp.eq.f32.partialorder %v4171_v57, %v1075_v60  ;;  %v839_v26 = vadd.f32 %v838_v30, %v4411_v44  ;;  %1907 = vmatpush.bf16.msrb.mxu2 %v4266_v39 }
 0x2c2   : > { %v4427_v49 = vsel %vm1083_vm9, -inf, %v4255_v31  ;;  %v3663_v36 = vsel %vm1083_vm9, 1.0, %v5774_v42 }
 0x2c3   : > { %v1378_v35 = vsel %vm634_vm1, %v4427_v49, -inf  ;;  %v858_v38 = vmul.f32 %v4386_v6, %v839_v26 }
 0x2c4   : > { %1379 = vmax.xlane.f32.xlu0 %v1378_v35 }
 0x2c5   : > { %3671 = vmatmul.msk.f32.gmra.mxu3 %vm634_vm1, %v3663_v36  ;;  %v869_v40 = vadd.f32 %v4398_v50, %v858_v38 }
 0x2c7   : > { %v885_v48 = vmul.f32 0.2, %v869_v40  ;;  %vm877_vm10 = vcmp.gt.f32.partialorder %v869_v40, 0.0 }
 0x2c8   : > { %v840_v53 = vpop.f32.mrf.mxu1 }
 0x2c9   : > { %v841_v43 = vadd.f32 %v840_v53, %v4429_v32  ;;  %v893_v61 = vsel %vm877_vm10, %v869_v40, %v885_v48 }
 0x2cb   : > { %v859_v31 = vmul.f32 %v4386_v6, %v841_v43 }
 0x2cd   : > { %v870_v52 = vadd.f32 %v4398_v50, %v859_v31 }
 0x2cf   : > { %vm878_vm11 = vcmp.gt.f32.partialorder %v870_v52, 0.0  ;;  %v886_v54 = vmul.f32 0.2, %v870_v52 }
 0x2d0   : > { %v843_v55 = vpop.f32.mrf.mxu1 }
 0x2d1   : > { %v844_v56 = vadd.f32 %v843_v55, %v4439_v46  ;;  %v894_v62 = vsel %vm878_vm11, %v870_v52, %v886_v54 }
 0x2d2   : > { %v900_v63 = vpack.c.bf16 %v894_v62, %v893_v61 }
 0x2d3   : > { %v860_v3 = vmul.f32 %v4386_v6, %v844_v56 }
 0x2d4   : > { %3654 = vmatmul.msk.bf16.gmra.mxu2 %vm909_vm8, %v900_v63 }
 0x2d5   : > { %v871_v13 = vadd.f32 %v4398_v50, %v860_v3 }
 0x2d7   : > { %v887_v29 = vmul.f32 0.2, %v871_v13  ;;  %vm879_vm12 = vcmp.gt.f32.partialorder %v871_v13, 0.0 }
 0x2d8   : > { %v845_v9 = vpop.f32.mrf.mxu1 }
 0x2d9   : > { %v846_v41 = vadd.f32 %v845_v9, %v4445_v14  ;;  %v895_v27 = vsel %vm879_vm12, %v871_v13, %v887_v29 }
 0x2db   : > { %v861_v15 = vmul.f32 %v4386_v6, %v846_v41 }
 0x2dd   : > { %v872_v25 = vadd.f32 %v4398_v50, %v861_v15 }
 0x2df   : > { %vm880_vm13 = vcmp.gt.f32.partialorder %v872_v25, 0.0  ;;  %v888_v45 = vmul.f32 0.2, %v872_v25 }
 0x2e1   : > { %v896_v60 = vsel %vm880_vm13, %v872_v25, %v888_v45  ;;  %v4476_v25 = vpop.f32.mrf.mxu2 }
 0x2e2   : > { %v901_v30 = vpack.c.bf16 %v896_v60, %v895_v27 }
 0x2e4   : > { %3655 = vmatmul.msk.bf16.gmra.mxu2 %vm909_vm8, %v901_v30 }
 0x309   : > { %v1362_v26 = vpop.xlane.xlu2 %1361 }
 0x30a   : > { %vm1384_vm14 = vcmp.eq.f32.partialorder %v4324_v59, %v1362_v26 }
 0x30b   : > { %v1392_v35 = vsel %vm1384_vm14, %v4174_v58, -64.0 }
 0x30c   : > { %v1400_v36 = vsel %vm634_vm1, %v1392_v35, -inf  ;;  %v4491_v35 = vpop.f32.mrf.mxu2 }
 0x30d   : > { %1401 = vmax.xlane.f32.xlu2 %v1400_v36 }
 0x311   : > { %v1068_v38 = vpop.xlane.xlu1 %1067  ;;  %v1365_v53 = vpop.xlane.xlu0 %1364 }
 0x312   : > { %v1076_v40 = vsub.f32 0.0, %v1068_v38  ;;  %vm1385_vm15 = vcmp.eq.f32.partialorder %v4339_v12, %v1365_v53 }
 0x313   : > { %v1393_v43 = vsel %vm1385_vm15, %v4174_v58, -64.0 }
 0x314   : > { %vm1084_vm2 = vcmp.eq.f32.partialorder %v4171_v57, %v1076_v40  ;;  %v1403_v31 = vsel %vm634_vm1, %v1393_v43, -inf }
 0x315   : > { %1404 = vmax.xlane.f32.xlu1 %v1403_v31  ;;  %v3664_v48 = vsel %vm1084_vm2, 1.0, %v5774_v42  ;;  %v4461_v52 = vsel %vm1084_vm2, -inf, %v4286_v33 }
 0x316   : > { %3672 = vmatmul.msk.f32.gmra.mxu3 %vm634_vm1, %v3664_v48  ;;  %v1381_v54 = vsel %vm634_vm1, %v4461_v52, -inf }
 0x317   : > { %1382 = vmax.xlane.f32.xlu2 %v1381_v54 }
 0x318   : > { %v1142_v55 = vpop.f32.mrf.mxu3 }
 0x319   : > { %v1368_v56 = vpop.xlane.xlu1 %1367  ;;  %v1166_v3 = vsub.f32 %v1142_v55, %v4093_v16 }
 0x31a   : > { %vm1386_vm3 = vcmp.eq.f32.partialorder %v4354_v17, %v1368_v56 }
 0x31b   : > { %v1394_v61 = vsel %vm1386_vm3, %v4174_v58, -64.0 }
 0x31c   : > { %v1406_v62 = vsel %vm634_vm1, %v1394_v61, -inf }
 0x31d   : > { %1407 = vmax.xlane.f32.xlu0 %v1406_v62 }
 0x31f   : > { %v1371_v63 = vpop.xlane.xlu2 %1370 }
 0x320   : > { %vm1387_vm4 = vcmp.eq.f32.partialorder %v4374_v34, %v1371_v63  ;;  %v1145_v33 = vpop.f32.mrf.mxu3 }
 0x321   : > { %v1167_v9 = vsub.f32 %v1145_v33, %v4104_v18  ;;  %v1395_v13 = vsel %vm1387_vm4, %v4174_v58, -64.0 }
 0x322   : > { %v1409_v41 = vsel %vm634_vm1, %v1395_v13, -inf }
 0x323   : > { %v1174_v15 = vpack.c.bf16 %v1167_v9, %v1166_v3  ;;  %1410 = vmax.xlane.f32.xlu1 %v1409_v41 }
 0x325   : > { %3673 = vmatmul.msk.bf16.vlgmr.msra.gmra.mxu0 %vm409_vm0, %v1174_v15 }
 0x326   : > { %2198 = vmatpush.msra.mxu0 %v4009_v0 }
 0x327   : > { %v1374_v29 = vpop.xlane.xlu0 %1373 }
 0x328   : > { %vm1388_vm5 = vcmp.eq.f32.partialorder %v4402_v51, %v1374_v29  ;;  %v1148_v45 = vpop.f32.mrf.mxu3  ;;  %2199 = vmatpush.msra.mxu0 %v4012_v1 }
 0x329   : > { %v1396_v16 = vsel %vm1388_vm5, %v4174_v58, -64.0  ;;  %v1168_v26 = vsub.f32 %v1148_v45, %v4113_v19 }
 0x32a   : > { %v1412_v18 = vsel %vm634_vm1, %v1396_v16, -inf  ;;  %2200 = vmatpush.msra.mxu0 %v4024_v4 }
 0x32b   : > { %v848_v27 = vpop.f32.mrf.mxu1  ;;  %1413 = vmax.xlane.f32.xlu2 %v1412_v18 }
 0x32c   : > { %v849_v60 = vadd.f32 %v848_v27, %v4476_v25  ;;  %2201 = vmatpush.msra.mxu0 %v4030_v5 }
 0x32e   : > { %2202 = vmatpush.msra.mxu0 %v4037_v7  ;;  %v862_v30 = vmul.f32 %v4386_v6, %v849_v60 }
 0x32f   : > { %v1377_v0 = vpop.xlane.xlu1 %1376 }
 0x330   : > { %vm1389_vm6 = vcmp.eq.f32.partialorder %v4416_v2, %v1377_v0  ;;  %v1151_v1 = vpop.f32.mrf.mxu3  ;;  %2203 = vmatpush.msra.mxu0 %v4043_v8  ;;  %v873_v53 = vadd.f32 %v4398_v50, %v862_v30 }
 0x331   : > { %v1169_v4 = vsub.f32 %v1151_v1, %v4119_v20  ;;  %v1397_v36 = vsel %vm1389_vm6, %v4174_v58, -64.0 }
 0x332   : > { %v1415_v5 = vsel %vm634_vm1, %v1397_v36, -inf  ;;  %2204 = vmatpush.msra.mxu0 %v4050_v10  ;;  %v889_v20 = vmul.f32 0.2, %v873_v53  ;;  %vm881_vm9 = vcmp.gt.f32.partialorder %v873_v53, 0.0 }
 0x333   : > { %v1175_v7 = vpack.c.bf16 %v1169_v4, %v1168_v26  ;;  %v850_v38 = vpop.f32.mrf.mxu1  ;;  %1416 = vmax.xlane.f32.xlu0 %v1415_v5 }
 0x334   : > { %v851_v40 = vadd.f32 %v850_v38, %v4491_v35  ;;  %2205 = vmatpush.msra.mxu0 %v4056_v11  ;;  %v897_v11 = vsel %vm881_vm9, %v873_v53, %v889_v20 }
 0x335   : > { %3674 = vmatmul.msk.bf16.gmra.mxu0 %vm409_vm0, %v1175_v7 }
 0x336   : > { %v863_v8 = vmul.f32 %v4386_v6, %v851_v40 }
 0x337   : > { %v1380_v19 = vpop.xlane.xlu0 %1379 }
 0x338   : > { %v874_v43 = vadd.f32 %v4398_v50, %v863_v8  ;;  %vm1390_vm7 = vcmp.eq.f32.partialorder %v4427_v49, %v1380_v19  ;;  %v1154_v10 = vpop.f32.mrf.mxu3 }
 0x339   : > { %v1398_v31 = vsel %vm1390_vm7, %v4174_v58, -64.0  ;;  %v1170_v62 = vsub.f32 %v1154_v10, %v4124_v21 }
 0x33a   : > { %v1418_v48 = vsel %vm634_vm1, %v1398_v31, -inf  ;;  %vm882_vm10 = vcmp.gt.f32.partialorder %v874_v43, 0.0  ;;  %v890_v54 = vmul.f32 0.2, %v874_v43 }
 0x33b   : > { %1419 = vmax.xlane.f32.xlu2 %v1418_v48 }
 0x33c   : > { %v898_v55 = vsel %vm882_vm10, %v874_v43, %v890_v54 }
 0x33d   : > { %v902_v56 = vpack.c.bf16 %v898_v55, %v897_v11 }
 0x33f   : > { %3656 = vmatmul.msk.bf16.gmra.mxu2 %vm909_vm8, %v902_v56 }
 0x340   : > { %v1157_v61 = vpop.f32.mrf.mxu3 }
 0x341   : > { %v1171_v63 = vsub.f32 %v1157_v61, %v4129_v22 }
 0x343   : > { %v1176_v33 = vpack.c.bf16 %v1171_v63, %v1170_v62 }
 0x345   : > { %3675 = vmatmul.msk.bf16.gmra.mxu0 %vm409_vm0, %v1176_v33 }
 0x348   : > { %v1160_v0 = vpop.f32.mrf.mxu3 }
 0x349   : > { %v1172_v7 = vsub.f32 %v1160_v0, %v4134_v23 }
 0x380   : > { %v1402_v3 = vpop.xlane.xlu2 %1401 }
 0x381   : > { %v1424_v9 = vsub.f32 0.0, %v1402_v3 }
 0x383   : > { %vm1432_vm11 = vcmp.eq.f32.partialorder %v4171_v57, %v1424_v9 }
 0x384   : > { %v3681_v13 = vsel %vm1432_vm11, 1.0, %v5774_v42  ;;  %v4512_v41 = vsel %vm1432_vm11, -inf, %v4324_v59 }
 0x385   : > { %3689 = vmatmul.msk.f32.vlgmr.msra.gmra.mxu2 %vm634_vm1, %v3681_v13  ;;  %v1715_v15 = vsel %vm634_vm1, %v4512_v41, -inf }
 0x386   : > { %1716 = vmax.xlane.f32.xlu1 %v1715_v15  ;;  %2347 = vmatpush.bf16.msra.mxu2 %v4334_v37 }
 0x388   : > { %v1405_v21 = vpop.xlane.xlu1 %1404 }
 0x389   : > { %v1425_v22 = vsub.f32 0.0, %v1405_v21 }
 0x38a   : > { %v1383_v29 = vpop.xlane.xlu2 %1382 }
 0x38b   : > { %vm1433_vm12 = vcmp.eq.f32.partialorder %v4171_v57, %v1425_v22  ;;  %vm1391_vm13 = vcmp.eq.f32.partialorder %v4461_v52, %v1383_v29 }
 0x38c   : > { %v3682_v45 = vsel %vm1433_vm12, 1.0, %v5774_v42  ;;  %v1399_v59 = vsel %vm1391_vm13, %v4174_v58, -64.0  ;;  %v4523_v16 = vsel %vm1433_vm12, -inf, %v4339_v12 }
 0x38d   : > { %3690 = vmatmul.msk.f32.gmra.mxu2 %vm634_vm1, %v3682_v45  ;;  %v1421_v18 = vsel %vm634_vm1, %v1399_v59, -inf  ;;  %v1718_v27 = vsel %vm634_vm1, %v4523_v16, -inf }
 0x38e   : > { %1422 = vmax.xlane.f32.xlu1 %v1421_v18  ;;  %1719 = vmax.xlane.f32.xlu0 %v1718_v27 }
 0x390   : > { %v1408_v60 = vpop.xlane.xlu0 %1407 }
 0x391   : > { %v1426_v30 = vsub.f32 0.0, %v1408_v60 }
 0x393   : > { %vm1434_vm14 = vcmp.eq.f32.partialorder %v4171_v57, %v1426_v30 }
 0x394   : > { %v3683_v1 = vsel %vm1434_vm14, 1.0, %v5774_v42  ;;  %v4532_v26 = vsel %vm1434_vm14, -inf, %v4354_v17 }
 0x395   : > { %3691 = vmatmul.msk.f32.gmra.mxu2 %vm634_vm1, %v3683_v1  ;;  %v1721_v12 = vsel %vm634_vm1, %v4532_v26, -inf }
 0x396   : > { %v1411_v4 = vpop.xlane.xlu1 %1410  ;;  %1722 = vmax.xlane.f32.xlu2 %v1721_v12  ;;  %v4585_v12 = vpop.f32.mrf.mxu2 }
 0x397   : > { %v1427_v36 = vsub.f32 0.0, %v1411_v4 }
 0x399   : > { %vm1435_vm15 = vcmp.eq.f32.partialorder %v4171_v57, %v1427_v36  ;;  %v1163_v5 = vpop.f32.mrf.mxu3 }
 0x39a   : > { %v1173_v38 = vsub.f32 %v1163_v5, %v4139_v24  ;;  %v4541_v53 = vsel %vm1435_vm15, -inf, %v4374_v34  ;;  %v3684_v8 = vsel %vm1435_vm15, 1.0, %v5774_v42 }
 0x39b   : > { %v1724_v17 = vsel %vm634_vm1, %v4541_v53, -inf }
 0x39c   : > { %v1177_v40 = vpack.c.bf16 %v1173_v38, %v1172_v7  ;;  %1725 = vmax.xlane.f32.xlu0 %v1724_v17 }
 0x39d   : > { %3692 = vmatmul.msk.f32.gmra.mxu2 %vm634_vm1, %v3684_v8 }
 0x39e   : > { %3676 = vmatmul.msk.bf16.gmra.mxu0 %vm409_vm0, %v1177_v40  ;;  %v1414_v19 = vpop.xlane.xlu2 %1413 }
 0x39f   : > { %v1428_v20 = vsub.f32 0.0, %v1414_v19 }
 0x3a1   : > { %vm1436_vm2 = vcmp.eq.f32.partialorder %v4171_v57, %v1428_v20  ;;  %v4591_v20 = vpop.f32.mrf.mxu2 }
 0x3a2   : > { %v1199_v23 = vpop.f32.mrf.mxu0  ;;  %v4550_v24 = vsel %vm1436_vm2, -inf, %v4402_v51  ;;  %v3685_v10 = vsel %vm1436_vm2, 1.0, %v5774_v42  ;;  %5776 = vst [vmem:[#allocation2_spill] sm:$0xff] %v4591_v20 }
 0x3a3   : > { %v1200_v34 = vadd.f32 %v1199_v23, %v4364_v28  ;;  %v1727_v43 = vsel %vm634_vm1, %v4550_v24, -inf }
 0x3a4   : > { %1728 = vmax.xlane.f32.xlu1 %v1727_v43 }
 0x3a5   : > { %3693 = vmatmul.msk.f32.gmra.mxu2 %vm634_vm1, %v3685_v10  ;;  %v1219_v48 = vmul.f32 %v4386_v6, %v1200_v34 }
 0x3a6   : > { %v1417_v31 = vpop.xlane.xlu0 %1416 }
 0x3a7   : > { %v1429_v54 = vsub.f32 0.0, %v1417_v31  ;;  %v1227_v55 = vadd.f32 %v4398_v50, %v1219_v48 }
 0x3a9   : > { %vm1437_vm3 = vcmp.eq.f32.partialorder %v4171_v57, %v1429_v54  ;;  %v1243_v3 = vmul.f32 0.2, %v1227_v55  ;;  %vm1235_vm4 = vcmp.gt.f32.partialorder %v1227_v55, 0.0  ;;  %v4597_v54 = vpop.f32.mrf.mxu2 }
 0x3aa   : > { %v1201_v11 = vpop.f32.mrf.mxu0  ;;  %v4560_v51 = vsel %vm1437_vm3, -inf, %v4416_v2  ;;  %v3686_v62 = vsel %vm1437_vm3, 1.0, %v5774_v42 }
 0x3ab   : > { %v1202_v56 = vadd.f32 %v1201_v11, %v4392_v47  ;;  %v1730_v61 = vsel %vm634_vm1, %v4560_v51, -inf  ;;  %v1251_v22 = vsel %vm1235_vm4, %v1227_v55, %v1243_v3 }
 0x3ac   : > { %1731 = vmax.xlane.f32.xlu2 %v1730_v61 }
 0x3ad   : > { %v1220_v63 = vmul.f32 %v4386_v6, %v1202_v56  ;;  %3694 = vmatmul.msk.f32.gmra.mxu2 %vm634_vm1, %v3686_v62 }
 0x3ae   : > { %v1420_v33 = vpop.xlane.xlu2 %1419 }
 0x3af   : > { %v1228_v9 = vadd.f32 %v4398_v50, %v1220_v63  ;;  %v1430_v2 = vsub.f32 0.0, %v1420_v33 }
 0x3b1   : > { %vm1236_vm5 = vcmp.gt.f32.partialorder %v1228_v9, 0.0  ;;  %v1244_v13 = vmul.f32 0.2, %v1228_v9  ;;  %vm1438_vm6 = vcmp.eq.f32.partialorder %v4171_v57, %v1430_v2  ;;  %v4600_v62 = vpop.f32.mrf.mxu2 }
 0x3b2   : > { %v1204_v15 = vpop.f32.mrf.mxu0  ;;  %v4572_v21 = vsel %vm1438_vm6, -inf, %v4427_v49  ;;  %v3687_v27 = vsel %vm1438_vm6, 1.0, %v5774_v42  ;;  %5777 = vst [vmem:[#allocation3_spill] sm:$0xff] %v4600_v62 }
 0x3b3   : > { %v1252_v29 = vsel %vm1236_vm5, %v1228_v9, %v1244_v13  ;;  %v1205_v45 = vadd.f32 %v1204_v15, %v4411_v44  ;;  %v1733_v59 = vsel %vm634_vm1, %v4572_v21, -inf }
 0x3b4   : > { %v1259_v18 = vpack.c.bf16 %v1252_v29, %v1251_v22  ;;  %1734 = vmax.xlane.f32.xlu1 %v1733_v59 }
 0x3b5   : > { %3695 = vmatmul.msk.f32.gmra.mxu2 %vm634_vm1, %v3687_v27  ;;  %v1221_v60 = vmul.f32 %v4386_v6, %v1205_v45 }
 0x3b6   : > { %3677 = vmatmul.msk.bf16.vlgmr.msra.gmra.mxu1 %vm909_vm8, %v1259_v18 }
 0x3b7   : > { %2262 = vmatpush.bf16.msra.mxu1 %v4266_v39  ;;  %v1229_v0 = vadd.f32 %v4398_v50, %v1221_v60 }
 0x3b9   : > { %v1245_v4 = vmul.f32 0.2, %v1229_v0  ;;  %vm1237_vm7 = vcmp.gt.f32.partialorder %v1229_v0, 0.0  ;;  %v4602_v63 = vpop.f32.mrf.mxu2 }
 0x3ba   : > { %v1206_v49 = vpop.f32.mrf.mxu0 }
 0x3bb   : > { %v1207_v30 = vadd.f32 %v1206_v49, %v4429_v32  ;;  %v1253_v17 = vsel %vm1237_vm7, %v1229_v0, %v1245_v4 }
 0x3bd   : > { %v1222_v1 = vmul.f32 %v4386_v6, %v1207_v30 }
 0x3bf   : > { %v1230_v36 = vadd.f32 %v4398_v50, %v1222_v1 }
 0x3c1   : > { %vm1238_vm9 = vcmp.gt.f32.partialorder %v1230_v36, 0.0  ;;  %v1246_v5 = vmul.f32 0.2, %v1230_v36  ;;  %v4604_v33 = vpop.f32.mrf.mxu2 }
 0x3c2   : > { %v1209_v7 = vpop.f32.mrf.mxu0  ;;  %5778 = vst [vmem:[#allocation4_spill] sm:$0xff] %v4604_v33 }
 0x3c3   : > { %v1210_v38 = vadd.f32 %v1209_v7, %v4439_v46  ;;  %v1254_v40 = vsel %vm1238_vm9, %v1230_v36, %v1246_v5  ;;  %v4629_v5 = vld [vmem:[%s4083_s19] sm:$0xff] }
 0x3c4   : > { %v1260_v8 = vpack.c.bf16 %v1254_v40, %v1253_v17 }
 0x3c5   : > { %v1223_v19 = vmul.f32 %v4386_v6, %v1210_v38  ;;  %v4633_v38 = vld [vmem:[%s4083_s19 + $0x8] sm:$0xff] }
 0x3c6   : > { %3678 = vmatmul.msk.bf16.gmra.mxu1 %vm909_vm8, %v1260_v8 }
 0x3c7   : > { %v1231_v34 = vadd.f32 %v4398_v50, %v1223_v19 }
 0x3c9   : > { %v1247_v31 = vmul.f32 0.2, %v1231_v34  ;;  %vm1239_vm10 = vcmp.gt.f32.partialorder %v1231_v34, 0.0  ;;  %v4606_v3 = vpop.f32.mrf.mxu2 }
 0x3ca   : > { %v1211_v23 = vpop.f32.mrf.mxu0 }
 0x3cb   : > { %v1212_v43 = vadd.f32 %v1211_v23, %v4445_v14  ;;  %v1255_v55 = vsel %vm1239_vm10, %v1231_v34, %v1247_v31  ;;  %v4640_v23 = vld [vmem:[%s4006_s16 + $0x38] sm:$0xff] }
 0x3cd   : > { %v1224_v10 = vmul.f32 %v4386_v6, %v1212_v43 }
 0x3cf   : > { %v1232_v48 = vadd.f32 %v4398_v50, %v1224_v10  ;;  %v4645_v10 = vld [vmem:[%s4006_s16 + $0x30] sm:$0xff] }
 0x3d1   : > { %vm1240_vm11 = vcmp.gt.f32.partialorder %v1232_v48, 0.0  ;;  %v1248_v11 = vmul.f32 0.2, %v1232_v48  ;;  %v4611_v15 = vpop.f32.mrf.mxu2 }
 0x3d2   : > { %5779 = vst [vmem:[#allocation5_spill] sm:$0xff] %v4611_v15 }
 0x3d3   : > { %v1256_v56 = vsel %vm1240_vm11, %v1232_v48, %v1248_v11  ;;  %v4651_v11 = vld [vmem:[%s4006_s16 + $0x28] sm:$0xff] }
 0x3d4   : > { %v1261_v61 = vpack.c.bf16 %v1256_v56, %v1255_v55 }
 0x3d6   : > { %3679 = vmatmul.msk.bf16.gmra.mxu1 %vm909_vm8, %v1261_v61  ;;  %v4656_v61 = vld [vmem:[%s4006_s16 + $0x20] sm:$0xff] }
 0x3f9   : > { %v1717_v9 = vpop.xlane.xlu1 %1716 }
 0x3fa   : > { %vm1739_vm12 = vcmp.eq.f32.partialorder %v4512_v41, %v1717_v9  ;;  %v4660_v9 = vld [vmem:[%s4006_s16 + $0x18] sm:$0xff] }
 0x3fb   : > { %v1747_v2 = vsel %vm1739_vm12, %v4174_v58, -64.0 }
 0x3fc   : > { %v1755_v13 = vsel %vm634_vm1, %v1747_v2, -inf }
 0x3fd   : > { %1756 = vmax.xlane.f32.xlu0 %v1755_v13 }
 0x401   : > { %v1423_v22 = vpop.xlane.xlu1 %1422  ;;  %v1720_v29 = vpop.xlane.xlu0 %1719 }
 0x402   : > { %v1431_v45 = vsub.f32 0.0, %v1423_v22  ;;  %vm1740_vm13 = vcmp.eq.f32.partialorder %v4523_v16, %v1720_v29  ;;  %v4666_v29 = vld [vmem:[%s4006_s16 + $0x10] sm:$0xff] }
 0x403   : > { %v1748_v59 = vsel %vm1740_vm13, %v4174_v58, -64.0 }
 0x404   : > { %vm1439_vm14 = vcmp.eq.f32.partialorder %v4171_v57, %v1431_v45  ;;  %v1758_v18 = vsel %vm634_vm1, %v1748_v59, -inf  ;;  %v4670_v45 = vld [vmem:[%s4083_s19 + $0x10] sm:$0xff] }
 0x405   : > { %1759 = vmax.xlane.f32.xlu2 %v1758_v18  ;;  %v3688_v27 = vsel %vm1439_vm14, 1.0, %v5774_v42  ;;  %v4619_v60 = vsel %vm1439_vm14, -inf, %v4461_v52  ;;  %v4674_v18 = vld [vmem:[%s4083_s19 + $0x18] sm:$0xff] }
 0x406   : > { %3696 = vmatmul.msk.f32.gmra.mxu2 %vm634_vm1, %v3688_v27  ;;  %v1736_v49 = vsel %vm634_vm1, %v4619_v60, -inf }
 0x407   : > { %1737 = vmax.xlane.f32.xlu0 %v1736_v49 }
 0x408   : > { %v1497_v0 = vpop.f32.mrf.mxu2 }
 0x409   : > { %v1723_v30 = vpop.xlane.xlu2 %1722  ;;  %v1521_v7 = vsub.f32 %v1497_v0, %v4629_v5 }
 0x40a   : > { %vm1741_vm15 = vcmp.eq.f32.partialorder %v4532_v26, %v1723_v30  ;;  %v4680_v30 = vld [vmem:[%s4006_s16 + $0x8] sm:$0xff] }
 0x40b   : > { %v1749_v1 = vsel %vm1741_vm15, %v4174_v58, -64.0 }
 0x40c   : > { %v1761_v4 = vsel %vm634_vm1, %v1749_v1, -inf }
 0x40d   : > { %1762 = vmax.xlane.f32.xlu1 %v1761_v4 }
 0x40f   : > { %v1726_v36 = vpop.xlane.xlu0 %1725 }
 0x410   : > { %vm1742_vm2 = vcmp.eq.f32.partialorder %v4541_v53, %v1726_v36  ;;  %v1500_v52 = vpop.f32.mrf.mxu2 }
 0x411   : > { %v1522_v17 = vsub.f32 %v1500_v52, %v4633_v38  ;;  %v1750_v40 = vsel %vm1742_vm2, %v4174_v58, -64.0 }
 0x412   : > { %v1764_v8 = vsel %vm634_vm1, %v1750_v40, -inf }
 0x413   : > { %v1529_v19 = vpack.c.bf16 %v1522_v17, %v1521_v7  ;;  %1765 = vmax.xlane.f32.xlu2 %v1764_v8  ;;  %v4686_v7 = vld [vmem:[%s4006_s16] sm:$0xff] }
 0x415   : > { %3697 = vmatmul.msk.bf16.vlgmr.msra.gmra.mxu3 %vm409_vm0, %v1529_v19 }
 0x416   : > { %2553 = vmatpush.msra.mxu3 %v4640_v23 }
 0x417   : > { %v1729_v34 = vpop.xlane.xlu1 %1728 }
 0x418   : > { %vm1743_vm3 = vcmp.eq.f32.partialorder %v4550_v24, %v1729_v34  ;;  %v1503_v43 = vpop.f32.mrf.mxu2  ;;  %2554 = vmatpush.msra.mxu3 %v4645_v10 }
 0x419   : > { %v1751_v31 = vsel %vm1743_vm3, %v4174_v58, -64.0  ;;  %v1523_v59 = vsub.f32 %v1503_v43, %v4670_v45 }
 0x41a   : > { %v1767_v48 = vsel %vm634_vm1, %v1751_v31, -inf  ;;  %2555 = vmatpush.msra.mxu3 %v4651_v11  ;;  %v4697_v31 = vld [vmem:[%s5771_s7] ss:$0 sm:$0xff] }
 0x41b   : > { %v1214_v55 = vpop.f32.mrf.mxu0  ;;  %1768 = vmax.xlane.f32.xlu0 %v1767_v48 }
 0x41c   : > { %v1215_v56 = vadd.f32 %v1214_v55, %v4476_v25  ;;  %2556 = vmatpush.msra.mxu3 %v4656_v61 }
 0x41e   : > { %2557 = vmatpush.msra.mxu3 %v4660_v9  ;;  %v1225_v13 = vmul.f32 %v4386_v6, %v1215_v56 }
 0x41f   : > { %v1732_v2 = vpop.xlane.xlu2 %1731 }
 0x420   : > { %vm1744_vm4 = vcmp.eq.f32.partialorder %v4560_v51, %v1732_v2  ;;  %v1506_v22 = vpop.f32.mrf.mxu2  ;;  %2558 = vmatpush.msra.mxu3 %v4666_v29  ;;  %v1233_v36 = vadd.f32 %v4398_v50, %v1225_v13 }
 0x421   : > { %v1524_v27 = vsub.f32 %v1506_v22, %v4674_v18  ;;  %v1752_v49 = vsel %vm1744_vm4, %v4174_v58, -64.0  ;;  %v954_v22 = vmul.f32 %v4697_v31, %v4585_v12 }
 0x422   : > { %v1770_v0 = vsel %vm634_vm1, %v1752_v49, -inf  ;;  %2559 = vmatpush.msra.mxu3 %v4680_v30  ;;  %v1249_v8 = vmul.f32 0.2, %v1233_v36  ;;  %vm1241_vm6 = vcmp.gt.f32.partialorder %v1233_v36, 0.0  ;;  %v4709_v49 = vld [vmem:[%s4083_s19 + $0x20] sm:$0xff] }
 0x423   : > { %v1530_v1 = vpack.c.bf16 %v1524_v27, %v1523_v59  ;;  %v1216_v4 = vpop.f32.mrf.mxu0  ;;  %1771 = vmax.xlane.f32.xlu1 %v1770_v0  ;;  %v4705_v59 = vld [vmem:[%s5772_s8] ss:$0 sm:$0xff] }
 0x424   : > { %v1217_v52 = vadd.f32 %v1216_v4, %v4491_v35  ;;  %2560 = vmatpush.msra.mxu3 %v4686_v7  ;;  %v1257_v56 = vsel %vm1241_vm6, %v1233_v36, %v1249_v8  ;;  %v965_v36 = vadd.f32 %v4705_v59, %v954_v22 }
 0x425   : > { %3698 = vmatmul.msk.bf16.gmra.mxu3 %vm409_vm0, %v1530_v1  ;;  %v4713_v1 = vld [vmem:[%s4083_s19 + $0x28] sm:$0xff] }
 0x426   : > { %v1226_v17 = vmul.f32 %v4386_v6, %v1217_v52  ;;  %vm973_vm9 = vcmp.gt.f32.partialorder %v965_v36, 0.0 }
 0x427   : > { %v1735_v40 = vpop.xlane.xlu1 %1734 }
 0x428   : > { %v1234_v19 = vadd.f32 %v4398_v50, %v1226_v17  ;;  %vm1745_vm5 = vcmp.eq.f32.partialorder %v4572_v21, %v1735_v40  ;;  %v1509_v34 = vpop.f32.mrf.mxu2  ;;  %v981_v40 = vmul.f32 0.2, %v965_v36 }
 0x429   : > { %v1753_v43 = vsel %vm1745_vm5, %v4174_v58, -64.0  ;;  %v1525_v0 = vsub.f32 %v1509_v34, %v4709_v49 }
 0x42a   : > { %v1773_v48 = vsel %vm634_vm1, %v1753_v43, -inf  ;;  %vm1242_vm7 = vcmp.gt.f32.partialorder %v1234_v19, 0.0  ;;  %v1250_v55 = vmul.f32 0.2, %v1234_v19  ;;  %v4720_v43 = vsel %vm973_vm9, %v965_v36, %v981_v40 }
 0x42b   : > { %1774 = vmax.xlane.f32.xlu2 %v1773_v48 }
 0x42c   : > { %v1258_v2 = vsel %vm1242_vm7, %v1234_v19, %v1250_v55 }
 0x42d   : > { %v1262_v13 = vpack.c.bf16 %v1258_v2, %v1257_v56  ;;  %v956_v56 = vmul.f32 %v4697_v31, %v4597_v54  ;;  %v958_v54 = vmul.f32 %v4697_v31, %v4602_v63 }
 0x42f   : > { %3680 = vmatmul.msk.bf16.gmra.mxu1 %vm909_vm8, %v1262_v13  ;;  %v967_v2 = vadd.f32 %v4705_v59, %v956_v56  ;;  %v969_v40 = vadd.f32 %v4705_v59, %v958_v54 }
 0x430   : > { %v1512_v27 = vpop.f32.mrf.mxu2 }
 0x431   : > { %v1526_v4 = vsub.f32 %v1512_v27, %v4713_v1  ;;  %v983_v27 = vmul.f32 0.2, %v967_v2  ;;  %vm975_vm11 = vcmp.gt.f32.partialorder %v967_v2, 0.0  ;;  %v985_v56 = vmul.f32 0.2, %v969_v40 }
 0x432   : > { %vm977_vm13 = vcmp.gt.f32.partialorder %v969_v40, 0.0 }
 0x433   : > { %v1531_v52 = vpack.c.bf16 %v1526_v4, %v1525_v0  ;;  %v1284_v12 = vpop.f32.mrf.mxu1  ;;  %v4733_v36 = vsel %vm975_vm11, %v967_v2, %v983_v27 }
 0x434   : > { %v1304_v17 = vmul.f32 %v4697_v31, %v1284_v12 }
 0x435   : > { %3699 = vmatmul.msk.bf16.gmra.mxu3 %vm409_vm0, %v1531_v52 }
 0x436   : > { %v1312_v8 = vadd.f32 %v4705_v59, %v1304_v17 }
 0x438   : > { %vm1320_vm10 = vcmp.gt.f32.partialorder %v1312_v8, 0.0  ;;  %v1328_v19 = vmul.f32 0.2, %v1312_v8 }
 0x43a   : > { %v4722_v34 = vsel %vm1320_vm10, %v1312_v8, %v1328_v19 }
 0x43b   : > { %v4726_v55 = vpop.f32.mrf.mxu1 }
 0x43c   : > { %5780 = vst [vmem:[#allocation6_spill] sm:$0xff] %v4726_v55 }
 0x443   : > { %v1289_v13 = vpop.f32.mrf.mxu1 }
 0x444   : > { %v1306_v22 = vmul.f32 %v4697_v31, %v1289_v13 }
 0x446   : > { %v1314_v0 = vadd.f32 %v4705_v59, %v1306_v22  ;;  %v4746_v22 = vsel %vm977_vm13, %v969_v40, %v985_v56 }
 0x448   : > { %vm1322_vm12 = vcmp.gt.f32.partialorder %v1314_v0, 0.0  ;;  %v1330_v4 = vmul.f32 0.2, %v1314_v0 }
 0x44a   : > { %v4735_v52 = vsel %vm1322_vm12, %v1314_v0, %v1330_v4 }
 0x44b   : > { %v4739_v17 = vpop.f32.mrf.mxu1 }
 0x44c   : > { %5781 = vst [vmem:[#allocation7_spill] sm:$0xff] %v4739_v17 }
 0x453   : > { %v1294_v8 = vpop.f32.mrf.mxu1 }
 0x454   : > { %v1308_v19 = vmul.f32 %v4697_v31, %v1294_v8 }
 0x456   : > { %v1316_v13 = vadd.f32 %v4705_v59, %v1308_v19 }
 0x458   : > { %vm1324_vm14 = vcmp.gt.f32.partialorder %v1316_v13, 0.0  ;;  %v1332_v2 = vmul.f32 0.2, %v1316_v13 }
 0x45a   : > { %v4748_v27 = vsel %vm1324_vm14, %v1316_v13, %v1332_v2 }
 0x470   : > { %v1757_v4 = vpop.xlane.xlu0 %1756 }
 0x471   : > { %v1779_v63 = vsub.f32 0.0, %v1757_v4 }
 0x473   : > { %vm1787_vm15 = vcmp.eq.f32.partialorder %v4171_v57, %v1779_v63 }
 0x474   : > { %v3705_v54 = vsel %vm1787_vm15, 1.0, %v5774_v42  ;;  %v4755_v8 = vsel %vm1787_vm15, -inf, %v4512_v41 }
 0x475   : > { %3713 = vmatmul.msk.f32.vlgmr.msrb.gmra.mxu1 %vm634_vm1, %v3705_v54  ;;  %v2070_v40 = vsel %vm634_vm1, %v4755_v8, -inf }
 0x476   : > { %2071 = vmax.xlane.f32.xlu1 %v2070_v40  ;;  %2702 = vmatpush.bf16.msrb.mxu1 %v4334_v37  ;;  %v1515_v40 = vpop.f32.mrf.mxu2 }
 0x478   : > { %v1760_v19 = vpop.xlane.xlu2 %1759 }
 0x479   : > { %v1780_v56 = vsub.f32 0.0, %v1760_v19 }
 0x47a   : > { %v1738_v13 = vpop.xlane.xlu0 %1737 }
 0x47b   : > { %vm1788_vm2 = vcmp.eq.f32.partialorder %v4171_v57, %v1780_v56  ;;  %vm1746_vm3 = vcmp.eq.f32.partialorder %v4619_v60, %v1738_v13 }
 0x47c   : > { %v3706_v2 = vsel %vm1788_vm2, 1.0, %v5774_v42  ;;  %v4765_v41 = vsel %vm1788_vm2, -inf, %v4523_v16  ;;  %v1754_v4 = vsel %vm1746_vm3, %v4174_v58, -64.0 }
 0x47d   : > { %3714 = vmatmul.msk.f32.gmra.mxu1 %vm634_vm1, %v3706_v2  ;;  %v2073_v63 = vsel %vm634_vm1, %v4765_v41, -inf  ;;  %v1776_v37 = vsel %vm634_vm1, %v1754_v4, -inf }
 0x47e   : > { %2074 = vmax.xlane.f32.xlu2 %v2073_v63  ;;  %1777 = vmax.xlane.f32.xlu0 %v1776_v37  ;;  %v4782_v37 = vld [vmem:[%s4083_s19 + $0x30] sm:$0xff] }
 0x480   : > { %v1763_v54 = vpop.xlane.xlu1 %1762 }
 0x481   : > { %v1781_v19 = vsub.f32 0.0, %v1763_v54  ;;  %v1527_v54 = vsub.f32 %v1515_v40, %v4782_v37 }
 0x483   : > { %vm1789_vm4 = vcmp.eq.f32.partialorder %v4171_v57, %v1781_v19  ;;  %v4786_v19 = vld [vmem:[%s4083_s19 + $0x38] sm:$0xff] }
 0x484   : > { %v3707_v16 = vsel %vm1789_vm4, 1.0, %v5774_v42  ;;  %v4775_v56 = vsel %vm1789_vm4, -inf, %v4532_v26 }
 0x485   : > { %3715 = vmatmul.msk.f32.gmra.mxu1 %vm634_vm1, %v3707_v16  ;;  %v2076_v13 = vsel %vm634_vm1, %v4775_v56, -inf }
 0x486   : > { %v1766_v2 = vpop.xlane.xlu2 %1765  ;;  %2077 = vmax.xlane.f32.xlu0 %v2076_v13 }
 0x487   : > { %v1782_v4 = vsub.f32 0.0, %v1766_v2 }
 0x489   : > { %vm1790_vm5 = vcmp.eq.f32.partialorder %v4171_v57, %v1782_v4  ;;  %v1518_v63 = vpop.f32.mrf.mxu2 }
 0x48a   : > { %v1528_v26 = vsub.f32 %v1518_v63, %v4786_v19  ;;  %v4790_v0 = vsel %vm1790_vm5, -inf, %v4541_v53  ;;  %v3708_v13 = vsel %vm1790_vm5, 1.0, %v5774_v42 }
 0x48b   : > { %v2079_v16 = vsel %vm634_vm1, %v4790_v0, -inf }
 0x48c   : > { %v1532_v12 = vpack.c.bf16 %v1528_v26, %v1527_v54  ;;  %2080 = vmax.xlane.f32.xlu1 %v2079_v16 }
 0x48d   : > { %3716 = vmatmul.msk.f32.gmra.mxu1 %vm634_vm1, %v3708_v13 }
 0x48e   : > { %3700 = vmatmul.msk.bf16.gmra.mxu3 %vm409_vm0, %v1532_v12  ;;  %v1769_v2 = vpop.xlane.xlu0 %1768 }
 0x48f   : > { %v1783_v40 = vsub.f32 0.0, %v1769_v2 }
 0x491   : > { %vm1791_vm6 = vcmp.eq.f32.partialorder %v4171_v57, %v1783_v40 }
 0x492   : > { %v4799_v4 = vsel %vm1791_vm6, -inf, %v4550_v24  ;;  %v3709_v63 = vsel %vm1791_vm6, 1.0, %v5774_v42 }
 0x493   : > { %v2082_v53 = vsel %vm634_vm1, %v4799_v4, -inf }
 0x494   : > { %2083 = vmax.xlane.f32.xlu2 %v2082_v53 }
 0x495   : > { %3717 = vmatmul.msk.f32.gmra.mxu1 %vm634_vm1, %v3709_v63 }
 0x496   : > { %v1772_v54 = vpop.xlane.xlu1 %1771 }
 0x497   : > { %v1784_v26 = vsub.f32 0.0, %v1772_v54 }
 0x498   : > { %v1554_v16 = vpop.f32.mrf.mxu3 }
 0x499   : > { %vm1792_vm7 = vcmp.eq.f32.partialorder %v4171_v57, %v1784_v26  ;;  %v1555_v12 = vadd.f32 %v1554_v16, %v4364_v28 }
 0x49a   : > { %v4808_v13 = vsel %vm1792_vm7, -inf, %v4560_v51  ;;  %v3710_v2 = vsel %vm1792_vm7, 1.0, %v5774_v42 }
 0x49b   : > { %v2085_v24 = vsel %vm634_vm1, %v4808_v13, -inf  ;;  %v1574_v40 = vmul.f32 %v4386_v6, %v1555_v12  ;;  %v4824_v12 = vpop.f32.mrf.mxu1 }
 0x49c   : > { %2086 = vmax.xlane.f32.xlu0 %v2085_v24  ;;  %5782 = vst [vmem:[#allocation8_spill] sm:$0xff] %v4824_v12 }
 0x49d   : > { %3718 = vmatmul.msk.f32.gmra.mxu1 %vm634_vm1, %v3710_v2  ;;  %v1582_v26 = vadd.f32 %v4398_v50, %v1574_v40 }
 0x49e   : > { %v1775_v53 = vpop.xlane.xlu2 %1774 }
 0x49f   : > { %v1785_v63 = vsub.f32 0.0, %v1775_v53  ;;  %v1598_v53 = vmul.f32 0.2, %v1582_v26  ;;  %vm1590_vm10 = vcmp.gt.f32.partialorder %v1582_v26, 0.0 }
 0x4a0   : > { %v1556_v54 = vpop.f32.mrf.mxu3 }
 0x4a1   : > { %vm1793_vm9 = vcmp.eq.f32.partialorder %v4171_v57, %v1785_v63  ;;  %v1557_v51 = vadd.f32 %v1556_v54, %v4392_v47 }
 0x4a2   : > { %v4819_v16 = vsel %vm1793_vm9, -inf, %v4572_v21  ;;  %v3711_v2 = vsel %vm1793_vm9, 1.0, %v5774_v42  ;;  %v960_v21 = vmul.f32 %v4697_v31, %v4606_v3 }
 0x4a3   : > { %v1575_v24 = vmul.f32 %v4386_v6, %v1557_v51  ;;  %v2088_v48 = vsel %vm634_vm1, %v4819_v16, -inf  ;;  %v1606_v51 = vsel %vm1590_vm10, %v1582_v26, %v1598_v53 }
 0x4a4   : > { %2089 = vmax.xlane.f32.xlu2 %v2088_v48  ;;  %v971_v48 = vadd.f32 %v4705_v59, %v960_v21 }
 0x4a5   : > { %v1583_v40 = vadd.f32 %v4398_v50, %v1575_v24  ;;  %3719 = vmatmul.msk.f32.gmra.mxu1 %vm634_vm1, %v3711_v2 }
 0x4a6   : > { %v987_v3 = vmul.f32 0.2, %v971_v48  ;;  %vm979_vm12 = vcmp.gt.f32.partialorder %v971_v48, 0.0 }
 0x4a7   : > { %vm1591_vm11 = vcmp.gt.f32.partialorder %v1583_v40, 0.0  ;;  %v1599_v63 = vmul.f32 0.2, %v1583_v40 }
 0x4a8   : > { %v1559_v54 = vpop.f32.mrf.mxu3  ;;  %v4840_v21 = vsel %vm979_vm12, %v971_v48, %v987_v3 }
 0x4a9   : > { %v1607_v15 = vsel %vm1591_vm11, %v1583_v40, %v1599_v63  ;;  %v1560_v33 = vadd.f32 %v1559_v54, %v4411_v44 }
 0x4aa   : > { %v1614_v12 = vpack.c.bf16 %v1607_v15, %v1606_v51 }
 0x4ab   : > { %v1576_v24 = vmul.f32 %v4386_v6, %v1560_v33 }
 0x4ac   : > { %v1299_v42 = vpop.f32.mrf.mxu1  ;;  %3701 = vmatmul.msk.bf16.vlgmr.msrb.gmra.mxu0 %vm909_vm8, %v1614_v12 }
 0x4ad   : > { %v1310_v2 = vmul.f32 %v4697_v31, %v1299_v42  ;;  %2617 = vmatpush.bf16.msrb.mxu0 %v4266_v39  ;;  %v1584_v53 = vadd.f32 %v4398_v50, %v1576_v24  ;;  %v4847_v42 = vld [vmem:[%s5768_s4] ss:$0 sm:$0xff] }
 0x4ae   : > { %v4855_v50 = vld [vmem:[%s5769_s5] ss:$0 sm:$0xff] }
 0x4af   : > { %v1318_v62 = vadd.f32 %v4705_v59, %v1310_v2  ;;  %v1600_v63 = vmul.f32 0.2, %v1584_v53  ;;  %vm1592_vm14 = vcmp.gt.f32.partialorder %v1584_v53, 0.0 }
 0x4b0   : > { %v1561_v26 = vpop.f32.mrf.mxu3 }
 0x4b1   : > { %vm1326_vm13 = vcmp.gt.f32.partialorder %v1318_v62, 0.0  ;;  %v1334_v15 = vmul.f32 0.2, %v1318_v62  ;;  %v1562_v40 = vadd.f32 %v1561_v26, %v4429_v32  ;;  %v1608_v24 = vsel %vm1592_vm14, %v1584_v53, %v1600_v63 }
 0x4b3   : > { %v4842_v12 = vsel %vm1326_vm13, %v1318_v62, %v1334_v15  ;;  %v1577_v6 = vmul.f32 %v4847_v42, %v1562_v40 }
 0x4b5   : > { %v1585_v54 = vadd.f32 %v4855_v50, %v1577_v6 }
 0x4b7   : > { %vm1593_vm15 = vcmp.gt.f32.partialorder %v1585_v54, 0.0  ;;  %v1601_v62 = vmul.f32 0.2, %v1585_v54 }
 0x4b8   : > { %v1564_v51 = vpop.f32.mrf.mxu3 }
 0x4b9   : > { %v1565_v48 = vadd.f32 %v1564_v51, %v4439_v46  ;;  %v1609_v2 = vsel %vm1593_vm15, %v1585_v54, %v1601_v62 }
 0x4ba   : > { %v1615_v3 = vpack.c.bf16 %v1609_v2, %v1608_v24 }
 0x4bb   : > { %v1578_v26 = vmul.f32 %v4847_v42, %v1565_v48  ;;  %v4866_v48 = vpop.f32.mrf.mxu1 }
 0x4bc   : > { %3702 = vmatmul.msk.bf16.gmra.mxu0 %vm909_vm8, %v1615_v3  ;;  %5783 = vst [vmem:[#allocation9_spill] sm:$0xff] %v4866_v48 }
 0x4bd   : > { %v1586_v40 = vadd.f32 %v4855_v50, %v1578_v26 }
 0x4bf   : > { %v1602_v17 = vmul.f32 0.2, %v1586_v40  ;;  %vm1594_vm2 = vcmp.gt.f32.partialorder %v1586_v40, 0.0 }
 0x4c0   : > { %v1566_v15 = vpop.f32.mrf.mxu3 }
 0x4c1   : > { %v1567_v33 = vadd.f32 %v1566_v15, %v4445_v14  ;;  %v1610_v53 = vsel %vm1594_vm2, %v1586_v40, %v1602_v17  ;;  %v5784_v40 = vmov 0.0  }
 0x4c3   : > { %v1579_v6 = vmul.f32 %v4847_v42, %v1567_v33 }
 0x4c5   : > { %v1587_v20 = vadd.f32 %v4855_v50, %v1579_v6 }
 0x4c7   : > { %vm1595_vm3 = vcmp.gt.f32.partialorder %v1587_v20, 0.0  ;;  %v1603_v51 = vmul.f32 0.2, %v1587_v20 }
 0x4c9   : > { %v1611_v63 = vsel %vm1595_vm3, %v1587_v20, %v1603_v51 }
 0x4ca   : > { %v1616_v54 = vpack.c.bf16 %v1611_v63, %v1610_v53 }
 0x4cc   : > { %3703 = vmatmul.msk.bf16.gmra.mxu0 %vm909_vm8, %v1616_v54 }
 0x4e9   : > { %v2072_v62 = vpop.xlane.xlu1 %2071 }
 0x4ea   : > { %vm2094_vm4 = vcmp.eq.f32.partialorder %v4755_v8, %v2072_v62 }
 0x4eb   : > { %v2102_v24 = vsel %vm2094_vm4, %v4174_v58, -64.0 }
 0x4ec   : > { %v2110_v33 = vsel %vm634_vm1, %v2102_v24, -inf }
 0x4ed   : > { %2111 = vmax.xlane.f32.xlu1 %v2110_v33 }
 0x4f1   : > { %v2075_v2 = vpop.xlane.xlu2 %2074  ;;  %v1778_v3 = vpop.xlane.xlu0 %1777 }
 0x4f2   : > { %vm2095_vm5 = vcmp.eq.f32.partialorder %v4765_v41, %v2075_v2  ;;  %v1786_v26 = vsub.f32 0.0, %v1778_v3  ;;  %v1852_v17 = vpop.f32.mrf.mxu1 }
 0x4f3   : > { %v2103_v20 = vsel %vm2095_vm5, %v4174_v58, -64.0  ;;  %v1876_v62 = vsub.f32 %v1852_v17, %v4629_v5 }
 0x4f4   : > { %vm1794_vm6 = vcmp.eq.f32.partialorder %v4171_v57, %v1786_v26  ;;  %v2113_v15 = vsel %vm634_vm1, %v2103_v20, -inf }
 0x4f5   : > { %2114 = vmax.xlane.f32.xlu0 %v2113_v15  ;;  %v3712_v6 = vsel %vm1794_vm6, 1.0, %v5784_v40  ;;  %v4877_v51 = vsel %vm1794_vm6, -inf, %v4619_v60 }
 0x4f6   : > { %3720 = vmatmul.msk.f32.gmra.mxu1 %vm634_vm1, %v3712_v6  ;;  %v2091_v53 = vsel %vm634_vm1, %v4877_v51, -inf }
 0x4f7   : > { %2092 = vmax.xlane.f32.xlu1 %v2091_v53 }
 0x4f9   : > { %v2078_v63 = vpop.xlane.xlu0 %2077 }
 0x4fa   : > { %vm2096_vm7 = vcmp.eq.f32.partialorder %v4775_v56, %v2078_v63  ;;  %v1855_v54 = vpop.f32.mrf.mxu1 }
 0x4fb   : > { %v1877_v24 = vsub.f32 %v1855_v54, %v4633_v38  ;;  %v2104_v33 = vsel %vm2096_vm7, %v4174_v58, -64.0 }
 0x4fc   : > { %v2116_v2 = vsel %vm634_vm1, %v2104_v33, -inf }
 0x4fd   : > { %v1884_v60 = vpack.c.bf16 %v1877_v24, %v1876_v62  ;;  %2117 = vmax.xlane.f32.xlu2 %v2116_v2 }
 0x4ff   : > { %v2081_v3 = vpop.xlane.xlu1 %2080  ;;  %3721 = vmatmul.msk.bf16.vlgmr.msrb.gmra.mxu2 %vm409_vm0, %v1884_v60 }
 0x500   : > { %vm2097_vm9 = vcmp.eq.f32.partialorder %v4790_v0, %v2081_v3  ;;  %2908 = vmatpush.msrb.mxu2 %v4640_v23 }
 0x501   : > { %v2105_v26 = vsel %vm2097_vm9, %v4174_v58, -64.0 }
 0x502   : > { %v1858_v20 = vpop.f32.mrf.mxu1  ;;  %v2119_v17 = vsel %vm634_vm1, %v2105_v26, -inf  ;;  %2909 = vmatpush.msrb.mxu2 %v4645_v10 }
 0x503   : > { %2120 = vmax.xlane.f32.xlu0 %v2119_v17  ;;  %v1878_v54 = vsub.f32 %v1858_v20, %v4670_v45 }
 0x504   : > { %2910 = vmatpush.msrb.mxu2 %v4651_v11 }
 0x506   : > { %2911 = vmatpush.msrb.mxu2 %v4656_v61 }
 0x507   : > { %v2084_v15 = vpop.xlane.xlu2 %2083 }
 0x508   : > { %vm2098_vm10 = vcmp.eq.f32.partialorder %v4799_v4, %v2084_v15  ;;  %2912 = vmatpush.msrb.mxu2 %v4660_v9 }
 0x509   : > { %v2106_v6 = vsel %vm2098_vm10, %v4174_v58, -64.0 }
 0x50a   : > { %v1861_v53 = vpop.f32.mrf.mxu1  ;;  %v2122_v63 = vsel %vm634_vm1, %v2106_v6, -inf  ;;  %2913 = vmatpush.msrb.mxu2 %v4666_v29 }
 0x50b   : > { %v1879_v62 = vsub.f32 %v1861_v53, %v4674_v18  ;;  %2123 = vmax.xlane.f32.xlu1 %v2122_v63 }
 0x50c   : > { %2914 = vmatpush.msrb.mxu2 %v4680_v30 }
 0x50d   : > { %v1885_v24 = vpack.c.bf16 %v1879_v62, %v1878_v54 }
 0x50e   : > { %2915 = vmatpush.msrb.mxu2 %v4686_v7 }
 0x50f   : > { %3722 = vmatmul.msk.bf16.gmra.mxu2 %vm409_vm0, %v1885_v24  ;;  %v2087_v33 = vpop.xlane.xlu0 %2086 }
 0x510   : > { %vm2099_vm11 = vcmp.eq.f32.partialorder %v4808_v13, %v2087_v33 }
 0x511   : > { %v1569_v2 = vpop.f32.mrf.mxu3  ;;  %v2107_v60 = vsel %vm2099_vm11, %v4174_v58, -64.0 }
 0x512   : > { %v1570_v3 = vadd.f32 %v1569_v2, %v4476_v25  ;;  %v1864_v26 = vpop.f32.mrf.mxu1  ;;  %v2125_v20 = vsel %vm634_vm1, %v2107_v60, -inf }
 0x513   : > { %2126 = vmax.xlane.f32.xlu2 %v2125_v20  ;;  %v1880_v33 = vsub.f32 %v1864_v26, %v4709_v49 }
 0x514   : > { %v1580_v17 = vmul.f32 %v4847_v42, %v1570_v3 }
 0x516   : > { %v1588_v63 = vadd.f32 %v4855_v50, %v1580_v17 }
 0x517   : > { %v2090_v15 = vpop.xlane.xlu2 %2089 }
 0x518   : > { %vm2100_vm12 = vcmp.eq.f32.partialorder %v4819_v16, %v2090_v15  ;;  %v1604_v20 = vmul.f32 0.2, %v1588_v63  ;;  %vm1596_vm13 = vcmp.gt.f32.partialorder %v1588_v63, 0.0 }
 0x519   : > { %v1571_v6 = vpop.f32.mrf.mxu3  ;;  %v2108_v53 = vsel %vm2100_vm12, %v4174_v58, -64.0 }
 0x51a   : > { %v1572_v54 = vadd.f32 %v1571_v6, %v4491_v35  ;;  %v1867_v62 = vpop.f32.mrf.mxu1  ;;  %v2128_v24 = vsel %vm634_vm1, %v2108_v53, -inf  ;;  %v1612_v6 = vsel %vm1596_vm13, %v1588_v63, %v1604_v20 }
 0x51b   : > { %v1881_v2 = vsub.f32 %v1867_v62, %v4713_v1  ;;  %2129 = vmax.xlane.f32.xlu1 %v2128_v24 }
 0x51c   : > { %v1581_v60 = vmul.f32 %v4847_v42, %v1572_v54 }
 0x51d   : > { %v1886_v3 = vpack.c.bf16 %v1881_v2, %v1880_v33  ;;  %v5785_v33 = vmax.f32 %v4720_v43, %v4722_v34 }
 0x51e   : > { %v1589_v15 = vadd.f32 %v4855_v50, %v1581_v60 }
 0x51f   : > { %3723 = vmatmul.msk.bf16.gmra.mxu2 %vm409_vm0, %v1886_v3 }
 0x520   : > { %vm1597_vm14 = vcmp.gt.f32.partialorder %v1589_v15, 0.0  ;;  %v1605_v17 = vmul.f32 0.2, %v1589_v15 }
 0x522   : > { %v1613_v48 = vsel %vm1597_vm14, %v1589_v15, %v1605_v17  ;;  %v5786_v15 = vmax.f32 %v4733_v36, %v4735_v52 }
 0x523   : > { %v1617_v55 = vpack.c.bf16 %v1613_v48, %v1612_v6 }
 0x525   : > { %3704 = vmatmul.msk.bf16.gmra.mxu0 %vm909_vm8, %v1617_v55 }
 0x529   : > { %v1639_v26 = vpop.f32.mrf.mxu0 }
 0x52a   : > { %v1659_v53 = vmul.f32 %v4697_v31, %v1639_v26 }
 0x52c   : > { %v1667_v62 = vadd.f32 %v4705_v59, %v1659_v53 }
 0x52e   : > { %vm1675_vm15 = vcmp.gt.f32.partialorder %v1667_v62, 0.0  ;;  %v1683_v54 = vmul.f32 0.2, %v1667_v62 }
 0x530   : > { %v1691_v24 = vsel %vm1675_vm15, %v1667_v62, %v1683_v54  ;;  %v5788_v54 = vmax.f32 %v4746_v22, %v4748_v27  ;;  %v4957_v22 = vld [vmem:[%s5770_s6] sm:$0xff] }
 0x531   : > { %v4926_v2 = vmax.f32 %v5785_v33, %v1691_v24  ;;  %v4928_v60 = vpop.f32.mrf.mxu0 }
 0x539   : > { %v1644_v63 = vpop.f32.mrf.mxu0 }
 0x53a   : > { %v1661_v48 = vmul.f32 %v4697_v31, %v1644_v63 }
 0x53c   : > { %v1669_v55 = vadd.f32 %v4705_v59, %v1661_v48 }
 0x53e   : > { %vm1677_vm2 = vcmp.gt.f32.partialorder %v1669_v55, 0.0  ;;  %v1685_v3 = vmul.f32 0.2, %v1669_v55 }
 0x540   : > { %v1693_v20 = vsel %vm1677_vm2, %v1669_v55, %v1685_v3 }
 0x541   : > { %v4935_v17 = vmax.f32 %v5786_v15, %v1693_v20  ;;  %v4937_v6 = vpop.f32.mrf.mxu0  ;;  %v1870_v20 = vpop.f32.mrf.mxu1 }
 0x542   : > { %5787 = vst [vmem:[#allocation10_spill] sm:$0xff] %v4937_v6 }
 0x549   : > { %v1649_v43 = vpop.f32.mrf.mxu0 }
 0x54a   : > { %v1663_v34 = vmul.f32 %v4697_v31, %v1649_v43 }
 0x54c   : > { %v1671_v26 = vadd.f32 %v4705_v59, %v1663_v34 }
 0x54e   : > { %vm1679_vm3 = vcmp.gt.f32.partialorder %v1671_v26, 0.0  ;;  %v1687_v53 = vmul.f32 0.2, %v1671_v26 }
 0x550   : > { %v1695_v62 = vsel %vm1679_vm3, %v1671_v26, %v1687_v53 }
 0x551   : > { %v4944_v24 = vmax.f32 %v5788_v54, %v1695_v62 }
 0x560   : > { %v2112_v33 = vpop.xlane.xlu1 %2111 }
 0x561   : > { %v2134_v63 = vsub.f32 0.0, %v2112_v33  ;;  %v1882_v33 = vsub.f32 %v1870_v20, %v4782_v37 }
 0x563   : > { %vm2142_vm4 = vcmp.eq.f32.partialorder %v4171_v57, %v2134_v63 }
 0x564   : > { %v3729_v36 = vsel %vm2142_vm4, 1.0, %v5784_v40  ;;  %v4949_v52 = vsel %vm2142_vm4, -inf, %v4755_v8 }
 0x565   : > { %3737 = vmatmul.msk.f32.vlgmr.msra.gmra.mxu0 %vm634_vm1, %v3729_v36  ;;  %v2425_v48 = vsel %vm634_vm1, %v4949_v52, -inf }
 0x566   : > { %2426 = vmax.xlane.f32.xlu0 %v2425_v48  ;;  %3057 = vmatpush.bf16.msra.mxu0 %v4957_v22 }
 0x568   : > { %v2115_v27 = vpop.xlane.xlu0 %2114 }
 0x569   : > { %v2135_v55 = vsub.f32 0.0, %v2115_v27 }
 0x56a   : > { %v2093_v3 = vpop.xlane.xlu1 %2092 }
 0x56b   : > { %vm2143_vm5 = vcmp.eq.f32.partialorder %v4171_v57, %v2135_v55  ;;  %vm2101_vm6 = vcmp.eq.f32.partialorder %v4877_v51, %v2093_v3 }
 0x56c   : > { %v3730_v8 = vsel %vm2143_vm5, 1.0, %v5784_v40  ;;  %v2109_v15 = vsel %vm2101_vm6, %v4174_v58, -64.0  ;;  %v4965_v43 = vsel %vm2143_vm5, -inf, %v4765_v41 }
 0x56d   : > { %3738 = vmatmul.msk.f32.gmra.mxu0 %vm634_vm1, %v3730_v8  ;;  %v2131_v34 = vsel %vm634_vm1, %v2109_v15, -inf  ;;  %v2428_v26 = vsel %vm634_vm1, %v4965_v43, -inf }
 0x56e   : > { %2132 = vmax.xlane.f32.xlu0 %v2131_v34  ;;  %2429 = vmax.xlane.f32.xlu2 %v2428_v26 }
 0x570   : > { %v2118_v53 = vpop.xlane.xlu2 %2117 }
 0x571   : > { %v2136_v62 = vsub.f32 0.0, %v2118_v53 }
 0x573   : > { %vm2144_vm7 = vcmp.eq.f32.partialorder %v4171_v57, %v2136_v62  ;;  %v1873_v54 = vpop.f32.mrf.mxu1 }
 0x574   : > { %v1883_v63 = vsub.f32 %v1873_v54, %v4786_v19  ;;  %v3731_v41 = vsel %vm2144_vm7, 1.0, %v5784_v40  ;;  %v4976_v36 = vsel %vm2144_vm7, -inf, %v4775_v56 }
 0x575   : > { %3739 = vmatmul.msk.f32.gmra.mxu0 %vm634_vm1, %v3731_v41  ;;  %v2431_v48 = vsel %vm634_vm1, %v4976_v36, -inf }
 0x576   : > { %v1887_v27 = vpack.c.bf16 %v1883_v63, %v1882_v33  ;;  %2432 = vmax.xlane.f32.xlu1 %v2431_v48  ;;  %v2121_v55 = vpop.xlane.xlu0 %2120 }
 0x577   : > { %v2137_v3 = vsub.f32 0.0, %v2121_v55 }
 0x578   : > { %3724 = vmatmul.msk.bf16.gmra.mxu2 %vm409_vm0, %v1887_v27 }
 0x579   : > { %vm2145_vm9 = vcmp.eq.f32.partialorder %v4171_v57, %v2137_v3 }
 0x57a   : > { %v4984_v20 = vsel %vm2145_vm9, -inf, %v4790_v0  ;;  %v3732_v8 = vsel %vm2145_vm9, 1.0, %v5784_v40 }
 0x57b   : > { %v2434_v56 = vsel %vm634_vm1, %v4984_v20, -inf }
 0x57c   : > { %2435 = vmax.xlane.f32.xlu2 %v2434_v56 }
 0x57d   : > { %3740 = vmatmul.msk.f32.gmra.mxu0 %vm634_vm1, %v3732_v8 }
 0x57e   : > { %v2124_v15 = vpop.xlane.xlu1 %2123 }
 0x57f   : > { %v2138_v34 = vsub.f32 0.0, %v2124_v15 }
 0x581   : > { %vm2146_vm10 = vcmp.eq.f32.partialorder %v4171_v57, %v2138_v34 }
 0x582   : > { %v1909_v26 = vpop.f32.mrf.mxu2  ;;  %v4992_v53 = vsel %vm2146_vm10, -inf, %v4799_v4  ;;  %v3733_v54 = vsel %vm2146_vm10, 1.0, %v5784_v40 }
 0x583   : > { %v1910_v62 = vadd.f32 %v1909_v26, %v4364_v28  ;;  %v2437_v0 = vsel %vm634_vm1, %v4992_v53, -inf }
 0x584   : > { %2438 = vmax.xlane.f32.xlu0 %v2437_v0 }
 0x585   : > { %3741 = vmatmul.msk.f32.gmra.mxu0 %vm634_vm1, %v3733_v54  ;;  %v1929_v63 = vmul.f32 %v4847_v42, %v1910_v62 }
 0x586   : > { %v2127_v33 = vpop.xlane.xlu2 %2126 }
 0x587   : > { %v2139_v41 = vsub.f32 0.0, %v2127_v33  ;;  %v1937_v27 = vadd.f32 %v4855_v50, %v1929_v63 }
 0x589   : > { %vm2147_vm11 = vcmp.eq.f32.partialorder %v4171_v57, %v2139_v41  ;;  %v1953_v34 = vmul.f32 0.2, %v1937_v27  ;;  %vm1945_vm12 = vcmp.gt.f32.partialorder %v1937_v27, 0.0 }
 0x58a   : > { %v1911_v48 = vpop.f32.mrf.mxu2  ;;  %v5002_v4 = vsel %vm2147_vm11, -inf, %v4808_v13  ;;  %v3734_v56 = vsel %vm2147_vm11, 1.0, %v5784_v40 }
 0x58b   : > { %v1912_v55 = vadd.f32 %v1911_v48, %v4392_v47  ;;  %v2440_v3 = vsel %vm634_vm1, %v5002_v4, -inf  ;;  %v1961_v33 = vsel %vm1945_vm12, %v1937_v27, %v1953_v34 }
 0x58c   : > { %2441 = vmax.xlane.f32.xlu1 %v2440_v3 }
 0x58d   : > { %v1930_v8 = vmul.f32 %v4847_v42, %v1912_v55  ;;  %3742 = vmatmul.msk.f32.gmra.mxu0 %vm634_vm1, %v3734_v56 }
 0x58e   : > { %v2130_v15 = vpop.xlane.xlu1 %2129 }
 0x58f   : > { %v1938_v26 = vadd.f32 %v4855_v50, %v1930_v8  ;;  %v2140_v13 = vsub.f32 0.0, %v2130_v15 }
 0x591   : > { %vm1946_vm13 = vcmp.gt.f32.partialorder %v1938_v26, 0.0  ;;  %v1954_v62 = vmul.f32 0.2, %v1938_v26  ;;  %vm2148_vm14 = vcmp.eq.f32.partialorder %v4171_v57, %v2140_v13 }
 0x592   : > { %v1914_v0 = vpop.f32.mrf.mxu2  ;;  %v5014_v54 = vsel %vm2148_vm14, -inf, %v4819_v16  ;;  %v3735_v3 = vsel %vm2148_vm14, 1.0, %v5784_v40  ;;  %v5024_v16 = vpop.f32.mrf.mxu0 }
 0x593   : > { %v1962_v63 = vsel %vm1946_vm13, %v1938_v26, %v1954_v62  ;;  %v1915_v41 = vadd.f32 %v1914_v0, %v4411_v44  ;;  %v2443_v48 = vsel %vm634_vm1, %v5014_v54, -inf  ;;  %5789 = vst [vmem:[#allocation11_spill] sm:$0xff] %v5024_v16  ;;  %v5790_v16 = vmax.f32 %v4840_v21, %v4842_v12 }
 0x594   : > { %v1969_v55 = vpack.c.bf16 %v1962_v63, %v1961_v33  ;;  %2444 = vmax.xlane.f32.xlu0 %v2443_v48 }
 0x595   : > { %3743 = vmatmul.msk.f32.gmra.mxu0 %vm634_vm1, %v3735_v3  ;;  %v1931_v56 = vmul.f32 %v4847_v42, %v1915_v41 }
 0x596   : > { %3725 = vmatmul.msk.bf16.vlgmr.msrb.gmra.mxu3 %vm909_vm8, %v1969_v55 }
 0x597   : > { %2972 = vmatpush.bf16.msrb.mxu3 %v4266_v39  ;;  %v1939_v8 = vadd.f32 %v4855_v50, %v1931_v56 }
 0x599   : > { %v1955_v26 = vmul.f32 0.2, %v1939_v8  ;;  %vm1947_vm15 = vcmp.gt.f32.partialorder %v1939_v8, 0.0 }
 0x59a   : > { %v1916_v27 = vpop.f32.mrf.mxu2 }
 0x59b   : > { %v1917_v15 = vadd.f32 %v1916_v27, %v4429_v32  ;;  %v1963_v48 = vsel %vm1947_vm15, %v1939_v8, %v1955_v26 }
 0x59d   : > { %v1932_v34 = vmul.f32 %v4847_v42, %v1917_v15 }
 0x59f   : > { %v1940_v13 = vadd.f32 %v4855_v50, %v1932_v34 }
 0x5a1   : > { %vm1948_vm2 = vcmp.gt.f32.partialorder %v1940_v13, 0.0  ;;  %v1956_v62 = vmul.f32 0.2, %v1940_v13 }
 0x5a2   : > { %v1654_v0 = vpop.f32.mrf.mxu0  ;;  %v1919_v33 = vpop.f32.mrf.mxu2 }
 0x5a3   : > { %v1665_v63 = vmul.f32 %v4697_v31, %v1654_v0  ;;  %v1920_v41 = vadd.f32 %v1919_v33, %v4439_v46  ;;  %v1964_v55 = vsel %vm1948_vm2, %v1940_v13, %v1956_v62 }
 0x5a4   : > { %v1970_v3 = vpack.c.bf16 %v1964_v55, %v1963_v48 }
 0x5a5   : > { %v1673_v56 = vadd.f32 %v4705_v59, %v1665_v63  ;;  %v1933_v15 = vmul.f32 %v4847_v42, %v1920_v41 }
 0x5a6   : > { %3726 = vmatmul.msk.bf16.gmra.mxu3 %vm909_vm8, %v1970_v3 }
 0x5a7   : > { %vm1681_vm3 = vcmp.gt.f32.partialorder %v1673_v56, 0.0  ;;  %v1689_v27 = vmul.f32 0.2, %v1673_v56  ;;  %v1941_v33 = vadd.f32 %v4855_v50, %v1933_v15 }
 0x5a9   : > { %v1697_v34 = vsel %vm1681_vm3, %v1673_v56, %v1689_v27  ;;  %v1957_v13 = vmul.f32 0.2, %v1941_v33  ;;  %vm1949_vm4 = vcmp.gt.f32.partialorder %v1941_v33, 0.0 }
 0x5aa   : > { %v5038_v6 = vmax.f32 %v5790_v16, %v1697_v34  ;;  %v1921_v0 = vpop.f32.mrf.mxu2  ;;  %v5045_v12 = vpop.f32.mrf.mxu0 }
 0x5ab   : > { %v1922_v8 = vadd.f32 %v1921_v0, %v4445_v14  ;;  %v1965_v41 = vsel %vm1949_vm4, %v1941_v33, %v1957_v13 }
 0x5ad   : > { %v1934_v26 = vmul.f32 %v4847_v42, %v1922_v8 }
 0x5af   : > { %v1942_v62 = vadd.f32 %v4855_v50, %v1934_v26 }
 0x5b1   : > { %vm1950_vm5 = vcmp.gt.f32.partialorder %v1942_v62, 0.0  ;;  %v1958_v63 = vmul.f32 0.2, %v1942_v62 }
 0x5b3   : > { %v1966_v48 = vsel %vm1950_vm5, %v1942_v62, %v1958_v63 }
 0x5b4   : > { %v1971_v55 = vpack.c.bf16 %v1966_v48, %v1965_v41 }
 0x5b6   : > { %3727 = vmatmul.msk.bf16.gmra.mxu3 %vm909_vm8, %v1971_v55 }
 0x5d9   : > { %v2427_v21 = vpop.xlane.xlu0 %2426 }
 0x5da   : > { %vm2449_vm6 = vcmp.eq.f32.partialorder %v4949_v52, %v2427_v21 }
 0x5db   : > { %v2457_v16 = vsel %vm2449_vm6, %v4174_v58, -64.0 }
 0x5dc   : > { %v2465_v3 = vsel %vm634_vm1, %v2457_v16, -inf }
 0x5dd   : > { %2466 = vmax.xlane.f32.xlu2 %v2465_v3 }
 0x5e1   : > { %v2430_v56 = vpop.xlane.xlu2 %2429  ;;  %v2133_v27 = vpop.xlane.xlu0 %2132 }
 0x5e2   : > { %vm2450_vm7 = vcmp.eq.f32.partialorder %v4965_v43, %v2430_v56  ;;  %v2141_v15 = vsub.f32 0.0, %v2133_v27  ;;  %v2207_v34 = vpop.f32.mrf.mxu0 }
 0x5e3   : > { %v2458_v0 = vsel %vm2450_vm7, %v4174_v58, -64.0  ;;  %v2231_v41 = vsub.f32 %v2207_v34, %v4629_v5 }
 0x5e4   : > { %vm2149_vm9 = vcmp.eq.f32.partialorder %v4171_v57, %v2141_v15  ;;  %v2468_v33 = vsel %vm634_vm1, %v2458_v0, -inf }
 0x5e5   : > { %2469 = vmax.xlane.f32.xlu1 %v2468_v33  ;;  %v3736_v8 = vsel %vm2149_vm9, 1.0, %v5784_v40  ;;  %v5056_v26 = vsel %vm2149_vm9, -inf, %v4877_v51 }
 0x5e6   : > { %3744 = vmatmul.msk.f32.gmra.mxu0 %vm634_vm1, %v3736_v8  ;;  %v2446_v13 = vsel %vm634_vm1, %v5056_v26, -inf }
 0x5e7   : > { %2447 = vmax.xlane.f32.xlu2 %v2446_v13 }
 0x5e9   : > { %v2433_v62 = vpop.xlane.xlu1 %2432 }
 0x5ea   : > { %vm2451_vm10 = vcmp.eq.f32.partialorder %v4976_v36, %v2433_v62  ;;  %v2210_v63 = vpop.f32.mrf.mxu0 }
 0x5eb   : > { %v2232_v48 = vsub.f32 %v2210_v63, %v4633_v38  ;;  %v2459_v55 = vsel %vm2451_vm10, %v4174_v58, -64.0 }
 0x5ec   : > { %v2471_v21 = vsel %vm634_vm1, %v2459_v55, -inf }
 0x5ed   : > { %v2239_v51 = vpack.c.bf16 %v2232_v48, %v2231_v41  ;;  %2472 = vmax.xlane.f32.xlu0 %v2471_v21 }
 0x5ef   : > { %3745 = vmatmul.msk.bf16.vlgmr.msra.gmra.mxu1 %vm409_vm0, %v2239_v51  ;;  %v2436_v16 = vpop.xlane.xlu2 %2435 }
 0x5f0   : > { %vm2452_vm11 = vcmp.eq.f32.partialorder %v4984_v20, %v2436_v16  ;;  %3263 = vmatpush.msra.mxu1 %v4640_v23 }
 0x5f1   : > { %v2460_v3 = vsel %vm2452_vm11, %v4174_v58, -64.0 }
 0x5f2   : > { %v2213_v56 = vpop.f32.mrf.mxu0  ;;  %v2474_v5 = vsel %vm634_vm1, %v2460_v3, -inf  ;;  %3264 = vmatpush.msra.mxu1 %v4645_v10 }
 0x5f3   : > { %2475 = vmax.xlane.f32.xlu1 %v2474_v5  ;;  %v2233_v34 = vsub.f32 %v2213_v56, %v4670_v45 }
 0x5f4   : > { %3265 = vmatpush.msra.mxu1 %v4651_v11 }
 0x5f6   : > { %3266 = vmatpush.msra.mxu1 %v4656_v61 }
 0x5f7   : > { %v2439_v38 = vpop.xlane.xlu0 %2438 }
 0x5f8   : > { %vm2453_vm12 = vcmp.eq.f32.partialorder %v4992_v53, %v2439_v38  ;;  %3267 = vmatpush.msra.mxu1 %v4660_v9 }
 0x5f9   : > { %v2461_v27 = vsel %vm2453_vm12, %v4174_v58, -64.0 }
 0x5fa   : > { %v2216_v23 = vpop.f32.mrf.mxu0  ;;  %v2477_v15 = vsel %vm634_vm1, %v2461_v27, -inf  ;;  %3268 = vmatpush.msra.mxu1 %v4666_v29 }
 0x5fb   : > { %v2234_v10 = vsub.f32 %v2216_v23, %v4674_v18  ;;  %v1924_v0 = vpop.f32.mrf.mxu2  ;;  %2478 = vmax.xlane.f32.xlu2 %v2477_v15 }
 0x5fc   : > { %v1925_v11 = vadd.f32 %v1924_v0, %v4476_v25  ;;  %3269 = vmatpush.msra.mxu1 %v4680_v30 }
 0x5fd   : > { %v2240_v61 = vpack.c.bf16 %v2234_v10, %v2233_v34 }
 0x5fe   : > { %3270 = vmatpush.msra.mxu1 %v4686_v7  ;;  %v1935_v33 = vmul.f32 %v4847_v42, %v1925_v11 }
 0x5ff   : > { %v2442_v9 = vpop.xlane.xlu1 %2441  ;;  %3746 = vmatmul.msk.bf16.gmra.mxu1 %vm409_vm0, %v2240_v61  ;;  %v5111_v61 = vld [vmem:[%s5771_s7] ss:$0 sm:$0xff] }
 0x600   : > { %vm2454_vm13 = vcmp.eq.f32.partialorder %v5002_v4, %v2442_v9  ;;  %v1943_v13 = vadd.f32 %v4855_v50, %v1935_v33 }
 0x601   : > { %v2462_v29 = vsel %vm2454_vm13, %v4174_v58, -64.0 }
 0x602   : > { %v2219_v45 = vpop.f32.mrf.mxu0  ;;  %v2480_v18 = vsel %vm634_vm1, %v2462_v29, -inf  ;;  %v1959_v63 = vmul.f32 0.2, %v1943_v13  ;;  %vm1951_vm15 = vcmp.gt.f32.partialorder %v1943_v13, 0.0 }
 0x603   : > { %v1926_v8 = vpop.f32.mrf.mxu2  ;;  %2481 = vmax.xlane.f32.xlu0 %v2480_v18  ;;  %v2235_v16 = vsub.f32 %v2219_v45, %v4709_v49 }
 0x604   : > { %v1927_v30 = vadd.f32 %v1926_v8, %v4491_v35  ;;  %v1967_v56 = vsel %vm1951_vm15, %v1943_v13, %v1959_v63 }
 0x606   : > { %v1936_v7 = vmul.f32 %v4847_v42, %v1927_v30  ;;  %v5125_v30 = vld [vmem:[%s5772_s8] ss:$0 sm:$0xff] }
 0x607   : > { %v2445_v62 = vpop.xlane.xlu0 %2444 }
 0x608   : > { %v1944_v41 = vadd.f32 %v4855_v50, %v1936_v7  ;;  %vm2455_vm14 = vcmp.eq.f32.partialorder %v5014_v54, %v2445_v62 }
 0x609   : > { %v2463_v48 = vsel %vm2455_vm14, %v4174_v58, -64.0 }
 0x60a   : > { %vm1952_vm2 = vcmp.gt.f32.partialorder %v1944_v41, 0.0  ;;  %v1960_v55 = vmul.f32 0.2, %v1944_v41  ;;  %v2222_v21 = vpop.f32.mrf.mxu0  ;;  %v2483_v51 = vsel %vm634_vm1, %v2463_v48, -inf }
 0x60b   : > { %v2236_v3 = vsub.f32 %v2222_v21, %v4713_v1  ;;  %2484 = vmax.xlane.f32.xlu1 %v2483_v51 }
 0x60c   : > { %v1968_v5 = vsel %vm1952_vm2, %v1944_v41, %v1960_v55 }
 0x60d   : > { %v2241_v38 = vpack.c.bf16 %v2236_v3, %v2235_v16  ;;  %v1972_v27 = vpack.c.bf16 %v1968_v5, %v1967_v56 }
 0x60f   : > { %3728 = vmatmul.msk.bf16.gmra.mxu3 %vm909_vm8, %v1972_v27  ;;  %3747 = vmatmul.msk.bf16.gmra.mxu1 %vm409_vm0, %v2241_v38 }
 0x612   : > { %v2225_v5 = vpop.f32.mrf.mxu0 }
 0x619   : > { %v1994_v23 = vpop.f32.mrf.mxu3 }
 0x61a   : > { %v2014_v15 = vmul.f32 %v4697_v31, %v1994_v23 }
 0x61c   : > { %v2022_v34 = vadd.f32 %v4705_v59, %v2014_v15 }
 0x61e   : > { %vm2030_vm3 = vcmp.gt.f32.partialorder %v2022_v34, 0.0  ;;  %v2038_v10 = vmul.f32 0.2, %v2022_v34 }
 0x620   : > { %v5102_v0 = vsel %vm2030_vm3, %v2022_v34, %v2038_v10 }
 0x621   : > { %v2054_v49 = vmax.f32 %v4926_v2, %v5102_v0  ;;  %v5106_v1 = vpop.f32.mrf.mxu3 }
 0x629   : > { %v1999_v11 = vpop.f32.mrf.mxu3 }
 0x62a   : > { %v2016_v9 = vmul.f32 %v5111_v61, %v1999_v11  ;;  %v2237_v11 = vsub.f32 %v2225_v5, %v4782_v37 }
 0x62c   : > { %v2024_v31 = vadd.f32 %v4705_v59, %v2016_v9 }
 0x62e   : > { %vm2032_vm4 = vcmp.gt.f32.partialorder %v2024_v31, 0.0  ;;  %v2040_v33 = vmul.f32 0.2, %v2024_v31 }
 0x630   : > { %v5115_v29 = vsel %vm2032_vm4, %v2024_v31, %v2040_v33 }
 0x631   : > { %v2056_v45 = vmax.f32 %v4935_v17, %v5115_v29  ;;  %v5119_v18 = vpop.f32.mrf.mxu3 }
 0x639   : > { %v2004_v8 = vpop.f32.mrf.mxu3 }
 0x63a   : > { %v2018_v13 = vmul.f32 %v5111_v61, %v2004_v8 }
 0x63c   : > { %v2026_v7 = vadd.f32 %v5125_v30, %v2018_v13 }
 0x63e   : > { %vm2034_vm5 = vcmp.gt.f32.partialorder %v2026_v7, 0.0  ;;  %v2042_v59 = vmul.f32 0.2, %v2026_v7 }
 0x640   : > { %v5128_v62 = vsel %vm2034_vm5, %v2026_v7, %v2042_v59 }
 0x641   : > { %v2058_v63 = vmax.f32 %v4944_v24, %v5128_v62 }
 0x650   : > { %v2467_v41 = vpop.xlane.xlu2 %2466 }
 0x651   : > { %v2489_v48 = vsub.f32 0.0, %v2467_v41 }
 0x653   : > { %vm2497_vm6 = vcmp.eq.f32.partialorder %v4171_v57, %v2489_v48 }
 0x654   : > { %v3753_v55 = vsel %vm2497_vm6, 1.0, %v5784_v40  ;;  %v5135_v21 = vsel %vm2497_vm6, -inf, %v4949_v52 }
 0x655   : > { %3761 = vmatmul.msk.f32.vlgmr.msra.gmra.mxu3 %vm634_vm1, %v3753_v55  ;;  %v2780_v51 = vsel %vm634_vm1, %v5135_v21, -inf }
 0x656   : > { %2781 = vmax.xlane.f32.xlu0 %v2780_v51  ;;  %3412 = vmatpush.bf16.msra.mxu3 %v4957_v22 }
 0x658   : > { %v2470_v16 = vpop.xlane.xlu1 %2469 }
 0x659   : > { %v2490_v3 = vsub.f32 0.0, %v2470_v16 }
 0x65a   : > { %v2448_v56 = vpop.xlane.xlu2 %2447 }
 0x65b   : > { %vm2498_vm7 = vcmp.eq.f32.partialorder %v4171_v57, %v2490_v3  ;;  %vm2456_vm9 = vcmp.eq.f32.partialorder %v5056_v26, %v2448_v56 }
 0x65c   : > { %v3754_v38 = vsel %vm2498_vm7, 1.0, %v5784_v40  ;;  %v2464_v52 = vsel %vm2456_vm9, %v4174_v58, -64.0  ;;  %v5146_v27 = vsel %vm2498_vm7, -inf, %v4965_v43 }
 0x65d   : > { %3762 = vmatmul.msk.f32.gmra.mxu3 %vm634_vm1, %v3754_v38  ;;  %v2486_v23 = vsel %vm634_vm1, %v2464_v52, -inf  ;;  %v2783_v22 = vsel %vm634_vm1, %v5146_v27, -inf }
 0x65e   : > { %2487 = vmax.xlane.f32.xlu2 %v2486_v23  ;;  %2784 = vmax.xlane.f32.xlu1 %v2783_v22 }
 0x660   : > { %v2473_v15 = vpop.xlane.xlu0 %2472 }
 0x661   : > { %v2491_v34 = vsub.f32 0.0, %v2473_v15 }
 0x663   : > { %vm2499_vm10 = vcmp.eq.f32.partialorder %v4171_v57, %v2491_v34  ;;  %v2228_v10 = vpop.f32.mrf.mxu0 }
 0x664   : > { %v2238_v9 = vsub.f32 %v2228_v10, %v4786_v19  ;;  %v3755_v43 = vsel %vm2499_vm10, 1.0, %v5784_v40  ;;  %v5157_v31 = vsel %vm2499_vm10, -inf, %v4976_v36 }
 0x665   : > { %3763 = vmatmul.msk.f32.gmra.mxu3 %vm634_vm1, %v3755_v43  ;;  %v2786_v33 = vsel %vm634_vm1, %v5157_v31, -inf }
 0x666   : > { %v2242_v8 = vpack.c.bf16 %v2238_v9, %v2237_v11  ;;  %v2476_v13 = vpop.xlane.xlu1 %2475  ;;  %2787 = vmax.xlane.f32.xlu2 %v2786_v33 }
 0x667   : > { %v2492_v7 = vsub.f32 0.0, %v2476_v13 }
 0x668   : > { %3748 = vmatmul.msk.bf16.gmra.mxu1 %vm409_vm0, %v2242_v8 }
 0x669   : > { %vm2500_vm11 = vcmp.eq.f32.partialorder %v4171_v57, %v2492_v7 }
 0x66a   : > { %v5165_v37 = vsel %vm2500_vm11, -inf, %v4984_v20  ;;  %v3756_v59 = vsel %vm2500_vm11, 1.0, %v5784_v40 }
 0x66b   : > { %v2789_v19 = vsel %vm634_vm1, %v5165_v37, -inf }
 0x66c   : > { %v2264_v36 = vpop.f32.mrf.mxu1  ;;  %2790 = vmax.xlane.f32.xlu0 %v2789_v19 }
 0x66d   : > { %v2265_v41 = vadd.f32 %v2264_v36, %v4364_v28  ;;  %3764 = vmatmul.msk.f32.gmra.mxu3 %vm634_vm1, %v3756_v59 }
 0x66e   : > { %v2479_v48 = vpop.xlane.xlu2 %2478 }
 0x66f   : > { %v2493_v55 = vsub.f32 0.0, %v2479_v48  ;;  %v2284_v51 = vmul.f32 %v4847_v42, %v2265_v41 }
 0x671   : > { %vm2501_vm12 = vcmp.eq.f32.partialorder %v4171_v57, %v2493_v55  ;;  %v2292_v5 = vadd.f32 %v4855_v50, %v2284_v51 }
 0x672   : > { %v5175_v20 = vsel %vm2501_vm12, -inf, %v4992_v53  ;;  %v3757_v56 = vsel %vm2501_vm12, 1.0, %v5784_v40 }
 0x673   : > { %v2792_v16 = vsel %vm634_vm1, %v5175_v20, -inf  ;;  %v2308_v15 = vmul.f32 0.2, %v2292_v5  ;;  %vm2300_vm14 = vcmp.gt.f32.partialorder %v2292_v5, 0.0 }
 0x674   : > { %v2266_v3 = vpop.f32.mrf.mxu1  ;;  %2793 = vmax.xlane.f32.xlu1 %v2792_v16 }
 0x675   : > { %v2267_v38 = vadd.f32 %v2266_v3, %v4392_v47  ;;  %3765 = vmatmul.msk.f32.gmra.mxu3 %vm634_vm1, %v3757_v56  ;;  %v2316_v33 = vsel %vm2300_vm14, %v2292_v5, %v2308_v15 }
 0x676   : > { %v2482_v52 = vpop.xlane.xlu0 %2481 }
 0x677   : > { %v2285_v23 = vmul.f32 %v4847_v42, %v2267_v38  ;;  %v2494_v22 = vsub.f32 0.0, %v2482_v52 }
 0x679   : > { %v2293_v53 = vadd.f32 %v4855_v50, %v2285_v23  ;;  %vm2502_vm13 = vcmp.eq.f32.partialorder %v4171_v57, %v2494_v22 }
 0x67a   : > { %v5187_v34 = vsel %vm2502_vm13, -inf, %v5002_v4  ;;  %v3758_v43 = vsel %vm2502_vm13, 1.0, %v5784_v40 }
 0x67b   : > { %vm2301_vm15 = vcmp.gt.f32.partialorder %v2293_v53, 0.0  ;;  %v2309_v10 = vmul.f32 0.2, %v2293_v53  ;;  %v2795_v11 = vsel %vm634_vm1, %v5187_v34, -inf }
 0x67c   : > { %v2269_v9 = vpop.f32.mrf.mxu1  ;;  %2796 = vmax.xlane.f32.xlu2 %v2795_v11 }
 0x67d   : > { %v2317_v8 = vsel %vm2301_vm15, %v2293_v53, %v2309_v10  ;;  %v2270_v13 = vadd.f32 %v2269_v9, %v4411_v44  ;;  %3766 = vmatmul.msk.f32.gmra.mxu3 %vm634_vm1, %v3758_v43 }
 0x67e   : > { %v2324_v7 = vpack.c.bf16 %v2317_v8, %v2316_v33  ;;  %v2485_v19 = vpop.xlane.xlu1 %2484 }
 0x67f   : > { %v2495_v36 = vsub.f32 0.0, %v2485_v19  ;;  %v2286_v4 = vmul.f32 %v4847_v42, %v2270_v13 }
 0x680   : > { %3749 = vmatmul.msk.bf16.vlgmr.msra.gmra.mxu2 %vm909_vm8, %v2324_v7 }
 0x681   : > { %vm2503_vm2 = vcmp.eq.f32.partialorder %v4171_v57, %v2495_v36  ;;  %3327 = vmatpush.bf16.msra.mxu2 %v4266_v39  ;;  %v2294_v51 = vadd.f32 %v4855_v50, %v2286_v4 }
 0x682   : > { %v5199_v59 = vsel %vm2503_vm2, -inf, %v5014_v54  ;;  %v3759_v55 = vsel %vm2503_vm2, 1.0, %v5784_v40  ;;  %v5209_v54 = vpop.f32.mrf.mxu3 }
 0x683   : > { %v2798_v41 = vsel %vm634_vm1, %v5199_v59, -inf  ;;  %v2310_v56 = vmul.f32 0.2, %v2294_v51  ;;  %vm2302_vm3 = vcmp.gt.f32.partialorder %v2294_v51, 0.0 }
 0x684   : > { %v2271_v48 = vpop.f32.mrf.mxu1  ;;  %2799 = vmax.xlane.f32.xlu1 %v2798_v41 }
 0x685   : > { %v2272_v16 = vadd.f32 %v2271_v48, %v4429_v32  ;;  %3767 = vmatmul.msk.f32.gmra.mxu3 %vm634_vm1, %v3759_v55  ;;  %v2318_v23 = vsel %vm2302_vm3, %v2294_v51, %v2310_v56 }
 0x687   : > { %v2287_v3 = vmul.f32 %v4847_v42, %v2272_v16 }
 0x689   : > { %v2295_v39 = vadd.f32 %v4855_v50, %v2287_v3 }
 0x68b   : > { %vm2303_vm4 = vcmp.gt.f32.partialorder %v2295_v39, 0.0  ;;  %v2311_v5 = vmul.f32 0.2, %v2295_v39 }
 0x68c   : > { %v2274_v38 = vpop.f32.mrf.mxu1 }
 0x68d   : > { %v2275_v52 = vadd.f32 %v2274_v38, %v4439_v46  ;;  %v2319_v22 = vsel %vm2303_vm4, %v2295_v39, %v2311_v5 }
 0x68e   : > { %v2325_v15 = vpack.c.bf16 %v2319_v22, %v2318_v23 }
 0x68f   : > { %v2288_v53 = vmul.f32 %v4847_v42, %v2275_v52 }
 0x690   : > { %3750 = vmatmul.msk.bf16.gmra.mxu2 %vm909_vm8, %v2325_v15 }
 0x691   : > { %v2296_v43 = vadd.f32 %v4855_v50, %v2288_v53 }
 0x692   : > { %v2009_v10 = vpop.f32.mrf.mxu3 }
 0x693   : > { %v2020_v11 = vmul.f32 %v5111_v61, %v2009_v10  ;;  %v2312_v19 = vmul.f32 0.2, %v2296_v43  ;;  %vm2304_vm6 = vcmp.gt.f32.partialorder %v2296_v43, 0.0 }
 0x694   : > { %v2276_v9 = vpop.f32.mrf.mxu1 }
 0x695   : > { %v2028_v33 = vadd.f32 %v5125_v30, %v2020_v11  ;;  %v2277_v8 = vadd.f32 %v2276_v9, %v4445_v14  ;;  %v2320_v55 = vsel %vm2304_vm6, %v2296_v43, %v2312_v19 }
 0x697   : > { %vm2036_vm5 = vcmp.gt.f32.partialorder %v2028_v33, 0.0  ;;  %v2044_v13 = vmul.f32 0.2, %v2028_v33  ;;  %v2289_v7 = vmul.f32 %v4847_v42, %v2277_v8  ;;  %v5246_v8 = vld [vmem:[%s4083_s19] sm:$0xff] }
 0x699   : > { %v5219_v36 = vsel %vm2036_vm5, %v2028_v33, %v2044_v13  ;;  %v2297_v4 = vadd.f32 %v4855_v50, %v2289_v7  ;;  %v5250_v7 = vld [vmem:[%s4083_s19 + $0x8] sm:$0xff] }
 0x69a   : > { %v2060_v41 = vmax.f32 %v5038_v6, %v5219_v36  ;;  %v5228_v50 = vpop.f32.mrf.mxu3 }
 0x69b   : > { %vm2305_vm7 = vcmp.gt.f32.partialorder %v2297_v4, 0.0  ;;  %v2313_v48 = vmul.f32 0.2, %v2297_v4 }
 0x69d   : > { %v2321_v51 = vsel %vm2305_vm7, %v2297_v4, %v2313_v48 }
 0x69e   : > { %v2326_v16 = vpack.c.bf16 %v2321_v51, %v2320_v55 }
 0x6a0   : > { %3751 = vmatmul.msk.bf16.gmra.mxu2 %vm909_vm8, %v2326_v16 }
 0x6c9   : > { %v2782_v3 = vpop.xlane.xlu0 %2781 }
 0x6ca   : > { %vm2804_vm9 = vcmp.eq.f32.partialorder %v5135_v21, %v2782_v3 }
 0x6cb   : > { %v2812_v42 = vsel %vm2804_vm9, %v4174_v58, -64.0 }
 0x6cc   : > { %v2820_v56 = vsel %vm634_vm1, %v2812_v42, -inf }
 0x6cd   : > { %2821 = vmax.xlane.f32.xlu0 %v2820_v56 }
 0x6d1   : > { %v2488_v39 = vpop.xlane.xlu2 %2487  ;;  %v2785_v5 = vpop.xlane.xlu1 %2784 }
 0x6d2   : > { %v2496_v38 = vsub.f32 0.0, %v2488_v39  ;;  %vm2805_vm10 = vcmp.eq.f32.partialorder %v5146_v27, %v2785_v5  ;;  %v5262_v39 = vld [vmem:[%s5768_s4] ss:$0 sm:$0xff] }
 0x6d3   : > { %v2813_v52 = vsel %vm2805_vm10, %v4174_v58, -64.0 }
 0x6d4   : > { %vm2504_vm11 = vcmp.eq.f32.partialorder %v4171_v57, %v2496_v38  ;;  %v2823_v23 = vsel %vm634_vm1, %v2813_v52, -inf }
 0x6d5   : > { %2824 = vmax.xlane.f32.xlu2 %v2823_v23  ;;  %v3760_v22 = vsel %vm2504_vm11, 1.0, %v5784_v40  ;;  %v5236_v15 = vsel %vm2504_vm11, -inf, %v5056_v26  ;;  %v5269_v23 = vld [vmem:[%s5769_s5] ss:$0 sm:$0xff] }
 0x6d6   : > { %3768 = vmatmul.msk.f32.gmra.mxu3 %vm634_vm1, %v3760_v22  ;;  %v2801_v53 = vsel %vm634_vm1, %v5236_v15, -inf }
 0x6d7   : > { %2802 = vmax.xlane.f32.xlu0 %v2801_v53 }
 0x6d8   : > { %v2562_v10 = vpop.f32.mrf.mxu3 }
 0x6d9   : > { %v2788_v11 = vpop.xlane.xlu2 %2787  ;;  %v2586_v13 = vsub.f32 %v2562_v10, %v5246_v8 }
 0x6da   : > { %vm2806_vm12 = vcmp.eq.f32.partialorder %v5157_v31, %v2788_v11 }
 0x6db   : > { %v2814_v9 = vsel %vm2806_vm12, %v4174_v58, -64.0 }
 0x6dc   : > { %v2826_v43 = vsel %vm634_vm1, %v2814_v9, -inf }
 0x6dd   : > { %2827 = vmax.xlane.f32.xlu1 %v2826_v43  ;;  %v5276_v43 = vld [vmem:[%s4083_s19 + $0x10] sm:$0xff] }
 0x6df   : > { %v2791_v33 = vpop.xlane.xlu0 %2790 }
 0x6e0   : > { %vm2807_vm13 = vcmp.eq.f32.partialorder %v5165_v37, %v2791_v33  ;;  %v2565_v26 = vpop.f32.mrf.mxu3 }
 0x6e1   : > { %v2587_v19 = vsub.f32 %v2565_v26, %v5250_v7  ;;  %v2815_v4 = vsel %vm2807_vm13, %v4174_v58, -64.0  ;;  %v5280_v26 = vld [vmem:[%s4083_s19 + $0x18] sm:$0xff] }
 0x6e2   : > { %v2829_v48 = vsel %vm634_vm1, %v2815_v4, -inf }
 0x6e3   : > { %v2594_v55 = vpack.c.bf16 %v2587_v19, %v2586_v13  ;;  %2830 = vmax.xlane.f32.xlu2 %v2829_v48 }
 0x6e5   : > { %v2279_v51 = vpop.f32.mrf.mxu1  ;;  %3769 = vmatmul.msk.bf16.vlgmr.msrb.gmra.mxu0 %vm409_vm0, %v2594_v55 }
 0x6e6   : > { %v2280_v16 = vadd.f32 %v2279_v51, %v4476_v25 }
 0x6e7   : > { %v2794_v3 = vpop.xlane.xlu1 %2793 }
 0x6e8   : > { %vm2808_vm14 = vcmp.eq.f32.partialorder %v5175_v20, %v2794_v3  ;;  %v2568_v42 = vpop.f32.mrf.mxu3  ;;  %v2290_v5 = vmul.f32 %v5262_v39, %v2280_v16 }
 0x6e9   : > { %v2816_v56 = vsel %vm2808_vm14, %v4174_v58, -64.0  ;;  %v2588_v33 = vsub.f32 %v2568_v42, %v5276_v43 }
 0x6ea   : > { %v2832_v38 = vsel %vm634_vm1, %v2816_v56, -inf  ;;  %v2298_v22 = vadd.f32 %v5269_v23, %v2290_v5 }
 0x6eb   : > { %2833 = vmax.xlane.f32.xlu0 %v2832_v38 }
 0x6ec   : > { %v2314_v4 = vmul.f32 0.2, %v2298_v22  ;;  %vm2306_vm2 = vcmp.gt.f32.partialorder %v2298_v22, 0.0 }
 0x6ed   : > { %v2281_v52 = vpop.f32.mrf.mxu1 }
 0x6ee   : > { %v2282_v53 = vadd.f32 %v2281_v52, %v4491_v35  ;;  %v2322_v3 = vsel %vm2306_vm2, %v2298_v22, %v2314_v4 }
 0x6ef   : > { %v2797_v10 = vpop.xlane.xlu2 %2796 }
 0x6f0   : > { %v2291_v11 = vmul.f32 %v5262_v39, %v2282_v53  ;;  %vm2809_vm15 = vcmp.eq.f32.partialorder %v5187_v34, %v2797_v10  ;;  %v2571_v9 = vpop.f32.mrf.mxu3 }
 0x6f1   : > { %v2589_v13 = vsub.f32 %v2571_v9, %v5280_v26  ;;  %v2817_v19 = vsel %vm2809_vm15, %v4174_v58, -64.0 }
 0x6f2   : > { %v2299_v48 = vadd.f32 %v5269_v23, %v2291_v11  ;;  %v2835_v55 = vsel %vm634_vm1, %v2817_v19, -inf  ;;  %v5292_v11 = vld [vmem:[%s4083_s19 + $0x20] sm:$0xff] }
 0x6f3   : > { %v2595_v51 = vpack.c.bf16 %v2589_v13, %v2588_v33  ;;  %2836 = vmax.xlane.f32.xlu1 %v2835_v55  ;;  %v5296_v33 = vld [vmem:[%s4083_s19 + $0x28] sm:$0xff] }
 0x6f4   : > { %vm2307_vm3 = vcmp.gt.f32.partialorder %v2299_v48, 0.0  ;;  %v2315_v16 = vmul.f32 0.2, %v2299_v48 }
 0x6f5   : > { %3770 = vmatmul.msk.bf16.gmra.mxu0 %vm409_vm0, %v2595_v51 }
 0x6f6   : > { %v2323_v42 = vsel %vm2307_vm3, %v2299_v48, %v2315_v16 }
 0x6f7   : > { %v2800_v56 = vpop.xlane.xlu1 %2799  ;;  %v2327_v5 = vpack.c.bf16 %v2323_v42, %v2322_v3 }
 0x6f8   : > { %vm2810_vm4 = vcmp.eq.f32.partialorder %v5199_v59, %v2800_v56  ;;  %v2574_v38 = vpop.f32.mrf.mxu3 }
 0x6f9   : > { %3752 = vmatmul.msk.bf16.gmra.mxu2 %vm909_vm8, %v2327_v5  ;;  %v2818_v52 = vsel %vm2810_vm4, %v4174_v58, -64.0  ;;  %v2590_v9 = vsub.f32 %v2574_v38, %v5292_v11 }
 0x6fa   : > { %v2838_v53 = vsel %vm634_vm1, %v2818_v52, -inf }
 0x6fb   : > { %2839 = vmax.xlane.f32.xlu0 %v2838_v53 }
 0x700   : > { %v2577_v10 = vpop.f32.mrf.mxu3 }
 0x701   : > { %v2591_v22 = vsub.f32 %v2577_v10, %v5296_v33 }
 0x703   : > { %v2596_v13 = vpack.c.bf16 %v2591_v22, %v2590_v9  ;;  %v2349_v19 = vpop.f32.mrf.mxu2 }
 0x704   : > { %v2369_v4 = vmul.f32 %v5111_v61, %v2349_v19 }
 0x705   : > { %3771 = vmatmul.msk.bf16.gmra.mxu0 %vm409_vm0, %v2596_v13 }
 0x706   : > { %v2377_v48 = vadd.f32 %v5125_v30, %v2369_v4 }
 0x708   : > { %vm2385_vm5 = vcmp.gt.f32.partialorder %v2377_v48, 0.0  ;;  %v2393_v55 = vmul.f32 0.2, %v2377_v48 }
 0x70a   : > { %v2401_v51 = vsel %vm2385_vm5, %v2377_v48, %v2393_v55 }
 0x70b   : > { %v5305_v16 = vmax.f32 %v2054_v49, %v2401_v51  ;;  %v5307_v3 = vpop.f32.mrf.mxu2 }
 0x713   : > { %v2354_v42 = vpop.f32.mrf.mxu2 }
 0x714   : > { %v2371_v56 = vmul.f32 %v5111_v61, %v2354_v42 }
 0x716   : > { %v2379_v5 = vadd.f32 %v5125_v30, %v2371_v56 }
 0x718   : > { %vm2387_vm6 = vcmp.gt.f32.partialorder %v2379_v5, 0.0  ;;  %v2395_v38 = vmul.f32 0.2, %v2379_v5 }
 0x71a   : > { %v2403_v52 = vsel %vm2387_vm6, %v2379_v5, %v2395_v38  ;;  %v2580_v5 = vpop.f32.mrf.mxu3 }
 0x71b   : > { %v5314_v53 = vmax.f32 %v2056_v45, %v2403_v52  ;;  %v5316_v10 = vpop.f32.mrf.mxu2 }
 0x723   : > { %v2359_v2 = vpop.f32.mrf.mxu2 }
 0x724   : > { %v2373_v0 = vmul.f32 %v5111_v61, %v2359_v2 }
 0x726   : > { %v2381_v49 = vadd.f32 %v5125_v30, %v2373_v0 }
 0x728   : > { %vm2389_vm7 = vcmp.gt.f32.partialorder %v2381_v49, 0.0  ;;  %v2397_v9 = vmul.f32 0.2, %v2381_v49 }
 0x72a   : > { %v2405_v22 = vsel %vm2389_vm7, %v2381_v49, %v2397_v9 }
 0x72b   : > { %v5323_v13 = vmax.f32 %v2058_v63, %v2405_v22  ;;  %v5354_v22 = vld [vmem:[%s4083_s19 + $0x30] sm:$0xff] }
 0x740   : > { %v2822_v19 = vpop.xlane.xlu0 %2821 }
 0x741   : > { %v2844_v4 = vsub.f32 0.0, %v2822_v19  ;;  %v2592_v19 = vsub.f32 %v2580_v5, %v5354_v22 }
 0x743   : > { %vm2852_vm9 = vcmp.eq.f32.partialorder %v4171_v57, %v2844_v4  ;;  %v5358_v4 = vld [vmem:[%s4083_s19 + $0x38] sm:$0xff] }
 0x744   : > { %v3777_v17 = vsel %vm2852_vm9, 1.0, %v5784_v40  ;;  %v5328_v29 = vsel %vm2852_vm9, -inf, %v5135_v21 }
 0x745   : > { %3785 = vmatmul.msk.f32.vlgmr.msrb.gmra.mxu2 %vm634_vm1, %v3777_v17  ;;  %v3135_v45 = vsel %vm634_vm1, %v5328_v29, -inf }
 0x746   : > { %3136 = vmax.xlane.f32.xlu2 %v3135_v45 }
 0x748   : > { %v2825_v48 = vpop.xlane.xlu2 %2824 }
 0x749   : > { %v2845_v55 = vsub.f32 0.0, %v2825_v48 }
 0x74a   : > { %v2803_v24 = vpop.xlane.xlu0 %2802 }
 0x74b   : > { %vm2853_vm10 = vcmp.eq.f32.partialorder %v4171_v57, %v2845_v55  ;;  %vm2811_vm11 = vcmp.eq.f32.partialorder %v5236_v15, %v2803_v24 }
 0x74c   : > { %v3778_v62 = vsel %vm2853_vm10, 1.0, %v5784_v40  ;;  %v5337_v63 = vsel %vm2853_vm10, -inf, %v5146_v27  ;;  %v2819_v21 = vsel %vm2811_vm11, %v4174_v58, -64.0 }
 0x74d   : > { %3786 = vmatmul.msk.f32.gmra.mxu2 %vm634_vm1, %v3778_v62  ;;  %v3138_v51 = vsel %vm634_vm1, %v5337_v63, -inf  ;;  %v2841_v42 = vsel %vm634_vm1, %v2819_v21, -inf }
 0x74e   : > { %3139 = vmax.xlane.f32.xlu1 %v3138_v51  ;;  %2842 = vmax.xlane.f32.xlu2 %v2841_v42 }
 0x750   : > { %v2828_v56 = vpop.xlane.xlu1 %2827 }
 0x751   : > { %v2846_v38 = vsub.f32 0.0, %v2828_v56 }
 0x753   : > { %vm2854_vm12 = vcmp.eq.f32.partialorder %v4171_v57, %v2846_v38 }
 0x754   : > { %v3779_v27 = vsel %vm2854_vm12, 1.0, %v5784_v40  ;;  %v5347_v52 = vsel %vm2854_vm12, -inf, %v5157_v31 }
 0x755   : > { %3787 = vmatmul.msk.f32.gmra.mxu2 %vm634_vm1, %v3779_v27  ;;  %v3141_v2 = vsel %vm634_vm1, %v5347_v52, -inf }
 0x756   : > { %3142 = vmax.xlane.f32.xlu0 %v3141_v2  ;;  %v2831_v0 = vpop.xlane.xlu2 %2830 }
 0x757   : > { %v2847_v49 = vsub.f32 0.0, %v2831_v0 }
 0x759   : > { %v2583_v9 = vpop.f32.mrf.mxu3  ;;  %vm2855_vm13 = vcmp.eq.f32.partialorder %v4171_v57, %v2847_v49 }
 0x75a   : > { %v2593_v31 = vsub.f32 %v2583_v9, %v5358_v4  ;;  %v5362_v17 = vsel %vm2855_vm13, -inf, %v5165_v37  ;;  %v3780_v55 = vsel %vm2855_vm13, 1.0, %v5784_v40 }
 0x75b   : > { %v3144_v45 = vsel %vm634_vm1, %v5362_v17, -inf }
 0x75c   : > { %v2597_v48 = vpack.c.bf16 %v2593_v31, %v2592_v19  ;;  %3145 = vmax.xlane.f32.xlu1 %v3144_v45 }
 0x75d   : > { %3788 = vmatmul.msk.f32.gmra.mxu2 %vm634_vm1, %v3780_v55 }
 0x75e   : > { %3772 = vmatmul.msk.bf16.gmra.mxu0 %vm409_vm0, %v2597_v48  ;;  %v2834_v24 = vpop.xlane.xlu0 %2833 }
 0x75f   : > { %v2848_v62 = vsub.f32 0.0, %v2834_v24 }
 0x761   : > { %vm2856_vm14 = vcmp.eq.f32.partialorder %v4171_v57, %v2848_v62 }
 0x762   : > { %v2619_v21 = vpop.f32.mrf.mxu0  ;;  %v5371_v51 = vsel %vm2856_vm14, -inf, %v5175_v20  ;;  %v3781_v56 = vsel %vm2856_vm14, 1.0, %v5784_v40 }
 0x763   : > { %v2620_v37 = vadd.f32 %v2619_v21, %v4364_v28  ;;  %v3147_v42 = vsel %vm634_vm1, %v5371_v51, -inf }
 0x764   : > { %3148 = vmax.xlane.f32.xlu2 %v3147_v42 }
 0x765   : > { %3789 = vmatmul.msk.f32.gmra.mxu2 %vm634_vm1, %v3781_v56  ;;  %v2639_v38 = vmul.f32 %v5262_v39, %v2620_v37 }
 0x766   : > { %v2837_v5 = vpop.xlane.xlu1 %2836 }
 0x767   : > { %v2849_v27 = vsub.f32 0.0, %v2837_v5  ;;  %v2647_v0 = vadd.f32 %v5269_v23, %v2639_v38  ;;  %v5398_v38 = vpop.f32.mrf.mxu2 }
 0x769   : > { %vm2857_vm15 = vcmp.eq.f32.partialorder %v4171_v57, %v2849_v27  ;;  %v2663_v48 = vmul.f32 0.2, %v2647_v0  ;;  %vm2655_vm2 = vcmp.gt.f32.partialorder %v2647_v0, 0.0 }
 0x76a   : > { %v2621_v2 = vpop.f32.mrf.mxu0  ;;  %v5381_v20 = vsel %vm2857_vm15, -inf, %v5187_v34  ;;  %v3782_v19 = vsel %vm2857_vm15, 1.0, %v5784_v40 }
 0x76b   : > { %v2622_v49 = vadd.f32 %v2621_v2, %v4392_v47  ;;  %v3150_v9 = vsel %vm634_vm1, %v5381_v20, -inf  ;;  %v2671_v37 = vsel %vm2655_vm2, %v2647_v0, %v2663_v48 }
 0x76c   : > { %3151 = vmax.xlane.f32.xlu0 %v3150_v9 }
 0x76d   : > { %v2640_v31 = vmul.f32 %v5262_v39, %v2622_v49  ;;  %3790 = vmatmul.msk.f32.gmra.mxu2 %vm634_vm1, %v3782_v19 }
 0x76e   : > { %v2840_v45 = vpop.xlane.xlu0 %2839 }
 0x76f   : > { %v2648_v55 = vadd.f32 %v5269_v23, %v2640_v31  ;;  %v2850_v34 = vsub.f32 0.0, %v2840_v45 }
 0x771   : > { %vm2656_vm3 = vcmp.gt.f32.partialorder %v2648_v55, 0.0  ;;  %v2664_v24 = vmul.f32 0.2, %v2648_v55  ;;  %vm2858_vm4 = vcmp.eq.f32.partialorder %v4171_v57, %v2850_v34 }
 0x772   : > { %v2624_v62 = vpop.f32.mrf.mxu0  ;;  %v5393_v21 = vsel %vm2858_vm4, -inf, %v5199_v59  ;;  %v3783_v2 = vsel %vm2858_vm4, 1.0, %v5784_v40 }
 0x773   : > { %v2672_v42 = vsel %vm2656_vm3, %v2648_v55, %v2664_v24  ;;  %v2625_v56 = vadd.f32 %v2624_v62, %v4411_v44  ;;  %v3153_v5 = vsel %vm634_vm1, %v5393_v21, -inf }
 0x774   : > { %v2679_v27 = vpack.c.bf16 %v2672_v42, %v2671_v37  ;;  %3154 = vmax.xlane.f32.xlu2 %v3153_v5 }
 0x775   : > { %3791 = vmatmul.msk.f32.gmra.mxu2 %vm634_vm1, %v3783_v2  ;;  %v2641_v59 = vmul.f32 %v5262_v39, %v2625_v56 }
 0x776   : > { %3773 = vmatmul.msk.bf16.vlgmr.msrb.gmra.mxu1 %vm909_vm8, %v2679_v27 }
 0x777   : > { %v2649_v0 = vadd.f32 %v5269_v23, %v2641_v59 }
 0x779   : > { %v2665_v48 = vmul.f32 0.2, %v2649_v0  ;;  %vm2657_vm5 = vcmp.gt.f32.partialorder %v2649_v0, 0.0 }
 0x77a   : > { %v2626_v49 = vpop.f32.mrf.mxu0 }
 0x77b   : > { %v2627_v9 = vadd.f32 %v2626_v49, %v4429_v32  ;;  %v2673_v5 = vsel %vm2657_vm5, %v2649_v0, %v2665_v48 }
 0x77c   : > { %v2364_v19 = vpop.f32.mrf.mxu2 }
 0x77d   : > { %v2642_v31 = vmul.f32 %v5262_v39, %v2627_v9  ;;  %v2375_v45 = vmul.f32 %v5111_v61, %v2364_v19 }
 0x77f   : > { %v2650_v55 = vadd.f32 %v5269_v23, %v2642_v31  ;;  %v2383_v34 = vadd.f32 %v5125_v30, %v2375_v45 }
 0x781   : > { %vm2658_vm6 = vcmp.gt.f32.partialorder %v2650_v55, 0.0  ;;  %v2666_v24 = vmul.f32 0.2, %v2650_v55  ;;  %vm2391_vm7 = vcmp.gt.f32.partialorder %v2383_v34, 0.0  ;;  %v2399_v62 = vmul.f32 0.2, %v2383_v34 }
 0x782   : > { %v2629_v37 = vpop.f32.mrf.mxu0 }
 0x783   : > { %v2407_v42 = vsel %vm2391_vm7, %v2383_v34, %v2399_v62  ;;  %v2630_v56 = vadd.f32 %v2629_v37, %v4439_v46  ;;  %v2674_v27 = vsel %vm2658_vm6, %v2650_v55, %v2666_v24 }
 0x784   : > { %v5414_v2 = vmax.f32 %v2060_v41, %v2407_v42  ;;  %v2680_v59 = vpack.c.bf16 %v2674_v27, %v2673_v5  ;;  %v5426_v37 = vpop.f32.mrf.mxu2 }
 0x785   : > { %v2643_v49 = vmul.f32 %v5262_v39, %v2630_v56 }
 0x786   : > { %3774 = vmatmul.msk.bf16.gmra.mxu1 %vm909_vm8, %v2680_v59 }
 0x787   : > { %v2651_v19 = vadd.f32 %v5269_v23, %v2643_v49 }
 0x789   : > { %v2667_v34 = vmul.f32 0.2, %v2651_v19  ;;  %vm2659_vm9 = vcmp.gt.f32.partialorder %v2651_v19, 0.0 }
 0x78a   : > { %v2631_v9 = vpop.f32.mrf.mxu0 }
 0x78b   : > { %v2632_v31 = vadd.f32 %v2631_v9, %v4445_v14  ;;  %v2675_v36 = vsel %vm2659_vm9, %v2651_v19, %v2667_v34 }
 0x78d   : > { %v2644_v45 = vmul.f32 %v5262_v39, %v2632_v31 }
 0x78f   : > { %v2652_v0 = vadd.f32 %v5269_v23, %v2644_v45 }
 0x791   : > { %vm2660_vm10 = vcmp.gt.f32.partialorder %v2652_v0, 0.0  ;;  %v2668_v6 = vmul.f32 0.2, %v2652_v0 }
 0x793   : > { %v2676_v41 = vsel %vm2660_vm10, %v2652_v0, %v2668_v6 }
 0x794   : > { %v2681_v48 = vpack.c.bf16 %v2676_v41, %v2675_v36 }
 0x796   : > { %3775 = vmatmul.msk.bf16.gmra.mxu1 %vm909_vm8, %v2681_v48 }
 0x7b9   : > { %v3137_v55 = vpop.xlane.xlu2 %3136 }
 0x7ba   : > { %vm3159_vm11 = vcmp.eq.f32.partialorder %v5328_v29, %v3137_v55 }
 0x7bb   : > { %v3167_v24 = vsel %vm3159_vm11, %v4174_v58, -64.0 }
 0x7bc   : > { %v3175_v62 = vsel %vm634_vm1, %v3167_v24, -inf }
 0x7bd   : > { %3176 = vmax.xlane.f32.xlu1 %v3175_v62 }
 0x7c1   : > { %v3140_v42 = vpop.xlane.xlu1 %3139  ;;  %v2843_v56 = vpop.xlane.xlu2 %2842 }
 0x7c2   : > { %vm3160_vm12 = vcmp.eq.f32.partialorder %v5337_v63, %v3140_v42  ;;  %v2851_v5 = vsub.f32 0.0, %v2843_v56 }
 0x7c3   : > { %v3168_v27 = vsel %vm3160_vm12, %v4174_v58, -64.0 }
 0x7c4   : > { %vm2859_vm13 = vcmp.eq.f32.partialorder %v4171_v57, %v2851_v5  ;;  %v3178_v59 = vsel %vm634_vm1, %v3168_v27, -inf }
 0x7c5   : > { %3179 = vmax.xlane.f32.xlu0 %v3178_v59  ;;  %v3784_v29 = vsel %vm2859_vm13, 1.0, %v5784_v40  ;;  %v5434_v49 = vsel %vm2859_vm13, -inf, %v5236_v15 }
 0x7c6   : > { %3792 = vmatmul.msk.f32.gmra.mxu2 %vm634_vm1, %v3784_v29  ;;  %v3156_v9 = vsel %vm634_vm1, %v5434_v49, -inf }
 0x7c7   : > { %3157 = vmax.xlane.f32.xlu1 %v3156_v9 }
 0x7c8   : > { %v2917_v63 = vpop.f32.mrf.mxu2 }
 0x7c9   : > { %v3143_v19 = vpop.xlane.xlu0 %3142  ;;  %v2941_v0 = vsub.f32 %v2917_v63, %v5246_v8 }
 0x7ca   : > { %vm3161_vm14 = vcmp.eq.f32.partialorder %v5347_v52, %v3143_v19 }
 0x7cb   : > { %v3169_v31 = vsel %vm3161_vm14, %v4174_v58, -64.0 }
 0x7cc   : > { %v3181_v45 = vsel %vm634_vm1, %v3169_v31, -inf }
 0x7cd   : > { %3182 = vmax.xlane.f32.xlu2 %v3181_v45 }
 0x7cf   : > { %v3146_v34 = vpop.xlane.xlu1 %3145 }
 0x7d0   : > { %vm3162_vm15 = vcmp.eq.f32.partialorder %v5362_v17, %v3146_v34  ;;  %v2920_v15 = vpop.f32.mrf.mxu2 }
 0x7d1   : > { %v2942_v6 = vsub.f32 %v2920_v15, %v5250_v7  ;;  %v3170_v36 = vsel %vm3162_vm15, %v4174_v58, -64.0 }
 0x7d2   : > { %v3184_v41 = vsel %vm634_vm1, %v3170_v36, -inf }
 0x7d3   : > { %v2949_v48 = vpack.c.bf16 %v2942_v6, %v2941_v0  ;;  %3185 = vmax.xlane.f32.xlu0 %v3184_v41 }
 0x7d5   : > { %3793 = vmatmul.msk.bf16.vlgmr.msrb.gmra.mxu3 %vm409_vm0, %v2949_v48 }
 0x7d7   : > { %v3149_v52 = vpop.xlane.xlu2 %3148 }
 0x7d8   : > { %vm3163_vm2 = vcmp.eq.f32.partialorder %v5371_v51, %v3149_v52  ;;  %v2923_v55 = vpop.f32.mrf.mxu2  ;;  %v5791_v52 = vld [vmem:[#allocation6_spill] sm:$0xff] }
 0x7d9   : > { %v3171_v24 = vsel %vm3163_vm2, %v4174_v58, -64.0  ;;  %v2943_v59 = vsub.f32 %v2923_v55, %v5276_v43  ;;  %v1305_v55 = vmul.f32 %v5111_v61, %v5791_v52 }
 0x7da   : > { %v3187_v17 = vsel %vm634_vm1, %v3171_v24, -inf }
 0x7db   : > { %v2634_v62 = vpop.f32.mrf.mxu0  ;;  %3188 = vmax.xlane.f32.xlu1 %v3187_v17 }
 0x7dc   : > { %v2635_v42 = vadd.f32 %v2634_v62, %v4476_v25 }
 0x7de   : > { %v2645_v5 = vmul.f32 %v5262_v39, %v2635_v42  ;;  %v5792_v42 = vld [vmem:[#allocation2_spill] sm:$0xff] }
 0x7df   : > { %v3152_v56 = vpop.xlane.xlu0 %3151 }
 0x7e0   : > { %vm3164_vm3 = vcmp.eq.f32.partialorder %v5381_v20, %v3152_v56  ;;  %v2926_v27 = vpop.f32.mrf.mxu2  ;;  %v2653_v31 = vadd.f32 %v5269_v23, %v2645_v5  ;;  %v955_v56 = vmul.f32 %v5111_v61, %v5792_v42  ;;  %v1313_v5 = vadd.f32 %v5125_v30, %v1305_v55 }
 0x7e1   : > { %v2944_v29 = vsub.f32 %v2926_v27, %v5280_v26  ;;  %v3172_v51 = vsel %vm3164_vm3, %v4174_v58, -64.0  ;;  %v2015_v27 = vmul.f32 %v5111_v61, %v5106_v1 }
 0x7e2   : > { %v3190_v9 = vsel %vm634_vm1, %v3172_v51, -inf  ;;  %v2669_v15 = vmul.f32 0.2, %v2653_v31  ;;  %vm2661_vm5 = vcmp.gt.f32.partialorder %v2653_v31, 0.0  ;;  %vm1321_vm7 = vcmp.gt.f32.partialorder %v1313_v5, 0.0 }
 0x7e3   : > { %v2950_v63 = vpack.c.bf16 %v2944_v29, %v2943_v59  ;;  %v2636_v19 = vpop.f32.mrf.mxu0  ;;  %3191 = vmax.xlane.f32.xlu2 %v3190_v9  ;;  %v966_v9 = vadd.f32 %v5125_v30, %v955_v56  ;;  %v5793_v56 = vld [vmem:[#allocation7_spill] sm:$0xff] }
 0x7e4   : > { %v2637_v45 = vadd.f32 %v2636_v19, %v4491_v35  ;;  %v2677_v24 = vsel %vm2661_vm5, %v2653_v31, %v2669_v15  ;;  %v2370_v19 = vmul.f32 %v5111_v61, %v5307_v3 }
 0x7e5   : > { %3794 = vmatmul.msk.bf16.gmra.mxu3 %vm409_vm0, %v2950_v63  ;;  %v982_v1 = vmul.f32 0.2, %v966_v9  ;;  %vm974_vm9 = vcmp.gt.f32.partialorder %v966_v9, 0.0 }
 0x7e6   : > { %v2646_v20 = vmul.f32 %v5262_v39, %v2637_v45  ;;  %v1329_v45 = vmul.f32 0.2, %v1313_v5 }
 0x7e7   : > { %v3155_v34 = vpop.xlane.xlu2 %3154 }
 0x7e8   : > { %v2654_v0 = vadd.f32 %v5269_v23, %v2646_v20  ;;  %vm3165_vm4 = vcmp.eq.f32.partialorder %v5393_v21, %v3155_v34  ;;  %v2929_v6 = vpop.f32.mrf.mxu2  ;;  %v1660_v21 = vmul.f32 %v5111_v61, %v4928_v60  ;;  %v2023_v20 = vadd.f32 %v5125_v30, %v2015_v27 }
 0x7e9   : > { %v3173_v36 = vsel %vm3165_vm4, %v4174_v58, -64.0  ;;  %v2945_v29 = vsub.f32 %v2929_v6, %v5292_v11 }
 0x7ea   : > { %vm2662_vm6 = vcmp.gt.f32.partialorder %v2654_v0, 0.0  ;;  %v2670_v41 = vmul.f32 0.2, %v2654_v0  ;;  %v3193_v48 = vsel %vm634_vm1, %v3173_v36, -inf  ;;  %v1668_v63 = vadd.f32 %v5125_v30, %v1660_v21 }
 0x7eb   : > { %3194 = vmax.xlane.f32.xlu0 %v3193_v48  ;;  %v1337_v36 = vsel %vm1321_vm7, %v1313_v5, %v1329_v45  ;;  %v2039_v3 = vmul.f32 0.2, %v2023_v20  ;;  %vm2031_vm12 = vcmp.gt.f32.partialorder %v2023_v20, 0.0  ;;  %v990_v48 = vsel %vm974_vm9, %v966_v9, %v982_v1  ;;  %v5795_v9 = vld [vmem:[#allocation10_spill] sm:$0xff] }
 0x7ec   : > { %v2678_v17 = vsel %vm2662_vm6, %v2654_v0, %v2670_v41  ;;  %v1684_v15 = vmul.f32 0.2, %v1668_v63  ;;  %v2378_v0 = vadd.f32 %v5125_v30, %v2370_v19  ;;  %vm1676_vm10 = vcmp.gt.f32.partialorder %v1668_v63, 0.0 }
 0x7ed   : > { %v2682_v62 = vpack.c.bf16 %v2678_v17, %v2677_v24  ;;  %v1345_v17 = vmax.f32 %v990_v48, %v1337_v36  ;;  %v1307_v21 = vmul.f32 %v5111_v61, %v5793_v56  ;;  %v2047_v27 = vsel %vm2031_vm12, %v2023_v20, %v2039_v3 }
 0x7ee   : > { %v1692_v52 = vsel %vm1676_vm10, %v1668_v63, %v1684_v15  ;;  %v2394_v55 = vmul.f32 0.2, %v2378_v0  ;;  %vm2386_vm13 = vcmp.gt.f32.partialorder %v2378_v0, 0.0  ;;  %v1662_v63 = vmul.f32 %v5111_v61, %v5795_v9 }
 0x7ef   : > { %3776 = vmatmul.msk.bf16.gmra.mxu1 %vm909_vm8, %v2682_v62  ;;  %v1315_v45 = vadd.f32 %v5125_v30, %v1307_v21  ;;  %v2372_v36 = vmul.f32 %v5111_v61, %v5316_v10 }
 0x7f0   : > { %v2932_v59 = vpop.f32.mrf.mxu2  ;;  %v2402_v19 = vsel %vm2386_vm13, %v2378_v0, %v2394_v55 }
 0x7f1   : > { %v2946_v51 = vsub.f32 %v2932_v59, %v5296_v33  ;;  %v1700_v59 = vmax.f32 %v1345_v17, %v1692_v52  ;;  %v1331_v48 = vmul.f32 0.2, %v1315_v45  ;;  %vm1323_vm15 = vcmp.gt.f32.partialorder %v1315_v45, 0.0 }
 0x7f3   : > { %v2951_v60 = vpack.c.bf16 %v2946_v51, %v2945_v29  ;;  %v2704_v31 = vpop.f32.mrf.mxu1  ;;  %v5794_v29 = vld [vmem:[#allocation3_spill] sm:$0xff]  ;;  %v1339_v10 = vsel %vm1323_vm15, %v1315_v45, %v1331_v48 }
 0x7f4   : > { %v2724_v34 = vmul.f32 %v5111_v61, %v2704_v31  ;;  %v957_v51 = vmul.f32 %v5111_v61, %v5794_v29  ;;  %v2055_v31 = vmax.f32 %v1700_v59, %v2047_v27 }
 0x7f5   : > { %3795 = vmatmul.msk.bf16.gmra.mxu3 %vm409_vm0, %v2951_v60 }
 0x7f6   : > { %v2732_v6 = vadd.f32 %v5125_v30, %v2724_v34  ;;  %v2017_v34 = vmul.f32 %v5111_v61, %v5119_v18  ;;  %v5502_v1 = vmax.f32 %v2055_v31, %v2402_v19  ;;  %v968_v15 = vadd.f32 %v5125_v30, %v957_v51 }
 0x7f8   : > { %vm2740_vm11 = vcmp.gt.f32.partialorder %v2732_v6, 0.0  ;;  %v2748_v41 = vmul.f32 0.2, %v2732_v6  ;;  %v2025_v18 = vadd.f32 %v5125_v30, %v2017_v34  ;;  %v984_v55 = vmul.f32 0.2, %v968_v15 }
 0x7f9   : > { %vm976_vm2 = vcmp.gt.f32.partialorder %v968_v15, 0.0 }
 0x7fa   : > { %v5487_v24 = vsel %vm2740_vm11, %v2732_v6, %v2748_v41  ;;  %v1670_v6 = vadd.f32 %v5125_v30, %v1662_v63  ;;  %v2041_v21 = vmul.f32 0.2, %v2025_v18  ;;  %vm2033_vm5 = vcmp.gt.f32.partialorder %v2025_v18, 0.0 }
 0x7fb   : > { %v2764_v62 = vmax.f32 %v5305_v16, %v5487_v24  ;;  %v2706_v42 = vpop.f32.mrf.mxu1 }
 0x7fc   : > { %v2725_v5 = vmul.f32 %v5111_v61, %v2706_v42  ;;  %v1686_v17 = vmul.f32 0.2, %v1670_v6  ;;  %v2380_v42 = vadd.f32 %v5125_v30, %v2372_v36  ;;  %vm1678_vm3 = vcmp.gt.f32.partialorder %v1670_v6, 0.0 }
 0x7fd   : > { %v2049_v19 = vsel %vm2033_vm5, %v2025_v18, %v2041_v21 }
 0x7fe   : > { %v2733_v60 = vadd.f32 %v5125_v30, %v2725_v5  ;;  %v992_v5 = vsel %vm976_vm2, %v968_v15, %v984_v55  ;;  %v1694_v59 = vsel %vm1678_vm3, %v1670_v6, %v1686_v17  ;;  %v2396_v29 = vmul.f32 0.2, %v2380_v42  ;;  %v5537_v55 = vld [vmem:[%s5772_s8] ss:$0 sm:$0xff] }
 0x7ff   : > { %vm2388_vm6 = vcmp.gt.f32.partialorder %v2380_v42, 0.0 }
 0x800   : > { %vm2741_vm14 = vcmp.gt.f32.partialorder %v2733_v60, 0.0  ;;  %v2749_v20 = vmul.f32 0.2, %v2733_v60  ;;  %v2404_v34 = vsel %vm2388_vm6, %v2380_v42, %v2396_v29 }
 0x802   : > { %v5508_v0 = vsel %vm2741_vm14, %v2733_v60, %v2749_v20  ;;  %v5523_v60 = vld [vmem:[%s5771_s7] ss:$0 sm:$0xff] }
 0x803   : > { %v2765_v3 = vmax.f32 %v5502_v1, %v5508_v0  ;;  %v2709_v41 = vpop.f32.mrf.mxu1  ;;  %v5797_v0 = vld [vmem:[#allocation8_spill] sm:$0xff] }
 0x804   : > { %v2726_v52 = vmul.f32 %v5111_v61, %v2709_v41  ;;  %v1347_v61 = vmax.f32 %v992_v5, %v1339_v10 }
 0x806   : > { %v2734_v56 = vadd.f32 %v5125_v30, %v2726_v52  ;;  %v1702_v45 = vmax.f32 %v1347_v61, %v1694_v59 }
 0x808   : > { %vm2742_vm4 = vcmp.gt.f32.partialorder %v2734_v56, 0.0  ;;  %v2750_v27 = vmul.f32 0.2, %v2734_v56  ;;  %v2057_v15 = vmax.f32 %v1702_v45, %v2049_v19  ;;  %v2935_v45 = vpop.f32.mrf.mxu2 }
 0x80a   : > { %v5516_v51 = vsel %vm2742_vm4, %v2734_v56, %v2750_v27  ;;  %v5527_v36 = vmax.f32 %v2057_v15, %v2404_v34 }
 0x80b   : > { %v2766_v9 = vmax.f32 %v5314_v53, %v5516_v51  ;;  %v2711_v63 = vpop.f32.mrf.mxu1  ;;  %v2374_v53 = vmul.f32 %v5523_v60, %v5398_v38 }
 0x80c   : > { %v2727_v31 = vmul.f32 %v5523_v60, %v2711_v63 }
 0x80e   : > { %v2735_v20 = vadd.f32 %v5125_v30, %v2727_v31 }
 0x810   : > { %vm2743_vm7 = vcmp.gt.f32.partialorder %v2735_v20, 0.0  ;;  %v2751_v6 = vmul.f32 0.2, %v2735_v20 }
 0x812   : > { %v5529_v41 = vsel %vm2743_vm7, %v2735_v20, %v2751_v6 }
 0x813   : > { %v2767_v48 = vmax.f32 %v5527_v36, %v5529_v41  ;;  %v2714_v18 = vpop.f32.mrf.mxu1 }
 0x814   : > { %v2728_v52 = vmul.f32 %v5523_v60, %v2714_v18 }
 0x816   : > { %v2736_v30 = vadd.f32 %v5537_v55, %v2728_v52 }
 0x818   : > { %vm2744_vm9 = vcmp.gt.f32.partialorder %v2736_v30, 0.0  ;;  %v2752_v17 = vmul.f32 0.2, %v2736_v30 }
 0x81a   : > { %v5540_v42 = vsel %vm2744_vm9, %v2736_v30, %v2752_v17 }
 0x81b   : > { %v2768_v56 = vmax.f32 %v5323_v13, %v5540_v42 }
 0x830   : > { %v3177_v10 = vpop.xlane.xlu1 %3176 }
 0x831   : > { %v3199_v21 = vsub.f32 0.0, %v3177_v10 }
 0x833   : > { %vm3207_vm10 = vcmp.eq.f32.partialorder %v4171_v57, %v3199_v21 }
 0x834   : > { %v3801_v27 = vsel %vm3207_vm10, 1.0, %v5784_v40 }
 0x835   : > { %3809 = vmatmul.msk.f32.vlgmr.msra.gmra.mxu1 %vm634_vm1, %v3801_v27 }
 0x838   : > { %v3180_v5 = vpop.xlane.xlu0 %3179 }
 0x839   : > { %v3200_v59 = vsub.f32 0.0, %v3180_v5 }
 0x83a   : > { %v3158_v29 = vpop.xlane.xlu1 %3157 }
 0x83b   : > { %vm3208_vm11 = vcmp.eq.f32.partialorder %v4171_v57, %v3200_v59  ;;  %vm3166_vm12 = vcmp.eq.f32.partialorder %v5434_v49, %v3158_v29 }
 0x83c   : > { %v3802_v61 = vsel %vm3208_vm11, 1.0, %v5784_v40  ;;  %v3174_v63 = vsel %vm3166_vm12, %v4174_v58, -64.0  ;;  %v2947_v58 = vsub.f32 %v2935_v45, %v5354_v22 }
 0x83d   : > { %3810 = vmatmul.msk.f32.gmra.mxu1 %vm634_vm1, %v3802_v61  ;;  %v3196_v19 = vsel %vm634_vm1, %v3174_v63, -inf }
 0x83e   : > { %3197 = vmax.xlane.f32.xlu1 %v3196_v19 }
 0x840   : > { %v3183_v31 = vpop.xlane.xlu2 %3182 }
 0x841   : > { %v3201_v34 = vsub.f32 0.0, %v3183_v31 }
 0x843   : > { %vm3209_vm13 = vcmp.eq.f32.partialorder %v4171_v57, %v3201_v34 }
 0x844   : > { %v3803_v20 = vsel %vm3209_vm13, 1.0, %v5784_v40 }
 0x845   : > { %3811 = vmatmul.msk.f32.gmra.mxu1 %vm634_vm1, %v3803_v20 }
 0x846   : > { %v3186_v15 = vpop.xlane.xlu0 %3185 }
 0x847   : > { %v3202_v49 = vsub.f32 0.0, %v3186_v15 }
 0x849   : > { %vm3210_vm14 = vcmp.eq.f32.partialorder %v4171_v57, %v3202_v49  ;;  %v2938_v6 = vpop.f32.mrf.mxu2  ;;  %v5574_v49 = vpop.f32.mrf.mxu1 }
 0x84a   : > { %v2948_v18 = vsub.f32 %v2938_v6, %v5358_v4  ;;  %v3804_v30 = vsel %vm3210_vm14, 1.0, %v5784_v40 }
 0x84c   : > { %v2952_v52 = vpack.c.bf16 %v2948_v18, %v2947_v58 }
 0x84d   : > { %3812 = vmatmul.msk.f32.gmra.mxu1 %vm634_vm1, %v3804_v30 }
 0x84e   : > { %v3189_v17 = vpop.xlane.xlu1 %3188  ;;  %3796 = vmatmul.msk.bf16.gmra.mxu3 %vm409_vm0, %v2952_v52 }
 0x84f   : > { %v3203_v10 = vsub.f32 0.0, %v3189_v17 }
 0x851   : > { %vm3211_vm15 = vcmp.eq.f32.partialorder %v4171_v57, %v3203_v10 }
 0x852   : > { %v3805_v21 = vsel %vm3211_vm15, 1.0, %v5784_v40 }
 0x855   : > { %3813 = vmatmul.msk.f32.gmra.mxu1 %vm634_vm1, %v3805_v21 }
 0x856   : > { %v3192_v27 = vpop.xlane.xlu2 %3191 }
 0x857   : > { %v3204_v5 = vsub.f32 0.0, %v3192_v27 }
 0x858   : > { %v2974_v59 = vpop.f32.mrf.mxu3 }
 0x859   : > { %vm3212_vm2 = vcmp.eq.f32.partialorder %v4171_v57, %v3204_v5  ;;  %v2975_v29 = vadd.f32 %v2974_v59, %v4364_v28 }
 0x85a   : > { %v3806_v61 = vsel %vm3212_vm2, 1.0, %v5784_v40 }
 0x85b   : > { %v2994_v63 = vmul.f32 %v5262_v39, %v2975_v29 }
 0x85d   : > { %3814 = vmatmul.msk.f32.gmra.mxu1 %vm634_vm1, %v3806_v61  ;;  %v3002_v34 = vadd.f32 %v5269_v23, %v2994_v63 }
 0x85e   : > { %v3195_v19 = vpop.xlane.xlu0 %3194 }
 0x85f   : > { %v3205_v31 = vsub.f32 0.0, %v3195_v19  ;;  %v3018_v58 = vmul.f32 0.2, %v3002_v34  ;;  %vm3010_vm4 = vcmp.gt.f32.partialorder %v3002_v34, 0.0 }
 0x860   : > { %v2976_v45 = vpop.f32.mrf.mxu3 }
 0x861   : > { %vm3213_vm3 = vcmp.eq.f32.partialorder %v4171_v57, %v3205_v31  ;;  %v2977_v20 = vadd.f32 %v2976_v45, %v4392_v47  ;;  %v3026_v17 = vsel %vm3010_vm4, %v3002_v34, %v3018_v58 }
 0x862   : > { %v3807_v6 = vsel %vm3213_vm3, 1.0, %v5784_v40 }
 0x863   : > { %v2995_v15 = vmul.f32 %v5262_v39, %v2977_v20 }
 0x865   : > { %v3003_v18 = vadd.f32 %v5269_v23, %v2995_v15  ;;  %3815 = vmatmul.msk.f32.gmra.mxu1 %vm634_vm1, %v3807_v6 }
 0x867   : > { %vm3011_vm5 = vcmp.gt.f32.partialorder %v3003_v18, 0.0  ;;  %v3019_v52 = vmul.f32 0.2, %v3003_v18 }
 0x868   : > { %v2979_v30 = vpop.f32.mrf.mxu3 }
 0x869   : > { %v3027_v10 = vsel %vm3011_vm5, %v3003_v18, %v3019_v52  ;;  %v2980_v21 = vadd.f32 %v2979_v30, %v4411_v44 }
 0x86a   : > { %v3034_v27 = vpack.c.bf16 %v3027_v10, %v3026_v17 }
 0x86b   : > { %v2996_v59 = vmul.f32 %v5262_v39, %v2980_v21 }
 0x86c   : > { %v2719_v5 = vpop.f32.mrf.mxu1  ;;  %3797 = vmatmul.msk.bf16.vlgmr.msra.gmra.mxu0 %vm909_vm8, %v3034_v27 }
 0x86d   : > { %v2730_v29 = vmul.f32 %v5523_v60, %v2719_v5  ;;  %v3004_v19 = vadd.f32 %v5269_v23, %v2996_v59 }
 0x86f   : > { %v2738_v61 = vadd.f32 %v5537_v55, %v2730_v29  ;;  %v3020_v6 = vmul.f32 0.2, %v3004_v19  ;;  %vm3012_vm7 = vcmp.gt.f32.partialorder %v3004_v19, 0.0 }
 0x870   : > { %v2981_v63 = vpop.f32.mrf.mxu3 }
 0x871   : > { %vm2746_vm6 = vcmp.gt.f32.partialorder %v2738_v61, 0.0  ;;  %v2754_v31 = vmul.f32 0.2, %v2738_v61  ;;  %v2982_v45 = vadd.f32 %v2981_v63, %v4429_v32  ;;  %v3028_v17 = vsel %vm3012_vm7, %v3004_v19, %v3020_v6 }
 0x873   : > { %v5586_v34 = vsel %vm2746_vm6, %v2738_v61, %v2754_v31  ;;  %v2997_v20 = vmul.f32 %v5262_v39, %v2982_v45 }
 0x874   : > { %v2770_v15 = vmax.f32 %v5414_v2, %v5586_v34 }
 0x875   : > { %v3005_v58 = vadd.f32 %v5269_v23, %v2997_v20 }
 0x877   : > { %vm3013_vm9 = vcmp.gt.f32.partialorder %v3005_v58, 0.0  ;;  %v3021_v18 = vmul.f32 0.2, %v3005_v58 }
 0x878   : > { %v2984_v52 = vpop.f32.mrf.mxu3 }
 0x879   : > { %v2985_v30 = vadd.f32 %v2984_v52, %v4439_v46  ;;  %v3029_v10 = vsel %vm3013_vm9, %v3005_v58, %v3021_v18  ;;  %v5600_v58 = vpop.f32.mrf.mxu1 }
 0x87a   : > { %v3035_v21 = vpack.c.bf16 %v3029_v10, %v3028_v17 }
 0x87b   : > { %v2998_v27 = vmul.f32 %v5262_v39, %v2985_v30 }
 0x87c   : > { %3798 = vmatmul.msk.bf16.gmra.mxu0 %vm909_vm8, %v3035_v21 }
 0x87d   : > { %v3006_v59 = vadd.f32 %v5269_v23, %v2998_v27 }
 0x87f   : > { %v3022_v63 = vmul.f32 0.2, %v3006_v59  ;;  %vm3014_vm10 = vcmp.gt.f32.partialorder %v3006_v59, 0.0 }
 0x880   : > { %v2986_v5 = vpop.f32.mrf.mxu3 }
 0x881   : > { %v2987_v29 = vadd.f32 %v2986_v5, %v4445_v14  ;;  %v3030_v19 = vsel %vm3014_vm10, %v3006_v59, %v3022_v63 }
 0x883   : > { %v2999_v61 = vmul.f32 %v5262_v39, %v2987_v29 }
 0x885   : > { %v3007_v31 = vadd.f32 %v5269_v23, %v2999_v61 }
 0x887   : > { %vm3015_vm11 = vcmp.gt.f32.partialorder %v3007_v31, 0.0  ;;  %v3023_v45 = vmul.f32 0.2, %v3007_v31 }
 0x889   : > { %v3031_v20 = vsel %vm3015_vm11, %v3007_v31, %v3023_v45 }
 0x88a   : > { %v3036_v6 = vpack.c.bf16 %v3031_v20, %v3030_v19 }
 0x88c   : > { %3799 = vmatmul.msk.bf16.gmra.mxu0 %vm909_vm8, %v3036_v6 }
 0x8b1   : > { %v3198_v18 = vpop.xlane.xlu1 %3197 }
 0x8b2   : > { %v3206_v52 = vsub.f32 0.0, %v3198_v18  ;;  %v3272_v30 = vpop.f32.mrf.mxu1 }
 0x8b3   : > { %v3296_v21 = vsub.f32 %v3272_v30, %v5246_v8 }
 0x8b4   : > { %vm3214_vm12 = vcmp.eq.f32.partialorder %v4171_v57, %v3206_v52 }
 0x8b5   : > { %v3808_v17 = vsel %vm3214_vm12, 1.0, %v5784_v40 }
 0x8b6   : > { %3816 = vmatmul.msk.f32.gmra.mxu1 %vm634_vm1, %v3808_v17 }
 0x8ba   : > { %v3275_v10 = vpop.f32.mrf.mxu1 }
 0x8bb   : > { %v3297_v27 = vsub.f32 %v3275_v10, %v5250_v7 }
 0x8bd   : > { %v3304_v5 = vpack.c.bf16 %v3297_v27, %v3296_v21 }
 0x8bf   : > { %3817 = vmatmul.msk.bf16.vlgmr.msra.gmra.mxu2 %vm409_vm0, %v3304_v5 }
 0x8c2   : > { %v3278_v59 = vpop.f32.mrf.mxu1 }
 0x8c3   : > { %v3298_v61 = vsub.f32 %v3278_v59, %v5276_v43 }
 0x8ca   : > { %v3281_v29 = vpop.f32.mrf.mxu1 }
 0x8cb   : > { %v3299_v63 = vsub.f32 %v3281_v29, %v5280_v26 }
 0x8cd   : > { %v3305_v31 = vpack.c.bf16 %v3299_v63, %v3298_v61 }
 0x8cf   : > { %3818 = vmatmul.msk.bf16.gmra.mxu2 %vm409_vm0, %v3305_v31 }
 0x8d1   : > { %v2989_v57 = vpop.f32.mrf.mxu3 }
 0x8d2   : > { %v2990_v40 = vadd.f32 %v2989_v57, %v4476_v25  ;;  %v3284_v45 = vpop.f32.mrf.mxu1 }
 0x8d3   : > { %v3300_v18 = vsub.f32 %v3284_v45, %v5292_v11 }
 0x8d4   : > { %v3000_v8 = vmul.f32 %v5262_v39, %v2990_v40 }
 0x8d6   : > { %v3008_v7 = vadd.f32 %v5269_v23, %v3000_v8 }
 0x8d8   : > { %v3024_v30 = vmul.f32 0.2, %v3008_v7  ;;  %vm3016_vm1 = vcmp.gt.f32.partialorder %v3008_v7, 0.0 }
 0x8d9   : > { %v2991_v19 = vpop.f32.mrf.mxu3 }
 0x8da   : > { %v2992_v20 = vadd.f32 %v2991_v19, %v4491_v35  ;;  %v3287_v6 = vpop.f32.mrf.mxu1  ;;  %v3032_v21 = vsel %vm3016_vm1, %v3008_v7, %v3024_v30 }
 0x8db   : > { %v3301_v43 = vsub.f32 %v3287_v6, %v5296_v33 }
 0x8dc   : > { %v3001_v26 = vmul.f32 %v5262_v39, %v2992_v20 }
 0x8dd   : > { %v3306_v52 = vpack.c.bf16 %v3301_v43, %v3300_v18 }
 0x8de   : > { %v3009_v17 = vadd.f32 %v5269_v23, %v3001_v26 }
 0x8df   : > { %3819 = vmatmul.msk.bf16.gmra.mxu2 %vm409_vm0, %v3306_v52 }
 0x8e0   : > { %vm3017_vm13 = vcmp.gt.f32.partialorder %v3009_v17, 0.0  ;;  %v3025_v10 = vmul.f32 0.2, %v3009_v17 }
 0x8e2   : > { %v3033_v27 = vsel %vm3017_vm13, %v3009_v17, %v3025_v10  ;;  %v3290_v59 = vpop.f32.mrf.mxu1 }
 0x8e3   : > { %v3037_v5 = vpack.c.bf16 %v3033_v27, %v3032_v21  ;;  %v3302_v33 = vsub.f32 %v3290_v59, %v5354_v22 }
 0x8e5   : > { %3800 = vmatmul.msk.bf16.gmra.mxu0 %vm909_vm8, %v3037_v5 }
 0x933   : > { %v3293_v11 = vpop.f32.mrf.mxu1 }
 0x934   : > { %v3303_v29 = vsub.f32 %v3293_v11, %v5358_v4 }
 0x936   : > { %v3307_v61 = vpack.c.bf16 %v3303_v29, %v3302_v33 }
 0x938   : > { %3820 = vmatmul.msk.bf16.gmra.mxu2 %vm409_vm0, %v3307_v61 }
 0x942   : > { %v3329_v63 = vpop.f32.mrf.mxu2 }
 0x943   : > { %v3330_v31 = vadd.f32 %v3329_v63, %v4364_v28 }
 0x945   : > { %v3349_v57 = vmul.f32 %v5262_v39, %v3330_v31 }
 0x947   : > { %v3357_v45 = vadd.f32 %v5269_v23, %v3349_v57 }
 0x949   : > { %v3373_v7 = vmul.f32 0.2, %v3357_v45  ;;  %vm3365_vm14 = vcmp.gt.f32.partialorder %v3357_v45, 0.0 }
 0x94a   : > { %v3331_v40 = vpop.f32.mrf.mxu2 }
 0x94b   : > { %v3332_v8 = vadd.f32 %v3331_v40, %v4392_v47  ;;  %v3381_v6 = vsel %vm3365_vm14, %v3357_v45, %v3373_v7  ;;  %v3903_v47 = vld [vmem:[%s5768_s4] ss:$0 sm:$0xff] }
 0x94d   : > { %v3350_v19 = vmul.f32 %v5262_v39, %v3332_v8 }
 0x94f   : > { %v3358_v22 = vadd.f32 %v5269_v23, %v3350_v19  ;;  %v3904_v23 = vld [vmem:[%s5769_s5] ss:$0 sm:$0xff] }
 0x951   : > { %vm3366_vm15 = vcmp.gt.f32.partialorder %v3358_v22, 0.0  ;;  %v3374_v4 = vmul.f32 0.2, %v3358_v22 }
 0x952   : > { %v3334_v20 = vpop.f32.mrf.mxu2 }
 0x953   : > { %v3382_v18 = vsel %vm3366_vm15, %v3358_v22, %v3374_v4  ;;  %v3335_v28 = vadd.f32 %v3334_v20, %v4411_v44  ;;  %v3059_v20 = vpop.f32.mrf.mxu0 }
 0x954   : > { %v3389_v43 = vpack.c.bf16 %v3382_v18, %v3381_v6 }
 0x955   : > { %v3351_v26 = vmul.f32 %v3903_v47, %v3335_v28 }
 0x956   : > { %3821 = vmatmul.msk.bf16.vlgmr.msra.gmra.mxu3 %vm909_vm8, %v3389_v43 }
 0x957   : > { %v3359_v52 = vadd.f32 %v3904_v23, %v3351_v26 }
 0x959   : > { %v3375_v10 = vmul.f32 0.2, %v3359_v52  ;;  %vm3367_vm0 = vcmp.gt.f32.partialorder %v3359_v52, 0.0 }
 0x95a   : > { %v3336_v39 = vpop.f32.mrf.mxu2 }
 0x95b   : > { %v3337_v30 = vadd.f32 %v3336_v39, %v4429_v32  ;;  %v3383_v59 = vsel %vm3367_vm0, %v3359_v52, %v3375_v10 }
 0x95d   : > { %v3352_v17 = vmul.f32 %v3903_v47, %v3337_v30 }
 0x95f   : > { %v3360_v21 = vadd.f32 %v3904_v23, %v3352_v17  ;;  %v3061_v17 = vpop.f32.mrf.mxu0 }
 0x961   : > { %vm3368_vm2 = vcmp.gt.f32.partialorder %v3360_v21, 0.0  ;;  %v3376_v44 = vmul.f32 0.2, %v3360_v21 }
 0x962   : > { %v3339_v27 = vpop.f32.mrf.mxu2 }
 0x963   : > { %v3340_v5 = vadd.f32 %v3339_v27, %v4439_v46  ;;  %v3384_v11 = vsel %vm3368_vm2, %v3360_v21, %v3376_v44 }
 0x964   : > { %v3390_v33 = vpack.c.bf16 %v3384_v11, %v3383_v59 }
 0x965   : > { %v3353_v29 = vmul.f32 %v3903_v47, %v3340_v5 }
 0x966   : > { %3822 = vmatmul.msk.bf16.gmra.mxu3 %vm909_vm8, %v3390_v33 }
 0x967   : > { %v3361_v63 = vadd.f32 %v3904_v23, %v3353_v29  ;;  %v3064_v44 = vpop.f32.mrf.mxu0 }
 0x969   : > { %v3377_v57 = vmul.f32 0.2, %v3361_v63  ;;  %vm3369_vm3 = vcmp.gt.f32.partialorder %v3361_v63, 0.0 }
 0x96a   : > { %v3341_v61 = vpop.f32.mrf.mxu2 }
 0x96b   : > { %v3342_v31 = vadd.f32 %v3341_v61, %v4445_v14  ;;  %v3385_v8 = vsel %vm3369_vm3, %v3361_v63, %v3377_v57  ;;  %v3081_v63 = vmul.f32 %v5523_v60, %v3064_v44 }
 0x96d   : > { %v3354_v32 = vmul.f32 %v3903_v47, %v3342_v31  ;;  %v3089_v24 = vadd.f32 %v5537_v55, %v3081_v63  ;;  %v2729_v63 = vmul.f32 %v5523_v60, %v5574_v49 }
 0x96f   : > { %v3362_v40 = vadd.f32 %v3904_v23, %v3354_v32  ;;  %v3066_v32 = vpop.f32.mrf.mxu0  ;;  %vm3097_vm12 = vcmp.gt.f32.partialorder %v3089_v24, 0.0 }
 0x971   : > { %vm3370_vm4 = vcmp.gt.f32.partialorder %v3362_v40, 0.0  ;;  %v3378_v45 = vmul.f32 0.2, %v3362_v40 }
 0x973   : > { %v3386_v19 = vsel %vm3370_vm4, %v3362_v40, %v3378_v45 }
 0x974   : > { %v3391_v7 = vpack.c.bf16 %v3386_v19, %v3385_v8 }
 0x976   : > { %3823 = vmatmul.msk.bf16.gmra.mxu3 %vm909_vm8, %v3391_v7  ;;  %v3105_v7 = vmul.f32 0.2, %v3089_v24 }
 0x9bb   : > { %v3344_v46 = vpop.f32.mrf.mxu2 }
 0x9bc   : > { %v3345_v22 = vadd.f32 %v3344_v46, %v4476_v25  ;;  %v3079_v25 = vmul.f32 %v5523_v60, %v3059_v20  ;;  %v3082_v46 = vmul.f32 %v5523_v60, %v3066_v32 }
 0x9be   : > { %v3355_v4 = vmul.f32 %v3903_v47, %v3345_v22  ;;  %v3087_v21 = vadd.f32 %v5537_v55, %v3079_v25 }
 0x9c0   : > { %v3363_v18 = vadd.f32 %v3904_v23, %v3355_v4  ;;  %v3103_v27 = vmul.f32 0.2, %v3087_v21  ;;  %vm3095_vm7 = vcmp.gt.f32.partialorder %v3087_v21, 0.0 }
 0x9c2   : > { %v3379_v43 = vmul.f32 0.2, %v3363_v18  ;;  %vm3371_vm5 = vcmp.gt.f32.partialorder %v3363_v18, 0.0  ;;  %v3111_v5 = vsel %vm3095_vm7, %v3087_v21, %v3103_v27 }
 0x9c3   : > { %v3346_v6 = vpop.f32.mrf.mxu2  ;;  %v3119_v29 = vmax.f32 %v2764_v62, %v3111_v5 }
 0x9c4   : > { %v3347_v14 = vadd.f32 %v3346_v6, %v4491_v35  ;;  %v3387_v52 = vsel %vm3371_vm5, %v3363_v18, %v3379_v43  ;;  %v3080_v35 = vmul.f32 %v5523_v60, %v3061_v17  ;;  %v3069_v18 = vpop.f32.mrf.mxu0 }
 0x9c5   : > { %v3083_v25 = vmul.f32 %v5523_v60, %v3069_v18 }
 0x9c6   : > { %v3356_v28 = vmul.f32 %v3903_v47, %v3347_v14  ;;  %v3088_v59 = vadd.f32 %v5537_v55, %v3080_v35  ;;  %v3113_v14 = vsel %vm3097_vm12, %v3089_v24, %v3105_v7 }
 0x9c7   : > { %v3121_v17 = vmax.f32 %v2766_v9, %v3113_v14  ;;  %v3091_v9 = vadd.f32 %v5537_v55, %v3083_v25 }
 0x9c8   : > { %v3364_v26 = vadd.f32 %v3904_v23, %v3356_v28  ;;  %v3104_v61 = vmul.f32 0.2, %v3088_v59  ;;  %vm3096_vm10 = vcmp.gt.f32.partialorder %v3088_v59, 0.0  ;;  %v3090_v28 = vadd.f32 %v5537_v55, %v3082_v46 }
 0x9c9   : > { %vm3099_vm3 = vcmp.gt.f32.partialorder %v3091_v9, 0.0 }
 0x9ca   : > { %vm3372_vm6 = vcmp.gt.f32.partialorder %v3364_v26, 0.0  ;;  %v3380_v39 = vmul.f32 0.2, %v3364_v26  ;;  %v3112_v16 = vsel %vm3096_vm10, %v3088_v59, %v3104_v61  ;;  %vm3098_vm13 = vcmp.gt.f32.partialorder %v3090_v28, 0.0 }
 0x9cb   : > { %v3120_v19 = vmax.f32 %v2765_v3, %v3112_v16  ;;  %v1309_v3 = vmul.f32 %v5523_v60, %v5797_v0 }
 0x9cc   : > { %v3388_v30 = vsel %vm3372_vm6, %v3364_v26, %v3380_v39  ;;  %v5796_v26 = vld [vmem:[#allocation4_spill] sm:$0xff]  ;;  %v3071_v61 = vpop.f32.mrf.mxu0 }
 0x9cd   : > { %v3392_v10 = vpack.c.bf16 %v3388_v30, %v3387_v52  ;;  %v959_v1 = vmul.f32 %v5523_v60, %v5796_v26  ;;  %v5798_v52 = vld [vmem:[#allocation11_spill] sm:$0xff]  ;;  %v1317_v27 = vadd.f32 %v5537_v55, %v1309_v3 }
 0x9ce   : > { %v1664_v30 = vmul.f32 %v5523_v60, %v5798_v52 }
 0x9cf   : > { %3824 = vmatmul.msk.bf16.gmra.mxu3 %vm909_vm8, %v3392_v10  ;;  %v3106_v10 = vmul.f32 0.2, %v3090_v28  ;;  %v970_v44 = vadd.f32 %v5537_v55, %v959_v1  ;;  %vm1325_vm0 = vcmp.gt.f32.partialorder %v1317_v27, 0.0 }
 0x9d0   : > { %v1672_v59 = vadd.f32 %v5537_v55, %v1664_v30 }
 0x9d1   : > { %v3114_v51 = vsel %vm3098_vm13, %v3090_v28, %v3106_v10  ;;  %vm978_vm14 = vcmp.gt.f32.partialorder %v970_v44, 0.0 }
 0x9d2   : > { %vm1680_vm2 = vcmp.gt.f32.partialorder %v1672_v59, 0.0  ;;  %v1688_v32 = vmul.f32 0.2, %v1672_v59  ;;  %v3122_v38 = vmax.f32 %v2767_v48, %v3114_v51 }
 0x9d4   : > { %v1696_v36 = vsel %vm1680_vm2, %v1672_v59, %v1688_v32  ;;  %v2731_v32 = vmul.f32 %v5523_v60, %v5600_v58 }
 0x9d9   : > { %v3414_v47 = vpop.f32.mrf.mxu3 }
 0x9da   : > { %v3434_v23 = vmul.f32 %v5523_v60, %v3414_v47 }
 0x9dc   : > { %v3442_v11 = vadd.f32 %v5537_v55, %v3434_v23  ;;  %v2019_v23 = vmul.f32 %v5523_v60, %v5209_v54 }
 0x9de   : > { %vm3450_vm9 = vcmp.gt.f32.partialorder %v3442_v11, 0.0  ;;  %v3458_v33 = vmul.f32 0.2, %v3442_v11  ;;  %v2027_v54 = vadd.f32 %v5537_v55, %v2019_v23 }
 0x9e0   : > { %v3466_v31 = vsel %vm3450_vm9, %v3442_v11, %v3458_v33  ;;  %v986_v33 = vmul.f32 0.2, %v970_v44  ;;  %vm2035_vm4 = vcmp.gt.f32.partialorder %v2027_v54, 0.0 }
 0x9e1   : > { %v3474_v57 = vmax.f32 %v3119_v29, %v3466_v31  ;;  %v3416_v40 = vpop.f32.mrf.mxu3  ;;  %v1333_v29 = vmul.f32 0.2, %v1317_v27 }
 0x9e2   : > { %v3435_v45 = vmul.f32 %v5523_v60, %v3416_v40  ;;  %v3107_v40 = vmul.f32 0.2, %v3091_v9  ;;  %v994_v46 = vsel %vm978_vm14, %v970_v44, %v986_v33 }
 0x9e3   : > { %3482 = vst.msk [vmem:[%s5660_s25] sm:$0xff] %vm909_vm8, %v3474_v57  ;;  %v2382_v57 = vadd.f32 %v5537_v55, %v2374_v53  ;;  %v1341_v49 = vsel %vm1325_vm0, %v1317_v27, %v1333_v29  ;;  %v1666_v53 = vmul.f32 %v5523_v60, %v5045_v12 }
 0x9e4   : > { %v3443_v62 = vadd.f32 %v5537_v55, %v3435_v45  ;;  %v3084_v45 = vmul.f32 %v5523_v60, %v3071_v61  ;;  %v3115_v48 = vsel %vm3099_vm3, %v3091_v9, %v3107_v40  ;;  %v2376_v61 = vmul.f32 %v5523_v60, %v5426_v37 }
 0x9e5   : > { %v2398_v41 = vmul.f32 0.2, %v2382_v57  ;;  %vm2390_vm5 = vcmp.gt.f32.partialorder %v2382_v57, 0.0  ;;  %v1674_v29 = vadd.f32 %v5537_v55, %v1666_v53 }
 0x9e6   : > { %vm3451_vm11 = vcmp.gt.f32.partialorder %v3443_v62, 0.0  ;;  %v3459_v8 = vmul.f32 0.2, %v3443_v62 }
 0x9e7   : > { %v2406_v26 = vsel %vm2390_vm5, %v2382_v57, %v2398_v41  ;;  %v2384_v57 = vadd.f32 %v5537_v55, %v2376_v61 }
 0x9e8   : > { %v3467_v22 = vsel %vm3451_vm11, %v3443_v62, %v3459_v8  ;;  %v2043_v8 = vmul.f32 0.2, %v2027_v54 }
 0x9e9   : > { %v3475_v4 = vmax.f32 %v3120_v19, %v3467_v22  ;;  %v3419_v20 = vpop.f32.mrf.mxu3  ;;  %v2737_v19 = vadd.f32 %v5537_v55, %v2729_v63  ;;  %v3092_v22 = vadd.f32 %v5537_v55, %v3084_v45 }
 0x9ea   : > { %v3436_v6 = vmul.f32 %v5523_v60, %v3419_v20  ;;  %v1349_v20 = vmax.f32 %v994_v46, %v1341_v49 }
 0x9eb   : > { %3483 = vst.msk [vmem:[%s5660_s25 + $0x8] sm:$0xff] %vm909_vm8, %v3475_v4  ;;  %v2753_v18 = vmul.f32 0.2, %v2737_v19  ;;  %vm2745_vm7 = vcmp.gt.f32.partialorder %v2737_v19, 0.0  ;;  %v3108_v1 = vmul.f32 0.2, %v3092_v22 }
 0x9ec   : > { %v3444_v43 = vadd.f32 %v5537_v55, %v3436_v6  ;;  %v2051_v6 = vsel %vm2035_vm4, %v2027_v54, %v2043_v8  ;;  %v1704_v28 = vmax.f32 %v1349_v20, %v1696_v36  ;;  %vm3100_vm9 = vcmp.gt.f32.partialorder %v3092_v22, 0.0 }
 0x9ed   : > { %v2761_v30 = vsel %vm2745_vm7, %v2737_v19, %v2753_v18  ;;  %v3116_v25 = vsel %vm3100_vm9, %v3092_v22, %v3108_v1  ;;  %v2400_v19 = vmul.f32 0.2, %v2384_v57 }
 0x9ee   : > { %vm3452_vm1 = vcmp.gt.f32.partialorder %v3444_v43, 0.0  ;;  %v3460_v39 = vmul.f32 0.2, %v3444_v43  ;;  %v2059_v3 = vmax.f32 %v1704_v28, %v2051_v6 }
 0x9f0   : > { %v3468_v21 = vsel %vm3452_vm1, %v3444_v43, %v3460_v39  ;;  %v3123_v43 = vmax.f32 %v2768_v56, %v3115_v48  ;;  %v2414_v10 = vmax.f32 %v2059_v3, %v2406_v26  ;;  %vm1682_vm1 = vcmp.gt.f32.partialorder %v1674_v29, 0.0 }
 0x9f1   : > { %v3476_v35 = vmax.f32 %v3121_v17, %v3468_v21  ;;  %v3421_v47 = vpop.f32.mrf.mxu3 }
 0x9f2   : > { %v3437_v5 = vmul.f32 %v5523_v60, %v3421_v47  ;;  %v2769_v44 = vmax.f32 %v2414_v10, %v2761_v30  ;;  %v5799_v47 = vld [vmem:[#allocation9_spill] sm:$0xff] }
 0x9f3   : > { %3484 = vst.msk [vmem:[%s5660_s25 + $0x10] sm:$0xff] %vm909_vm8, %v3476_v35  ;;  %v3074_v35 = vpop.f32.mrf.mxu0  ;;  %v1311_v23 = vmul.f32 %v5523_v60, %v5799_v47 }
 0x9f4   : > { %v3445_v11 = vadd.f32 %v5537_v55, %v3437_v5  ;;  %v3124_v42 = vmax.f32 %v2769_v44, %v3116_v25  ;;  %v5800_v5 = vld [vmem:[#allocation5_spill] sm:$0xff]  ;;  %v3085_v51 = vmul.f32 %v5523_v60, %v3074_v35 }
 0x9f5   : > { %v961_v59 = vmul.f32 %v5523_v60, %v5800_v5  ;;  %v1319_v9 = vadd.f32 %v5537_v55, %v1311_v23 }
 0x9f6   : > { %vm3453_vm15 = vcmp.gt.f32.partialorder %v3445_v11, 0.0  ;;  %v3461_v31 = vmul.f32 0.2, %v3445_v11  ;;  %v3093_v54 = vadd.f32 %v5537_v55, %v3085_v51 }
 0x9f7   : > { %v972_v33 = vadd.f32 %v5537_v55, %v961_v59  ;;  %vm1327_vm12 = vcmp.gt.f32.partialorder %v1319_v9, 0.0 }
 0x9f8   : > { %v3469_v16 = vsel %vm3453_vm15, %v3445_v11, %v3461_v31  ;;  %v2021_v11 = vmul.f32 %v5523_v60, %v5228_v50  ;;  %v1335_v31 = vmul.f32 0.2, %v1319_v9  ;;  %v1690_v50 = vmul.f32 0.2, %v1674_v29 }
 0x9f9   : > { %v3477_v24 = vmax.f32 %v3122_v38, %v3469_v16  ;;  %v3424_v62 = vpop.f32.mrf.mxu3  ;;  %vm980_vm11 = vcmp.gt.f32.partialorder %v972_v33, 0.0  ;;  %v988_v38 = vmul.f32 0.2, %v972_v33  ;;  %v3109_v40 = vmul.f32 0.2, %v3093_v54 }
 0x9fa   : > { %v3438_v7 = vmul.f32 %v5523_v60, %v3424_v62  ;;  %v2029_v12 = vadd.f32 %v5537_v55, %v2021_v11  ;;  %vm3101_vm13 = vcmp.gt.f32.partialorder %v3093_v54, 0.0  ;;  %v1343_v16 = vsel %vm1327_vm12, %v1319_v9, %v1335_v31 }
 0x9fb   : > { %3485 = vst.msk [vmem:[%s5660_s25 + $0x18] sm:$0xff] %vm909_vm8, %v3477_v24  ;;  %v3076_v63 = vpop.f32.mrf.mxu0  ;;  %v2739_v62 = vadd.f32 %v5537_v55, %v2731_v32  ;;  %v996_v8 = vsel %vm980_vm11, %v972_v33, %v988_v38  ;;  %v1698_v58 = vsel %vm1682_vm1, %v1674_v29, %v1690_v50  ;;  %vm2392_vm15 = vcmp.gt.f32.partialorder %v2384_v57, 0.0 }
 0x9fc   : > { %v3446_v4 = vadd.f32 %v5537_v55, %v3438_v7  ;;  %v3086_v45 = vmul.f32 %v5523_v60, %v3076_v63  ;;  %v2045_v24 = vmul.f32 0.2, %v2029_v12  ;;  %vm2037_vm14 = vcmp.gt.f32.partialorder %v2029_v12, 0.0 }
 0x9fd   : > { %v3117_v7 = vsel %vm3101_vm13, %v3093_v54, %v3109_v40  ;;  %v1351_v41 = vmax.f32 %v996_v8, %v1343_v16  ;;  %v2755_v22 = vmul.f32 0.2, %v2739_v62  ;;  %vm2747_vm2 = vcmp.gt.f32.partialorder %v2739_v62, 0.0 }
 0x9fe   : > { %vm3454_vm6 = vcmp.gt.f32.partialorder %v3446_v4, 0.0  ;;  %v3462_v14 = vmul.f32 0.2, %v3446_v4  ;;  %v3094_v46 = vadd.f32 %v5537_v55, %v3086_v45  ;;  %v2053_v48 = vsel %vm2037_vm14, %v2029_v12, %v2045_v24 }
 0x9ff   : > { %v1706_v20 = vmax.f32 %v1351_v41, %v1698_v58  ;;  %v3125_v6 = vmax.f32 %v2770_v15, %v3117_v7  ;;  %v2408_v18 = vsel %vm2392_vm15, %v2384_v57, %v2400_v19 }
 0xa00   : > { %v3470_v0 = vsel %vm3454_vm6, %v3446_v4, %v3462_v14  ;;  %v3110_v14 = vmul.f32 0.2, %v3094_v46  ;;  %vm3102_vm3 = vcmp.gt.f32.partialorder %v3094_v46, 0.0 }
 0xa01   : > { %v3478_v39 = vmax.f32 %v3123_v43, %v3470_v0  ;;  %v3426_v52 = vpop.f32.mrf.mxu3  ;;  %v2061_v43 = vmax.f32 %v1706_v20, %v2053_v48  ;;  %v2763_v0 = vsel %vm2747_vm2, %v2739_v62, %v2755_v22 }
 0xa02   : > { %v3439_v17 = vmul.f32 %v5523_v60, %v3426_v52  ;;  %v3118_v52 = vsel %vm3102_vm3, %v3094_v46, %v3110_v14 }
 0xa03   : > { %3486 = vst.msk [vmem:[%s5660_s25 + $0x20] sm:$0xff] %vm909_vm8, %v3478_v39  ;;  %v2416_v39 = vmax.f32 %v2061_v43, %v2408_v18 }
 0xa04   : > { %v3447_v21 = vadd.f32 %v5537_v55, %v3439_v17 }
 0xa05   : > { %v2771_v17 = vmax.f32 %v2416_v39, %v2763_v0 }
 0xa06   : > { %vm3455_vm10 = vcmp.gt.f32.partialorder %v3447_v21, 0.0  ;;  %v3463_v13 = vmul.f32 0.2, %v3447_v21 }
 0xa07   : > { %v3126_v34 = vmax.f32 %v2771_v17, %v3118_v52 }
 0xa08   : > { %v3471_v56 = vsel %vm3455_vm10, %v3447_v21, %v3463_v13 }
 0xa09   : > { %v3479_v27 = vmax.f32 %v3124_v42, %v3471_v56 }
 0xa0b   : > { %3487 = vst.msk [vmem:[%s5660_s25 + $0x28] sm:$0xff] %vm909_vm8, %v3479_v27 }
 0xa52   : > { %v3429_v37 = vpop.f32.mrf.mxu3 }
 0xa53   : > { %v3440_v49 = vmul.f32 %v5523_v60, %v3429_v37 }
 0xa55   : > { %v3448_v36 = vadd.f32 %v5537_v55, %v3440_v49 }
 0xa57   : > { %vm3456_vm0 = vcmp.gt.f32.partialorder %v3448_v36, 0.0  ;;  %v3464_v4 = vmul.f32 0.2, %v3448_v36 }
 0xa59   : > { %v3472_v28 = vsel %vm3456_vm0, %v3448_v36, %v3464_v4 }
 0xa5a   : > { %v3480_v26 = vmax.f32 %v3125_v6, %v3472_v28  ;;  %v3431_v1 = vpop.f32.mrf.mxu3 }
 0xa5b   : > { %v3441_v3 = vmul.f32 %v5523_v60, %v3431_v1 }
 0xa5c   : > { %3488 = vst.msk [vmem:[%s5660_s25 + $0x30] sm:$0xff] %vm909_vm8, %v3480_v26 }
 0xa5d   : > { %v3449_v30 = vadd.f32 %v5537_v55, %v3441_v3 }
 0xa5f   : > { %vm3457_vm4 = vcmp.gt.f32.partialorder %v3449_v30, 0.0  ;;  %v3465_v2 = vmul.f32 0.2, %v3449_v30 }
 0xa61   : > { %v3473_v15 = vsel %vm3457_vm4, %v3449_v30, %v3465_v2 }
 0xa62   : > { %v3481_v10 = vmax.f32 %v3126_v34, %v3473_v15 }
 0xa64   : > { %3489 = vst.msk [vmem:[%s5660_s25 + $0x38] sm:$0xff] %vm909_vm8, %v3481_v10 }
 0xa65 PF: > { %s19_s11 = sadd.s32 1, %s3927_s11   ;;  %s5801_s30 = smov %s3923_s10 }
 0xa66   : > { %p16_p5 = scmp.ge.s32.totalorder %s19_s11, 4   ;;  %s5802_s10 = smov %s5804_s12 }
 0xa68   :  { %18 = sbr.rel (!%p16_p5) target bundleno = 2 (0x2), region = 89 }

</bundles_post_ra>
